<compile_context>
chip_gen: v7x
topology: tpu7x:2x2x1
jax: 0.10.0
libtpu: 0.0.40
codegen_flags: <defaults>
</compile_context>

<pallas_src>
import functools

import jax
import jax.numpy as jnp
from jax import lax
from jax.experimental import pallas as pl
from jax.experimental.pallas import tpu as pltpu

LANE = 128  # TPU lane width: stored feature axes are padded to a multiple of this.


def _round_up(x, m):
    return (x + m - 1) // m * m


# ---------------------------------------------------------------------------
# Fused Pallas kernel: conv2 (4 pooling taps) + maxpool + bias + ReLU
#                      + fc1 + ReLU + fc2 (+ masked softmax), per image group.
# ---------------------------------------------------------------------------
def _lenet_tail_kernel(taps_ref, w2_ref, b2_ref, w1_ref, b1_ref, w3_ref, b3_ref,
                       out_ref, fc1in_ref, *, g, c2p, n_pos, num_classes, softmax):
    rows = n_pos * g                                   # pooled rows for this group

    # conv2 over the 4 pooling taps as ONE MXU pass (taps stacked along rows).
    z = jnp.dot(taps_ref[0], w2_ref[...], preferred_element_type=jnp.float32)
    z = jnp.maximum(jnp.maximum(z[0:rows], z[rows:2 * rows]),
                    jnp.maximum(z[2 * rows:3 * rows], z[3 * rows:4 * rows]))
    # bias-add and ReLU commute with the max (same bias for all four taps).
    z = jnp.maximum(z + b2_ref[...], 0.0)              # (n_pos*g, c2p) f32, pos-major

    # Transpose-free flatten: for pooled position `pos`, the g image rows become one
    # 128-lane-aligned column block of the per-image fc1 input (whole-vreg copies).
    for pos in range(n_pos):
        fc1in_ref[:, pos * c2p:(pos + 1) * c2p] = z[pos * g:(pos + 1) * g, :]

    # fc1 + ReLU + fc2 entirely in VMEM; both matmuls bf16 with f32 accumulation.
    h = jnp.dot(fc1in_ref[...].astype(w1_ref.dtype), w1_ref[...],
                preferred_element_type=jnp.float32)
    h = jnp.maximum(h + b1_ref[...], 0.0)
    logits = jnp.dot(h.astype(w3_ref.dtype), w3_ref[...],
                     preferred_element_type=jnp.float32) + b3_ref[...]

    if softmax:
        col = lax.broadcasted_iota(jnp.int32, logits.shape, 1)
        logits = jnp.where(col < num_classes, logits, -1e30)   # mask padded columns
        m = jnp.max(logits, axis=-1, keepdims=True)
        e = jnp.exp(logits - m)
        logits = e / jnp.sum(e, axis=-1, keepdims=True)

    out_ref[...] = logits.astype(out_ref.dtype)


def _fused_conv_pool_head(taps, params, *, g, n_pos, num_classes, softmax,
                          out_dtype=jnp.float32):
    ng, rows4, k = taps.shape
    w2, b2 = params['conv2_w_mat'], params['conv2_b_row']
    w1, b1 = params['fc1_w'], params['fc1_b']
    w3, b3 = params['fc2_w'], params['fc2_b']
    c2p = w2.shape[1]
    kf, hp = w1.shape
    ncp = w3.shape[1]
    assert rows4 == 4 * n_pos * g and kf == n_pos * c2p and w3.shape[0] == hp

    kernel = functools.partial(_lenet_tail_kernel, g=g, c2p=c2p, n_pos=n_pos,
                               num_classes=num_classes, softmax=softmax)
    return pl.pallas_call(
        kernel,
        out_shape=jax.ShapeDtypeStruct((ng * g, ncp), out_dtype),
        grid=(ng,),
        in_specs=[
            pl.BlockSpec((1, rows4, k), lambda i: (i, 0, 0)),   # stacked pooling taps
            pl.BlockSpec((k, c2p), lambda i: (0, 0)),           # conv2 weights (resident)
            pl.BlockSpec((1, c2p), lambda i: (0, 0)),           # conv2 bias
            pl.BlockSpec((kf, hp), lambda i: (0, 0)),           # fc1 weights (resident)
            pl.BlockSpec((1, hp), lambda i: (0, 0)),            # fc1 bias
            pl.BlockSpec((hp, ncp), lambda i: (0, 0)),          # fc2 weights (resident)
            pl.BlockSpec((1, ncp), lambda i: (0, 0)),           # fc2 bias
        ],
        out_specs=pl.BlockSpec((g, ncp), lambda i: (i, 0)),     # lane-dense output
        scratch_shapes=[pltpu.VMEM((g, kf), jnp.float32)],      # per-image fc1 input
        compiler_params=pltpu.CompilerParams(
            dimension_semantics=("parallel",),                  # image groups -> 2 TCs on v7x
            vmem_limit_bytes=40 * 1024 * 1024),                 # ~17 MB used at g=8
    )(taps, w2, b2, w1, b1, w3, b3)


# ---------------------------------------------------------------------------
# One-time parameter repacking (off the hot path)
# ---------------------------------------------------------------------------
def prepare_params(raw, *, matmul_dtype=jnp.bfloat16):
    c1_w, c1_b = raw['conv1_w'], raw['conv1_b']        # (C1,1,3,3), (C1,)
    c2_w, c2_b = raw['conv2_w'], raw['conv2_b']        # (C2,C1,3,3), (C2,)
    fc1_w, fc1_b = raw['fc1_w'], raw['fc1_b']          # (H, C2*12*12), (H,)
    fc2_w, fc2_b = raw['fc2_w'], raw['fc2_b']          # (10, H), (10,)
    c1, c2 = c1_w.shape[0], c2_w.shape[0]
    c2p = _round_up(c2, LANE)
    hid = fc1_w.shape[0]
    hp = _round_up(hid, LANE)                          # hidden padded to 128 (exact: zeros)
    ncls = fc2_w.shape[0]
    ncp = _round_up(ncls, LANE)                        # classes padded to 128 (lane-dense out)
    pooled_hw = 12                                     # 28 -> 26 -> 24 -> pool -> 12
    assert fc1_w.shape[1] == c2 * pooled_hw * pooled_hw

    # conv1 stays an XLA conv: HWIO layout, f32.
    k1 = jnp.transpose(c1_w, (2, 3, 1, 0)).astype(jnp.float32)

    # conv2 as (9*C1, C2p) matmul; feature order (ki, kj, c1) matches the tap builder.
    w2 = jnp.transpose(c2_w, (2, 3, 1, 0)).reshape(9 * c1, c2)
    w2 = jnp.pad(w2, ((0, 0), (0, c2p - c2))).astype(matmul_dtype)
    b2 = jnp.pad(c2_b, (0, c2p - c2)).astype(jnp.float32).reshape(1, c2p)

    # fc1: permute K from torch's (C,H,W) flatten to (pos=ph*12+pw, c2-padded); pad H.
    a = jnp.transpose(fc1_w.reshape(hid, c2, pooled_hw, pooled_hw), (0, 2, 3, 1))
    a = jnp.pad(a, ((0, 0), (0, 0), (0, 0), (0, c2p - c2)))
    w_fc1 = jnp.transpose(a.reshape(hid, pooled_hw * pooled_hw * c2p))
    w_fc1 = jnp.pad(w_fc1, ((0, 0), (0, hp - hid))).astype(matmul_dtype)
    b1 = jnp.pad(fc1_b, (0, hp - hid)).astype(jnp.float32).reshape(1, hp)

    # fc2: bf16, padded rows (hidden) and columns (classes) are zeros -> exact.
    w_fc2 = jnp.pad(fc2_w.T, ((0, hp - hid), (0, ncp - ncls))).astype(matmul_dtype)
    b3 = jnp.pad(fc2_b, (0, ncp - ncls)).astype(jnp.float32).reshape(1, ncp)

    return {
        'conv1_w_hwio': k1,
        'conv1_b': c1_b.astype(jnp.float32),
        'conv2_w_mat': w2,
        'conv2_b_row': b2,
        'fc1_w': w_fc1,
        'fc1_b': b1,
        'fc2_w': w_fc2,
        'fc2_b': b3,
    }


# ---------------------------------------------------------------------------
# XLA-side glue: conv1 + pooling-tap im2col rows (tap-major, pos-major, image-minor)
# ---------------------------------------------------------------------------
def _build_tap_rows(y, g, pooled_hw):
    """y: (Np, 26, 26, C1) bf16 -> (ngroups, 4*144*g, 9*C1) bf16.

    Row order inside a group: (tap, pos=ph*12+pw, image) so the kernel can (a) run all
    four taps as one matmul and (b) flatten per-image activations with vreg-aligned
    position slices."""
    npad, _, _, c1 = y.shape
    end = 2 * pooled_hw
    n_pos = pooled_hw * pooled_hw
    taps = []
    for dy in (0, 1):
        for dx in (0, 1):
            slabs = [y[:, dy + ki: dy + ki + end: 2, dx + kj: dx + kj + end: 2, :]
                     for ki in range(3) for kj in range(3)]
            p = jnp.concatenate(slabs, axis=-1)            # (Np, 12, 12, 9*C1)
            taps.append(p.reshape(npad, n_pos, 9 * c1))
    t = jnp.stack(taps, axis=0)                            # (4, Np, 144, K)
    ng = npad // g
    t = t.reshape(4, ng, g, n_pos, 9 * c1)
    t = jnp.transpose(t, (1, 0, 3, 2, 4))                  # (ng, 4, 144, g, K)
    return t.reshape(ng, 4 * n_pos * g, 9 * c1)


# ---------------------------------------------------------------------------
# Forward pass
# ---------------------------------------------------------------------------
def lenet_forward(x_nchw, params, perform_softmax=False, *,
                  images_per_block=8, num_classes=10, matmul_dtype=jnp.bfloat16):
    g = images_per_block
    assert g % 8 == 0, "images_per_block must be a multiple of 8 (sublane alignment)"
    x = jnp.transpose(x_nchw, (0, 2, 3, 1)).astype(jnp.float32)   # NCHW -> NHWC once
    # conv1 + ReLU: 1 input channel, K=9 -> MXU-hostile; left to XLA per perf review.
    y = lax.conv_general_dilated(x, params['conv1_w_hwio'], (1, 1), 'VALID',
                                 dimension_numbers=('NHWC', 'HWIO', 'NHWC'))
    y = jnp.maximum(y + params['conv1_b'], 0.0).astype(matmul_dtype)  # bf16 cast ONCE

    n = y.shape[0]
    pooled_hw = (y.shape[1] - 2) // 2                      # 26 -> 24 -> 12
    npad = _round_up(n, g)
    if npad != n:
        y = jnp.pad(y, ((0, npad - n), (0, 0), (0, 0), (0, 0)))
    taps = _build_tap_rows(y, g, pooled_hw)                # (ngroups, 4*144*g, 9*C1)

    out = _fused_conv_pool_head(taps, params, g=g, n_pos=pooled_hw * pooled_hw,
                                num_classes=num_classes, softmax=perform_softmax)
    return out[:n, :num_classes]


# ---------------------------------------------------------------------------
# Pure-JAX f32 reference (mirrors the PyTorch module exactly)
# ---------------------------------------------------------------------------
def reference_forward(x_nchw, raw, perform_softmax):
    x = jnp.transpose(x_nchw, (0, 2, 3, 1)).astype(jnp.float32)
    k1 = jnp.transpose(raw['conv1_w'], (2, 3, 1, 0))
    y = lax.conv_general_dilated(x, k1, (1, 1), 'VALID',
                                 dimension_numbers=('NHWC', 'HWIO', 'NHWC'))
    y = jnp.maximum(y + raw['conv1_b'], 0.0)
    k2 = jnp.transpose(raw['conv2_w'], (2, 3, 1, 0))
    z = lax.conv_general_dilated(y, k2, (1, 1), 'VALID',
                                 dimension_numbers=('NHWC', 'HWIO', 'NHWC'))
    z = jnp.maximum(z + raw['conv2_b'], 0.0)
    n, hh, ww, c = z.shape
    z = z.reshape(n, hh // 2, 2, ww // 2, 2, c).max(axis=(2, 4))
    flat = jnp.transpose(z, (0, 3, 1, 2)).reshape(n, -1)   # torch flatten order (C,H,W)
    h = jnp.maximum(flat @ raw['fc1_w'].T + raw['fc1_b'], 0.0)
    logits = h @ raw['fc2_w'].T + raw['fc2_b']
    return jax.nn.softmax(logits, axis=-1) if perform_softmax else logits


# ---------------------------------------------------------------------------
# Deterministic params + smoke test
# ---------------------------------------------------------------------------
if __name__ == "__main__":
    # fc1 expects 9216 = channels2 * 12 * 12  =>  channels2=64, 1x28x28 input.
    param = {'channels1': 8, 'channels2': 64, 'hidden': 32}
    batch = 16                               # 2 image groups of 8 -> 2 parallel grid steps

    key = jax.random.PRNGKey(0)
    keys = jax.random.split(key, 9)
    raw = {
        'conv1_w': 0.10 * jax.random.normal(keys[0], (param['channels1'], 1, 3, 3), jnp.float32),
        'conv1_b': 0.10 * jax.random.normal(keys[1], (param['channels1'],), jnp.float32),
        'conv2_w': 0.05 * jax.random.normal(keys[2], (param['channels2'], param['channels1'], 3, 3), jnp.float32),
        'conv2_b': 0.05 * jax.random.normal(keys[3], (param['channels2'],), jnp.float32),
        'fc1_w':   0.01 * jax.random.normal(keys[4], (param['hidden'], 9216), jnp.float32),
        'fc1_b':   0.01 * jax.random.normal(keys[5], (param['hidden'],), jnp.float32),
        'fc2_w':   0.10 * jax.random.normal(keys[6], (10, param['hidden']), jnp.float32),
        'fc2_b':   0.10 * jax.random.normal(keys[7], (10,), jnp.float32),
    }
    params = prepare_params(raw)             # one-time repack, not in the hot path
    x = jax.random.normal(keys[8], (batch, 1, 28, 28), jnp.float32)   # NCHW like PyTorch

    fwd_logits = jax.jit(functools.partial(lenet_forward, perform_softmax=False))
    fwd_probs = jax.jit(functools.partial(lenet_forward, perform_softmax=True))
    logits = fwd_logits(x, params)
    probs = fwd_probs(x, params)
    jax.block_until_ready((logits, probs))

    assert logits.shape == (batch, 10)
    assert probs.shape == (batch, 10)
    assert bool(jnp.all(jnp.isfinite(logits)))
    assert bool(jnp.allclose(jnp.sum(probs, axis=1), 1.0, atol=1e-5))

    # bf16-matmul Pallas path vs f32 XLA reference of the original PyTorch graph.
    ref_logits = reference_forward(x, raw, False)
    ref_probs = reference_forward(x, raw, True)
    assert bool(jnp.allclose(logits, ref_logits, atol=3e-2, rtol=1e-2))
    assert bool(jnp.allclose(probs, ref_probs, atol=1e-2, rtol=1e-2))
    print("KERNEL_OK")
</pallas_src>

<mosaic_0001>
module attributes {stable_mosaic.version = 11 : i64} {
  func.func @_lenet_tail_kernel(%arg0: i32, %arg1: memref<1x4608x72xbf16, #tpu.memory_space<vmem>>, %arg2: memref<72x128xbf16, #tpu.memory_space<vmem>>, %arg3: memref<1x128xf32, #tpu.memory_space<vmem>>, %arg4: memref<18432x128xbf16, #tpu.memory_space<vmem>>, %arg5: memref<1x128xf32, #tpu.memory_space<vmem>>, %arg6: memref<128x128xbf16, #tpu.memory_space<vmem>>, %arg7: memref<1x128xf32, #tpu.memory_space<vmem>>, %arg8: memref<8x128xf32, #tpu.memory_space<vmem>>, %arg9: memref<8x18432xf32, #tpu.memory_space<vmem>>) attributes {dimension_semantics = [#tpu.dimension_semantics<parallel>], iteration_bounds = array<i64: 2>, scalar_prefetch = 0 : i64, scratch_operands = 1 : i64, tpu.core_type = #tpu.core_type<tc>, window_params = [{transform_indices = @transform_0, window_bounds = array<i64: 1, 4608, 72>}, {pipeline_mode = #tpu.pipeline_mode<synchronous>, transform_indices = @transform_1, window_bounds = array<i64: 72, 128>}, {pipeline_mode = #tpu.pipeline_mode<synchronous>, transform_indices = @transform_2, window_bounds = array<i64: 1, 128>}, {pipeline_mode = #tpu.pipeline_mode<synchronous>, transform_indices = @transform_3, window_bounds = array<i64: 18432, 128>}, {pipeline_mode = #tpu.pipeline_mode<synchronous>, transform_indices = @transform_4, window_bounds = array<i64: 1, 128>}, {pipeline_mode = #tpu.pipeline_mode<synchronous>, transform_indices = @transform_5, window_bounds = array<i64: 128, 128>}, {pipeline_mode = #tpu.pipeline_mode<synchronous>, transform_indices = @transform_6, window_bounds = array<i64: 1, 128>}, {transform_indices = @transform_7, window_bounds = array<i64: 8, 128>}]} {
    %c0 = arith.constant 0 : index
    %c0_0 = arith.constant 0 : index
    %c0_1 = arith.constant 0 : index
    %0 = vector.load %arg1[%c0, %c0_0, %c0_1] : memref<1x4608x72xbf16, #tpu.memory_space<vmem>>, vector<1x4608x72xbf16>
    %1 = vector.shape_cast %0 : vector<1x4608x72xbf16> to vector<4608x72xbf16>
    %c0_2 = arith.constant 0 : index
    %c0_3 = arith.constant 0 : index
    %2 = vector.load %arg2[%c0_2, %c0_3] : memref<72x128xbf16, #tpu.memory_space<vmem>>, vector<72x128xbf16>
    %cst = arith.constant dense<0.000000e+00> : vector<4608x128xf32>
    %3 = tpu.matmul %1, %2, %cst {dimension_numbers = #tpu.dot_dimension_numbers<[1], [0], [0], [1], [0, 0, 1, 1], [], []>} : vector<4608x72xbf16>, vector<72x128xbf16>, vector<4608x128xf32> -> vector<4608x128xf32>
    %4 = vector.extract_strided_slice %3 {offsets = [0, 0], sizes = [1152, 128], strides = [1, 1]} : vector<4608x128xf32> to vector<1152x128xf32>
    %5 = vector.extract_strided_slice %3 {offsets = [1152, 0], sizes = [1152, 128], strides = [1, 1]} : vector<4608x128xf32> to vector<1152x128xf32>
    %6 = arith.maximumf %4, %5 : vector<1152x128xf32>
    %7 = vector.extract_strided_slice %3 {offsets = [2304, 0], sizes = [1152, 128], strides = [1, 1]} : vector<4608x128xf32> to vector<1152x128xf32>
    %8 = vector.extract_strided_slice %3 {offsets = [3456, 0], sizes = [1152, 128], strides = [1, 1]} : vector<4608x128xf32> to vector<1152x128xf32>
    %9 = arith.maximumf %7, %8 : vector<1152x128xf32>
    %10 = arith.maximumf %6, %9 : vector<1152x128xf32>
    %c0_4 = arith.constant 0 : index
    %c0_5 = arith.constant 0 : index
    %11 = vector.load %arg3[%c0_4, %c0_5] : memref<1x128xf32, #tpu.memory_space<vmem>>, vector<1x128xf32>
    %12 = vector.broadcast %11 : vector<1x128xf32> to vector<1152x128xf32>
    %13 = arith.addf %10, %12 : vector<1152x128xf32>
    %cst_6 = arith.constant 0.000000e+00 : f32
    %14 = vector.broadcast %cst_6 : f32 to vector<1152x128xf32>
    %15 = arith.maximumf %13, %14 : vector<1152x128xf32>
    %16 = vector.extract_strided_slice %15 {offsets = [0, 0], sizes = [8, 128], strides = [1, 1]} : vector<1152x128xf32> to vector<8x128xf32>
    %c0_7 = arith.constant 0 : index
    %c0_8 = arith.constant 0 : index
    %17 = vector.load %arg9[%c0_7, %c0_8] : memref<8x18432xf32, #tpu.memory_space<vmem>>, vector<8x128xf32>
    tpu.vector_store %arg9[%c0_7, %c0_8], %16 {strides = array<i32>} : memref<8x18432xf32, #tpu.memory_space<vmem>>, vector<8x128xf32>,
    %18 = vector.extract_strided_slice %15 {offsets = [8, 0], sizes = [8, 128], strides = [1, 1]} : vector<1152x128xf32> to vector<8x128xf32>
    %c0_9 = arith.constant 0 : index
    %c128 = arith.constant 128 : index
    %19 = vector.load %arg9[%c0_9, %c128] : memref<8x18432xf32, #tpu.memory_space<vmem>>, vector<8x128xf32>
    tpu.vector_store %arg9[%c0_9, %c128], %18 {strides = array<i32>} : memref<8x18432xf32, #tpu.memory_space<vmem>>, vector<8x128xf32>,
    %20 = vector.extract_strided_slice %15 {offsets = [16, 0], sizes = [8, 128], strides = [1, 1]} : vector<1152x128xf32> to vector<8x128xf32>
    %c0_10 = arith.constant 0 : index
    %c256 = arith.constant 256 : index
    %21 = vector.load %arg9[%c0_10, %c256] : memref<8x18432xf32, #tpu.memory_space<vmem>>, vector<8x128xf32>
    tpu.vector_store %arg9[%c0_10, %c256], %20 {strides = array<i32>} : memref<8x18432xf32, #tpu.memory_space<vmem>>, vector<8x128xf32>,
    %22 = vector.extract_strided_slice %15 {offsets = [24, 0], sizes = [8, 128], strides = [1, 1]} : vector<1152x128xf32> to vector<8x128xf32>
    %c0_11 = arith.constant 0 : index
    %c384 = arith.constant 384 : index
    %23 = vector.load %arg9[%c0_11, %c384] : memref<8x18432xf32, #tpu.memory_space<vmem>>, vector<8x128xf32>
    tpu.vector_store %arg9[%c0_11, %c384], %22 {strides = array<i32>} : memref<8x18432xf32, #tpu.memory_space<vmem>>, vector<8x128xf32>,
    %24 = vector.extract_strided_slice %15 {offsets = [32, 0], sizes = [8, 128], strides = [1, 1]} : vector<1152x128xf32> to vector<8x128xf32>
    %c0_12 = arith.constant 0 : index
    %c512 = arith.constant 512 : index
    %25 = vector.load %arg9[%c0_12, %c512] : memref<8x18432xf32, #tpu.memory_space<vmem>>, vector<8x128xf32>
    tpu.vector_store %arg9[%c0_12, %c512], %24 {strides = array<i32>} : memref<8x18432xf32, #tpu.memory_space<vmem>>, vector<8x128xf32>,
    %26 = vector.extract_strided_slice %15 {offsets = [40, 0], sizes = [8, 128], strides = [1, 1]} : vector<1152x128xf32> to vector<8x128xf32>
    %c0_13 = arith.constant 0 : index
    %c640 = arith.constant 640 : index
    %27 = vector.load %arg9[%c0_13, %c640] : memref<8x18432xf32, #tpu.memory_space<vmem>>, vector<8x128xf32>
    tpu.vector_store %arg9[%c0_13, %c640], %26 {strides = array<i32>} : memref<8x18432xf32, #tpu.memory_space<vmem>>, vector<8x128xf32>,
    %28 = vector.extract_strided_slice %15 {offsets = [48, 0], sizes = [8, 128], strides = [1, 1]} : vector<1152x128xf32> to vector<8x128xf32>
    %c0_14 = arith.constant 0 : index
    %c768 = arith.constant 768 : index
    %29 = vector.load %arg9[%c0_14, %c768] : memref<8x18432xf32, #tpu.memory_space<vmem>>, vector<8x128xf32>
    tpu.vector_store %arg9[%c0_14, %c768], %28 {strides = array<i32>} : memref<8x18432xf32, #tpu.memory_space<vmem>>, vector<8x128xf32>,
    %30 = vector.extract_strided_slice %15 {offsets = [56, 0], sizes = [8, 128], strides = [1, 1]} : vector<1152x128xf32> to vector<8x128xf32>
    %c0_15 = arith.constant 0 : index
    %c896 = arith.constant 896 : index
    %31 = vector.load %arg9[%c0_15, %c896] : memref<8x18432xf32, #tpu.memory_space<vmem>>, vector<8x128xf32>
    tpu.vector_store %arg9[%c0_15, %c896], %30 {strides = array<i32>} : memref<8x18432xf32, #tpu.memory_space<vmem>>, vector<8x128xf32>,
    %32 = vector.extract_strided_slice %15 {offsets = [64, 0], sizes = [8, 128], strides = [1, 1]} : vector<1152x128xf32> to vector<8x128xf32>
    %c0_16 = arith.constant 0 : index
    %c1024 = arith.constant 1024 : index
    %33 = vector.load %arg9[%c0_16, %c1024] : memref<8x18432xf32, #tpu.memory_space<vmem>>, vector<8x128xf32>
    tpu.vector_store %arg9[%c0_16, %c1024], %32 {strides = array<i32>} : memref<8x18432xf32, #tpu.memory_space<vmem>>, vector<8x128xf32>,
    %34 = vector.extract_strided_slice %15 {offsets = [72, 0], sizes = [8, 128], strides = [1, 1]} : vector<1152x128xf32> to vector<8x128xf32>
    %c0_17 = arith.constant 0 : index
    %c1152 = arith.constant 1152 : index
    %35 = vector.load %arg9[%c0_17, %c1152] : memref<8x18432xf32, #tpu.memory_space<vmem>>, vector<8x128xf32>
    tpu.vector_store %arg9[%c0_17, %c1152], %34 {strides = array<i32>} : memref<8x18432xf32, #tpu.memory_space<vmem>>, vector<8x128xf32>,
    %36 = vector.extract_strided_slice %15 {offsets = [80, 0], sizes = [8, 128], strides = [1, 1]} : vector<1152x128xf32> to vector<8x128xf32>
    %c0_18 = arith.constant 0 : index
    %c1280 = arith.constant 1280 : index
    %37 = vector.load %arg9[%c0_18, %c1280] : memref<8x18432xf32, #tpu.memory_space<vmem>>, vector<8x128xf32>
    tpu.vector_store %arg9[%c0_18, %c1280], %36 {strides = array<i32>} : memref<8x18432xf32, #tpu.memory_space<vmem>>, vector<8x128xf32>,
    %38 = vector.extract_strided_slice %15 {offsets = [88, 0], sizes = [8, 128], strides = [1, 1]} : vector<1152x128xf32> to vector<8x128xf32>
    %c0_19 = arith.constant 0 : index
    %c1408 = arith.constant 1408 : index
    %39 = vector.load %arg9[%c0_19, %c1408] : memref<8x18432xf32, #tpu.memory_space<vmem>>, vector<8x128xf32>
    tpu.vector_store %arg9[%c0_19, %c1408], %38 {strides = array<i32>} : memref<8x18432xf32, #tpu.memory_space<vmem>>, vector<8x128xf32>,
    %40 = vector.extract_strided_slice %15 {offsets = [96, 0], sizes = [8, 128], strides = [1, 1]} : vector<1152x128xf32> to vector<8x128xf32>
    %c0_20 = arith.constant 0 : index
    %c1536 = arith.constant 1536 : index
    %41 = vector.load %arg9[%c0_20, %c1536] : memref<8x18432xf32, #tpu.memory_space<vmem>>, vector<8x128xf32>
    tpu.vector_store %arg9[%c0_20, %c1536], %40 {strides = array<i32>} : memref<8x18432xf32, #tpu.memory_space<vmem>>, vector<8x128xf32>,
    %42 = vector.extract_strided_slice %15 {offsets = [104, 0], sizes = [8, 128], strides = [1, 1]} : vector<1152x128xf32> to vector<8x128xf32>
    %c0_21 = arith.constant 0 : index
    %c1664 = arith.constant 1664 : index
    %43 = vector.load %arg9[%c0_21, %c1664] : memref<8x18432xf32, #tpu.memory_space<vmem>>, vector<8x128xf32>
    tpu.vector_store %arg9[%c0_21, %c1664], %42 {strides = array<i32>} : memref<8x18432xf32, #tpu.memory_space<vmem>>, vector<8x128xf32>,
    %44 = vector.extract_strided_slice %15 {offsets = [112, 0], sizes = [8, 128], strides = [1, 1]} : vector<1152x128xf32> to vector<8x128xf32>
    %c0_22 = arith.constant 0 : index
    %c1792 = arith.constant 1792 : index
    %45 = vector.load %arg9[%c0_22, %c1792] : memref<8x18432xf32, #tpu.memory_space<vmem>>, vector<8x128xf32>
    tpu.vector_store %arg9[%c0_22, %c1792], %44 {strides = array<i32>} : memref<8x18432xf32, #tpu.memory_space<vmem>>, vector<8x128xf32>,
    %46 = vector.extract_strided_slice %15 {offsets = [120, 0], sizes = [8, 128], strides = [1, 1]} : vector<1152x128xf32> to vector<8x128xf32>
    %c0_23 = arith.constant 0 : index
    %c1920 = arith.constant 1920 : index
    %47 = vector.load %arg9[%c0_23, %c1920] : memref<8x18432xf32, #tpu.memory_space<vmem>>, vector<8x128xf32>
    tpu.vector_store %arg9[%c0_23, %c1920], %46 {strides = array<i32>} : memref<8x18432xf32, #tpu.memory_space<vmem>>, vector<8x128xf32>,
    %48 = vector.extract_strided_slice %15 {offsets = [128, 0], sizes = [8, 128], strides = [1, 1]} : vector<1152x128xf32> to vector<8x128xf32>
    %c0_24 = arith.constant 0 : index
    %c2048 = arith.constant 2048 : index
    %49 = vector.load %arg9[%c0_24, %c2048] : memref<8x18432xf32, #tpu.memory_space<vmem>>, vector<8x128xf32>
    tpu.vector_store %arg9[%c0_24, %c2048], %48 {strides = array<i32>} : memref<8x18432xf32, #tpu.memory_space<vmem>>, vector<8x128xf32>,
    %50 = vector.extract_strided_slice %15 {offsets = [136, 0], sizes = [8, 128], strides = [1, 1]} : vector<1152x128xf32> to vector<8x128xf32>
    %c0_25 = arith.constant 0 : index
    %c2176 = arith.constant 2176 : index
    %51 = vector.load %arg9[%c0_25, %c2176] : memref<8x18432xf32, #tpu.memory_space<vmem>>, vector<8x128xf32>
    tpu.vector_store %arg9[%c0_25, %c2176], %50 {strides = array<i32>} : memref<8x18432xf32, #tpu.memory_space<vmem>>, vector<8x128xf32>,
    %52 = vector.extract_strided_slice %15 {offsets = [144, 0], sizes = [8, 128], strides = [1, 1]} : vector<1152x128xf32> to vector<8x128xf32>
    %c0_26 = arith.constant 0 : index
    %c2304 = arith.constant 2304 : index
    %53 = vector.load %arg9[%c0_26, %c2304] : memref<8x18432xf32, #tpu.memory_space<vmem>>, vector<8x128xf32>
    tpu.vector_store %arg9[%c0_26, %c2304], %52 {strides = array<i32>} : memref<8x18432xf32, #tpu.memory_space<vmem>>, vector<8x128xf32>,
    %54 = vector.extract_strided_slice %15 {offsets = [152, 0], sizes = [8, 128], strides = [1, 1]} : vector<1152x128xf32> to vector<8x128xf32>
    %c0_27 = arith.constant 0 : index
    %c2432 = arith.constant 2432 : index
    %55 = vector.load %arg9[%c0_27, %c2432] : memref<8x18432xf32, #tpu.memory_space<vmem>>, vector<8x128xf32>
    tpu.vector_store %arg9[%c0_27, %c2432], %54 {strides = array<i32>} : memref<8x18432xf32, #tpu.memory_space<vmem>>, vector<8x128xf32>,
    %56 = vector.extract_strided_slice %15 {offsets = [160, 0], sizes = [8, 128], strides = [1, 1]} : vector<1152x128xf32> to vector<8x128xf32>
    %c0_28 = arith.constant 0 : index
    %c2560 = arith.constant 2560 : index
    %57 = vector.load %arg9[%c0_28, %c2560] : memref<8x18432xf32, #tpu.memory_space<vmem>>, vector<8x128xf32>
    tpu.vector_store %arg9[%c0_28, %c2560], %56 {strides = array<i32>} : memref<8x18432xf32, #tpu.memory_space<vmem>>, vector<8x128xf32>,
    %58 = vector.extract_strided_slice %15 {offsets = [168, 0], sizes = [8, 128], strides = [1, 1]} : vector<1152x128xf32> to vector<8x128xf32>
    %c0_29 = arith.constant 0 : index
    %c2688 = arith.constant 2688 : index
    %59 = vector.load %arg9[%c0_29, %c2688] : memref<8x18432xf32, #tpu.memory_space<vmem>>, vector<8x128xf32>
    tpu.vector_store %arg9[%c0_29, %c2688], %58 {strides = array<i32>} : memref<8x18432xf32, #tpu.memory_space<vmem>>, vector<8x128xf32>,
    %60 = vector.extract_strided_slice %15 {offsets = [176, 0], sizes = [8, 128], strides = [1, 1]} : vector<1152x128xf32> to vector<8x128xf32>
    %c0_30 = arith.constant 0 : index
    %c2816 = arith.constant 2816 : index
    %61 = vector.load %arg9[%c0_30, %c2816] : memref<8x18432xf32, #tpu.memory_space<vmem>>, vector<8x128xf32>
    tpu.vector_store %arg9[%c0_30, %c2816], %60 {strides = array<i32>} : memref<8x18432xf32, #tpu.memory_space<vmem>>, vector<8x128xf32>,
    %62 = vector.extract_strided_slice %15 {offsets = [184, 0], sizes = [8, 128], strides = [1, 1]} : vector<1152x128xf32> to vector<8x128xf32>
    %c0_31 = arith.constant 0 : index
    %c2944 = arith.constant 2944 : index
    %63 = vector.load %arg9[%c0_31, %c2944] : memref<8x18432xf32, #tpu.memory_space<vmem>>, vector<8x128xf32>
    tpu.vector_store %arg9[%c0_31, %c2944], %62 {strides = array<i32>} : memref<8x18432xf32, #tpu.memory_space<vmem>>, vector<8x128xf32>,
    %64 = vector.extract_strided_slice %15 {offsets = [192, 0], sizes = [8, 128], strides = [1, 1]} : vector<1152x128xf32> to vector<8x128xf32>
    %c0_32 = arith.constant 0 : index
    %c3072 = arith.constant 3072 : index
    %65 = vector.load %arg9[%c0_32, %c3072] : memref<8x18432xf32, #tpu.memory_space<vmem>>, vector<8x128xf32>
    tpu.vector_store %arg9[%c0_32, %c3072], %64 {strides = array<i32>} : memref<8x18432xf32, #tpu.memory_space<vmem>>, vector<8x128xf32>,
    %66 = vector.extract_strided_slice %15 {offsets = [200, 0], sizes = [8, 128], strides = [1, 1]} : vector<1152x128xf32> to vector<8x128xf32>
    %c0_33 = arith.constant 0 : index
    %c3200 = arith.constant 3200 : index
    %67 = vector.load %arg9[%c0_33, %c3200] : memref<8x18432xf32, #tpu.memory_space<vmem>>, vector<8x128xf32>
    tpu.vector_store %arg9[%c0_33, %c3200], %66 {strides = array<i32>} : memref<8x18432xf32, #tpu.memory_space<vmem>>, vector<8x128xf32>,
    %68 = vector.extract_strided_slice %15 {offsets = [208, 0], sizes = [8, 128], strides = [1, 1]} : vector<1152x128xf32> to vector<8x128xf32>
    %c0_34 = arith.constant 0 : index
    %c3328 = arith.constant 3328 : index
    %69 = vector.load %arg9[%c0_34, %c3328] : memref<8x18432xf32, #tpu.memory_space<vmem>>, vector<8x128xf32>
    tpu.vector_store %arg9[%c0_34, %c3328], %68 {strides = array<i32>} : memref<8x18432xf32, #tpu.memory_space<vmem>>, vector<8x128xf32>,
    %70 = vector.extract_strided_slice %15 {offsets = [216, 0], sizes = [8, 128], strides = [1, 1]} : vector<1152x128xf32> to vector<8x128xf32>
    %c0_35 = arith.constant 0 : index
    %c3456 = arith.constant 3456 : index
    %71 = vector.load %arg9[%c0_35, %c3456] : memref<8x18432xf32, #tpu.memory_space<vmem>>, vector<8x128xf32>
    tpu.vector_store %arg9[%c0_35, %c3456], %70 {strides = array<i32>} : memref<8x18432xf32, #tpu.memory_space<vmem>>, vector<8x128xf32>,
    %72 = vector.extract_strided_slice %15 {offsets = [224, 0], sizes = [8, 128], strides = [1, 1]} : vector<1152x128xf32> to vector<8x128xf32>
    %c0_36 = arith.constant 0 : index
    %c3584 = arith.constant 3584 : index
    %73 = vector.load %arg9[%c0_36, %c3584] : memref<8x18432xf32, #tpu.memory_space<vmem>>, vector<8x128xf32>
    tpu.vector_store %arg9[%c0_36, %c3584], %72 {strides = array<i32>} : memref<8x18432xf32, #tpu.memory_space<vmem>>, vector<8x128xf32>,
    %74 = vector.extract_strided_slice %15 {offsets = [232, 0], sizes = [8, 128], strides = [1, 1]} : vector<1152x128xf32> to vector<8x128xf32>
    %c0_37 = arith.constant 0 : index
    %c3712 = arith.constant 3712 : index
    %75 = vector.load %arg9[%c0_37, %c3712] : memref<8x18432xf32, #tpu.memory_space<vmem>>, vector<8x128xf32>
    tpu.vector_store %arg9[%c0_37, %c3712], %74 {strides = array<i32>} : memref<8x18432xf32, #tpu.memory_space<vmem>>, vector<8x128xf32>,
    %76 = vector.extract_strided_slice %15 {offsets = [240, 0], sizes = [8, 128], strides = [1, 1]} : vector<1152x128xf32> to vector<8x128xf32>
    %c0_38 = arith.constant 0 : index
    %c3840 = arith.constant 3840 : index
    %77 = vector.load %arg9[%c0_38, %c3840] : memref<8x18432xf32, #tpu.memory_space<vmem>>, vector<8x128xf32>
    tpu.vector_store %arg9[%c0_38, %c3840], %76 {strides = array<i32>} : memref<8x18432xf32, #tpu.memory_space<vmem>>, vector<8x128xf32>,
    %78 = vector.extract_strided_slice %15 {offsets = [248, 0], sizes = [8, 128], strides = [1, 1]} : vector<1152x128xf32> to vector<8x128xf32>
    %c0_39 = arith.constant 0 : index
    %c3968 = arith.constant 3968 : index
    %79 = vector.load %arg9[%c0_39, %c3968] : memref<8x18432xf32, #tpu.memory_space<vmem>>, vector<8x128xf32>
    tpu.vector_store %arg9[%c0_39, %c3968], %78 {strides = array<i32>} : memref<8x18432xf32, #tpu.memory_space<vmem>>, vector<8x128xf32>,
    %80 = vector.extract_strided_slice %15 {offsets = [256, 0], sizes = [8, 128], strides = [1, 1]} : vector<1152x128xf32> to vector<8x128xf32>
    %c0_40 = arith.constant 0 : index
    %c4096 = arith.constant 4096 : index
    %81 = vector.load %arg9[%c0_40, %c4096] : memref<8x18432xf32, #tpu.memory_space<vmem>>, vector<8x128xf32>
    tpu.vector_store %arg9[%c0_40, %c4096], %80 {strides = array<i32>} : memref<8x18432xf32, #tpu.memory_space<vmem>>, vector<8x128xf32>,
    %82 = vector.extract_strided_slice %15 {offsets = [264, 0], sizes = [8, 128], strides = [1, 1]} : vector<1152x128xf32> to vector<8x128xf32>
    %c0_41 = arith.constant 0 : index
    %c4224 = arith.constant 4224 : index
    %83 = vector.load %arg9[%c0_41, %c4224] : memref<8x18432xf32, #tpu.memory_space<vmem>>, vector<8x128xf32>
    tpu.vector_store %arg9[%c0_41, %c4224], %82 {strides = array<i32>} : memref<8x18432xf32, #tpu.memory_space<vmem>>, vector<8x128xf32>,
    %84 = vector.extract_strided_slice %15 {offsets = [272, 0], sizes = [8, 128], strides = [1, 1]} : vector<1152x128xf32> to vector<8x128xf32>
    %c0_42 = arith.constant 0 : index
    %c4352 = arith.constant 4352 : index
    %85 = vector.load %arg9[%c0_42, %c4352] : memref<8x18432xf32, #tpu.memory_space<vmem>>, vector<8x128xf32>
    tpu.vector_store %arg9[%c0_42, %c4352], %84 {strides = array<i32>} : memref<8x18432xf32, #tpu.memory_space<vmem>>, vector<8x128xf32>,
    %86 = vector.extract_strided_slice %15 {offsets = [280, 0], sizes = [8, 128], strides = [1, 1]} : vector<1152x128xf32> to vector<8x128xf32>
    %c0_43 = arith.constant 0 : index
    %c4480 = arith.constant 4480 : index
    %87 = vector.load %arg9[%c0_43, %c4480] : memref<8x18432xf32, #tpu.memory_space<vmem>>, vector<8x128xf32>
    tpu.vector_store %arg9[%c0_43, %c4480], %86 {strides = array<i32>} : memref<8x18432xf32, #tpu.memory_space<vmem>>, vector<8x128xf32>,
    %88 = vector.extract_strided_slice %15 {offsets = [288, 0], sizes = [8, 128], strides = [1, 1]} : vector<1152x128xf32> to vector<8x128xf32>
    %c0_44 = arith.constant 0 : index
    %c4608 = arith.constant 4608 : index
    %89 = vector.load %arg9[%c0_44, %c4608] : memref<8x18432xf32, #tpu.memory_space<vmem>>, vector<8x128xf32>
    tpu.vector_store %arg9[%c0_44, %c4608], %88 {strides = array<i32>} : memref<8x18432xf32, #tpu.memory_space<vmem>>, vector<8x128xf32>,
    %90 = vector.extract_strided_slice %15 {offsets = [296, 0], sizes = [8, 128], strides = [1, 1]} : vector<1152x128xf32> to vector<8x128xf32>
    %c0_45 = arith.constant 0 : index
    %c4736 = arith.constant 4736 : index
    %91 = vector.load %arg9[%c0_45, %c4736] : memref<8x18432xf32, #tpu.memory_space<vmem>>, vector<8x128xf32>
    tpu.vector_store %arg9[%c0_45, %c4736], %90 {strides = array<i32>} : memref<8x18432xf32, #tpu.memory_space<vmem>>, vector<8x128xf32>,
    %92 = vector.extract_strided_slice %15 {offsets = [304, 0], sizes = [8, 128], strides = [1, 1]} : vector<1152x128xf32> to vector<8x128xf32>
    %c0_46 = arith.constant 0 : index
    %c4864 = arith.constant 4864 : index
    %93 = vector.load %arg9[%c0_46, %c4864] : memref<8x18432xf32, #tpu.memory_space<vmem>>, vector<8x128xf32>
    tpu.vector_store %arg9[%c0_46, %c4864], %92 {strides = array<i32>} : memref<8x18432xf32, #tpu.memory_space<vmem>>, vector<8x128xf32>,
    %94 = vector.extract_strided_slice %15 {offsets = [312, 0], sizes = [8, 128], strides = [1, 1]} : vector<1152x128xf32> to vector<8x128xf32>
    %c0_47 = arith.constant 0 : index
    %c4992 = arith.constant 4992 : index
    %95 = vector.load %arg9[%c0_47, %c4992] : memref<8x18432xf32, #tpu.memory_space<vmem>>, vector<8x128xf32>
    tpu.vector_store %arg9[%c0_47, %c4992], %94 {strides = array<i32>} : memref<8x18432xf32, #tpu.memory_space<vmem>>, vector<8x128xf32>,
    %96 = vector.extract_strided_slice %15 {offsets = [320, 0], sizes = [8, 128], strides = [1, 1]} : vector<1152x128xf32> to vector<8x128xf32>
    %c0_48 = arith.constant 0 : index
    %c5120 = arith.constant 5120 : index
    %97 = vector.load %arg9[%c0_48, %c5120] : memref<8x18432xf32, #tpu.memory_space<vmem>>, vector<8x128xf32>
    tpu.vector_store %arg9[%c0_48, %c5120], %96 {strides = array<i32>} : memref<8x18432xf32, #tpu.memory_space<vmem>>, vector<8x128xf32>,
    %98 = vector.extract_strided_slice %15 {offsets = [328, 0], sizes = [8, 128], strides = [1, 1]} : vector<1152x128xf32> to vector<8x128xf32>
    %c0_49 = arith.constant 0 : index
    %c5248 = arith.constant 5248 : index
    %99 = vector.load %arg9[%c0_49, %c5248] : memref<8x18432xf32, #tpu.memory_space<vmem>>, vector<8x128xf32>
    tpu.vector_store %arg9[%c0_49, %c5248], %98 {strides = array<i32>} : memref<8x18432xf32, #tpu.memory_space<vmem>>, vector<8x128xf32>,
    %100 = vector.extract_strided_slice %15 {offsets = [336, 0], sizes = [8, 128], strides = [1, 1]} : vector<1152x128xf32> to vector<8x128xf32>
    %c0_50 = arith.constant 0 : index
    %c5376 = arith.constant 5376 : index
    %101 = vector.load %arg9[%c0_50, %c5376] : memref<8x18432xf32, #tpu.memory_space<vmem>>, vector<8x128xf32>
    tpu.vector_store %arg9[%c0_50, %c5376], %100 {strides = array<i32>} : memref<8x18432xf32, #tpu.memory_space<vmem>>, vector<8x128xf32>,
    %102 = vector.extract_strided_slice %15 {offsets = [344, 0], sizes = [8, 128], strides = [1, 1]} : vector<1152x128xf32> to vector<8x128xf32>
    %c0_51 = arith.constant 0 : index
    %c5504 = arith.constant 5504 : index
    %103 = vector.load %arg9[%c0_51, %c5504] : memref<8x18432xf32, #tpu.memory_space<vmem>>, vector<8x128xf32>
    tpu.vector_store %arg9[%c0_51, %c5504], %102 {strides = array<i32>} : memref<8x18432xf32, #tpu.memory_space<vmem>>, vector<8x128xf32>,
    %104 = vector.extract_strided_slice %15 {offsets = [352, 0], sizes = [8, 128], strides = [1, 1]} : vector<1152x128xf32> to vector<8x128xf32>
    %c0_52 = arith.constant 0 : index
    %c5632 = arith.constant 5632 : index
    %105 = vector.load %arg9[%c0_52, %c5632] : memref<8x18432xf32, #tpu.memory_space<vmem>>, vector<8x128xf32>
    tpu.vector_store %arg9[%c0_52, %c5632], %104 {strides = array<i32>} : memref<8x18432xf32, #tpu.memory_space<vmem>>, vector<8x128xf32>,
    %106 = vector.extract_strided_slice %15 {offsets = [360, 0], sizes = [8, 128], strides = [1, 1]} : vector<1152x128xf32> to vector<8x128xf32>
    %c0_53 = arith.constant 0 : index
    %c5760 = arith.constant 5760 : index
    %107 = vector.load %arg9[%c0_53, %c5760] : memref<8x18432xf32, #tpu.memory_space<vmem>>, vector<8x128xf32>
    tpu.vector_store %arg9[%c0_53, %c5760], %106 {strides = array<i32>} : memref<8x18432xf32, #tpu.memory_space<vmem>>, vector<8x128xf32>,
    %108 = vector.extract_strided_slice %15 {offsets = [368, 0], sizes = [8, 128], strides = [1, 1]} : vector<1152x128xf32> to vector<8x128xf32>
    %c0_54 = arith.constant 0 : index
    %c5888 = arith.constant 5888 : index
    %109 = vector.load %arg9[%c0_54, %c5888] : memref<8x18432xf32, #tpu.memory_space<vmem>>, vector<8x128xf32>
    tpu.vector_store %arg9[%c0_54, %c5888], %108 {strides = array<i32>} : memref<8x18432xf32, #tpu.memory_space<vmem>>, vector<8x128xf32>,
    %110 = vector.extract_strided_slice %15 {offsets = [376, 0], sizes = [8, 128], strides = [1, 1]} : vector<1152x128xf32> to vector<8x128xf32>
    %c0_55 = arith.constant 0 : index
    %c6016 = arith.constant 6016 : index
    %111 = vector.load %arg9[%c0_55, %c6016] : memref<8x18432xf32, #tpu.memory_space<vmem>>, vector<8x128xf32>
    tpu.vector_store %arg9[%c0_55, %c6016], %110 {strides = array<i32>} : memref<8x18432xf32, #tpu.memory_space<vmem>>, vector<8x128xf32>,
    %112 = vector.extract_strided_slice %15 {offsets = [384, 0], sizes = [8, 128], strides = [1, 1]} : vector<1152x128xf32> to vector<8x128xf32>
    %c0_56 = arith.constant 0 : index
    %c6144 = arith.constant 6144 : index
    %113 = vector.load %arg9[%c0_56, %c6144] : memref<8x18432xf32, #tpu.memory_space<vmem>>, vector<8x128xf32>
    tpu.vector_store %arg9[%c0_56, %c6144], %112 {strides = array<i32>} : memref<8x18432xf32, #tpu.memory_space<vmem>>, vector<8x128xf32>,
    %114 = vector.extract_strided_slice %15 {offsets = [392, 0], sizes = [8, 128], strides = [1, 1]} : vector<1152x128xf32> to vector<8x128xf32>
    %c0_57 = arith.constant 0 : index
    %c6272 = arith.constant 6272 : index
    %115 = vector.load %arg9[%c0_57, %c6272] : memref<8x18432xf32, #tpu.memory_space<vmem>>, vector<8x128xf32>
    tpu.vector_store %arg9[%c0_57, %c6272], %114 {strides = array<i32>} : memref<8x18432xf32, #tpu.memory_space<vmem>>, vector<8x128xf32>,
    %116 = vector.extract_strided_slice %15 {offsets = [400, 0], sizes = [8, 128], strides = [1, 1]} : vector<1152x128xf32> to vector<8x128xf32>
    %c0_58 = arith.constant 0 : index
    %c6400 = arith.constant 6400 : index
    %117 = vector.load %arg9[%c0_58, %c6400] : memref<8x18432xf32, #tpu.memory_space<vmem>>, vector<8x128xf32>
    tpu.vector_store %arg9[%c0_58, %c6400], %116 {strides = array<i32>} : memref<8x18432xf32, #tpu.memory_space<vmem>>, vector<8x128xf32>,
    %118 = vector.extract_strided_slice %15 {offsets = [408, 0], sizes = [8, 128], strides = [1, 1]} : vector<1152x128xf32> to vector<8x128xf32>
    %c0_59 = arith.constant 0 : index
    %c6528 = arith.constant 6528 : index
    %119 = vector.load %arg9[%c0_59, %c6528] : memref<8x18432xf32, #tpu.memory_space<vmem>>, vector<8x128xf32>
    tpu.vector_store %arg9[%c0_59, %c6528], %118 {strides = array<i32>} : memref<8x18432xf32, #tpu.memory_space<vmem>>, vector<8x128xf32>,
    %120 = vector.extract_strided_slice %15 {offsets = [416, 0], sizes = [8, 128], strides = [1, 1]} : vector<1152x128xf32> to vector<8x128xf32>
    %c0_60 = arith.constant 0 : index
    %c6656 = arith.constant 6656 : index
    %121 = vector.load %arg9[%c0_60, %c6656] : memref<8x18432xf32, #tpu.memory_space<vmem>>, vector<8x128xf32>
    tpu.vector_store %arg9[%c0_60, %c6656], %120 {strides = array<i32>} : memref<8x18432xf32, #tpu.memory_space<vmem>>, vector<8x128xf32>,
    %122 = vector.extract_strided_slice %15 {offsets = [424, 0], sizes = [8, 128], strides = [1, 1]} : vector<1152x128xf32> to vector<8x128xf32>
    %c0_61 = arith.constant 0 : index
    %c6784 = arith.constant 6784 : index
    %123 = vector.load %arg9[%c0_61, %c6784] : memref<8x18432xf32, #tpu.memory_space<vmem>>, vector<8x128xf32>
    tpu.vector_store %arg9[%c0_61, %c6784], %122 {strides = array<i32>} : memref<8x18432xf32, #tpu.memory_space<vmem>>, vector<8x128xf32>,
    %124 = vector.extract_strided_slice %15 {offsets = [432, 0], sizes = [8, 128], strides = [1, 1]} : vector<1152x128xf32> to vector<8x128xf32>
    %c0_62 = arith.constant 0 : index
    %c6912 = arith.constant 6912 : index
    %125 = vector.load %arg9[%c0_62, %c6912] : memref<8x18432xf32, #tpu.memory_space<vmem>>, vector<8x128xf32>
    tpu.vector_store %arg9[%c0_62, %c6912], %124 {strides = array<i32>} : memref<8x18432xf32, #tpu.memory_space<vmem>>, vector<8x128xf32>,
    %126 = vector.extract_strided_slice %15 {offsets = [440, 0], sizes = [8, 128], strides = [1, 1]} : vector<1152x128xf32> to vector<8x128xf32>
    %c0_63 = arith.constant 0 : index
    %c7040 = arith.constant 7040 : index
    %127 = vector.load %arg9[%c0_63, %c7040] : memref<8x18432xf32, #tpu.memory_space<vmem>>, vector<8x128xf32>
    tpu.vector_store %arg9[%c0_63, %c7040], %126 {strides = array<i32>} : memref<8x18432xf32, #tpu.memory_space<vmem>>, vector<8x128xf32>,
    %128 = vector.extract_strided_slice %15 {offsets = [448, 0], sizes = [8, 128], strides = [1, 1]} : vector<1152x128xf32> to vector<8x128xf32>
    %c0_64 = arith.constant 0 : index
    %c7168 = arith.constant 7168 : index
    %129 = vector.load %arg9[%c0_64, %c7168] : memref<8x18432xf32, #tpu.memory_space<vmem>>, vector<8x128xf32>
    tpu.vector_store %arg9[%c0_64, %c7168], %128 {strides = array<i32>} : memref<8x18432xf32, #tpu.memory_space<vmem>>, vector<8x128xf32>,
    %130 = vector.extract_strided_slice %15 {offsets = [456, 0], sizes = [8, 128], strides = [1, 1]} : vector<1152x128xf32> to vector<8x128xf32>
    %c0_65 = arith.constant 0 : index
    %c7296 = arith.constant 7296 : index
    %131 = vector.load %arg9[%c0_65, %c7296] : memref<8x18432xf32, #tpu.memory_space<vmem>>, vector<8x128xf32>
    tpu.vector_store %arg9[%c0_65, %c7296], %130 {strides = array<i32>} : memref<8x18432xf32, #tpu.memory_space<vmem>>, vector<8x128xf32>,
    %132 = vector.extract_strided_slice %15 {offsets = [464, 0], sizes = [8, 128], strides = [1, 1]} : vector<1152x128xf32> to vector<8x128xf32>
    %c0_66 = arith.constant 0 : index
    %c7424 = arith.constant 7424 : index
    %133 = vector.load %arg9[%c0_66, %c7424] : memref<8x18432xf32, #tpu.memory_space<vmem>>, vector<8x128xf32>
    tpu.vector_store %arg9[%c0_66, %c7424], %132 {strides = array<i32>} : memref<8x18432xf32, #tpu.memory_space<vmem>>, vector<8x128xf32>,
    %134 = vector.extract_strided_slice %15 {offsets = [472, 0], sizes = [8, 128], strides = [1, 1]} : vector<1152x128xf32> to vector<8x128xf32>
    %c0_67 = arith.constant 0 : index
    %c7552 = arith.constant 7552 : index
    %135 = vector.load %arg9[%c0_67, %c7552] : memref<8x18432xf32, #tpu.memory_space<vmem>>, vector<8x128xf32>
    tpu.vector_store %arg9[%c0_67, %c7552], %134 {strides = array<i32>} : memref<8x18432xf32, #tpu.memory_space<vmem>>, vector<8x128xf32>,
    %136 = vector.extract_strided_slice %15 {offsets = [480, 0], sizes = [8, 128], strides = [1, 1]} : vector<1152x128xf32> to vector<8x128xf32>
    %c0_68 = arith.constant 0 : index
    %c7680 = arith.constant 7680 : index
    %137 = vector.load %arg9[%c0_68, %c7680] : memref<8x18432xf32, #tpu.memory_space<vmem>>, vector<8x128xf32>
    tpu.vector_store %arg9[%c0_68, %c7680], %136 {strides = array<i32>} : memref<8x18432xf32, #tpu.memory_space<vmem>>, vector<8x128xf32>,
    %138 = vector.extract_strided_slice %15 {offsets = [488, 0], sizes = [8, 128], strides = [1, 1]} : vector<1152x128xf32> to vector<8x128xf32>
    %c0_69 = arith.constant 0 : index
    %c7808 = arith.constant 7808 : index
    %139 = vector.load %arg9[%c0_69, %c7808] : memref<8x18432xf32, #tpu.memory_space<vmem>>, vector<8x128xf32>
    tpu.vector_store %arg9[%c0_69, %c7808], %138 {strides = array<i32>} : memref<8x18432xf32, #tpu.memory_space<vmem>>, vector<8x128xf32>,
    %140 = vector.extract_strided_slice %15 {offsets = [496, 0], sizes = [8, 128], strides = [1, 1]} : vector<1152x128xf32> to vector<8x128xf32>
    %c0_70 = arith.constant 0 : index
    %c7936 = arith.constant 7936 : index
    %141 = vector.load %arg9[%c0_70, %c7936] : memref<8x18432xf32, #tpu.memory_space<vmem>>, vector<8x128xf32>
    tpu.vector_store %arg9[%c0_70, %c7936], %140 {strides = array<i32>} : memref<8x18432xf32, #tpu.memory_space<vmem>>, vector<8x128xf32>,
    %142 = vector.extract_strided_slice %15 {offsets = [504, 0], sizes = [8, 128], strides = [1, 1]} : vector<1152x128xf32> to vector<8x128xf32>
    %c0_71 = arith.constant 0 : index
    %c8064 = arith.constant 8064 : index
    %143 = vector.load %arg9[%c0_71, %c8064] : memref<8x18432xf32, #tpu.memory_space<vmem>>, vector<8x128xf32>
    tpu.vector_store %arg9[%c0_71, %c8064], %142 {strides = array<i32>} : memref<8x18432xf32, #tpu.memory_space<vmem>>, vector<8x128xf32>,
    %144 = vector.extract_strided_slice %15 {offsets = [512, 0], sizes = [8, 128], strides = [1, 1]} : vector<1152x128xf32> to vector<8x128xf32>
    %c0_72 = arith.constant 0 : index
    %c8192 = arith.constant 8192 : index
    %145 = vector.load %arg9[%c0_72, %c8192] : memref<8x18432xf32, #tpu.memory_space<vmem>>, vector<8x128xf32>
    tpu.vector_store %arg9[%c0_72, %c8192], %144 {strides = array<i32>} : memref<8x18432xf32, #tpu.memory_space<vmem>>, vector<8x128xf32>,
    %146 = vector.extract_strided_slice %15 {offsets = [520, 0], sizes = [8, 128], strides = [1, 1]} : vector<1152x128xf32> to vector<8x128xf32>
    %c0_73 = arith.constant 0 : index
    %c8320 = arith.constant 8320 : index
    %147 = vector.load %arg9[%c0_73, %c8320] : memref<8x18432xf32, #tpu.memory_space<vmem>>, vector<8x128xf32>
    tpu.vector_store %arg9[%c0_73, %c8320], %146 {strides = array<i32>} : memref<8x18432xf32, #tpu.memory_space<vmem>>, vector<8x128xf32>,
    %148 = vector.extract_strided_slice %15 {offsets = [528, 0], sizes = [8, 128], strides = [1, 1]} : vector<1152x128xf32> to vector<8x128xf32>
    %c0_74 = arith.constant 0 : index
    %c8448 = arith.constant 8448 : index
    %149 = vector.load %arg9[%c0_74, %c8448] : memref<8x18432xf32, #tpu.memory_space<vmem>>, vector<8x128xf32>
    tpu.vector_store %arg9[%c0_74, %c8448], %148 {strides = array<i32>} : memref<8x18432xf32, #tpu.memory_space<vmem>>, vector<8x128xf32>,
    %150 = vector.extract_strided_slice %15 {offsets = [536, 0], sizes = [8, 128], strides = [1, 1]} : vector<1152x128xf32> to vector<8x128xf32>
    %c0_75 = arith.constant 0 : index
    %c8576 = arith.constant 8576 : index
    %151 = vector.load %arg9[%c0_75, %c8576] : memref<8x18432xf32, #tpu.memory_space<vmem>>, vector<8x128xf32>
    tpu.vector_store %arg9[%c0_75, %c8576], %150 {strides = array<i32>} : memref<8x18432xf32, #tpu.memory_space<vmem>>, vector<8x128xf32>,
    %152 = vector.extract_strided_slice %15 {offsets = [544, 0], sizes = [8, 128], strides = [1, 1]} : vector<1152x128xf32> to vector<8x128xf32>
    %c0_76 = arith.constant 0 : index
    %c8704 = arith.constant 8704 : index
    %153 = vector.load %arg9[%c0_76, %c8704] : memref<8x18432xf32, #tpu.memory_space<vmem>>, vector<8x128xf32>
    tpu.vector_store %arg9[%c0_76, %c8704], %152 {strides = array<i32>} : memref<8x18432xf32, #tpu.memory_space<vmem>>, vector<8x128xf32>,
    %154 = vector.extract_strided_slice %15 {offsets = [552, 0], sizes = [8, 128], strides = [1, 1]} : vector<1152x128xf32> to vector<8x128xf32>
    %c0_77 = arith.constant 0 : index
    %c8832 = arith.constant 8832 : index
    %155 = vector.load %arg9[%c0_77, %c8832] : memref<8x18432xf32, #tpu.memory_space<vmem>>, vector<8x128xf32>
    tpu.vector_store %arg9[%c0_77, %c8832], %154 {strides = array<i32>} : memref<8x18432xf32, #tpu.memory_space<vmem>>, vector<8x128xf32>,
    %156 = vector.extract_strided_slice %15 {offsets = [560, 0], sizes = [8, 128], strides = [1, 1]} : vector<1152x128xf32> to vector<8x128xf32>
    %c0_78 = arith.constant 0 : index
    %c8960 = arith.constant 8960 : index
    %157 = vector.load %arg9[%c0_78, %c8960] : memref<8x18432xf32, #tpu.memory_space<vmem>>, vector<8x128xf32>
    tpu.vector_store %arg9[%c0_78, %c8960], %156 {strides = array<i32>} : memref<8x18432xf32, #tpu.memory_space<vmem>>, vector<8x128xf32>,
    %158 = vector.extract_strided_slice %15 {offsets = [568, 0], sizes = [8, 128], strides = [1, 1]} : vector<1152x128xf32> to vector<8x128xf32>
    %c0_79 = arith.constant 0 : index
    %c9088 = arith.constant 9088 : index
    %159 = vector.load %arg9[%c0_79, %c9088] : memref<8x18432xf32, #tpu.memory_space<vmem>>, vector<8x128xf32>
    tpu.vector_store %arg9[%c0_79, %c9088], %158 {strides = array<i32>} : memref<8x18432xf32, #tpu.memory_space<vmem>>, vector<8x128xf32>,
    %160 = vector.extract_strided_slice %15 {offsets = [576, 0], sizes = [8, 128], strides = [1, 1]} : vector<1152x128xf32> to vector<8x128xf32>
    %c0_80 = arith.constant 0 : index
    %c9216 = arith.constant 9216 : index
    %161 = vector.load %arg9[%c0_80, %c9216] : memref<8x18432xf32, #tpu.memory_space<vmem>>, vector<8x128xf32>
    tpu.vector_store %arg9[%c0_80, %c9216], %160 {strides = array<i32>} : memref<8x18432xf32, #tpu.memory_space<vmem>>, vector<8x128xf32>,
    %162 = vector.extract_strided_slice %15 {offsets = [584, 0], sizes = [8, 128], strides = [1, 1]} : vector<1152x128xf32> to vector<8x128xf32>
    %c0_81 = arith.constant 0 : index
    %c9344 = arith.constant 9344 : index
    %163 = vector.load %arg9[%c0_81, %c9344] : memref<8x18432xf32, #tpu.memory_space<vmem>>, vector<8x128xf32>
    tpu.vector_store %arg9[%c0_81, %c9344], %162 {strides = array<i32>} : memref<8x18432xf32, #tpu.memory_space<vmem>>, vector<8x128xf32>,
    %164 = vector.extract_strided_slice %15 {offsets = [592, 0], sizes = [8, 128], strides = [1, 1]} : vector<1152x128xf32> to vector<8x128xf32>
    %c0_82 = arith.constant 0 : index
    %c9472 = arith.constant 9472 : index
    %165 = vector.load %arg9[%c0_82, %c9472] : memref<8x18432xf32, #tpu.memory_space<vmem>>, vector<8x128xf32>
    tpu.vector_store %arg9[%c0_82, %c9472], %164 {strides = array<i32>} : memref<8x18432xf32, #tpu.memory_space<vmem>>, vector<8x128xf32>,
    %166 = vector.extract_strided_slice %15 {offsets = [600, 0], sizes = [8, 128], strides = [1, 1]} : vector<1152x128xf32> to vector<8x128xf32>
    %c0_83 = arith.constant 0 : index
    %c9600 = arith.constant 9600 : index
    %167 = vector.load %arg9[%c0_83, %c9600] : memref<8x18432xf32, #tpu.memory_space<vmem>>, vector<8x128xf32>
    tpu.vector_store %arg9[%c0_83, %c9600], %166 {strides = array<i32>} : memref<8x18432xf32, #tpu.memory_space<vmem>>, vector<8x128xf32>,
    %168 = vector.extract_strided_slice %15 {offsets = [608, 0], sizes = [8, 128], strides = [1, 1]} : vector<1152x128xf32> to vector<8x128xf32>
    %c0_84 = arith.constant 0 : index
    %c9728 = arith.constant 9728 : index
    %169 = vector.load %arg9[%c0_84, %c9728] : memref<8x18432xf32, #tpu.memory_space<vmem>>, vector<8x128xf32>
    tpu.vector_store %arg9[%c0_84, %c9728], %168 {strides = array<i32>} : memref<8x18432xf32, #tpu.memory_space<vmem>>, vector<8x128xf32>,
    %170 = vector.extract_strided_slice %15 {offsets = [616, 0], sizes = [8, 128], strides = [1, 1]} : vector<1152x128xf32> to vector<8x128xf32>
    %c0_85 = arith.constant 0 : index
    %c9856 = arith.constant 9856 : index
    %171 = vector.load %arg9[%c0_85, %c9856] : memref<8x18432xf32, #tpu.memory_space<vmem>>, vector<8x128xf32>
    tpu.vector_store %arg9[%c0_85, %c9856], %170 {strides = array<i32>} : memref<8x18432xf32, #tpu.memory_space<vmem>>, vector<8x128xf32>,
    %172 = vector.extract_strided_slice %15 {offsets = [624, 0], sizes = [8, 128], strides = [1, 1]} : vector<1152x128xf32> to vector<8x128xf32>
    %c0_86 = arith.constant 0 : index
    %c9984 = arith.constant 9984 : index
    %173 = vector.load %arg9[%c0_86, %c9984] : memref<8x18432xf32, #tpu.memory_space<vmem>>, vector<8x128xf32>
    tpu.vector_store %arg9[%c0_86, %c9984], %172 {strides = array<i32>} : memref<8x18432xf32, #tpu.memory_space<vmem>>, vector<8x128xf32>,
    %174 = vector.extract_strided_slice %15 {offsets = [632, 0], sizes = [8, 128], strides = [1, 1]} : vector<1152x128xf32> to vector<8x128xf32>
    %c0_87 = arith.constant 0 : index
    %c10112 = arith.constant 10112 : index
    %175 = vector.load %arg9[%c0_87, %c10112] : memref<8x18432xf32, #tpu.memory_space<vmem>>, vector<8x128xf32>
    tpu.vector_store %arg9[%c0_87, %c10112], %174 {strides = array<i32>} : memref<8x18432xf32, #tpu.memory_space<vmem>>, vector<8x128xf32>,
    %176 = vector.extract_strided_slice %15 {offsets = [640, 0], sizes = [8, 128], strides = [1, 1]} : vector<1152x128xf32> to vector<8x128xf32>
    %c0_88 = arith.constant 0 : index
    %c10240 = arith.constant 10240 : index
    %177 = vector.load %arg9[%c0_88, %c10240] : memref<8x18432xf32, #tpu.memory_space<vmem>>, vector<8x128xf32>
    tpu.vector_store %arg9[%c0_88, %c10240], %176 {strides = array<i32>} : memref<8x18432xf32, #tpu.memory_space<vmem>>, vector<8x128xf32>,
    %178 = vector.extract_strided_slice %15 {offsets = [648, 0], sizes = [8, 128], strides = [1, 1]} : vector<1152x128xf32> to vector<8x128xf32>
    %c0_89 = arith.constant 0 : index
    %c10368 = arith.constant 10368 : index
    %179 = vector.load %arg9[%c0_89, %c10368] : memref<8x18432xf32, #tpu.memory_space<vmem>>, vector<8x128xf32>
    tpu.vector_store %arg9[%c0_89, %c10368], %178 {strides = array<i32>} : memref<8x18432xf32, #tpu.memory_space<vmem>>, vector<8x128xf32>,
    %180 = vector.extract_strided_slice %15 {offsets = [656, 0], sizes = [8, 128], strides = [1, 1]} : vector<1152x128xf32> to vector<8x128xf32>
    %c0_90 = arith.constant 0 : index
    %c10496 = arith.constant 10496 : index
    %181 = vector.load %arg9[%c0_90, %c10496] : memref<8x18432xf32, #tpu.memory_space<vmem>>, vector<8x128xf32>
    tpu.vector_store %arg9[%c0_90, %c10496], %180 {strides = array<i32>} : memref<8x18432xf32, #tpu.memory_space<vmem>>, vector<8x128xf32>,
    %182 = vector.extract_strided_slice %15 {offsets = [664, 0], sizes = [8, 128], strides = [1, 1]} : vector<1152x128xf32> to vector<8x128xf32>
    %c0_91 = arith.constant 0 : index
    %c10624 = arith.constant 10624 : index
    %183 = vector.load %arg9[%c0_91, %c10624] : memref<8x18432xf32, #tpu.memory_space<vmem>>, vector<8x128xf32>
    tpu.vector_store %arg9[%c0_91, %c10624], %182 {strides = array<i32>} : memref<8x18432xf32, #tpu.memory_space<vmem>>, vector<8x128xf32>,
    %184 = vector.extract_strided_slice %15 {offsets = [672, 0], sizes = [8, 128], strides = [1, 1]} : vector<1152x128xf32> to vector<8x128xf32>
    %c0_92 = arith.constant 0 : index
    %c10752 = arith.constant 10752 : index
    %185 = vector.load %arg9[%c0_92, %c10752] : memref<8x18432xf32, #tpu.memory_space<vmem>>, vector<8x128xf32>
    tpu.vector_store %arg9[%c0_92, %c10752], %184 {strides = array<i32>} : memref<8x18432xf32, #tpu.memory_space<vmem>>, vector<8x128xf32>,
    %186 = vector.extract_strided_slice %15 {offsets = [680, 0], sizes = [8, 128], strides = [1, 1]} : vector<1152x128xf32> to vector<8x128xf32>
    %c0_93 = arith.constant 0 : index
    %c10880 = arith.constant 10880 : index
    %187 = vector.load %arg9[%c0_93, %c10880] : memref<8x18432xf32, #tpu.memory_space<vmem>>, vector<8x128xf32>
    tpu.vector_store %arg9[%c0_93, %c10880], %186 {strides = array<i32>} : memref<8x18432xf32, #tpu.memory_space<vmem>>, vector<8x128xf32>,
    %188 = vector.extract_strided_slice %15 {offsets = [688, 0], sizes = [8, 128], strides = [1, 1]} : vector<1152x128xf32> to vector<8x128xf32>
    %c0_94 = arith.constant 0 : index
    %c11008 = arith.constant 11008 : index
    %189 = vector.load %arg9[%c0_94, %c11008] : memref<8x18432xf32, #tpu.memory_space<vmem>>, vector<8x128xf32>
    tpu.vector_store %arg9[%c0_94, %c11008], %188 {strides = array<i32>} : memref<8x18432xf32, #tpu.memory_space<vmem>>, vector<8x128xf32>,
    %190 = vector.extract_strided_slice %15 {offsets = [696, 0], sizes = [8, 128], strides = [1, 1]} : vector<1152x128xf32> to vector<8x128xf32>
    %c0_95 = arith.constant 0 : index
    %c11136 = arith.constant 11136 : index
    %191 = vector.load %arg9[%c0_95, %c11136] : memref<8x18432xf32, #tpu.memory_space<vmem>>, vector<8x128xf32>
    tpu.vector_store %arg9[%c0_95, %c11136], %190 {strides = array<i32>} : memref<8x18432xf32, #tpu.memory_space<vmem>>, vector<8x128xf32>,
    %192 = vector.extract_strided_slice %15 {offsets = [704, 0], sizes = [8, 128], strides = [1, 1]} : vector<1152x128xf32> to vector<8x128xf32>
    %c0_96 = arith.constant 0 : index
    %c11264 = arith.constant 11264 : index
    %193 = vector.load %arg9[%c0_96, %c11264] : memref<8x18432xf32, #tpu.memory_space<vmem>>, vector<8x128xf32>
    tpu.vector_store %arg9[%c0_96, %c11264], %192 {strides = array<i32>} : memref<8x18432xf32, #tpu.memory_space<vmem>>, vector<8x128xf32>,
    %194 = vector.extract_strided_slice %15 {offsets = [712, 0], sizes = [8, 128], strides = [1, 1]} : vector<1152x128xf32> to vector<8x128xf32>
    %c0_97 = arith.constant 0 : index
    %c11392 = arith.constant 11392 : index
    %195 = vector.load %arg9[%c0_97, %c11392] : memref<8x18432xf32, #tpu.memory_space<vmem>>, vector<8x128xf32>
    tpu.vector_store %arg9[%c0_97, %c11392], %194 {strides = array<i32>} : memref<8x18432xf32, #tpu.memory_space<vmem>>, vector<8x128xf32>,
    %196 = vector.extract_strided_slice %15 {offsets = [720, 0], sizes = [8, 128], strides = [1, 1]} : vector<1152x128xf32> to vector<8x128xf32>
    %c0_98 = arith.constant 0 : index
    %c11520 = arith.constant 11520 : index
    %197 = vector.load %arg9[%c0_98, %c11520] : memref<8x18432xf32, #tpu.memory_space<vmem>>, vector<8x128xf32>
    tpu.vector_store %arg9[%c0_98, %c11520], %196 {strides = array<i32>} : memref<8x18432xf32, #tpu.memory_space<vmem>>, vector<8x128xf32>,
    %198 = vector.extract_strided_slice %15 {offsets = [728, 0], sizes = [8, 128], strides = [1, 1]} : vector<1152x128xf32> to vector<8x128xf32>
    %c0_99 = arith.constant 0 : index
    %c11648 = arith.constant 11648 : index
    %199 = vector.load %arg9[%c0_99, %c11648] : memref<8x18432xf32, #tpu.memory_space<vmem>>, vector<8x128xf32>
    tpu.vector_store %arg9[%c0_99, %c11648], %198 {strides = array<i32>} : memref<8x18432xf32, #tpu.memory_space<vmem>>, vector<8x128xf32>,
    %200 = vector.extract_strided_slice %15 {offsets = [736, 0], sizes = [8, 128], strides = [1, 1]} : vector<1152x128xf32> to vector<8x128xf32>
    %c0_100 = arith.constant 0 : index
    %c11776 = arith.constant 11776 : index
    %201 = vector.load %arg9[%c0_100, %c11776] : memref<8x18432xf32, #tpu.memory_space<vmem>>, vector<8x128xf32>
    tpu.vector_store %arg9[%c0_100, %c11776], %200 {strides = array<i32>} : memref<8x18432xf32, #tpu.memory_space<vmem>>, vector<8x128xf32>,
    %202 = vector.extract_strided_slice %15 {offsets = [744, 0], sizes = [8, 128], strides = [1, 1]} : vector<1152x128xf32> to vector<8x128xf32>
    %c0_101 = arith.constant 0 : index
    %c11904 = arith.constant 11904 : index
    %203 = vector.load %arg9[%c0_101, %c11904] : memref<8x18432xf32, #tpu.memory_space<vmem>>, vector<8x128xf32>
    tpu.vector_store %arg9[%c0_101, %c11904], %202 {strides = array<i32>} : memref<8x18432xf32, #tpu.memory_space<vmem>>, vector<8x128xf32>,
    %204 = vector.extract_strided_slice %15 {offsets = [752, 0], sizes = [8, 128], strides = [1, 1]} : vector<1152x128xf32> to vector<8x128xf32>
    %c0_102 = arith.constant 0 : index
    %c12032 = arith.constant 12032 : index
    %205 = vector.load %arg9[%c0_102, %c12032] : memref<8x18432xf32, #tpu.memory_space<vmem>>, vector<8x128xf32>
    tpu.vector_store %arg9[%c0_102, %c12032], %204 {strides = array<i32>} : memref<8x18432xf32, #tpu.memory_space<vmem>>, vector<8x128xf32>,
    %206 = vector.extract_strided_slice %15 {offsets = [760, 0], sizes = [8, 128], strides = [1, 1]} : vector<1152x128xf32> to vector<8x128xf32>
    %c0_103 = arith.constant 0 : index
    %c12160 = arith.constant 12160 : index
    %207 = vector.load %arg9[%c0_103, %c12160] : memref<8x18432xf32, #tpu.memory_space<vmem>>, vector<8x128xf32>
    tpu.vector_store %arg9[%c0_103, %c12160], %206 {strides = array<i32>} : memref<8x18432xf32, #tpu.memory_space<vmem>>, vector<8x128xf32>,
    %208 = vector.extract_strided_slice %15 {offsets = [768, 0], sizes = [8, 128], strides = [1, 1]} : vector<1152x128xf32> to vector<8x128xf32>
    %c0_104 = arith.constant 0 : index
    %c12288 = arith.constant 12288 : index
    %209 = vector.load %arg9[%c0_104, %c12288] : memref<8x18432xf32, #tpu.memory_space<vmem>>, vector<8x128xf32>
    tpu.vector_store %arg9[%c0_104, %c12288], %208 {strides = array<i32>} : memref<8x18432xf32, #tpu.memory_space<vmem>>, vector<8x128xf32>,
    %210 = vector.extract_strided_slice %15 {offsets = [776, 0], sizes = [8, 128], strides = [1, 1]} : vector<1152x128xf32> to vector<8x128xf32>
    %c0_105 = arith.constant 0 : index
    %c12416 = arith.constant 12416 : index
    %211 = vector.load %arg9[%c0_105, %c12416] : memref<8x18432xf32, #tpu.memory_space<vmem>>, vector<8x128xf32>
    tpu.vector_store %arg9[%c0_105, %c12416], %210 {strides = array<i32>} : memref<8x18432xf32, #tpu.memory_space<vmem>>, vector<8x128xf32>,
    %212 = vector.extract_strided_slice %15 {offsets = [784, 0], sizes = [8, 128], strides = [1, 1]} : vector<1152x128xf32> to vector<8x128xf32>
    %c0_106 = arith.constant 0 : index
    %c12544 = arith.constant 12544 : index
    %213 = vector.load %arg9[%c0_106, %c12544] : memref<8x18432xf32, #tpu.memory_space<vmem>>, vector<8x128xf32>
    tpu.vector_store %arg9[%c0_106, %c12544], %212 {strides = array<i32>} : memref<8x18432xf32, #tpu.memory_space<vmem>>, vector<8x128xf32>,
    %214 = vector.extract_strided_slice %15 {offsets = [792, 0], sizes = [8, 128], strides = [1, 1]} : vector<1152x128xf32> to vector<8x128xf32>
    %c0_107 = arith.constant 0 : index
    %c12672 = arith.constant 12672 : index
    %215 = vector.load %arg9[%c0_107, %c12672] : memref<8x18432xf32, #tpu.memory_space<vmem>>, vector<8x128xf32>
    tpu.vector_store %arg9[%c0_107, %c12672], %214 {strides = array<i32>} : memref<8x18432xf32, #tpu.memory_space<vmem>>, vector<8x128xf32>,
    %216 = vector.extract_strided_slice %15 {offsets = [800, 0], sizes = [8, 128], strides = [1, 1]} : vector<1152x128xf32> to vector<8x128xf32>
    %c0_108 = arith.constant 0 : index
    %c12800 = arith.constant 12800 : index
    %217 = vector.load %arg9[%c0_108, %c12800] : memref<8x18432xf32, #tpu.memory_space<vmem>>, vector<8x128xf32>
    tpu.vector_store %arg9[%c0_108, %c12800], %216 {strides = array<i32>} : memref<8x18432xf32, #tpu.memory_space<vmem>>, vector<8x128xf32>,
    %218 = vector.extract_strided_slice %15 {offsets = [808, 0], sizes = [8, 128], strides = [1, 1]} : vector<1152x128xf32> to vector<8x128xf32>
    %c0_109 = arith.constant 0 : index
    %c12928 = arith.constant 12928 : index
    %219 = vector.load %arg9[%c0_109, %c12928] : memref<8x18432xf32, #tpu.memory_space<vmem>>, vector<8x128xf32>
    tpu.vector_store %arg9[%c0_109, %c12928], %218 {strides = array<i32>} : memref<8x18432xf32, #tpu.memory_space<vmem>>, vector<8x128xf32>,
    %220 = vector.extract_strided_slice %15 {offsets = [816, 0], sizes = [8, 128], strides = [1, 1]} : vector<1152x128xf32> to vector<8x128xf32>
    %c0_110 = arith.constant 0 : index
    %c13056 = arith.constant 13056 : index
    %221 = vector.load %arg9[%c0_110, %c13056] : memref<8x18432xf32, #tpu.memory_space<vmem>>, vector<8x128xf32>
    tpu.vector_store %arg9[%c0_110, %c13056], %220 {strides = array<i32>} : memref<8x18432xf32, #tpu.memory_space<vmem>>, vector<8x128xf32>,
    %222 = vector.extract_strided_slice %15 {offsets = [824, 0], sizes = [8, 128], strides = [1, 1]} : vector<1152x128xf32> to vector<8x128xf32>
    %c0_111 = arith.constant 0 : index
    %c13184 = arith.constant 13184 : index
    %223 = vector.load %arg9[%c0_111, %c13184] : memref<8x18432xf32, #tpu.memory_space<vmem>>, vector<8x128xf32>
    tpu.vector_store %arg9[%c0_111, %c13184], %222 {strides = array<i32>} : memref<8x18432xf32, #tpu.memory_space<vmem>>, vector<8x128xf32>,
    %224 = vector.extract_strided_slice %15 {offsets = [832, 0], sizes = [8, 128], strides = [1, 1]} : vector<1152x128xf32> to vector<8x128xf32>
    %c0_112 = arith.constant 0 : index
    %c13312 = arith.constant 13312 : index
    %225 = vector.load %arg9[%c0_112, %c13312] : memref<8x18432xf32, #tpu.memory_space<vmem>>, vector<8x128xf32>
    tpu.vector_store %arg9[%c0_112, %c13312], %224 {strides = array<i32>} : memref<8x18432xf32, #tpu.memory_space<vmem>>, vector<8x128xf32>,
    %226 = vector.extract_strided_slice %15 {offsets = [840, 0], sizes = [8, 128], strides = [1, 1]} : vector<1152x128xf32> to vector<8x128xf32>
    %c0_113 = arith.constant 0 : index
    %c13440 = arith.constant 13440 : index
    %227 = vector.load %arg9[%c0_113, %c13440] : memref<8x18432xf32, #tpu.memory_space<vmem>>, vector<8x128xf32>
    tpu.vector_store %arg9[%c0_113, %c13440], %226 {strides = array<i32>} : memref<8x18432xf32, #tpu.memory_space<vmem>>, vector<8x128xf32>,
    %228 = vector.extract_strided_slice %15 {offsets = [848, 0], sizes = [8, 128], strides = [1, 1]} : vector<1152x128xf32> to vector<8x128xf32>
    %c0_114 = arith.constant 0 : index
    %c13568 = arith.constant 13568 : index
    %229 = vector.load %arg9[%c0_114, %c13568] : memref<8x18432xf32, #tpu.memory_space<vmem>>, vector<8x128xf32>
    tpu.vector_store %arg9[%c0_114, %c13568], %228 {strides = array<i32>} : memref<8x18432xf32, #tpu.memory_space<vmem>>, vector<8x128xf32>,
    %230 = vector.extract_strided_slice %15 {offsets = [856, 0], sizes = [8, 128], strides = [1, 1]} : vector<1152x128xf32> to vector<8x128xf32>
    %c0_115 = arith.constant 0 : index
    %c13696 = arith.constant 13696 : index
    %231 = vector.load %arg9[%c0_115, %c13696] : memref<8x18432xf32, #tpu.memory_space<vmem>>, vector<8x128xf32>
    tpu.vector_store %arg9[%c0_115, %c13696], %230 {strides = array<i32>} : memref<8x18432xf32, #tpu.memory_space<vmem>>, vector<8x128xf32>,
    %232 = vector.extract_strided_slice %15 {offsets = [864, 0], sizes = [8, 128], strides = [1, 1]} : vector<1152x128xf32> to vector<8x128xf32>
    %c0_116 = arith.constant 0 : index
    %c13824 = arith.constant 13824 : index
    %233 = vector.load %arg9[%c0_116, %c13824] : memref<8x18432xf32, #tpu.memory_space<vmem>>, vector<8x128xf32>
    tpu.vector_store %arg9[%c0_116, %c13824], %232 {strides = array<i32>} : memref<8x18432xf32, #tpu.memory_space<vmem>>, vector<8x128xf32>,
    %234 = vector.extract_strided_slice %15 {offsets = [872, 0], sizes = [8, 128], strides = [1, 1]} : vector<1152x128xf32> to vector<8x128xf32>
    %c0_117 = arith.constant 0 : index
    %c13952 = arith.constant 13952 : index
    %235 = vector.load %arg9[%c0_117, %c13952] : memref<8x18432xf32, #tpu.memory_space<vmem>>, vector<8x128xf32>
    tpu.vector_store %arg9[%c0_117, %c13952], %234 {strides = array<i32>} : memref<8x18432xf32, #tpu.memory_space<vmem>>, vector<8x128xf32>,
    %236 = vector.extract_strided_slice %15 {offsets = [880, 0], sizes = [8, 128], strides = [1, 1]} : vector<1152x128xf32> to vector<8x128xf32>
    %c0_118 = arith.constant 0 : index
    %c14080 = arith.constant 14080 : index
    %237 = vector.load %arg9[%c0_118, %c14080] : memref<8x18432xf32, #tpu.memory_space<vmem>>, vector<8x128xf32>
    tpu.vector_store %arg9[%c0_118, %c14080], %236 {strides = array<i32>} : memref<8x18432xf32, #tpu.memory_space<vmem>>, vector<8x128xf32>,
    %238 = vector.extract_strided_slice %15 {offsets = [888, 0], sizes = [8, 128], strides = [1, 1]} : vector<1152x128xf32> to vector<8x128xf32>
    %c0_119 = arith.constant 0 : index
    %c14208 = arith.constant 14208 : index
    %239 = vector.load %arg9[%c0_119, %c14208] : memref<8x18432xf32, #tpu.memory_space<vmem>>, vector<8x128xf32>
    tpu.vector_store %arg9[%c0_119, %c14208], %238 {strides = array<i32>} : memref<8x18432xf32, #tpu.memory_space<vmem>>, vector<8x128xf32>,
    %240 = vector.extract_strided_slice %15 {offsets = [896, 0], sizes = [8, 128], strides = [1, 1]} : vector<1152x128xf32> to vector<8x128xf32>
    %c0_120 = arith.constant 0 : index
    %c14336 = arith.constant 14336 : index
    %241 = vector.load %arg9[%c0_120, %c14336] : memref<8x18432xf32, #tpu.memory_space<vmem>>, vector<8x128xf32>
    tpu.vector_store %arg9[%c0_120, %c14336], %240 {strides = array<i32>} : memref<8x18432xf32, #tpu.memory_space<vmem>>, vector<8x128xf32>,
    %242 = vector.extract_strided_slice %15 {offsets = [904, 0], sizes = [8, 128], strides = [1, 1]} : vector<1152x128xf32> to vector<8x128xf32>
    %c0_121 = arith.constant 0 : index
    %c14464 = arith.constant 14464 : index
    %243 = vector.load %arg9[%c0_121, %c14464] : memref<8x18432xf32, #tpu.memory_space<vmem>>, vector<8x128xf32>
    tpu.vector_store %arg9[%c0_121, %c14464], %242 {strides = array<i32>} : memref<8x18432xf32, #tpu.memory_space<vmem>>, vector<8x128xf32>,
    %244 = vector.extract_strided_slice %15 {offsets = [912, 0], sizes = [8, 128], strides = [1, 1]} : vector<1152x128xf32> to vector<8x128xf32>
    %c0_122 = arith.constant 0 : index
    %c14592 = arith.constant 14592 : index
    %245 = vector.load %arg9[%c0_122, %c14592] : memref<8x18432xf32, #tpu.memory_space<vmem>>, vector<8x128xf32>
    tpu.vector_store %arg9[%c0_122, %c14592], %244 {strides = array<i32>} : memref<8x18432xf32, #tpu.memory_space<vmem>>, vector<8x128xf32>,
    %246 = vector.extract_strided_slice %15 {offsets = [920, 0], sizes = [8, 128], strides = [1, 1]} : vector<1152x128xf32> to vector<8x128xf32>
    %c0_123 = arith.constant 0 : index
    %c14720 = arith.constant 14720 : index
    %247 = vector.load %arg9[%c0_123, %c14720] : memref<8x18432xf32, #tpu.memory_space<vmem>>, vector<8x128xf32>
    tpu.vector_store %arg9[%c0_123, %c14720], %246 {strides = array<i32>} : memref<8x18432xf32, #tpu.memory_space<vmem>>, vector<8x128xf32>,
    %248 = vector.extract_strided_slice %15 {offsets = [928, 0], sizes = [8, 128], strides = [1, 1]} : vector<1152x128xf32> to vector<8x128xf32>
    %c0_124 = arith.constant 0 : index
    %c14848 = arith.constant 14848 : index
    %249 = vector.load %arg9[%c0_124, %c14848] : memref<8x18432xf32, #tpu.memory_space<vmem>>, vector<8x128xf32>
    tpu.vector_store %arg9[%c0_124, %c14848], %248 {strides = array<i32>} : memref<8x18432xf32, #tpu.memory_space<vmem>>, vector<8x128xf32>,
    %250 = vector.extract_strided_slice %15 {offsets = [936, 0], sizes = [8, 128], strides = [1, 1]} : vector<1152x128xf32> to vector<8x128xf32>
    %c0_125 = arith.constant 0 : index
    %c14976 = arith.constant 14976 : index
    %251 = vector.load %arg9[%c0_125, %c14976] : memref<8x18432xf32, #tpu.memory_space<vmem>>, vector<8x128xf32>
    tpu.vector_store %arg9[%c0_125, %c14976], %250 {strides = array<i32>} : memref<8x18432xf32, #tpu.memory_space<vmem>>, vector<8x128xf32>,
    %252 = vector.extract_strided_slice %15 {offsets = [944, 0], sizes = [8, 128], strides = [1, 1]} : vector<1152x128xf32> to vector<8x128xf32>
    %c0_126 = arith.constant 0 : index
    %c15104 = arith.constant 15104 : index
    %253 = vector.load %arg9[%c0_126, %c15104] : memref<8x18432xf32, #tpu.memory_space<vmem>>, vector<8x128xf32>
    tpu.vector_store %arg9[%c0_126, %c15104], %252 {strides = array<i32>} : memref<8x18432xf32, #tpu.memory_space<vmem>>, vector<8x128xf32>,
    %254 = vector.extract_strided_slice %15 {offsets = [952, 0], sizes = [8, 128], strides = [1, 1]} : vector<1152x128xf32> to vector<8x128xf32>
    %c0_127 = arith.constant 0 : index
    %c15232 = arith.constant 15232 : index
    %255 = vector.load %arg9[%c0_127, %c15232] : memref<8x18432xf32, #tpu.memory_space<vmem>>, vector<8x128xf32>
    tpu.vector_store %arg9[%c0_127, %c15232], %254 {strides = array<i32>} : memref<8x18432xf32, #tpu.memory_space<vmem>>, vector<8x128xf32>,
    %256 = vector.extract_strided_slice %15 {offsets = [960, 0], sizes = [8, 128], strides = [1, 1]} : vector<1152x128xf32> to vector<8x128xf32>
    %c0_128 = arith.constant 0 : index
    %c15360 = arith.constant 15360 : index
    %257 = vector.load %arg9[%c0_128, %c15360] : memref<8x18432xf32, #tpu.memory_space<vmem>>, vector<8x128xf32>
    tpu.vector_store %arg9[%c0_128, %c15360], %256 {strides = array<i32>} : memref<8x18432xf32, #tpu.memory_space<vmem>>, vector<8x128xf32>,
    %258 = vector.extract_strided_slice %15 {offsets = [968, 0], sizes = [8, 128], strides = [1, 1]} : vector<1152x128xf32> to vector<8x128xf32>
    %c0_129 = arith.constant 0 : index
    %c15488 = arith.constant 15488 : index
    %259 = vector.load %arg9[%c0_129, %c15488] : memref<8x18432xf32, #tpu.memory_space<vmem>>, vector<8x128xf32>
    tpu.vector_store %arg9[%c0_129, %c15488], %258 {strides = array<i32>} : memref<8x18432xf32, #tpu.memory_space<vmem>>, vector<8x128xf32>,
    %260 = vector.extract_strided_slice %15 {offsets = [976, 0], sizes = [8, 128], strides = [1, 1]} : vector<1152x128xf32> to vector<8x128xf32>
    %c0_130 = arith.constant 0 : index
    %c15616 = arith.constant 15616 : index
    %261 = vector.load %arg9[%c0_130, %c15616] : memref<8x18432xf32, #tpu.memory_space<vmem>>, vector<8x128xf32>
    tpu.vector_store %arg9[%c0_130, %c15616], %260 {strides = array<i32>} : memref<8x18432xf32, #tpu.memory_space<vmem>>, vector<8x128xf32>,
    %262 = vector.extract_strided_slice %15 {offsets = [984, 0], sizes = [8, 128], strides = [1, 1]} : vector<1152x128xf32> to vector<8x128xf32>
    %c0_131 = arith.constant 0 : index
    %c15744 = arith.constant 15744 : index
    %263 = vector.load %arg9[%c0_131, %c15744] : memref<8x18432xf32, #tpu.memory_space<vmem>>, vector<8x128xf32>
    tpu.vector_store %arg9[%c0_131, %c15744], %262 {strides = array<i32>} : memref<8x18432xf32, #tpu.memory_space<vmem>>, vector<8x128xf32>,
    %264 = vector.extract_strided_slice %15 {offsets = [992, 0], sizes = [8, 128], strides = [1, 1]} : vector<1152x128xf32> to vector<8x128xf32>
    %c0_132 = arith.constant 0 : index
    %c15872 = arith.constant 15872 : index
    %265 = vector.load %arg9[%c0_132, %c15872] : memref<8x18432xf32, #tpu.memory_space<vmem>>, vector<8x128xf32>
    tpu.vector_store %arg9[%c0_132, %c15872], %264 {strides = array<i32>} : memref<8x18432xf32, #tpu.memory_space<vmem>>, vector<8x128xf32>,
    %266 = vector.extract_strided_slice %15 {offsets = [1000, 0], sizes = [8, 128], strides = [1, 1]} : vector<1152x128xf32> to vector<8x128xf32>
    %c0_133 = arith.constant 0 : index
    %c16000 = arith.constant 16000 : index
    %267 = vector.load %arg9[%c0_133, %c16000] : memref<8x18432xf32, #tpu.memory_space<vmem>>, vector<8x128xf32>
    tpu.vector_store %arg9[%c0_133, %c16000], %266 {strides = array<i32>} : memref<8x18432xf32, #tpu.memory_space<vmem>>, vector<8x128xf32>,
    %268 = vector.extract_strided_slice %15 {offsets = [1008, 0], sizes = [8, 128], strides = [1, 1]} : vector<1152x128xf32> to vector<8x128xf32>
    %c0_134 = arith.constant 0 : index
    %c16128 = arith.constant 16128 : index
    %269 = vector.load %arg9[%c0_134, %c16128] : memref<8x18432xf32, #tpu.memory_space<vmem>>, vector<8x128xf32>
    tpu.vector_store %arg9[%c0_134, %c16128], %268 {strides = array<i32>} : memref<8x18432xf32, #tpu.memory_space<vmem>>, vector<8x128xf32>,
    %270 = vector.extract_strided_slice %15 {offsets = [1016, 0], sizes = [8, 128], strides = [1, 1]} : vector<1152x128xf32> to vector<8x128xf32>
    %c0_135 = arith.constant 0 : index
    %c16256 = arith.constant 16256 : index
    %271 = vector.load %arg9[%c0_135, %c16256] : memref<8x18432xf32, #tpu.memory_space<vmem>>, vector<8x128xf32>
    tpu.vector_store %arg9[%c0_135, %c16256], %270 {strides = array<i32>} : memref<8x18432xf32, #tpu.memory_space<vmem>>, vector<8x128xf32>,
    %272 = vector.extract_strided_slice %15 {offsets = [1024, 0], sizes = [8, 128], strides = [1, 1]} : vector<1152x128xf32> to vector<8x128xf32>
    %c0_136 = arith.constant 0 : index
    %c16384 = arith.constant 16384 : index
    %273 = vector.load %arg9[%c0_136, %c16384] : memref<8x18432xf32, #tpu.memory_space<vmem>>, vector<8x128xf32>
    tpu.vector_store %arg9[%c0_136, %c16384], %272 {strides = array<i32>} : memref<8x18432xf32, #tpu.memory_space<vmem>>, vector<8x128xf32>,
    %274 = vector.extract_strided_slice %15 {offsets = [1032, 0], sizes = [8, 128], strides = [1, 1]} : vector<1152x128xf32> to vector<8x128xf32>
    %c0_137 = arith.constant 0 : index
    %c16512 = arith.constant 16512 : index
    %275 = vector.load %arg9[%c0_137, %c16512] : memref<8x18432xf32, #tpu.memory_space<vmem>>, vector<8x128xf32>
    tpu.vector_store %arg9[%c0_137, %c16512], %274 {strides = array<i32>} : memref<8x18432xf32, #tpu.memory_space<vmem>>, vector<8x128xf32>,
    %276 = vector.extract_strided_slice %15 {offsets = [1040, 0], sizes = [8, 128], strides = [1, 1]} : vector<1152x128xf32> to vector<8x128xf32>
    %c0_138 = arith.constant 0 : index
    %c16640 = arith.constant 16640 : index
    %277 = vector.load %arg9[%c0_138, %c16640] : memref<8x18432xf32, #tpu.memory_space<vmem>>, vector<8x128xf32>
    tpu.vector_store %arg9[%c0_138, %c16640], %276 {strides = array<i32>} : memref<8x18432xf32, #tpu.memory_space<vmem>>, vector<8x128xf32>,
    %278 = vector.extract_strided_slice %15 {offsets = [1048, 0], sizes = [8, 128], strides = [1, 1]} : vector<1152x128xf32> to vector<8x128xf32>
    %c0_139 = arith.constant 0 : index
    %c16768 = arith.constant 16768 : index
    %279 = vector.load %arg9[%c0_139, %c16768] : memref<8x18432xf32, #tpu.memory_space<vmem>>, vector<8x128xf32>
    tpu.vector_store %arg9[%c0_139, %c16768], %278 {strides = array<i32>} : memref<8x18432xf32, #tpu.memory_space<vmem>>, vector<8x128xf32>,
    %280 = vector.extract_strided_slice %15 {offsets = [1056, 0], sizes = [8, 128], strides = [1, 1]} : vector<1152x128xf32> to vector<8x128xf32>
    %c0_140 = arith.constant 0 : index
    %c16896 = arith.constant 16896 : index
    %281 = vector.load %arg9[%c0_140, %c16896] : memref<8x18432xf32, #tpu.memory_space<vmem>>, vector<8x128xf32>
    tpu.vector_store %arg9[%c0_140, %c16896], %280 {strides = array<i32>} : memref<8x18432xf32, #tpu.memory_space<vmem>>, vector<8x128xf32>,
    %282 = vector.extract_strided_slice %15 {offsets = [1064, 0], sizes = [8, 128], strides = [1, 1]} : vector<1152x128xf32> to vector<8x128xf32>
    %c0_141 = arith.constant 0 : index
    %c17024 = arith.constant 17024 : index
    %283 = vector.load %arg9[%c0_141, %c17024] : memref<8x18432xf32, #tpu.memory_space<vmem>>, vector<8x128xf32>
    tpu.vector_store %arg9[%c0_141, %c17024], %282 {strides = array<i32>} : memref<8x18432xf32, #tpu.memory_space<vmem>>, vector<8x128xf32>,
    %284 = vector.extract_strided_slice %15 {offsets = [1072, 0], sizes = [8, 128], strides = [1, 1]} : vector<1152x128xf32> to vector<8x128xf32>
    %c0_142 = arith.constant 0 : index
    %c17152 = arith.constant 17152 : index
    %285 = vector.load %arg9[%c0_142, %c17152] : memref<8x18432xf32, #tpu.memory_space<vmem>>, vector<8x128xf32>
    tpu.vector_store %arg9[%c0_142, %c17152], %284 {strides = array<i32>} : memref<8x18432xf32, #tpu.memory_space<vmem>>, vector<8x128xf32>,
    %286 = vector.extract_strided_slice %15 {offsets = [1080, 0], sizes = [8, 128], strides = [1, 1]} : vector<1152x128xf32> to vector<8x128xf32>
    %c0_143 = arith.constant 0 : index
    %c17280 = arith.constant 17280 : index
    %287 = vector.load %arg9[%c0_143, %c17280] : memref<8x18432xf32, #tpu.memory_space<vmem>>, vector<8x128xf32>
    tpu.vector_store %arg9[%c0_143, %c17280], %286 {strides = array<i32>} : memref<8x18432xf32, #tpu.memory_space<vmem>>, vector<8x128xf32>,
    %288 = vector.extract_strided_slice %15 {offsets = [1088, 0], sizes = [8, 128], strides = [1, 1]} : vector<1152x128xf32> to vector<8x128xf32>
    %c0_144 = arith.constant 0 : index
    %c17408 = arith.constant 17408 : index
    %289 = vector.load %arg9[%c0_144, %c17408] : memref<8x18432xf32, #tpu.memory_space<vmem>>, vector<8x128xf32>
    tpu.vector_store %arg9[%c0_144, %c17408], %288 {strides = array<i32>} : memref<8x18432xf32, #tpu.memory_space<vmem>>, vector<8x128xf32>,
    %290 = vector.extract_strided_slice %15 {offsets = [1096, 0], sizes = [8, 128], strides = [1, 1]} : vector<1152x128xf32> to vector<8x128xf32>
    %c0_145 = arith.constant 0 : index
    %c17536 = arith.constant 17536 : index
    %291 = vector.load %arg9[%c0_145, %c17536] : memref<8x18432xf32, #tpu.memory_space<vmem>>, vector<8x128xf32>
    tpu.vector_store %arg9[%c0_145, %c17536], %290 {strides = array<i32>} : memref<8x18432xf32, #tpu.memory_space<vmem>>, vector<8x128xf32>,
    %292 = vector.extract_strided_slice %15 {offsets = [1104, 0], sizes = [8, 128], strides = [1, 1]} : vector<1152x128xf32> to vector<8x128xf32>
    %c0_146 = arith.constant 0 : index
    %c17664 = arith.constant 17664 : index
    %293 = vector.load %arg9[%c0_146, %c17664] : memref<8x18432xf32, #tpu.memory_space<vmem>>, vector<8x128xf32>
    tpu.vector_store %arg9[%c0_146, %c17664], %292 {strides = array<i32>} : memref<8x18432xf32, #tpu.memory_space<vmem>>, vector<8x128xf32>,
    %294 = vector.extract_strided_slice %15 {offsets = [1112, 0], sizes = [8, 128], strides = [1, 1]} : vector<1152x128xf32> to vector<8x128xf32>
    %c0_147 = arith.constant 0 : index
    %c17792 = arith.constant 17792 : index
    %295 = vector.load %arg9[%c0_147, %c17792] : memref<8x18432xf32, #tpu.memory_space<vmem>>, vector<8x128xf32>
    tpu.vector_store %arg9[%c0_147, %c17792], %294 {strides = array<i32>} : memref<8x18432xf32, #tpu.memory_space<vmem>>, vector<8x128xf32>,
    %296 = vector.extract_strided_slice %15 {offsets = [1120, 0], sizes = [8, 128], strides = [1, 1]} : vector<1152x128xf32> to vector<8x128xf32>
    %c0_148 = arith.constant 0 : index
    %c17920 = arith.constant 17920 : index
    %297 = vector.load %arg9[%c0_148, %c17920] : memref<8x18432xf32, #tpu.memory_space<vmem>>, vector<8x128xf32>
    tpu.vector_store %arg9[%c0_148, %c17920], %296 {strides = array<i32>} : memref<8x18432xf32, #tpu.memory_space<vmem>>, vector<8x128xf32>,
    %298 = vector.extract_strided_slice %15 {offsets = [1128, 0], sizes = [8, 128], strides = [1, 1]} : vector<1152x128xf32> to vector<8x128xf32>
    %c0_149 = arith.constant 0 : index
    %c18048 = arith.constant 18048 : index
    %299 = vector.load %arg9[%c0_149, %c18048] : memref<8x18432xf32, #tpu.memory_space<vmem>>, vector<8x128xf32>
    tpu.vector_store %arg9[%c0_149, %c18048], %298 {strides = array<i32>} : memref<8x18432xf32, #tpu.memory_space<vmem>>, vector<8x128xf32>,
    %300 = vector.extract_strided_slice %15 {offsets = [1136, 0], sizes = [8, 128], strides = [1, 1]} : vector<1152x128xf32> to vector<8x128xf32>
    %c0_150 = arith.constant 0 : index
    %c18176 = arith.constant 18176 : index
    %301 = vector.load %arg9[%c0_150, %c18176] : memref<8x18432xf32, #tpu.memory_space<vmem>>, vector<8x128xf32>
    tpu.vector_store %arg9[%c0_150, %c18176], %300 {strides = array<i32>} : memref<8x18432xf32, #tpu.memory_space<vmem>>, vector<8x128xf32>,
    %302 = vector.extract_strided_slice %15 {offsets = [1144, 0], sizes = [8, 128], strides = [1, 1]} : vector<1152x128xf32> to vector<8x128xf32>
    %c0_151 = arith.constant 0 : index
    %c18304 = arith.constant 18304 : index
    %303 = vector.load %arg9[%c0_151, %c18304] : memref<8x18432xf32, #tpu.memory_space<vmem>>, vector<8x128xf32>
    tpu.vector_store %arg9[%c0_151, %c18304], %302 {strides = array<i32>} : memref<8x18432xf32, #tpu.memory_space<vmem>>, vector<8x128xf32>,
    %c0_152 = arith.constant 0 : index
    %c0_153 = arith.constant 0 : index
    %304 = vector.load %arg9[%c0_152, %c0_153] : memref<8x18432xf32, #tpu.memory_space<vmem>>, vector<8x18432xf32>
    %305 = arith.truncf %304 : vector<8x18432xf32> to vector<8x18432xbf16>
    %c0_154 = arith.constant 0 : index
    %c0_155 = arith.constant 0 : index
    %306 = vector.load %arg4[%c0_154, %c0_155] : memref<18432x128xbf16, #tpu.memory_space<vmem>>, vector<18432x128xbf16>
    %cst_156 = arith.constant dense<0.000000e+00> : vector<8x128xf32>
    %307 = tpu.matmul %305, %306, %cst_156 {dimension_numbers = #tpu.dot_dimension_numbers<[1], [0], [0], [1], [0, 0, 1, 1], [], []>} : vector<8x18432xbf16>, vector<18432x128xbf16>, vector<8x128xf32> -> vector<8x128xf32>
    %c0_157 = arith.constant 0 : index
    %c0_158 = arith.constant 0 : index
    %308 = vector.load %arg5[%c0_157, %c0_158] : memref<1x128xf32, #tpu.memory_space<vmem>>, vector<1x128xf32>
    %309 = vector.broadcast %308 : vector<1x128xf32> to vector<8x128xf32>
    %310 = arith.addf %307, %309 : vector<8x128xf32>
    %cst_159 = arith.constant 0.000000e+00 : f32
    %311 = vector.broadcast %cst_159 : f32 to vector<8x128xf32>
    %312 = arith.maximumf %310, %311 : vector<8x128xf32>
    %313 = arith.truncf %312 : vector<8x128xf32> to vector<8x128xbf16>
    %c0_160 = arith.constant 0 : index
    %c0_161 = arith.constant 0 : index
    %314 = vector.load %arg6[%c0_160, %c0_161] : memref<128x128xbf16, #tpu.memory_space<vmem>>, vector<128x128xbf16>
    %cst_162 = arith.constant dense<0.000000e+00> : vector<8x128xf32>
    %315 = tpu.matmul %313, %314, %cst_162 {dimension_numbers = #tpu.dot_dimension_numbers<[1], [0], [0], [1], [0, 0, 1, 1], [], []>} : vector<8x128xbf16>, vector<128x128xbf16>, vector<8x128xf32> -> vector<8x128xf32>
    %c0_163 = arith.constant 0 : index
    %c0_164 = arith.constant 0 : index
    %316 = vector.load %arg7[%c0_163, %c0_164] : memref<1x128xf32, #tpu.memory_space<vmem>>, vector<1x128xf32>
    %317 = vector.broadcast %316 : vector<1x128xf32> to vector<8x128xf32>
    %318 = arith.addf %315, %317 : vector<8x128xf32>
    %c0_165 = arith.constant 0 : index
    %c0_166 = arith.constant 0 : index
    %319 = vector.load %arg8[%c0_165, %c0_166] : memref<8x128xf32, #tpu.memory_space<vmem>>, vector<8x128xf32>
    tpu.vector_store %arg8[%c0_165, %c0_166], %318 {strides = array<i32>} : memref<8x128xf32, #tpu.memory_space<vmem>>, vector<8x128xf32>,
    return
  }
  func.func @transform_0(%arg0: i32) -> (i32, i32, i32) {
    %c0_i32 = arith.constant 0 : i32
    %c0_i32_0 = arith.constant 0 : i32
    %c0_i32_1 = arith.constant 0 : i32
    return %arg0, %c0_i32, %c0_i32_0 : i32, i32, i32
  }
  func.func @transform_1(%arg0: i32) -> (i32, i32) {
    %c0_i32 = arith.constant 0 : i32
    %c0_i32_0 = arith.constant 0 : i32
    %c0_i32_1 = arith.constant 0 : i32
    return %c0_i32, %c0_i32_0 : i32, i32
  }
  func.func @transform_2(%arg0: i32) -> (i32, i32) {
    %c0_i32 = arith.constant 0 : i32
    %c0_i32_0 = arith.constant 0 : i32
    %c0_i32_1 = arith.constant 0 : i32
    return %c0_i32, %c0_i32_0 : i32, i32
  }
  func.func @transform_3(%arg0: i32) -> (i32, i32) {
    %c0_i32 = arith.constant 0 : i32
    %c0_i32_0 = arith.constant 0 : i32
    %c0_i32_1 = arith.constant 0 : i32
    return %c0_i32, %c0_i32_0 : i32, i32
  }
  func.func @transform_4(%arg0: i32) -> (i32, i32) {
    %c0_i32 = arith.constant 0 : i32
    %c0_i32_0 = arith.constant 0 : i32
    %c0_i32_1 = arith.constant 0 : i32
    return %c0_i32, %c0_i32_0 : i32, i32
  }
  func.func @transform_5(%arg0: i32) -> (i32, i32) {
    %c0_i32 = arith.constant 0 : i32
    %c0_i32_0 = arith.constant 0 : i32
    %c0_i32_1 = arith.constant 0 : i32
    return %c0_i32, %c0_i32_0 : i32, i32
  }
  func.func @transform_6(%arg0: i32) -> (i32, i32) {
    %c0_i32 = arith.constant 0 : i32
    %c0_i32_0 = arith.constant 0 : i32
    %c0_i32_1 = arith.constant 0 : i32
    return %c0_i32, %c0_i32_0 : i32, i32
  }
  func.func @transform_7(%arg0: i32) -> (i32, i32) {
    %c0_i32 = arith.constant 0 : i32
    %c0_i32_0 = arith.constant 0 : i32
    return %arg0, %c0_i32 : i32, i32
  }
}

</mosaic_0001>

<bundles_post_ra>
// kernel: lenet_forward.1
= control target key start
LH: loop header
LB: loop body
LE: loop exit
PB: predicated region body
PF: predicated region fallthrough
CT: control target
= control target key end

     0   :  { %12 = vsyncpa [#allocation4], 0  ;;  %s31442_s0 = inlined_call_operand.vmem [shape: bf16[2,4608,72], index: 0, kind: input, shape index: {}]   ;;  %s31443_s1 = inlined_call_operand.vmem [shape: bf16[72,128], index: 1, kind: input, shape index: {}]   ;;  %s31444_s2 = inlined_call_operand.vmem [shape: f32[1,128], index: 2, kind: input, shape index: {}]   ;;  %s31445_s3 = inlined_call_operand.vmem [shape: bf16[18432,128], index: 3, kind: input, shape index: {}]   ;;  %s31446_s4 = inlined_call_operand.vmem [shape: f32[1,128], index: 4, kind: input, shape index: {}]   ;;  %s31447_s5 = inlined_call_operand.vmem [shape: bf16[128,128], index: 5, kind: input, shape index: {}]   ;;  %s31448_s6 = inlined_call_operand.vmem [shape: f32[1,128], index: 6, kind: input, shape index: {}]   ;;  %s31449_s7 = inlined_call_operand.hbm [shape: f32[16,128], index: 7, kind: output, shape index: {}]  }
   0x1   :  { %14 = vsyncpa [#allocation4 + $0x1], 0  ;;  %s24841_s24 = smov 0   ;;  %s24843_s25 = smov 0  }
   0x2   :  { %s24845_s26 = smov 0   ;;  %s24847_s27 = smov 0  }
   0x3 LB: > { %s24862_s28 = sadd.s32 4294967295, %s24796_s27   ;;  %s18985_s29 = sadd.s32 4294967294, %s24796_s27   ;;  %s24796_s27 = sphi %s24847_s27, %s32873_s27   ;;  %s24792_s26 = sphi %s24845_s26, %s32872_s26   ;;  %s24788_s25 = sphi %s24843_s25, %s32871_s25   ;;  %s24784_s24 = sphi %s24841_s24, %s32870_s24  }
   0x4   : > { %s24866_s30 = sadd.s32 1, %s24796_s27   ;;  %s179_s8 = sadd.s32 1, %s24792_s26 }
   0x5   : > { %s176_s9 = ssub.s32 %s24796_s27, %s24866_s30  ;;  %p189_p0 = scmp.ne.s32.totalorder %s24792_s26, %s24788_s25 }
   0x6   : > { %p177_p1 = scmp.eq.s32.totalorder %s176_s9, 0  ;;  %p190_p2 = scmp.eq.s32.totalorder %s24862_s28, 1 }
   0x7   : > { %p195_p3 = scmp.ne.s32.totalorder %s24788_s25, %s24784_s24  ;;  %p196_p4 = scmp.eq.s32.totalorder %s18985_s29, 1 }
   0x8   : > { %s24877_s10 = scalar_select %p177_p1, %s24792_s26, %s179_s8  }
   0x9   : > { %p24879_p5 = por %p190_p2, %p189_p0  ;;  %p24883_p6 = por %p196_p4, %p195_p3 }
   0xa   : > { %p18988_p7 = scmp.ge.s32.totalorder %s24796_s27, 1  ;;  %p240_p8 = scmp.lt.s32.totalorder %s24796_s27, 3 }
   0xc   : > { %p241_p9 = pnand %p18988_p7, %p240_p8 }
   0xe   : > { %244 = sbr.rel (%p241_p9) target bundleno = 3277 (0xccd), region = 48 }
  0x15   : > { %v23274_v0 = vld [vmem:[%s31443_s1] sm:$0xff]   ;;  %v23275_v1 = vld [vmem:[%s31443_s1 + $0x8] sm:$0xff]   ;;  %p272_p10 = scmp.lt.s32.totalorder %s24862_s28, 1  ;;  %v23276_v2 = vld [vmem:[%s31443_s1 + $0x10] sm:$0xff]   ;;  %vm2330_vm0 = vcmask 588800   ;;  %vm3195_vm1 = vcmask 1043456  }
  0x16   : > { %22625 = vmatprep.subr.bf16.mxu0 %v23274_v0  ;;  %v23277_v3 = vld [vmem:[%s31443_s1 + $0x18] sm:$0xff]   ;;  %v23278_v5 = vld [vmem:[%s31443_s1 + $0x20] ss:$0 sps:$4 sm:$0xff]   ;;  %vm24799_vm2 = vmmov 0   ;;  %s20736_s13 = sshll.u32 %s24862_s28, 7 }
  0x17   : > { %22626 = vmatpush3.bf16.msra.mxu0 %v23274_v0  ;;  %s273_s17 = scalar_select %p272_p10, %s24862_s28, 1  ;;  %v3197_v6 = vsel %vm3195_vm1, %v23278_v5, 0 }
  0x18   : > { %22627 = vmatprep.subr.bf16.mxu0 %v23275_v1  ;;  %s31400_s18 = scalar_lea.hbm %s31449_s7, %s20736_s13 }
  0x19   : > { %s23232_s20 = smul.u32 2304, %s273_s17 }
  0x1b   : > { %22628 = vmatpush3.bf16.msra.mxu0 %v23275_v1  ;;  %s24906_s8 = scalar_lea.vmem %s31442_s0, %s23232_s20  ;;  %s24800_s20 = smov [#allocation3]  }
  0x1c   : > { %22629 = vmatprep.subr.bf16.mxu0 %v23276_v2  ;;  %v23279_v4 = vld [vmem:[%s24906_s8] sm:$0xff]   ;;  %v23280_v7 = vld [vmem:[%s24906_s8 + $0x8] sm:$0xff]   ;;  %v23281_v8 = vld [vmem:[%s24906_s8 + $0x10] sm:$0xff]   ;;  %s24738_s21 = sshll.u32 %s24800_s20, 4  ;;  %s24739_s21 = int_to_ptr.vmem [resolvable:$false] %s24738_s21 }
  0x1d   : > { %22635 = vmatprep.mubr.msk.bf16.mxu0 %vm2330_vm0, %v23279_v4  ;;  %v23282_v9 = vld [vmem:[%s24906_s8 + $0x18] sm:$0xff]   ;;  %v23283_v10 = vld [vmem:[%s24906_s8 + $0x20] sm:$0xff]   ;;  %v23284_v11 = vld [vmem:[%s24906_s8 + $0x28] sm:$0xff]   ;;  %s24740_s22 = scalar_lea.vmem %s24739_s21, 256 }
  0x1e   : > { %v23285_v12 = vld [vmem:[%s24906_s8 + $0x30] sm:$0xff]   ;;  %v23286_v13 = vld [vmem:[%s24906_s8 + $0x38] sm:$0xff]   ;;  %v23287_v14 = vld [vmem:[%s24906_s8 + $0x40] sm:$0xff]  }
  0x1f   : > { %22630 = vmatpush3.bf16.msra.mxu0 %v23276_v2  ;;  %v23288_v15 = vld [vmem:[%s24906_s8 + $0x48] sm:$0xff]   ;;  %v23289_v16 = vld [vmem:[%s24906_s8 + $0x50] sm:$0xff]   ;;  %v23290_v17 = vld [vmem:[%s24906_s8 + $0x58] sm:$0xff]  }
  0x20   : > { %22631 = vmatprep.subr.bf16.mxu0 %v23277_v3  ;;  %v23291_v18 = vld [vmem:[%s24906_s8 + $0x60] sm:$0xff]   ;;  %v23292_v19 = vld [vmem:[%s24906_s8 + $0x68] sm:$0xff]   ;;  %v23293_v20 = vld [vmem:[%s24906_s8 + $0x70] sm:$0xff]  }
  0x21   : > { %v23294_v21 = vld [vmem:[%s24906_s8 + $0x78] sm:$0xff]   ;;  %v23295_v22 = vld [vmem:[%s24906_s8 + $0x80] sm:$0xff]   ;;  %v23296_v23 = vld [vmem:[%s24906_s8 + $0x88] sm:$0xff]  }
  0x22   : > { %v23297_v24 = vld [vmem:[%s24906_s8 + $0x90] sm:$0xff]   ;;  %v23298_v25 = vld [vmem:[%s24906_s8 + $0x98] sm:$0xff]   ;;  %v23299_v26 = vld [vmem:[%s24906_s8 + $0xa0] sm:$0xff]  }
  0x23   : > { %22632 = vmatpush3.bf16.msra.mxu0 %v23277_v3  ;;  %v23300_v27 = vld [vmem:[%s24906_s8 + $0xa8] sm:$0xff]   ;;  %v23301_v28 = vld [vmem:[%s24906_s8 + $0xb0] sm:$0xff]   ;;  %v23302_v29 = vld [vmem:[%s24906_s8 + $0xb8] sm:$0xff]  }
  0x24   : > { %23231 = vmatprep.subr.msk.bf16.mxu0 %vm3195_vm1, %v23278_v5  ;;  %v23303_v30 = vld [vmem:[%s24906_s8 + $0xc0] sm:$0xff]   ;;  %v23304_v31 = vld [vmem:[%s24906_s8 + $0xc8] sm:$0xff]   ;;  %v23305_v32 = vld [vmem:[%s24906_s8 + $0xd0] sm:$0xff]  }
  0x25   : > { %v23306_v33 = vld [vmem:[%s24906_s8 + $0xd8] sm:$0xff]   ;;  %v23307_v34 = vld [vmem:[%s24906_s8 + $0xe0] sm:$0xff]   ;;  %v23308_v35 = vld [vmem:[%s24906_s8 + $0xe8] sm:$0xff]  }
  0x26   : > { %v23309_v36 = vld [vmem:[%s24906_s8 + $0xf0] sm:$0xff]   ;;  %v23310_v37 = vld [vmem:[%s24906_s8 + $0xf8] sm:$0xff]   ;;  %v23311_v38 = vld [vmem:[%s24906_s8 + $0x100] sm:$0xff]  }
  0x27   : > { %22634 = vmatpush3.bf16.msra.mxu0 %v3197_v6  ;;  %v23312_v39 = vld [vmem:[%s24906_s8 + $0x108] sm:$0xff]   ;;  %v23313_v40 = vld [vmem:[%s24906_s8 + $0x110] sm:$0xff]   ;;  %v23314_v41 = vld [vmem:[%s24906_s8 + $0x118] sm:$0xff]  }
  0x28   : > { %v23315_v42 = vld [vmem:[%s24906_s8 + $0x120] sm:$0xff]   ;;  %v23316_v43 = vld [vmem:[%s24906_s8 + $0x128] sm:$0xff]   ;;  %v23317_v44 = vld [vmem:[%s24906_s8 + $0x130] sm:$0xff]  }
  0x29   : > { %v23318_v45 = vld [vmem:[%s24906_s8 + $0x138] sm:$0xff]   ;;  %v23319_v46 = vld [vmem:[%s24906_s8 + $0x140] sm:$0xff]   ;;  %v23320_v47 = vld [vmem:[%s24906_s8 + $0x148] sm:$0xff]  }
  0x2a   : > { %22636 = vmatmul.mubr.msk.bf16.vlgmr.msra.gmra.mrb[0].mxu0 %vm2330_vm0, %v23280_v7  ;;  %v23321_v48 = vld [vmem:[%s24906_s8 + $0x150] sm:$0xff]   ;;  %v23322_v49 = vld [vmem:[%s24906_s8 + $0x158] sm:$0xff]   ;;  %v23323_v50 = vld [vmem:[%s24906_s8 + $0x160] sm:$0xff]  }
  0x2b   : > { %22639 = vmatprep.mubr.msk.bf16.mxu0 %vm2330_vm0, %v23281_v8  ;;  %v23324_v51 = vld [vmem:[%s24906_s8 + $0x168] sm:$0xff]   ;;  %v23325_v52 = vld [vmem:[%s24906_s8 + $0x170] sm:$0xff]   ;;  %v23326_v53 = vld [vmem:[%s24906_s8 + $0x178] sm:$0xff]  }
  0x2c   : > { %v23327_v54 = vld [vmem:[%s24906_s8 + $0x180] sm:$0xff]   ;;  %v23328_v55 = vld [vmem:[%s24906_s8 + $0x188] sm:$0xff]   ;;  %v23329_v56 = vld [vmem:[%s24906_s8 + $0x190] sm:$0xff]  }
  0x2d   : > { %v23330_v57 = vld [vmem:[%s24906_s8 + $0x198] sm:$0xff]   ;;  %v23331_v58 = vld [vmem:[%s24906_s8 + $0x1a0] sm:$0xff]   ;;  %v23332_v59 = vld [vmem:[%s24906_s8 + $0x1a8] sm:$0xff]  }
  0x2e   : > { %v23333_v60 = vld [vmem:[%s24906_s8 + $0x1b0] sm:$0xff]   ;;  %v23334_v63 = vld [vmem:[%s24906_s8 + $0x1b8] sm:$0xff]   ;;  %v23335_v1 = vld [vmem:[%s24906_s8 + $0x1c0] sm:$0xff]  }
  0x2f   : > { %v23336_v5 = vld [vmem:[%s24906_s8 + $0x1c8] sm:$0xff]   ;;  %v23337_v7 = vld [vmem:[%s24906_s8 + $0x1d0] sm:$0xff]  }
  0x32   : > { %22640 = vmatmul.mubr.msk.bf16.gmra.mrb[4].mxu0 %vm2330_vm0, %v23282_v9 }
  0x33   : > { %22643 = vmatprep.mubr.msk.bf16.mxu0 %vm2330_vm0, %v23283_v10 }
  0x3a   : > { %22644 = vmatmul.mubr.msk.bf16.gmra.mrb[8].mxu0 %vm2330_vm0, %v23284_v11  ;;  %v23338_v11 = vld [vmem:[%s24906_s8 + $0x1d8] sm:$0xff]  }
  0x3b   : > { %22647 = vmatprep.mubr.msk.bf16.mxu0 %vm2330_vm0, %v23285_v12 }
  0x42   : > { %22648 = vmatmul.mubr.msk.bf16.gmra.mrb[12].mxu0 %vm2330_vm0, %v23286_v13  ;;  %v23339_v13 = vld [vmem:[%s24906_s8 + $0x1e0] sm:$0xff]  }
  0x43   : > { %22651 = vmatprep.mubr.msk.bf16.mxu0 %vm2330_vm0, %v23287_v14 }
  0x4a   : > { %22652 = vmatmul.mubr.msk.bf16.gmra.mrb[16].mxu0 %vm2330_vm0, %v23288_v15 }
  0x4b   : > { %22655 = vmatprep.mubr.msk.bf16.mxu0 %vm2330_vm0, %v23289_v16 }
  0x52   : > { %22656 = vmatmul.mubr.msk.bf16.gmra.mrb[20].mxu0 %vm2330_vm0, %v23290_v17  ;;  %v23340_v17 = vld [vmem:[%s24906_s8 + $0x1e8] sm:$0xff]  }
  0x53   : > { %22659 = vmatprep.mubr.msk.bf16.mxu0 %vm2330_vm0, %v23291_v18 }
  0x5a   : > { %22660 = vmatmul.mubr.msk.bf16.gmra.mrb[24].mxu0 %vm2330_vm0, %v23292_v19  ;;  %v23341_v19 = vld [vmem:[%s24906_s8 + $0x1f0] sm:$0xff]  }
  0x5b   : > { %22663 = vmatprep.mubr.msk.bf16.mxu0 %vm2330_vm0, %v23293_v20 }
  0x62   : > { %22664 = vmatmul.mubr.msk.bf16.gmra.mrb[28].mxu0 %vm2330_vm0, %v23294_v21 }
  0x63   : > { %22667 = vmatprep.mubr.msk.bf16.mxu0 %vm2330_vm0, %v23295_v22 }
  0x6a   : > { %22668 = vmatmul.mubr.msk.bf16.gmra.mrb[32].mxu0 %vm2330_vm0, %v23296_v23  ;;  %v23342_v23 = vld [vmem:[%s24906_s8 + $0x1f8] sm:$0xff]  }
  0x6b   : > { %22671 = vmatprep.mubr.msk.bf16.mxu0 %vm2330_vm0, %v23297_v24 }
  0x72   : > { %22672 = vmatmul.mubr.msk.bf16.gmra.mrb[36].mxu0 %vm2330_vm0, %v23298_v25  ;;  %v23343_v25 = vld [vmem:[%s24906_s8 + $0x200] sm:$0xff]  }
  0x73   : > { %22675 = vmatprep.mubr.msk.bf16.mxu0 %vm2330_vm0, %v23299_v26 }
  0x7a   : > { %22676 = vmatmul.mubr.msk.bf16.gmra.mrb[40].mxu0 %vm2330_vm0, %v23300_v27 }
  0x7b   : > { %22679 = vmatprep.mubr.msk.bf16.mxu0 %vm2330_vm0, %v23301_v28 }
  0x82   : > { %22680 = vmatmul.mubr.msk.bf16.gmra.mrb[44].mxu0 %vm2330_vm0, %v23302_v29  ;;  %v23344_v29 = vld [vmem:[%s24906_s8 + $0x208] sm:$0xff]  }
  0x83   : > { %22683 = vmatprep.mubr.msk.bf16.mxu0 %vm2330_vm0, %v23303_v30 }
  0x8a   : > { %22684 = vmatmul.mubr.msk.bf16.gmra.mrb[48].mxu0 %vm2330_vm0, %v23304_v31  ;;  %v23345_v31 = vld [vmem:[%s24906_s8 + $0x210] sm:$0xff]  }
  0x8b   : > { %22687 = vmatprep.mubr.msk.bf16.mxu0 %vm2330_vm0, %v23305_v32 }
  0x92   : > { %22688 = vmatmul.mubr.msk.bf16.gmra.mrb[52].mxu0 %vm2330_vm0, %v23306_v33 }
  0x93   : > { %22691 = vmatprep.mubr.msk.bf16.mxu0 %vm2330_vm0, %v23307_v34 }
  0x9a   : > { %22692 = vmatmul.mubr.msk.bf16.gmra.mrb[56].mxu0 %vm2330_vm0, %v23308_v35  ;;  %v23346_v35 = vld [vmem:[%s24906_s8 + $0x218] sm:$0xff]  }
  0x9b   : > { %22695 = vmatprep.mubr.msk.bf16.mxu0 %vm2330_vm0, %v23309_v36 }
  0xa2   : > { %22696 = vmatmul.mubr.msk.bf16.gmra.mrb[60].mxu0 %vm2330_vm0, %v23310_v37  ;;  %v23347_v37 = vld [vmem:[%s24906_s8 + $0x220] sm:$0xff]  }
  0xa3   : > { %22699 = vmatprep.mubr.msk.bf16.mxu0 %vm2330_vm0, %v23311_v38 }
  0xaa   : > { %22700 = vmatmul.mubr.msk.bf16.gmra.mrb[64].mxu0 %vm2330_vm0, %v23312_v39 }
  0xab   : > { %22703 = vmatprep.mubr.msk.bf16.mxu0 %vm2330_vm0, %v23313_v40 }
  0xb2   : > { %22704 = vmatmul.mubr.msk.bf16.gmra.mrb[68].mxu0 %vm2330_vm0, %v23314_v41  ;;  %v23348_v41 = vld [vmem:[%s24906_s8 + $0x228] sm:$0xff]  }
  0xb3   : > { %22707 = vmatprep.mubr.msk.bf16.mxu0 %vm2330_vm0, %v23315_v42 }
  0xba   : > { %22708 = vmatmul.mubr.msk.bf16.gmra.mrb[72].mxu0 %vm2330_vm0, %v23316_v43  ;;  %v23349_v43 = vld [vmem:[%s24906_s8 + $0x230] sm:$0xff]  }
  0xbb   : > { %22711 = vmatprep.mubr.msk.bf16.mxu0 %vm2330_vm0, %v23317_v44 }
  0xc2   : > { %22712 = vmatmul.mubr.msk.bf16.gmra.mrb[76].mxu0 %vm2330_vm0, %v23318_v45 }
  0xc3   : > { %22715 = vmatprep.mubr.msk.bf16.mxu0 %vm2330_vm0, %v23319_v46 }
  0xca   : > { %22716 = vmatmul.mubr.msk.bf16.gmra.mrb[80].mxu0 %vm2330_vm0, %v23320_v47  ;;  %v23350_v47 = vld [vmem:[%s24906_s8 + $0x238] sm:$0xff]  }
  0xcb   : > { %22719 = vmatprep.mubr.msk.bf16.mxu0 %vm2330_vm0, %v23321_v48 }
  0xd2   : > { %22720 = vmatmul.mubr.msk.bf16.gmra.mrb[84].mxu0 %vm2330_vm0, %v23322_v49  ;;  %v23351_v49 = vld [vmem:[%s24906_s8 + $0x240] sm:$0xff]  }
  0xd3   : > { %22723 = vmatprep.mubr.msk.bf16.mxu0 %vm2330_vm0, %v23323_v50 }
  0xda   : > { %22724 = vmatmul.mubr.msk.bf16.gmra.mrb[88].mxu0 %vm2330_vm0, %v23324_v51 }
  0xdb   : > { %22727 = vmatprep.mubr.msk.bf16.mxu0 %vm2330_vm0, %v23325_v52 }
  0xe2   : > { %22728 = vmatmul.mubr.msk.bf16.gmra.mrb[92].mxu0 %vm2330_vm0, %v23326_v53  ;;  %v23352_v53 = vld [vmem:[%s24906_s8 + $0x248] sm:$0xff]  }
  0xe3   : > { %22731 = vmatprep.mubr.msk.bf16.mxu0 %vm2330_vm0, %v23327_v54 }
  0xea   : > { %22732 = vmatmul.mubr.msk.bf16.gmra.mrb[96].mxu0 %vm2330_vm0, %v23328_v55  ;;  %v23353_v55 = vld [vmem:[%s24906_s8 + $0x250] sm:$0xff]  }
  0xeb   : > { %22735 = vmatprep.mubr.msk.bf16.mxu0 %vm2330_vm0, %v23329_v56 }
  0xf2   : > { %22736 = vmatmul.mubr.msk.bf16.gmra.mrb[100].mxu0 %vm2330_vm0, %v23330_v57 }
  0xf3   : > { %22739 = vmatprep.mubr.msk.bf16.mxu0 %vm2330_vm0, %v23331_v58 }
  0xfa   : > { %22740 = vmatmul.mubr.msk.bf16.gmra.mrb[104].mxu0 %vm2330_vm0, %v23332_v59  ;;  %v23354_v59 = vld [vmem:[%s24906_s8 + $0x258] sm:$0xff]  }
  0xfb   : > { %22743 = vmatprep.mubr.msk.bf16.mxu0 %vm2330_vm0, %v23333_v60 }
  0xfd   : > { %v25021_v61 = vpop.f32.mrb[0].mxu0 }
  0xfe   : > { %v25023_v62 = vpop.f32.mrb[1].mxu0 }
  0xff   : > { %31718 = vst [vmem:[#allocation6_spill] sm:$0xff] %v25023_v62  ;;  %v25026_v0 = vpop.f32.mrb[2].mxu0  ;;  %v23408_v62 = vld [vmem:[%s24906_s8 + $0x408] sm:$0xff]  }
 0x100   : > { %v25029_v2 = vpop.f32.mrb[3].mxu0 }
 0x102   : > { %22744 = vmatmul.mubr.msk.bf16.gmra.mrb[108].mxu0 %vm2330_vm0, %v23334_v63  ;;  %v23355_v63 = vld [vmem:[%s24906_s8 + $0x260] sm:$0xff]  }
 0x103   : > { %22747 = vmatprep.mubr.msk.bf16.mxu0 %vm2330_vm0, %v23335_v1 }
 0x105   : > { %v25033_v3 = vpop.f32.mrb[4].mxu0 }
 0x106   : > { %v25035_v4 = vpop.f32.mrb[5].mxu0 }
 0x107   : > { %31719 = vst [vmem:[#allocation7_spill] sm:$0xff] %v25035_v4  ;;  %v25038_v6 = vpop.f32.mrb[6].mxu0  ;;  %v23410_v4 = vld [vmem:[%s24906_s8 + $0x418] sm:$0xff]  }
 0x108   : > { %v25041_v8 = vpop.f32.mrb[7].mxu0 }
 0x10a   : > { %22748 = vmatmul.mubr.msk.bf16.gmra.mrb[112].mxu0 %vm2330_vm0, %v23336_v5 }
 0x10b   : > { %22751 = vmatprep.mubr.msk.bf16.mxu0 %vm2330_vm0, %v23337_v7 }
 0x10d   : > { %v25045_v9 = vpop.f32.mrb[8].mxu0 }
 0x10e   : > { %v25047_v10 = vpop.f32.mrb[9].mxu0 }
 0x10f   : > { %31720 = vst [vmem:[#allocation8_spill] sm:$0xff] %v25047_v10  ;;  %v25050_v12 = vpop.f32.mrb[10].mxu0  ;;  %v23412_v10 = vld [vmem:[%s24906_s8 + $0x428] sm:$0xff]  }
 0x110   : > { %v25053_v14 = vpop.f32.mrb[11].mxu0 }
 0x112   : > { %22752 = vmatmul.mubr.msk.bf16.gmra.mrb[116].mxu0 %vm2330_vm0, %v23338_v11  ;;  %v23356_v11 = vld [vmem:[%s24906_s8 + $0x268] sm:$0xff]  }
 0x113   : > { %22755 = vmatprep.mubr.msk.bf16.mxu0 %vm2330_vm0, %v23339_v13 }
 0x115   : > { %v25057_v15 = vpop.f32.mrb[12].mxu0 }
 0x116   : > { %v25059_v16 = vpop.f32.mrb[13].mxu0 }
 0x117   : > { %31721 = vst [vmem:[#allocation9_spill] sm:$0xff] %v25059_v16  ;;  %v25062_v18 = vpop.f32.mrb[14].mxu0  ;;  %v23414_v16 = vld [vmem:[%s24906_s8 + $0x438] sm:$0xff]  }
 0x118   : > { %v25065_v20 = vpop.f32.mrb[15].mxu0 }
 0x11a   : > { %22756 = vmatmul.mubr.msk.bf16.gmra.mrb[120].mxu0 %vm2330_vm0, %v23340_v17  ;;  %v23357_v17 = vld [vmem:[%s24906_s8 + $0x270] sm:$0xff]  }
 0x11b   : > { %22759 = vmatprep.mubr.msk.bf16.mxu0 %vm2330_vm0, %v23341_v19 }
 0x11d   : > { %v25069_v21 = vpop.f32.mrb[16].mxu0 }
 0x11e   : > { %v25071_v22 = vpop.f32.mrb[17].mxu0 }
 0x11f   : > { %31722 = vst [vmem:[#allocation10_spill] sm:$0xff] %v25071_v22  ;;  %v25074_v24 = vpop.f32.mrb[18].mxu0  ;;  %v23416_v22 = vld [vmem:[%s24906_s8 + $0x448] sm:$0xff]  }
 0x120   : > { %v25077_v26 = vpop.f32.mrb[19].mxu0 }
 0x122   : > { %22760 = vmatmul.mubr.msk.bf16.gmra.mrb[124].mxu0 %vm2330_vm0, %v23342_v23 }
 0x123   : > { %22763 = vmatprep.mubr.msk.bf16.mxu0 %vm2330_vm0, %v23343_v25 }
 0x125   : > { %v25081_v27 = vpop.f32.mrb[20].mxu0 }
 0x126   : > { %v25083_v28 = vpop.f32.mrb[21].mxu0 }
 0x127   : > { %31723 = vst [vmem:[#allocation11_spill] sm:$0xff] %v25083_v28  ;;  %v25086_v30 = vpop.f32.mrb[22].mxu0  ;;  %v23418_v28 = vld [vmem:[%s24906_s8 + $0x458] sm:$0xff]  }
 0x128   : > { %31724 = vst [vmem:[#allocation12_spill] sm:$0xff] %v25086_v30  ;;  %v25089_v32 = vpop.f32.mrb[23].mxu0 }
 0x129   : > { %31725 = vst [vmem:[#allocation13_spill] sm:$0xff] %v25089_v32 }
 0x12a   : > { %22764 = vmatmul.mubr.msk.bf16.gmra.mrb[128].mxu0 %vm2330_vm0, %v23344_v29  ;;  %v23358_v29 = vld [vmem:[%s24906_s8 + $0x278] sm:$0xff]  }
 0x12b   : > { %22767 = vmatprep.mubr.msk.bf16.mxu0 %vm2330_vm0, %v23345_v31 }
 0x12d   : > { %v25093_v33 = vpop.f32.mrb[24].mxu0 }
 0x12e   : > { %31726 = vst [vmem:[#allocation14_spill] sm:$0xff] %v25093_v33  ;;  %v25095_v34 = vpop.f32.mrb[25].mxu0 }
 0x12f   : > { %31727 = vst [vmem:[#allocation15_spill] sm:$0xff] %v25095_v34  ;;  %v25098_v36 = vpop.f32.mrb[26].mxu0  ;;  %v23420_v34 = vld [vmem:[%s24906_s8 + $0x468] sm:$0xff]  }
 0x130   : > { %31728 = vst [vmem:[#allocation16_spill] sm:$0xff] %v25098_v36  ;;  %v25101_v38 = vpop.f32.mrb[27].mxu0 }
 0x131   : > { %31729 = vst [vmem:[#allocation17_spill] sm:$0xff] %v25101_v38 }
 0x132   : > { %22768 = vmatmul.mubr.msk.bf16.gmra.mrb[132].mxu0 %vm2330_vm0, %v23346_v35  ;;  %v23359_v35 = vld [vmem:[%s24906_s8 + $0x280] sm:$0xff]  }
 0x133   : > { %22771 = vmatprep.mubr.msk.bf16.mxu0 %vm2330_vm0, %v23347_v37 }
 0x135   : > { %v25105_v39 = vpop.f32.mrb[28].mxu0 }
 0x136   : > { %31730 = vst [vmem:[#allocation18_spill] sm:$0xff] %v25105_v39  ;;  %v25107_v40 = vpop.f32.mrb[29].mxu0 }
 0x137   : > { %31731 = vst [vmem:[#allocation19_spill] sm:$0xff] %v25107_v40  ;;  %v25110_v42 = vpop.f32.mrb[30].mxu0  ;;  %v23422_v40 = vld [vmem:[%s24906_s8 + $0x478] sm:$0xff]  }
 0x138   : > { %31732 = vst [vmem:[#allocation20_spill] sm:$0xff] %v25110_v42  ;;  %v25113_v44 = vpop.f32.mrb[31].mxu0 }
 0x139   : > { %31733 = vst [vmem:[#allocation21_spill] sm:$0xff] %v25113_v44 }
 0x13a   : > { %22772 = vmatmul.mubr.msk.bf16.gmra.mrb[136].mxu0 %vm2330_vm0, %v23348_v41 }
 0x13b   : > { %22775 = vmatprep.mubr.msk.bf16.mxu0 %vm2330_vm0, %v23349_v43 }
 0x13d   : > { %v25117_v45 = vpop.f32.mrb[32].mxu0 }
 0x13e   : > { %31734 = vst [vmem:[#allocation22_spill] sm:$0xff] %v25117_v45  ;;  %v25119_v46 = vpop.f32.mrb[33].mxu0 }
 0x13f   : > { %31735 = vst [vmem:[#allocation23_spill] sm:$0xff] %v25119_v46  ;;  %v25122_v48 = vpop.f32.mrb[34].mxu0  ;;  %v23424_v46 = vld [vmem:[%s24906_s8 + $0x488] sm:$0xff]  }
 0x140   : > { %31736 = vst [vmem:[#allocation24_spill] sm:$0xff] %v25122_v48  ;;  %v25125_v50 = vpop.f32.mrb[35].mxu0 }
 0x141   : > { %31737 = vst [vmem:[#allocation25_spill] sm:$0xff] %v25125_v50 }
 0x142   : > { %22776 = vmatmul.mubr.msk.bf16.gmra.mrb[140].mxu0 %vm2330_vm0, %v23350_v47  ;;  %v23360_v47 = vld [vmem:[%s24906_s8 + $0x288] sm:$0xff]  }
 0x143   : > { %22779 = vmatprep.mubr.msk.bf16.mxu0 %vm2330_vm0, %v23351_v49 }
 0x145   : > { %v25129_v51 = vpop.f32.mrb[36].mxu0 }
 0x146   : > { %31738 = vst [vmem:[#allocation26_spill] sm:$0xff] %v25129_v51  ;;  %v25131_v52 = vpop.f32.mrb[37].mxu0 }
 0x147   : > { %31739 = vst [vmem:[#allocation27_spill] sm:$0xff] %v25131_v52  ;;  %v25134_v54 = vpop.f32.mrb[38].mxu0  ;;  %v23426_v52 = vld [vmem:[%s24906_s8 + $0x498] sm:$0xff]  }
 0x148   : > { %31740 = vst [vmem:[#allocation28_spill] sm:$0xff] %v25134_v54  ;;  %v25137_v56 = vpop.f32.mrb[39].mxu0 }
 0x149   : > { %31741 = vst [vmem:[#allocation29_spill] sm:$0xff] %v25137_v56 }
 0x14a   : > { %22780 = vmatmul.mubr.msk.bf16.gmra.mrb[144].mxu0 %vm2330_vm0, %v23352_v53  ;;  %v23361_v53 = vld [vmem:[%s24906_s8 + $0x290] sm:$0xff]  }
 0x14b   : > { %22783 = vmatprep.mubr.msk.bf16.mxu0 %vm2330_vm0, %v23353_v55 }
 0x14d   : > { %v25141_v57 = vpop.f32.mrb[40].mxu0 }
 0x14e   : > { %31742 = vst [vmem:[#allocation30_spill] sm:$0xff] %v25141_v57  ;;  %v25143_v58 = vpop.f32.mrb[41].mxu0 }
 0x14f   : > { %31743 = vst [vmem:[#allocation31_spill] sm:$0xff] %v25143_v58  ;;  %v25146_v60 = vpop.f32.mrb[42].mxu0  ;;  %v23428_v58 = vld [vmem:[%s24906_s8 + $0x4a8] sm:$0xff]  }
 0x150   : > { %31744 = vst [vmem:[#allocation32_spill] sm:$0xff] %v25146_v60  ;;  %v25149_v1 = vpop.f32.mrb[43].mxu0 }
 0x151   : > { %31745 = vst [vmem:[#allocation33_spill] sm:$0xff] %v25149_v1 }
 0x152   : > { %22784 = vmatmul.mubr.msk.bf16.gmra.mrb[148].mxu0 %vm2330_vm0, %v23354_v59 }
 0x153   : > { %22787 = vmatprep.mubr.msk.bf16.mxu0 %vm2330_vm0, %v23355_v63 }
 0x155   : > { %v25153_v5 = vpop.f32.mrb[44].mxu0 }
 0x156   : > { %31746 = vst [vmem:[#allocation34_spill] sm:$0xff] %v25153_v5  ;;  %v25155_v7 = vpop.f32.mrb[45].mxu0 }
 0x157   : > { %31747 = vst [vmem:[#allocation35_spill] sm:$0xff] %v25155_v7  ;;  %v25158_v13 = vpop.f32.mrb[46].mxu0  ;;  %v23430_v7 = vld [vmem:[%s24906_s8 + $0x4b8] sm:$0xff]  }
 0x158   : > { %31748 = vst [vmem:[#allocation36_spill] sm:$0xff] %v25158_v13  ;;  %v25161_v19 = vpop.f32.mrb[47].mxu0 }
 0x159   : > { %31749 = vst [vmem:[#allocation37_spill] sm:$0xff] %v25161_v19 }
 0x15a   : > { %22788 = vmatmul.mubr.msk.bf16.gmra.mrb[152].mxu0 %vm2330_vm0, %v23356_v11  ;;  %v23362_v11 = vld [vmem:[%s24906_s8 + $0x298] sm:$0xff]  }
 0x15b   : > { %22791 = vmatprep.mubr.msk.bf16.mxu0 %vm2330_vm0, %v23357_v17 }
 0x15d   : > { %v25165_v23 = vpop.f32.mrb[48].mxu0 }
 0x15e   : > { %31750 = vst [vmem:[#allocation38_spill] sm:$0xff] %v25165_v23  ;;  %v25167_v25 = vpop.f32.mrb[49].mxu0 }
 0x15f   : > { %31751 = vst [vmem:[#allocation39_spill] sm:$0xff] %v25167_v25  ;;  %v25170_v31 = vpop.f32.mrb[50].mxu0  ;;  %v23432_v25 = vld [vmem:[%s24906_s8 + $0x4c8] sm:$0xff]  }
 0x160   : > { %31752 = vst [vmem:[#allocation40_spill] sm:$0xff] %v25170_v31  ;;  %v25173_v37 = vpop.f32.mrb[51].mxu0  ;;  %v23435_v31 = vld [vmem:[%s24906_s8 + $0x4e0] sm:$0xff]  }
 0x161   : > { %31753 = vst [vmem:[#allocation41_spill] sm:$0xff] %v25173_v37  ;;  %v23481_v37 = vld [vmem:[%s24906_s8 + $0x650] sm:$0xff]  }
 0x162   : > { %22792 = vmatmul.mubr.msk.bf16.gmra.mrb[156].mxu0 %vm2330_vm0, %v23358_v29  ;;  %v23363_v29 = vld [vmem:[%s24906_s8 + $0x2a0] sm:$0xff]  }
 0x163   : > { %22795 = vmatprep.mubr.msk.bf16.mxu0 %vm2330_vm0, %v23359_v35 }
 0x165   : > { %v25177_v41 = vpop.f32.mrb[52].mxu0 }
 0x166   : > { %31754 = vst [vmem:[#allocation42_spill] sm:$0xff] %v25177_v41  ;;  %v25179_v43 = vpop.f32.mrb[53].mxu0  ;;  %v23437_v41 = vld [vmem:[%s24906_s8 + $0x4f0] sm:$0xff]  }
 0x167   : > { %31755 = vst [vmem:[#allocation43_spill] sm:$0xff] %v25179_v43  ;;  %v25182_v49 = vpop.f32.mrb[54].mxu0 }
 0x168   : > { %31756 = vst [vmem:[#allocation44_spill] sm:$0xff] %v25182_v49  ;;  %v25185_v55 = vpop.f32.mrb[55].mxu0 }
 0x169   : > { %31757 = vst [vmem:[#allocation45_spill] sm:$0xff] %v25185_v55 }
 0x16a   : > { %22796 = vmatmul.mubr.msk.bf16.gmra.mrb[160].mxu0 %vm2330_vm0, %v23360_v47 }
 0x16b   : > { %22799 = vmatprep.mubr.msk.bf16.mxu0 %vm2330_vm0, %v23361_v53  ;;  %v23364_v53 = vld [vmem:[%s24906_s8 + $0x2a8] sm:$0xff]  }
 0x16d   : > { %v25189_v59 = vpop.f32.mrb[56].mxu0 }
 0x16e   : > { %31758 = vst [vmem:[#allocation46_spill] sm:$0xff] %v25189_v59  ;;  %v25191_v63 = vpop.f32.mrb[57].mxu0 }
 0x16f   : > { %31759 = vst [vmem:[#allocation47_spill] sm:$0xff] %v25191_v63  ;;  %v25194_v17 = vpop.f32.mrb[58].mxu0  ;;  %v23365_v63 = vld [vmem:[%s24906_s8 + $0x2b0] sm:$0xff]  }
 0x170   : > { %31760 = vst [vmem:[#allocation48_spill] sm:$0xff] %v25194_v17  ;;  %v25197_v35 = vpop.f32.mrb[59].mxu0 }
 0x171   : > { %31761 = vst [vmem:[#allocation49_spill] sm:$0xff] %v25197_v35 }
 0x172   : > { %22800 = vmatmul.mubr.msk.bf16.gmra.mrb[164].mxu0 %vm2330_vm0, %v23362_v11 }
 0x173   : > { %22803 = vmatprep.mubr.msk.bf16.mxu0 %vm2330_vm0, %v23363_v29  ;;  %v23366_v29 = vld [vmem:[%s24906_s8 + $0x2b8] sm:$0xff]  }
 0x175   : > { %v25201_v55 = vpop.f32.mrb[60].mxu0 }
 0x176   : > { %31762 = vst [vmem:[#allocation50_spill] sm:$0xff] %v25201_v55  ;;  %v25203_v47 = vpop.f32.mrb[61].mxu0 }
 0x177   : > { %31763 = vst [vmem:[#allocation51_spill] sm:$0xff] %v25203_v47  ;;  %v25206_v59 = vpop.f32.mrb[62].mxu0  ;;  %v23367_v47 = vld [vmem:[%s24906_s8 + $0x2c0] sm:$0xff]  }
 0x178   : > { %31764 = vst [vmem:[#allocation52_spill] sm:$0xff] %v25206_v59  ;;  %v25209_v49 = vpop.f32.mrb[63].mxu0 }
 0x179   : > { %31765 = vst [vmem:[#allocation53_spill] sm:$0xff] %v25209_v49 }
 0x17a   : > { %22804 = vmatmul.mubr.msk.bf16.gmra.mrb[168].mxu0 %vm2330_vm0, %v23364_v53 }
 0x17b   : > { %22807 = vmatprep.mubr.msk.bf16.mxu0 %vm2330_vm0, %v23365_v63  ;;  %v23368_v63 = vld [vmem:[%s24906_s8 + $0x2c8] sm:$0xff]  }
 0x17d   : > { %v25213_v35 = vpop.f32.mrb[64].mxu0 }
 0x17e   : > { %31766 = vst [vmem:[#allocation54_spill] sm:$0xff] %v25213_v35  ;;  %v25215_v11 = vpop.f32.mrb[65].mxu0 }
 0x17f   : > { %31767 = vst [vmem:[#allocation55_spill] sm:$0xff] %v25215_v11  ;;  %v25218_v55 = vpop.f32.mrb[66].mxu0  ;;  %v23369_v11 = vld [vmem:[%s24906_s8 + $0x2d0] sm:$0xff]  }
 0x180   : > { %31768 = vst [vmem:[#allocation56_spill] sm:$0xff] %v25218_v55  ;;  %v25221_v17 = vpop.f32.mrb[67].mxu0 }
 0x181   : > { %31769 = vst [vmem:[#allocation57_spill] sm:$0xff] %v25221_v17 }
 0x182   : > { %22808 = vmatmul.mubr.msk.bf16.gmra.mrb[172].mxu0 %vm2330_vm0, %v23366_v29 }
 0x183   : > { %22811 = vmatprep.mubr.msk.bf16.mxu0 %vm2330_vm0, %v23367_v47  ;;  %v23370_v47 = vld [vmem:[%s24906_s8 + $0x2d8] sm:$0xff]  }
 0x185   : > { %v25225_v49 = vpop.f32.mrb[68].mxu0 }
 0x186   : > { %31770 = vst [vmem:[#allocation58_spill] sm:$0xff] %v25225_v49  ;;  %v25227_v53 = vpop.f32.mrb[69].mxu0 }
 0x187   : > { %31771 = vst [vmem:[#allocation59_spill] sm:$0xff] %v25227_v53  ;;  %v25230_v35 = vpop.f32.mrb[70].mxu0  ;;  %v23371_v53 = vld [vmem:[%s24906_s8 + $0x2e0] sm:$0xff]  }
 0x188   : > { %31772 = vst [vmem:[#allocation60_spill] sm:$0xff] %v25230_v35  ;;  %v25233_v59 = vpop.f32.mrb[71].mxu0 }
 0x189   : > { %31773 = vst [vmem:[#allocation61_spill] sm:$0xff] %v25233_v59 }
 0x18a   : > { %22812 = vmatmul.mubr.msk.bf16.gmra.mrb[176].mxu0 %vm2330_vm0, %v23368_v63 }
 0x18b   : > { %22815 = vmatprep.mubr.msk.bf16.mxu0 %vm2330_vm0, %v23369_v11  ;;  %v23372_v11 = vld [vmem:[%s24906_s8 + $0x2e8] sm:$0xff]  }
 0x18d   : > { %v25237_v17 = vpop.f32.mrb[72].mxu0 }
 0x18e   : > { %31774 = vst [vmem:[#allocation62_spill] sm:$0xff] %v25237_v17  ;;  %v25239_v29 = vpop.f32.mrb[73].mxu0 }
 0x18f   : > { %31775 = vst [vmem:[#allocation63_spill] sm:$0xff] %v25239_v29  ;;  %v25242_v49 = vpop.f32.mrb[74].mxu0  ;;  %v23373_v29 = vld [vmem:[%s24906_s8 + $0x2f0] sm:$0xff]  }
 0x190   : > { %31776 = vst [vmem:[#allocation64_spill] sm:$0xff] %v25242_v49  ;;  %v25245_v55 = vpop.f32.mrb[75].mxu0 }
 0x191   : > { %31777 = vst [vmem:[#allocation65_spill] sm:$0xff] %v25245_v55 }
 0x192   : > { %22816 = vmatmul.mubr.msk.bf16.gmra.mrb[180].mxu0 %vm2330_vm0, %v23370_v47 }
 0x193   : > { %22819 = vmatprep.mubr.msk.bf16.mxu0 %vm2330_vm0, %v23371_v53  ;;  %v23374_v53 = vld [vmem:[%s24906_s8 + $0x2f8] sm:$0xff]  }
 0x195   : > { %v25249_v59 = vpop.f32.mrb[76].mxu0 }
 0x196   : > { %31778 = vst [vmem:[#allocation66_spill] sm:$0xff] %v25249_v59  ;;  %v25251_v63 = vpop.f32.mrb[77].mxu0 }
 0x197   : > { %31779 = vst [vmem:[#allocation67_spill] sm:$0xff] %v25251_v63  ;;  %v25254_v17 = vpop.f32.mrb[78].mxu0  ;;  %v23375_v63 = vld [vmem:[%s24906_s8 + $0x300] sm:$0xff]  }
 0x198   : > { %31780 = vst [vmem:[#allocation68_spill] sm:$0xff] %v25254_v17  ;;  %v25257_v35 = vpop.f32.mrb[79].mxu0 }
 0x199   : > { %31781 = vst [vmem:[#allocation69_spill] sm:$0xff] %v25257_v35 }
 0x19a   : > { %22820 = vmatmul.mubr.msk.bf16.gmra.mrb[184].mxu0 %vm2330_vm0, %v23372_v11 }
 0x19b   : > { %22823 = vmatprep.mubr.msk.bf16.mxu0 %vm2330_vm0, %v23373_v29  ;;  %v23376_v29 = vld [vmem:[%s24906_s8 + $0x308] sm:$0xff]  }
 0x19d   : > { %v25261_v55 = vpop.f32.mrb[80].mxu0 }
 0x19e   : > { %31782 = vst [vmem:[#allocation70_spill] sm:$0xff] %v25261_v55  ;;  %v25263_v47 = vpop.f32.mrb[81].mxu0 }
 0x19f   : > { %31783 = vst [vmem:[#allocation71_spill] sm:$0xff] %v25263_v47  ;;  %v25266_v59 = vpop.f32.mrb[82].mxu0  ;;  %v23377_v47 = vld [vmem:[%s24906_s8 + $0x310] sm:$0xff]  }
 0x1a0   : > { %31784 = vst [vmem:[#allocation72_spill] sm:$0xff] %v25266_v59  ;;  %v25269_v49 = vpop.f32.mrb[83].mxu0 }
 0x1a1   : > { %31785 = vst [vmem:[#allocation73_spill] sm:$0xff] %v25269_v49 }
 0x1a2   : > { %22824 = vmatmul.mubr.msk.bf16.gmra.mrb[188].mxu0 %vm2330_vm0, %v23374_v53 }
 0x1a3   : > { %22827 = vmatprep.mubr.msk.bf16.mxu0 %vm2330_vm0, %v23375_v63  ;;  %v23378_v63 = vld [vmem:[%s24906_s8 + $0x318] sm:$0xff]  }
 0x1a5   : > { %v25273_v35 = vpop.f32.mrb[84].mxu0 }
 0x1a6   : > { %31786 = vst [vmem:[#allocation74_spill] sm:$0xff] %v25273_v35  ;;  %v25275_v11 = vpop.f32.mrb[85].mxu0 }
 0x1a7   : > { %31787 = vst [vmem:[#allocation75_spill] sm:$0xff] %v25275_v11  ;;  %v25278_v55 = vpop.f32.mrb[86].mxu0  ;;  %v23379_v11 = vld [vmem:[%s24906_s8 + $0x320] sm:$0xff]  }
 0x1a8   : > { %31788 = vst [vmem:[#allocation76_spill] sm:$0xff] %v25278_v55  ;;  %v25281_v17 = vpop.f32.mrb[87].mxu0 }
 0x1a9   : > { %31789 = vst [vmem:[#allocation77_spill] sm:$0xff] %v25281_v17 }
 0x1aa   : > { %22828 = vmatmul.mubr.msk.bf16.gmra.mrb[192].mxu0 %vm2330_vm0, %v23376_v29 }
 0x1ab   : > { %22831 = vmatprep.mubr.msk.bf16.mxu0 %vm2330_vm0, %v23377_v47  ;;  %v23380_v47 = vld [vmem:[%s24906_s8 + $0x328] sm:$0xff]  }
 0x1ad   : > { %v25285_v49 = vpop.f32.mrb[88].mxu0 }
 0x1ae   : > { %31790 = vst [vmem:[#allocation78_spill] sm:$0xff] %v25285_v49  ;;  %v25287_v53 = vpop.f32.mrb[89].mxu0 }
 0x1af   : > { %31791 = vst [vmem:[#allocation79_spill] sm:$0xff] %v25287_v53  ;;  %v25290_v35 = vpop.f32.mrb[90].mxu0  ;;  %v23381_v53 = vld [vmem:[%s24906_s8 + $0x330] sm:$0xff]  }
 0x1b0   : > { %31792 = vst [vmem:[#allocation80_spill] sm:$0xff] %v25290_v35  ;;  %v25293_v59 = vpop.f32.mrb[91].mxu0 }
 0x1b1   : > { %31793 = vst [vmem:[#allocation81_spill] sm:$0xff] %v25293_v59 }
 0x1b2   : > { %22832 = vmatmul.mubr.msk.bf16.gmra.mrb[196].mxu0 %vm2330_vm0, %v23378_v63 }
 0x1b3   : > { %22835 = vmatprep.mubr.msk.bf16.mxu0 %vm2330_vm0, %v23379_v11  ;;  %v23382_v11 = vld [vmem:[%s24906_s8 + $0x338] sm:$0xff]  }
 0x1b5   : > { %v25297_v17 = vpop.f32.mrb[92].mxu0 }
 0x1b6   : > { %31794 = vst [vmem:[#allocation82_spill] sm:$0xff] %v25297_v17  ;;  %v25299_v29 = vpop.f32.mrb[93].mxu0 }
 0x1b7   : > { %31795 = vst [vmem:[#allocation83_spill] sm:$0xff] %v25299_v29  ;;  %v25302_v49 = vpop.f32.mrb[94].mxu0  ;;  %v23383_v29 = vld [vmem:[%s24906_s8 + $0x340] sm:$0xff]  }
 0x1b8   : > { %31796 = vst [vmem:[#allocation84_spill] sm:$0xff] %v25302_v49  ;;  %v25305_v55 = vpop.f32.mrb[95].mxu0 }
 0x1b9   : > { %31797 = vst [vmem:[#allocation85_spill] sm:$0xff] %v25305_v55 }
 0x1ba   : > { %22836 = vmatmul.mubr.msk.bf16.gmra.mrb[200].mxu0 %vm2330_vm0, %v23380_v47 }
 0x1bb   : > { %22839 = vmatprep.mubr.msk.bf16.mxu0 %vm2330_vm0, %v23381_v53  ;;  %v23384_v53 = vld [vmem:[%s24906_s8 + $0x348] sm:$0xff]  }
 0x1bd   : > { %v25309_v59 = vpop.f32.mrb[96].mxu0 }
 0x1be   : > { %31798 = vst [vmem:[#allocation86_spill] sm:$0xff] %v25309_v59  ;;  %v25311_v63 = vpop.f32.mrb[97].mxu0 }
 0x1bf   : > { %31799 = vst [vmem:[#allocation87_spill] sm:$0xff] %v25311_v63  ;;  %v25314_v17 = vpop.f32.mrb[98].mxu0  ;;  %v23385_v63 = vld [vmem:[%s24906_s8 + $0x350] sm:$0xff]  }
 0x1c0   : > { %31800 = vst [vmem:[#allocation88_spill] sm:$0xff] %v25314_v17  ;;  %v25317_v35 = vpop.f32.mrb[99].mxu0 }
 0x1c1   : > { %31801 = vst [vmem:[#allocation89_spill] sm:$0xff] %v25317_v35 }
 0x1c2   : > { %22840 = vmatmul.mubr.msk.bf16.gmra.mrb[204].mxu0 %vm2330_vm0, %v23382_v11 }
 0x1c3   : > { %22843 = vmatprep.mubr.msk.bf16.mxu0 %vm2330_vm0, %v23383_v29  ;;  %v23386_v29 = vld [vmem:[%s24906_s8 + $0x358] sm:$0xff]  }
 0x1c5   : > { %v25321_v55 = vpop.f32.mrb[100].mxu0 }
 0x1c6   : > { %31802 = vst [vmem:[#allocation90_spill] sm:$0xff] %v25321_v55  ;;  %v25323_v47 = vpop.f32.mrb[101].mxu0 }
 0x1c7   : > { %31803 = vst [vmem:[#allocation91_spill] sm:$0xff] %v25323_v47  ;;  %v25326_v59 = vpop.f32.mrb[102].mxu0  ;;  %v23387_v47 = vld [vmem:[%s24906_s8 + $0x360] sm:$0xff]  }
 0x1c8   : > { %31804 = vst [vmem:[#allocation92_spill] sm:$0xff] %v25326_v59  ;;  %v25329_v49 = vpop.f32.mrb[103].mxu0 }
 0x1c9   : > { %31805 = vst [vmem:[#allocation93_spill] sm:$0xff] %v25329_v49 }
 0x1ca   : > { %22844 = vmatmul.mubr.msk.bf16.gmra.mrb[208].mxu0 %vm2330_vm0, %v23384_v53 }
 0x1cb   : > { %22847 = vmatprep.mubr.msk.bf16.mxu0 %vm2330_vm0, %v23385_v63  ;;  %v23388_v63 = vld [vmem:[%s24906_s8 + $0x368] sm:$0xff]  }
 0x1cd   : > { %v25333_v35 = vpop.f32.mrb[104].mxu0 }
 0x1ce   : > { %31806 = vst [vmem:[#allocation94_spill] sm:$0xff] %v25333_v35  ;;  %v25335_v11 = vpop.f32.mrb[105].mxu0 }
 0x1cf   : > { %31807 = vst [vmem:[#allocation95_spill] sm:$0xff] %v25335_v11  ;;  %v25338_v55 = vpop.f32.mrb[106].mxu0  ;;  %v23389_v11 = vld [vmem:[%s24906_s8 + $0x370] sm:$0xff]  }
 0x1d0   : > { %31808 = vst [vmem:[#allocation96_spill] sm:$0xff] %v25338_v55  ;;  %v25341_v17 = vpop.f32.mrb[107].mxu0 }
 0x1d1   : > { %31809 = vst [vmem:[#allocation97_spill] sm:$0xff] %v25341_v17 }
 0x1d2   : > { %22848 = vmatmul.mubr.msk.bf16.gmra.mrb[212].mxu0 %vm2330_vm0, %v23386_v29 }
 0x1d3   : > { %22851 = vmatprep.mubr.msk.bf16.mxu0 %vm2330_vm0, %v23387_v47  ;;  %v23390_v47 = vld [vmem:[%s24906_s8 + $0x378] sm:$0xff]  }
 0x1d5   : > { %v25345_v49 = vpop.f32.mrb[108].mxu0 }
 0x1d6   : > { %31810 = vst [vmem:[#allocation98_spill] sm:$0xff] %v25345_v49  ;;  %v25347_v53 = vpop.f32.mrb[109].mxu0 }
 0x1d7   : > { %31811 = vst [vmem:[#allocation99_spill] sm:$0xff] %v25347_v53  ;;  %v25350_v35 = vpop.f32.mrb[110].mxu0  ;;  %v23391_v53 = vld [vmem:[%s24906_s8 + $0x380] sm:$0xff]  }
 0x1d8   : > { %31812 = vst [vmem:[#allocation100_spill] sm:$0xff] %v25350_v35  ;;  %v25353_v59 = vpop.f32.mrb[111].mxu0 }
 0x1d9   : > { %31813 = vst [vmem:[#allocation101_spill] sm:$0xff] %v25353_v59 }
 0x1da   : > { %22852 = vmatmul.mubr.msk.bf16.gmra.mrb[216].mxu0 %vm2330_vm0, %v23388_v63 }
 0x1db   : > { %22855 = vmatprep.mubr.msk.bf16.mxu0 %vm2330_vm0, %v23389_v11  ;;  %v23392_v11 = vld [vmem:[%s24906_s8 + $0x388] sm:$0xff]  }
 0x1dd   : > { %v25357_v17 = vpop.f32.mrb[112].mxu0 }
 0x1de   : > { %31814 = vst [vmem:[#allocation102_spill] sm:$0xff] %v25357_v17  ;;  %v25359_v29 = vpop.f32.mrb[113].mxu0 }
 0x1df   : > { %31815 = vst [vmem:[#allocation103_spill] sm:$0xff] %v25359_v29  ;;  %v25362_v49 = vpop.f32.mrb[114].mxu0  ;;  %v23393_v29 = vld [vmem:[%s24906_s8 + $0x390] sm:$0xff]  }
 0x1e0   : > { %31816 = vst [vmem:[#allocation104_spill] sm:$0xff] %v25362_v49  ;;  %v25365_v55 = vpop.f32.mrb[115].mxu0 }
 0x1e1   : > { %31817 = vst [vmem:[#allocation105_spill] sm:$0xff] %v25365_v55 }
 0x1e2   : > { %22856 = vmatmul.mubr.msk.bf16.gmra.mrb[220].mxu0 %vm2330_vm0, %v23390_v47 }
 0x1e3   : > { %22859 = vmatprep.mubr.msk.bf16.mxu0 %vm2330_vm0, %v23391_v53  ;;  %v23394_v53 = vld [vmem:[%s24906_s8 + $0x398] sm:$0xff]  }
 0x1e5   : > { %v25369_v59 = vpop.f32.mrb[116].mxu0 }
 0x1e6   : > { %31818 = vst [vmem:[#allocation106_spill] sm:$0xff] %v25369_v59  ;;  %v25371_v63 = vpop.f32.mrb[117].mxu0 }
 0x1e7   : > { %31819 = vst [vmem:[#allocation107_spill] sm:$0xff] %v25371_v63  ;;  %v25374_v17 = vpop.f32.mrb[118].mxu0  ;;  %v23395_v63 = vld [vmem:[%s24906_s8 + $0x3a0] sm:$0xff]  }
 0x1e8   : > { %31820 = vst [vmem:[#allocation108_spill] sm:$0xff] %v25374_v17  ;;  %v25377_v35 = vpop.f32.mrb[119].mxu0 }
 0x1e9   : > { %31821 = vst [vmem:[#allocation109_spill] sm:$0xff] %v25377_v35 }
 0x1ea   : > { %22860 = vmatmul.mubr.msk.bf16.gmra.mrb[224].mxu0 %vm2330_vm0, %v23392_v11 }
 0x1eb   : > { %22863 = vmatprep.mubr.msk.bf16.mxu0 %vm2330_vm0, %v23393_v29  ;;  %v23396_v29 = vld [vmem:[%s24906_s8 + $0x3a8] sm:$0xff]  }
 0x1ed   : > { %v25381_v55 = vpop.f32.mrb[120].mxu0 }
 0x1ee   : > { %31822 = vst [vmem:[#allocation110_spill] sm:$0xff] %v25381_v55  ;;  %v25383_v47 = vpop.f32.mrb[121].mxu0 }
 0x1ef   : > { %31823 = vst [vmem:[#allocation111_spill] sm:$0xff] %v25383_v47  ;;  %v25386_v59 = vpop.f32.mrb[122].mxu0  ;;  %v23397_v47 = vld [vmem:[%s24906_s8 + $0x3b0] sm:$0xff]  }
 0x1f0   : > { %31824 = vst [vmem:[#allocation112_spill] sm:$0xff] %v25386_v59  ;;  %v25389_v49 = vpop.f32.mrb[123].mxu0 }
 0x1f1   : > { %31825 = vst [vmem:[#allocation113_spill] sm:$0xff] %v25389_v49 }
 0x1f2   : > { %22864 = vmatmul.mubr.msk.bf16.gmra.mrb[228].mxu0 %vm2330_vm0, %v23394_v53 }
 0x1f3   : > { %22867 = vmatprep.mubr.msk.bf16.mxu0 %vm2330_vm0, %v23395_v63  ;;  %v23398_v63 = vld [vmem:[%s24906_s8 + $0x3b8] sm:$0xff]  }
 0x1f5   : > { %v25393_v35 = vpop.f32.mrb[124].mxu0 }
 0x1f6   : > { %31826 = vst [vmem:[#allocation114_spill] sm:$0xff] %v25393_v35  ;;  %v25395_v11 = vpop.f32.mrb[125].mxu0 }
 0x1f7   : > { %31827 = vst [vmem:[#allocation115_spill] sm:$0xff] %v25395_v11  ;;  %v25398_v55 = vpop.f32.mrb[126].mxu0  ;;  %v23399_v11 = vld [vmem:[%s24906_s8 + $0x3c0] sm:$0xff]  }
 0x1f8   : > { %31828 = vst [vmem:[#allocation116_spill] sm:$0xff] %v25398_v55  ;;  %v25401_v17 = vpop.f32.mrb[127].mxu0 }
 0x1f9   : > { %31829 = vst [vmem:[#allocation117_spill] sm:$0xff] %v25401_v17 }
 0x1fa   : > { %22868 = vmatmul.mubr.msk.bf16.gmra.mrb[232].mxu0 %vm2330_vm0, %v23396_v29 }
 0x1fb   : > { %22871 = vmatprep.mubr.msk.bf16.mxu0 %vm2330_vm0, %v23397_v47  ;;  %v23400_v47 = vld [vmem:[%s24906_s8 + $0x3c8] sm:$0xff]  }
 0x1fd   : > { %v25405_v49 = vpop.f32.mrb[128].mxu0 }
 0x1fe   : > { %31830 = vst [vmem:[#allocation118_spill] sm:$0xff] %v25405_v49  ;;  %v25407_v53 = vpop.f32.mrb[129].mxu0 }
 0x1ff   : > { %31831 = vst [vmem:[#allocation119_spill] sm:$0xff] %v25407_v53  ;;  %v25410_v35 = vpop.f32.mrb[130].mxu0  ;;  %v23401_v53 = vld [vmem:[%s24906_s8 + $0x3d0] sm:$0xff]  }
 0x200   : > { %31832 = vst [vmem:[#allocation120_spill] sm:$0xff] %v25410_v35  ;;  %v25413_v59 = vpop.f32.mrb[131].mxu0 }
 0x201   : > { %31833 = vst [vmem:[#allocation121_spill] sm:$0xff] %v25413_v59 }
 0x202   : > { %22872 = vmatmul.mubr.msk.bf16.gmra.mrb[236].mxu0 %vm2330_vm0, %v23398_v63 }
 0x203   : > { %22875 = vmatprep.mubr.msk.bf16.mxu0 %vm2330_vm0, %v23399_v11  ;;  %v23402_v11 = vld [vmem:[%s24906_s8 + $0x3d8] sm:$0xff]  }
 0x205   : > { %v25417_v17 = vpop.f32.mrb[132].mxu0 }
 0x206   : > { %31834 = vst [vmem:[#allocation122_spill] sm:$0xff] %v25417_v17  ;;  %v25419_v29 = vpop.f32.mrb[133].mxu0 }
 0x207   : > { %31835 = vst [vmem:[#allocation123_spill] sm:$0xff] %v25419_v29  ;;  %v25422_v49 = vpop.f32.mrb[134].mxu0  ;;  %v23403_v29 = vld [vmem:[%s24906_s8 + $0x3e0] sm:$0xff]  }
 0x208   : > { %31836 = vst [vmem:[#allocation124_spill] sm:$0xff] %v25422_v49  ;;  %v25425_v55 = vpop.f32.mrb[135].mxu0 }
 0x209   : > { %31837 = vst [vmem:[#allocation125_spill] sm:$0xff] %v25425_v55 }
 0x20a   : > { %22876 = vmatmul.mubr.msk.bf16.gmra.mrb[240].mxu0 %vm2330_vm0, %v23400_v47 }
 0x20b   : > { %22879 = vmatprep.mubr.msk.bf16.mxu0 %vm2330_vm0, %v23401_v53  ;;  %v23404_v53 = vld [vmem:[%s24906_s8 + $0x3e8] sm:$0xff]  }
 0x20d   : > { %v25429_v59 = vpop.f32.mrb[136].mxu0 }
 0x20e   : > { %31838 = vst [vmem:[#allocation126_spill] sm:$0xff] %v25429_v59  ;;  %v25431_v63 = vpop.f32.mrb[137].mxu0 }
 0x20f   : > { %31839 = vst [vmem:[#allocation127_spill] sm:$0xff] %v25431_v63  ;;  %v25434_v17 = vpop.f32.mrb[138].mxu0  ;;  %v23405_v63 = vld [vmem:[%s24906_s8 + $0x3f0] sm:$0xff]  }
 0x210   : > { %31840 = vst [vmem:[#allocation128_spill] sm:$0xff] %v25434_v17  ;;  %v25437_v35 = vpop.f32.mrb[139].mxu0  ;;  %v23409_v17 = vld [vmem:[%s24906_s8 + $0x410] sm:$0xff]  }
 0x211   : > { %31841 = vst [vmem:[#allocation129_spill] sm:$0xff] %v25437_v35 }
 0x212   : > { %22880 = vmatmul.mubr.msk.bf16.gmra.mrb[244].mxu0 %vm2330_vm0, %v23402_v11 }
 0x213   : > { %22883 = vmatprep.mubr.msk.bf16.mxu0 %vm2330_vm0, %v23403_v29 }
 0x215   : > { %v25441_v55 = vpop.f32.mrb[140].mxu0 }
 0x216   : > { %31842 = vst [vmem:[#allocation130_spill] sm:$0xff] %v25441_v55  ;;  %v25443_v47 = vpop.f32.mrb[141].mxu0 }
 0x217   : > { %31843 = vst [vmem:[#allocation131_spill] sm:$0xff] %v25443_v47  ;;  %v25446_v59 = vpop.f32.mrb[142].mxu0  ;;  %v23406_v47 = vld [vmem:[%s24906_s8 + $0x3f8] sm:$0xff]  }
 0x218   : > { %31844 = vst [vmem:[#allocation132_spill] sm:$0xff] %v25446_v59  ;;  %v25449_v49 = vpop.f32.mrb[143].mxu0 }
 0x219   : > { %31845 = vst [vmem:[#allocation133_spill] sm:$0xff] %v25449_v49  ;;  %v23407_v49 = vld [vmem:[%s24906_s8 + $0x400] sm:$0xff]  }
 0x21a   : > { %22884 = vmatmul.mubr.msk.bf16.gmra.mrb[248].mxu0 %vm2330_vm0, %v23404_v53 }
 0x21b   : > { %22887 = vmatprep.mubr.msk.bf16.mxu0 %vm2330_vm0, %v23405_v63 }
 0x21d   : > { %v25453_v35 = vpop.f32.mrb[144].mxu0 }
 0x21e   : > { %v25457_v11 = vpop.f32.mrb[145].mxu0 }
 0x21f   : > { %31846 = vst [vmem:[#allocation134_spill] sm:$0xff] %v25457_v11  ;;  %v25462_v55 = vpop.f32.mrb[146].mxu0 }
 0x220   : > { %31847 = vst [vmem:[#allocation135_spill] sm:$0xff] %v25462_v55  ;;  %v25467_v63 = vpop.f32.mrb[147].mxu0 }
 0x221   : > { %31848 = vst [vmem:[#allocation136_spill] sm:$0xff] %v25467_v63  ;;  %v23411_v63 = vld [vmem:[%s24906_s8 + $0x420] sm:$0xff]  }
 0x222   : > { %22888 = vmatmul.mubr.msk.bf16.gmra.mrb[252].mxu0 %vm2330_vm0, %v23406_v47 }
 0x223   : > { %22891 = vmatprep.mubr.msk.bf16.mxu0 %vm2330_vm0, %v23407_v49 }
 0x225   : > { %v25473_v29 = vpop.f32.mrb[148].mxu0 }
 0x226   : > { %v25477_v11 = vpop.f32.mrb[149].mxu0  ;;  %v32196_v33 = vld [vmem:[#allocation134_spill] sm:$0xff] }
 0x227   : > { %31849 = vst [vmem:[#allocation137_spill] sm:$0xff] %v25477_v11  ;;  %v25482_v55 = vpop.f32.mrb[150].mxu0 }
 0x228   : > { %31850 = vst [vmem:[#allocation138_spill] sm:$0xff] %v25482_v55  ;;  %v25487_v49 = vpop.f32.mrb[151].mxu0 }
 0x229   : > { %31851 = vst [vmem:[#allocation139_spill] sm:$0xff] %v25487_v49  ;;  %v23413_v49 = vld [vmem:[%s24906_s8 + $0x430] sm:$0xff]  }
 0x22a   : > { %22892 = vmatmul.mubr.msk.bf16.gmra.mrb[0].mxu0 %vm2330_vm0, %v23408_v62 }
 0x22b   : > { %22895 = vmatprep.mubr.msk.bf16.mxu0 %vm2330_vm0, %v23409_v17 }
 0x22d   : > { %v25493_v59 = vpop.f32.mrb[152].mxu0 }
 0x22e   : > { %v25497_v11 = vpop.f32.mrb[153].mxu0 }
 0x22f   : > { %31852 = vst [vmem:[#allocation140_spill] sm:$0xff] %v25497_v11  ;;  %v25502_v55 = vpop.f32.mrb[154].mxu0 }
 0x230   : > { %31853 = vst [vmem:[#allocation141_spill] sm:$0xff] %v25502_v55  ;;  %v25507_v17 = vpop.f32.mrb[155].mxu0 }
 0x231   : > { %31854 = vst [vmem:[#allocation142_spill] sm:$0xff] %v25507_v17  ;;  %v23415_v17 = vld [vmem:[%s24906_s8 + $0x440] sm:$0xff]  }
 0x232   : > { %22896 = vmatmul.mubr.msk.bf16.gmra.mrb[4].mxu0 %vm2330_vm0, %v23410_v4 }
 0x233   : > { %22899 = vmatprep.mubr.msk.bf16.mxu0 %vm2330_vm0, %v23411_v63 }
 0x235   : > { %v25513_v53 = vpop.f32.mrb[156].mxu0 }
 0x236   : > { %v25517_v11 = vpop.f32.mrb[157].mxu0 }
 0x237   : > { %31855 = vst [vmem:[#allocation143_spill] sm:$0xff] %v25517_v11  ;;  %v25522_v55 = vpop.f32.mrb[158].mxu0 }
 0x238   : > { %31856 = vst [vmem:[#allocation144_spill] sm:$0xff] %v25522_v55  ;;  %v25527_v63 = vpop.f32.mrb[159].mxu0 }
 0x239   : > { %31857 = vst [vmem:[#allocation145_spill] sm:$0xff] %v25527_v63  ;;  %v23417_v63 = vld [vmem:[%s24906_s8 + $0x450] sm:$0xff]  }
 0x23a   : > { %22900 = vmatmul.mubr.msk.bf16.gmra.mrb[8].mxu0 %vm2330_vm0, %v23412_v10 }
 0x23b   : > { %22903 = vmatprep.mubr.msk.bf16.mxu0 %vm2330_vm0, %v23413_v49 }
 0x23d   : > { %v25533_v47 = vpop.f32.mrb[160].mxu0 }
 0x23e   : > { %v25537_v11 = vpop.f32.mrb[161].mxu0 }
 0x23f   : > { %31858 = vst [vmem:[#allocation146_spill] sm:$0xff] %v25537_v11  ;;  %v25542_v55 = vpop.f32.mrb[162].mxu0 }
 0x240   : > { %31859 = vst [vmem:[#allocation147_spill] sm:$0xff] %v25542_v55  ;;  %v25547_v49 = vpop.f32.mrb[163].mxu0 }
 0x241   : > { %31860 = vst [vmem:[#allocation148_spill] sm:$0xff] %v25547_v49  ;;  %v23419_v49 = vld [vmem:[%s24906_s8 + $0x460] sm:$0xff]  }
 0x242   : > { %22904 = vmatmul.mubr.msk.bf16.gmra.mrb[12].mxu0 %vm2330_vm0, %v23414_v16 }
 0x243   : > { %22907 = vmatprep.mubr.msk.bf16.mxu0 %vm2330_vm0, %v23415_v17 }
 0x245   : > { %v25553_v62 = vpop.f32.mrb[164].mxu0 }
 0x246   : > { %v25557_v11 = vpop.f32.mrb[165].mxu0 }
 0x247   : > { %31861 = vst [vmem:[#allocation149_spill] sm:$0xff] %v25557_v11  ;;  %v25562_v55 = vpop.f32.mrb[166].mxu0 }
 0x248   : > { %31862 = vst [vmem:[#allocation150_spill] sm:$0xff] %v25562_v55  ;;  %v25567_v17 = vpop.f32.mrb[167].mxu0 }
 0x249   : > { %31863 = vst [vmem:[#allocation151_spill] sm:$0xff] %v25567_v17  ;;  %v23421_v17 = vld [vmem:[%s24906_s8 + $0x470] sm:$0xff]  }
 0x24a   : > { %22908 = vmatmul.mubr.msk.bf16.gmra.mrb[16].mxu0 %vm2330_vm0, %v23416_v22 }
 0x24b   : > { %22911 = vmatprep.mubr.msk.bf16.mxu0 %vm2330_vm0, %v23417_v63 }
 0x24d   : > { %v25573_v4 = vpop.f32.mrb[168].mxu0 }
 0x24e   : > { %31864 = vst [vmem:[#allocation152_spill] sm:$0xff] %v25573_v4  ;;  %v25577_v11 = vpop.f32.mrb[169].mxu0  ;;  %v32195_v4 = vld [vmem:[#allocation6_spill] sm:$0xff] }
 0x24f   : > { %31865 = vst [vmem:[#allocation153_spill] sm:$0xff] %v25577_v11  ;;  %v25582_v55 = vpop.f32.mrb[170].mxu0 }
 0x250   : > { %31866 = vst [vmem:[#allocation154_spill] sm:$0xff] %v25582_v55  ;;  %v25587_v63 = vpop.f32.mrb[171].mxu0 }
 0x251   : > { %31867 = vst [vmem:[#allocation155_spill] sm:$0xff] %v25587_v63  ;;  %v23423_v63 = vld [vmem:[%s24906_s8 + $0x480] sm:$0xff]  }
 0x252   : > { %22912 = vmatmul.mubr.msk.bf16.gmra.mrb[20].mxu0 %vm2330_vm0, %v23418_v28 }
 0x253   : > { %22915 = vmatprep.mubr.msk.bf16.mxu0 %vm2330_vm0, %v23419_v49 }
 0x255   : > { %v25593_v10 = vpop.f32.mrb[172].mxu0 }
 0x256   : > { %31868 = vst [vmem:[#allocation156_spill] sm:$0xff] %v25593_v10  ;;  %v25597_v11 = vpop.f32.mrb[173].mxu0  ;;  %v23493_v10 = vld [vmem:[%s24906_s8 + $0x6b0] sm:$0xff]  }
 0x257   : > { %31869 = vst [vmem:[#allocation157_spill] sm:$0xff] %v25597_v11  ;;  %v25602_v55 = vpop.f32.mrb[174].mxu0 }
 0x258   : > { %31870 = vst [vmem:[#allocation158_spill] sm:$0xff] %v25602_v55  ;;  %v25607_v49 = vpop.f32.mrb[175].mxu0 }
 0x259   : > { %31871 = vst [vmem:[#allocation159_spill] sm:$0xff] %v25607_v49  ;;  %v23425_v49 = vld [vmem:[%s24906_s8 + $0x490] sm:$0xff]  }
 0x25a   : > { %22916 = vmatmul.mubr.msk.bf16.gmra.mrb[24].mxu0 %vm2330_vm0, %v23420_v34 }
 0x25b   : > { %22919 = vmatprep.mubr.msk.bf16.mxu0 %vm2330_vm0, %v23421_v17 }
 0x25d   : > { %v25613_v16 = vpop.f32.mrb[176].mxu0 }
 0x25e   : > { %31872 = vst [vmem:[#allocation160_spill] sm:$0xff] %v25613_v16  ;;  %v25617_v11 = vpop.f32.mrb[177].mxu0  ;;  %v23491_v16 = vld [vmem:[%s24906_s8 + $0x6a0] sm:$0xff]  }
 0x25f   : > { %31873 = vst [vmem:[#allocation161_spill] sm:$0xff] %v25617_v11  ;;  %v25622_v55 = vpop.f32.mrb[178].mxu0 }
 0x260   : > { %31874 = vst [vmem:[#allocation162_spill] sm:$0xff] %v25622_v55  ;;  %v25627_v17 = vpop.f32.mrb[179].mxu0 }
 0x261   : > { %31875 = vst [vmem:[#allocation163_spill] sm:$0xff] %v25627_v17  ;;  %v23427_v17 = vld [vmem:[%s24906_s8 + $0x4a0] sm:$0xff]  }
 0x262   : > { %22920 = vmatmul.mubr.msk.bf16.gmra.mrb[28].mxu0 %vm2330_vm0, %v23422_v40 }
 0x263   : > { %22923 = vmatprep.mubr.msk.bf16.mxu0 %vm2330_vm0, %v23423_v63 }
 0x265   : > { %v25633_v22 = vpop.f32.mrb[180].mxu0 }
 0x266   : > { %31876 = vst [vmem:[#allocation164_spill] sm:$0xff] %v25633_v22  ;;  %v25637_v11 = vpop.f32.mrb[181].mxu0  ;;  %v23489_v22 = vld [vmem:[%s24906_s8 + $0x690] sm:$0xff]  }
 0x267   : > { %31877 = vst [vmem:[#allocation165_spill] sm:$0xff] %v25637_v11  ;;  %v25642_v55 = vpop.f32.mrb[182].mxu0 }
 0x268   : > { %31878 = vst [vmem:[#allocation166_spill] sm:$0xff] %v25642_v55  ;;  %v25647_v63 = vpop.f32.mrb[183].mxu0 }
 0x269   : > { %31879 = vst [vmem:[#allocation167_spill] sm:$0xff] %v25647_v63  ;;  %v23429_v63 = vld [vmem:[%s24906_s8 + $0x4b0] sm:$0xff]  }
 0x26a   : > { %22924 = vmatmul.mubr.msk.bf16.gmra.mrb[32].mxu0 %vm2330_vm0, %v23424_v46 }
 0x26b   : > { %22927 = vmatprep.mubr.msk.bf16.mxu0 %vm2330_vm0, %v23425_v49 }
 0x26d   : > { %v25653_v28 = vpop.f32.mrb[184].mxu0 }
 0x26e   : > { %31880 = vst [vmem:[#allocation168_spill] sm:$0xff] %v25653_v28  ;;  %v25657_v11 = vpop.f32.mrb[185].mxu0  ;;  %v23487_v28 = vld [vmem:[%s24906_s8 + $0x680] sm:$0xff]  }
 0x26f   : > { %31881 = vst [vmem:[#allocation169_spill] sm:$0xff] %v25657_v11  ;;  %v25662_v55 = vpop.f32.mrb[186].mxu0 }
 0x270   : > { %31882 = vst [vmem:[#allocation170_spill] sm:$0xff] %v25662_v55  ;;  %v25667_v49 = vpop.f32.mrb[187].mxu0 }
 0x271   : > { %31883 = vst [vmem:[#allocation171_spill] sm:$0xff] %v25667_v49  ;;  %v23431_v49 = vld [vmem:[%s24906_s8 + $0x4c0] sm:$0xff]  }
 0x272   : > { %22928 = vmatmul.mubr.msk.bf16.gmra.mrb[36].mxu0 %vm2330_vm0, %v23426_v52 }
 0x273   : > { %22931 = vmatprep.mubr.msk.bf16.mxu0 %vm2330_vm0, %v23427_v17 }
 0x275   : > { %v25673_v34 = vpop.f32.mrb[188].mxu0 }
 0x276   : > { %31884 = vst [vmem:[#allocation172_spill] sm:$0xff] %v25673_v34  ;;  %v25677_v11 = vpop.f32.mrb[189].mxu0  ;;  %v23485_v34 = vld [vmem:[%s24906_s8 + $0x670] sm:$0xff]  }
 0x277   : > { %31885 = vst [vmem:[#allocation173_spill] sm:$0xff] %v25677_v11  ;;  %v25682_v55 = vpop.f32.mrb[190].mxu0 }
 0x278   : > { %31886 = vst [vmem:[#allocation174_spill] sm:$0xff] %v25682_v55  ;;  %v25687_v17 = vpop.f32.mrb[191].mxu0 }
 0x279   : > { %31887 = vst [vmem:[#allocation175_spill] sm:$0xff] %v25687_v17  ;;  %v23433_v17 = vld [vmem:[%s24906_s8 + $0x4d0] sm:$0xff]  }
 0x27a   : > { %22932 = vmatmul.mubr.msk.bf16.gmra.mrb[40].mxu0 %vm2330_vm0, %v23428_v58  ;;  %v23439_v58 = vld [vmem:[%s24906_s8 + $0x500] sm:$0xff]  }
 0x27b   : > { %22935 = vmatprep.mubr.msk.bf16.mxu0 %vm2330_vm0, %v23429_v63 }
 0x27d   : > { %v25693_v40 = vpop.f32.mrb[192].mxu0 }
 0x27e   : > { %31888 = vst [vmem:[#allocation176_spill] sm:$0xff] %v25693_v40  ;;  %v25697_v11 = vpop.f32.mrb[193].mxu0  ;;  %v23483_v40 = vld [vmem:[%s24906_s8 + $0x660] sm:$0xff]  }
 0x27f   : > { %31889 = vst [vmem:[#allocation177_spill] sm:$0xff] %v25697_v11  ;;  %v25702_v55 = vpop.f32.mrb[194].mxu0 }
 0x280   : > { %31890 = vst [vmem:[#allocation178_spill] sm:$0xff] %v25702_v55  ;;  %v25707_v63 = vpop.f32.mrb[195].mxu0 }
 0x281   : > { %31891 = vst [vmem:[#allocation179_spill] sm:$0xff] %v25707_v63 }
 0x282   : > { %22936 = vmatmul.mubr.msk.bf16.gmra.mrb[44].mxu0 %vm2330_vm0, %v23430_v7 }
 0x283   : > { %22939 = vmatprep.mubr.msk.bf16.mxu0 %vm2330_vm0, %v23431_v49 }
 0x285   : > { %v25713_v46 = vpop.f32.mrb[196].mxu0 }
 0x286   : > { %31892 = vst [vmem:[#allocation180_spill] sm:$0xff] %v25713_v46  ;;  %v25717_v11 = vpop.f32.mrb[197].mxu0  ;;  %v23434_v46 = vld [vmem:[%s24906_s8 + $0x4d8] sm:$0xff]  }
 0x287   : > { %31893 = vst [vmem:[#allocation181_spill] sm:$0xff] %v25717_v11  ;;  %v25722_v55 = vpop.f32.mrb[198].mxu0 }
 0x288   : > { %31894 = vst [vmem:[#allocation182_spill] sm:$0xff] %v25722_v55  ;;  %v25727_v49 = vpop.f32.mrb[199].mxu0  ;;  %v23441_v55 = vld [vmem:[%s24906_s8 + $0x510] sm:$0xff]  }
 0x289   : > { %31896 = vst [vmem:[#allocation183_spill] sm:$0xff] %v25727_v49 }
 0x28a   : > { %22940 = vmatmul.mubr.msk.bf16.gmra.mrb[48].mxu0 %vm2330_vm0, %v23432_v25 }
 0x28b   : > { %22943 = vmatprep.mubr.msk.bf16.mxu0 %vm2330_vm0, %v23433_v17 }
 0x28d   : > { %v25733_v52 = vpop.f32.mrb[200].mxu0 }
 0x28e   : > { %31898 = vst [vmem:[#allocation184_spill] sm:$0xff] %v25733_v52  ;;  %v25737_v43 = vpop.f32.mrb[201].mxu0  ;;  %v23436_v52 = vld [vmem:[%s24906_s8 + $0x4e8] sm:$0xff]  }
 0x28f   : > { %31900 = vst [vmem:[#allocation185_spill] sm:$0xff] %v25737_v43  ;;  %v25742_v7 = vpop.f32.mrb[202].mxu0 }
 0x290   : > { %31902 = vst [vmem:[#allocation186_spill] sm:$0xff] %v25742_v7  ;;  %v25747_v17 = vpop.f32.mrb[203].mxu0  ;;  %v23443_v7 = vld [vmem:[%s24906_s8 + $0x520] sm:$0xff]  }
 0x291   : > { %31904 = vst [vmem:[#allocation187_spill] sm:$0xff] %v25747_v17 }
 0x292   : > { %22944 = vmatmul.mubr.msk.bf16.gmra.mrb[52].mxu0 %vm2330_vm0, %v23434_v46 }
 0x293   : > { %22947 = vmatprep.mubr.msk.bf16.mxu0 %vm2330_vm0, %v23435_v31 }
 0x295   : > { %v25753_v11 = vpop.f32.mrb[204].mxu0 }
 0x296   : > { %31906 = vst [vmem:[#allocation188_spill] sm:$0xff] %v25753_v11  ;;  %v25757_v63 = vpop.f32.mrb[205].mxu0  ;;  %v23438_v11 = vld [vmem:[%s24906_s8 + $0x4f8] sm:$0xff]  }
 0x297   : > { %31908 = vst [vmem:[#allocation189_spill] sm:$0xff] %v25757_v63  ;;  %v25762_v25 = vpop.f32.mrb[206].mxu0 }
 0x298   : > { %31910 = vst [vmem:[#allocation190_spill] sm:$0xff] %v25762_v25  ;;  %v25767_v31 = vpop.f32.mrb[207].mxu0  ;;  %v23445_v25 = vld [vmem:[%s24906_s8 + $0x530] sm:$0xff]  }
 0x299   : > { %31912 = vst [vmem:[#allocation191_spill] sm:$0xff] %v25767_v31 }
 0x29a   : > { %22948 = vmatmul.mubr.msk.bf16.gmra.mrb[56].mxu0 %vm2330_vm0, %v23436_v52 }
 0x29b   : > { %22951 = vmatprep.mubr.msk.bf16.mxu0 %vm2330_vm0, %v23437_v41 }
 0x29d   : > { %v25773_v43 = vpop.f32.mrb[208].mxu0 }
 0x29e   : > { %31914 = vst [vmem:[#allocation192_spill] sm:$0xff] %v25773_v43  ;;  %v25777_v49 = vpop.f32.mrb[209].mxu0  ;;  %v23440_v43 = vld [vmem:[%s24906_s8 + $0x508] sm:$0xff]  }
 0x29f   : > { %31916 = vst [vmem:[#allocation193_spill] sm:$0xff] %v25777_v49  ;;  %v25782_v46 = vpop.f32.mrb[210].mxu0 }
 0x2a0   : > { %31918 = vst [vmem:[#allocation194_spill] sm:$0xff] %v25782_v46  ;;  %v25787_v41 = vpop.f32.mrb[211].mxu0  ;;  %v23447_v46 = vld [vmem:[%s24906_s8 + $0x540] sm:$0xff]  }
 0x2a1   : > { %31920 = vst [vmem:[#allocation195_spill] sm:$0xff] %v25787_v41 }
 0x2a2   : > { %22952 = vmatmul.mubr.msk.bf16.gmra.mrb[60].mxu0 %vm2330_vm0, %v23438_v11 }
 0x2a3   : > { %22955 = vmatprep.mubr.msk.bf16.mxu0 %vm2330_vm0, %v23439_v58 }
 0x2a5   : > { %v25793_v63 = vpop.f32.mrb[212].mxu0 }
 0x2a6   : > { %31922 = vst [vmem:[#allocation196_spill] sm:$0xff] %v25793_v63  ;;  %v25797_v17 = vpop.f32.mrb[213].mxu0  ;;  %v23442_v63 = vld [vmem:[%s24906_s8 + $0x518] sm:$0xff]  }
 0x2a7   : > { %31924 = vst [vmem:[#allocation197_spill] sm:$0xff] %v25797_v17  ;;  %v25802_v52 = vpop.f32.mrb[214].mxu0 }
 0x2a8   : > { %31926 = vst [vmem:[#allocation198_spill] sm:$0xff] %v25802_v52  ;;  %v25807_v58 = vpop.f32.mrb[215].mxu0  ;;  %v23449_v52 = vld [vmem:[%s24906_s8 + $0x550] sm:$0xff]  }
 0x2a9   : > { %31928 = vst [vmem:[#allocation199_spill] sm:$0xff] %v25807_v58 }
 0x2aa   : > { %22956 = vmatmul.mubr.msk.bf16.gmra.mrb[64].mxu0 %vm2330_vm0, %v23440_v43 }
 0x2ab   : > { %22959 = vmatprep.mubr.msk.bf16.mxu0 %vm2330_vm0, %v23441_v55 }
 0x2ad   : > { %v25813_v49 = vpop.f32.mrb[216].mxu0 }
 0x2ae   : > { %31930 = vst [vmem:[#allocation200_spill] sm:$0xff] %v25813_v49  ;;  %v25817_v31 = vpop.f32.mrb[217].mxu0  ;;  %v23444_v49 = vld [vmem:[%s24906_s8 + $0x528] sm:$0xff]  }
 0x2af   : > { %31932 = vst [vmem:[#allocation201_spill] sm:$0xff] %v25817_v31  ;;  %v25822_v11 = vpop.f32.mrb[218].mxu0 }
 0x2b0   : > { %31934 = vst [vmem:[#allocation202_spill] sm:$0xff] %v25822_v11  ;;  %v25827_v55 = vpop.f32.mrb[219].mxu0  ;;  %v23451_v11 = vld [vmem:[%s24906_s8 + $0x560] sm:$0xff]  }
 0x2b1   : > { %31936 = vst [vmem:[#allocation203_spill] sm:$0xff] %v25827_v55 }
 0x2b2   : > { %22960 = vmatmul.mubr.msk.bf16.gmra.mrb[68].mxu0 %vm2330_vm0, %v23442_v63 }
 0x2b3   : > { %22963 = vmatprep.mubr.msk.bf16.mxu0 %vm2330_vm0, %v23443_v7 }
 0x2b5   : > { %v25833_v17 = vpop.f32.mrb[220].mxu0 }
 0x2b6   : > { %31938 = vst [vmem:[#allocation204_spill] sm:$0xff] %v25833_v17  ;;  %v25837_v41 = vpop.f32.mrb[221].mxu0  ;;  %v23446_v17 = vld [vmem:[%s24906_s8 + $0x538] sm:$0xff]  }
 0x2b7   : > { %31940 = vst [vmem:[#allocation205_spill] sm:$0xff] %v25837_v41  ;;  %v25842_v43 = vpop.f32.mrb[222].mxu0 }
 0x2b8   : > { %31942 = vst [vmem:[#allocation206_spill] sm:$0xff] %v25842_v43  ;;  %v25847_v7 = vpop.f32.mrb[223].mxu0  ;;  %v23453_v43 = vld [vmem:[%s24906_s8 + $0x570] sm:$0xff]  }
 0x2b9   : > { %31944 = vst [vmem:[#allocation207_spill] sm:$0xff] %v25847_v7 }
 0x2ba   : > { %22964 = vmatmul.mubr.msk.bf16.gmra.mrb[72].mxu0 %vm2330_vm0, %v23444_v49 }
 0x2bb   : > { %22967 = vmatprep.mubr.msk.bf16.mxu0 %vm2330_vm0, %v23445_v25 }
 0x2bd   : > { %v25853_v31 = vpop.f32.mrb[224].mxu0 }
 0x2be   : > { %31946 = vst [vmem:[#allocation208_spill] sm:$0xff] %v25853_v31  ;;  %v25857_v58 = vpop.f32.mrb[225].mxu0  ;;  %v23448_v31 = vld [vmem:[%s24906_s8 + $0x548] sm:$0xff]  }
 0x2bf   : > { %31948 = vst [vmem:[#allocation209_spill] sm:$0xff] %v25857_v58  ;;  %v25862_v63 = vpop.f32.mrb[226].mxu0 }
 0x2c0   : > { %31950 = vst [vmem:[#allocation210_spill] sm:$0xff] %v25862_v63  ;;  %v25867_v25 = vpop.f32.mrb[227].mxu0  ;;  %v23455_v63 = vld [vmem:[%s24906_s8 + $0x580] sm:$0xff]  }
 0x2c1   : > { %31952 = vst [vmem:[#allocation211_spill] sm:$0xff] %v25867_v25 }
 0x2c2   : > { %22968 = vmatmul.mubr.msk.bf16.gmra.mrb[76].mxu0 %vm2330_vm0, %v23446_v17 }
 0x2c3   : > { %22971 = vmatprep.mubr.msk.bf16.mxu0 %vm2330_vm0, %v23447_v46 }
 0x2c5   : > { %v25873_v41 = vpop.f32.mrb[228].mxu0 }
 0x2c6   : > { %31954 = vst [vmem:[#allocation212_spill] sm:$0xff] %v25873_v41  ;;  %v25877_v55 = vpop.f32.mrb[229].mxu0  ;;  %v23450_v41 = vld [vmem:[%s24906_s8 + $0x558] sm:$0xff]  }
 0x2c7   : > { %31956 = vst [vmem:[#allocation213_spill] sm:$0xff] %v25877_v55  ;;  %v25882_v49 = vpop.f32.mrb[230].mxu0 }
 0x2c8   : > { %31958 = vst [vmem:[#allocation214_spill] sm:$0xff] %v25882_v49  ;;  %v25887_v46 = vpop.f32.mrb[231].mxu0  ;;  %v23457_v49 = vld [vmem:[%s24906_s8 + $0x590] sm:$0xff]  }
 0x2c9   : > { %31960 = vst [vmem:[#allocation215_spill] sm:$0xff] %v25887_v46 }
 0x2ca   : > { %22972 = vmatmul.mubr.msk.bf16.gmra.mrb[80].mxu0 %vm2330_vm0, %v23448_v31 }
 0x2cb   : > { %22975 = vmatprep.mubr.msk.bf16.mxu0 %vm2330_vm0, %v23449_v52 }
 0x2cd   : > { %v25893_v58 = vpop.f32.mrb[232].mxu0 }
 0x2ce   : > { %31962 = vst [vmem:[#allocation216_spill] sm:$0xff] %v25893_v58  ;;  %v25897_v7 = vpop.f32.mrb[233].mxu0  ;;  %v23452_v58 = vld [vmem:[%s24906_s8 + $0x568] sm:$0xff]  }
 0x2cf   : > { %31964 = vst [vmem:[#allocation217_spill] sm:$0xff] %v25897_v7  ;;  %v25902_v17 = vpop.f32.mrb[234].mxu0 }
 0x2d0   : > { %31966 = vst [vmem:[#allocation218_spill] sm:$0xff] %v25902_v17  ;;  %v25907_v52 = vpop.f32.mrb[235].mxu0  ;;  %v23459_v17 = vld [vmem:[%s24906_s8 + $0x5a0] sm:$0xff]  }
 0x2d1   : > { %31968 = vst [vmem:[#allocation219_spill] sm:$0xff] %v25907_v52 }
 0x2d2   : > { %22976 = vmatmul.mubr.msk.bf16.gmra.mrb[84].mxu0 %vm2330_vm0, %v23450_v41 }
 0x2d3   : > { %22979 = vmatprep.mubr.msk.bf16.mxu0 %vm2330_vm0, %v23451_v11 }
 0x2d5   : > { %v25913_v55 = vpop.f32.mrb[236].mxu0 }
 0x2d6   : > { %31970 = vst [vmem:[#allocation220_spill] sm:$0xff] %v25913_v55  ;;  %v25917_v25 = vpop.f32.mrb[237].mxu0  ;;  %v23454_v55 = vld [vmem:[%s24906_s8 + $0x578] sm:$0xff]  }
 0x2d7   : > { %31972 = vst [vmem:[#allocation221_spill] sm:$0xff] %v25917_v25  ;;  %v25922_v31 = vpop.f32.mrb[238].mxu0 }
 0x2d8   : > { %31974 = vst [vmem:[#allocation222_spill] sm:$0xff] %v25922_v31  ;;  %v25927_v11 = vpop.f32.mrb[239].mxu0  ;;  %v23461_v31 = vld [vmem:[%s24906_s8 + $0x5b0] sm:$0xff]  }
 0x2d9   : > { %31976 = vst [vmem:[#allocation223_spill] sm:$0xff] %v25927_v11 }
 0x2da   : > { %22980 = vmatmul.mubr.msk.bf16.gmra.mrb[88].mxu0 %vm2330_vm0, %v23452_v58 }
 0x2db   : > { %22983 = vmatprep.mubr.msk.bf16.mxu0 %vm2330_vm0, %v23453_v43 }
 0x2dd   : > { %v25933_v7 = vpop.f32.mrb[240].mxu0 }
 0x2de   : > { %31978 = vst [vmem:[#allocation224_spill] sm:$0xff] %v25933_v7  ;;  %v25937_v46 = vpop.f32.mrb[241].mxu0  ;;  %v23456_v7 = vld [vmem:[%s24906_s8 + $0x588] sm:$0xff]  }
 0x2df   : > { %31980 = vst [vmem:[#allocation225_spill] sm:$0xff] %v25937_v46  ;;  %v25942_v41 = vpop.f32.mrb[242].mxu0 }
 0x2e0   : > { %31982 = vst [vmem:[#allocation226_spill] sm:$0xff] %v25942_v41  ;;  %v25947_v43 = vpop.f32.mrb[243].mxu0  ;;  %v23463_v41 = vld [vmem:[%s24906_s8 + $0x5c0] sm:$0xff]  }
 0x2e1   : > { %31984 = vst [vmem:[#allocation227_spill] sm:$0xff] %v25947_v43 }
 0x2e2   : > { %22984 = vmatmul.mubr.msk.bf16.gmra.mrb[92].mxu0 %vm2330_vm0, %v23454_v55 }
 0x2e3   : > { %22987 = vmatprep.mubr.msk.bf16.mxu0 %vm2330_vm0, %v23455_v63 }
 0x2e5   : > { %v25953_v25 = vpop.f32.mrb[244].mxu0 }
 0x2e6   : > { %31986 = vst [vmem:[#allocation228_spill] sm:$0xff] %v25953_v25  ;;  %v25957_v52 = vpop.f32.mrb[245].mxu0  ;;  %v23458_v25 = vld [vmem:[%s24906_s8 + $0x598] sm:$0xff]  }
 0x2e7   : > { %31988 = vst [vmem:[#allocation229_spill] sm:$0xff] %v25957_v52  ;;  %v25962_v58 = vpop.f32.mrb[246].mxu0 }
 0x2e8   : > { %31990 = vst [vmem:[#allocation230_spill] sm:$0xff] %v25962_v58  ;;  %v25967_v63 = vpop.f32.mrb[247].mxu0  ;;  %v23465_v58 = vld [vmem:[%s24906_s8 + $0x5d0] sm:$0xff]  }
 0x2e9   : > { %31992 = vst [vmem:[#allocation231_spill] sm:$0xff] %v25967_v63 }
 0x2ea   : > { %22988 = vmatmul.mubr.msk.bf16.gmra.mrb[96].mxu0 %vm2330_vm0, %v23456_v7 }
 0x2eb   : > { %22991 = vmatprep.mubr.msk.bf16.mxu0 %vm2330_vm0, %v23457_v49 }
 0x2ed   : > { %v25973_v46 = vpop.f32.mrb[248].mxu0 }
 0x2ee   : > { %31994 = vst [vmem:[#allocation232_spill] sm:$0xff] %v25973_v46  ;;  %v25977_v11 = vpop.f32.mrb[249].mxu0  ;;  %v23460_v46 = vld [vmem:[%s24906_s8 + $0x5a8] sm:$0xff]  }
 0x2ef   : > { %31996 = vst [vmem:[#allocation233_spill] sm:$0xff] %v25977_v11  ;;  %v25982_v55 = vpop.f32.mrb[250].mxu0 }
 0x2f0   : > { %31998 = vst [vmem:[#allocation234_spill] sm:$0xff] %v25982_v55  ;;  %v25987_v49 = vpop.f32.mrb[251].mxu0  ;;  %v23467_v55 = vld [vmem:[%s24906_s8 + $0x5e0] sm:$0xff]  }
 0x2f1   : > { %32000 = vst [vmem:[#allocation235_spill] sm:$0xff] %v25987_v49 }
 0x2f2   : > { %22992 = vmatmul.mubr.msk.bf16.gmra.mrb[100].mxu0 %vm2330_vm0, %v23458_v25 }
 0x2f3   : > { %22995 = vmatprep.mubr.msk.bf16.mxu0 %vm2330_vm0, %v23459_v17 }
 0x2f5   : > { %v25993_v52 = vpop.f32.mrb[252].mxu0 }
 0x2f6   : > { %32002 = vst [vmem:[#allocation236_spill] sm:$0xff] %v25993_v52  ;;  %v25997_v43 = vpop.f32.mrb[253].mxu0  ;;  %v23462_v52 = vld [vmem:[%s24906_s8 + $0x5b8] sm:$0xff]  }
 0x2f7   : > { %32004 = vst [vmem:[#allocation237_spill] sm:$0xff] %v25997_v43  ;;  %v26002_v7 = vpop.f32.mrb[254].mxu0 }
 0x2f8   : > { %32006 = vst [vmem:[#allocation238_spill] sm:$0xff] %v26002_v7  ;;  %v26007_v17 = vpop.f32.mrb[255].mxu0  ;;  %v23469_v7 = vld [vmem:[%s24906_s8 + $0x5f0] sm:$0xff]  }
 0x2f9   : > { %32008 = vst [vmem:[#allocation239_spill] sm:$0xff] %v26007_v17 }
 0x2fa   : > { %22996 = vmatmul.mubr.msk.bf16.gmra.mrb[104].mxu0 %vm2330_vm0, %v23460_v46 }
 0x2fb   : > { %22999 = vmatprep.mubr.msk.bf16.mxu0 %vm2330_vm0, %v23461_v31 }
 0x2fd   : > { %v26013_v11 = vpop.f32.mrb[0].mxu0 }
 0x2fe   : > { %32010 = vst [vmem:[#allocation240_spill] sm:$0xff] %v26013_v11  ;;  %v26017_v63 = vpop.f32.mrb[1].mxu0  ;;  %v23464_v11 = vld [vmem:[%s24906_s8 + $0x5c8] sm:$0xff]  }
 0x2ff   : > { %32012 = vst [vmem:[#allocation241_spill] sm:$0xff] %v26017_v63  ;;  %v26022_v25 = vpop.f32.mrb[2].mxu0 }
 0x300   : > { %32014 = vst [vmem:[#allocation242_spill] sm:$0xff] %v26022_v25  ;;  %v26027_v31 = vpop.f32.mrb[3].mxu0  ;;  %v23471_v25 = vld [vmem:[%s24906_s8 + $0x600] sm:$0xff]  }
 0x301   : > { %32016 = vst [vmem:[#allocation243_spill] sm:$0xff] %v26027_v31 }
 0x302   : > { %23000 = vmatmul.mubr.msk.bf16.gmra.mrb[108].mxu0 %vm2330_vm0, %v23462_v52 }
 0x303   : > { %23003 = vmatprep.mubr.msk.bf16.mxu0 %vm2330_vm0, %v23463_v41 }
 0x305   : > { %v26033_v43 = vpop.f32.mrb[4].mxu0 }
 0x306   : > { %32018 = vst [vmem:[#allocation244_spill] sm:$0xff] %v26033_v43  ;;  %v26037_v49 = vpop.f32.mrb[5].mxu0  ;;  %v23466_v43 = vld [vmem:[%s24906_s8 + $0x5d8] sm:$0xff]  }
 0x307   : > { %32020 = vst [vmem:[#allocation245_spill] sm:$0xff] %v26037_v49  ;;  %v26042_v46 = vpop.f32.mrb[6].mxu0 }
 0x308   : > { %32022 = vst [vmem:[#allocation246_spill] sm:$0xff] %v26042_v46  ;;  %v26047_v41 = vpop.f32.mrb[7].mxu0  ;;  %v23473_v46 = vld [vmem:[%s24906_s8 + $0x610] sm:$0xff]  }
 0x309   : > { %32024 = vst [vmem:[#allocation247_spill] sm:$0xff] %v26047_v41 }
 0x30a   : > { %23004 = vmatmul.mubr.msk.bf16.gmra.mrb[112].mxu0 %vm2330_vm0, %v23464_v11 }
 0x30b   : > { %23007 = vmatprep.mubr.msk.bf16.mxu0 %vm2330_vm0, %v23465_v58 }
 0x30d   : > { %v26053_v63 = vpop.f32.mrb[8].mxu0 }
 0x30e   : > { %32026 = vst [vmem:[#allocation248_spill] sm:$0xff] %v26053_v63  ;;  %v26057_v17 = vpop.f32.mrb[9].mxu0  ;;  %v23468_v63 = vld [vmem:[%s24906_s8 + $0x5e8] sm:$0xff]  }
 0x30f   : > { %32028 = vst [vmem:[#allocation249_spill] sm:$0xff] %v26057_v17  ;;  %v26062_v52 = vpop.f32.mrb[10].mxu0 }
 0x310   : > { %32030 = vst [vmem:[#allocation250_spill] sm:$0xff] %v26062_v52  ;;  %v26067_v58 = vpop.f32.mrb[11].mxu0  ;;  %v23475_v52 = vld [vmem:[%s24906_s8 + $0x620] sm:$0xff]  }
 0x311   : > { %32032 = vst [vmem:[#allocation251_spill] sm:$0xff] %v26067_v58 }
 0x312   : > { %23008 = vmatmul.mubr.msk.bf16.gmra.mrb[116].mxu0 %vm2330_vm0, %v23466_v43 }
 0x313   : > { %23011 = vmatprep.mubr.msk.bf16.mxu0 %vm2330_vm0, %v23467_v55 }
 0x315   : > { %v26073_v49 = vpop.f32.mrb[12].mxu0 }
 0x316   : > { %32034 = vst [vmem:[#allocation252_spill] sm:$0xff] %v26073_v49  ;;  %v26077_v31 = vpop.f32.mrb[13].mxu0  ;;  %v23470_v49 = vld [vmem:[%s24906_s8 + $0x5f8] sm:$0xff]  }
 0x317   : > { %32036 = vst [vmem:[#allocation253_spill] sm:$0xff] %v26077_v31  ;;  %v26082_v11 = vpop.f32.mrb[14].mxu0 }
 0x318   : > { %32038 = vst [vmem:[#allocation254_spill] sm:$0xff] %v26082_v11  ;;  %v26087_v55 = vpop.f32.mrb[15].mxu0  ;;  %v23477_v11 = vld [vmem:[%s24906_s8 + $0x630] sm:$0xff]  }
 0x319   : > { %32040 = vst [vmem:[#allocation255_spill] sm:$0xff] %v26087_v55 }
 0x31a   : > { %23012 = vmatmul.mubr.msk.bf16.gmra.mrb[120].mxu0 %vm2330_vm0, %v23468_v63 }
 0x31b   : > { %23015 = vmatprep.mubr.msk.bf16.mxu0 %vm2330_vm0, %v23469_v7 }
 0x31d   : > { %v26093_v17 = vpop.f32.mrb[16].mxu0 }
 0x31e   : > { %32042 = vst [vmem:[#allocation256_spill] sm:$0xff] %v26093_v17  ;;  %v26097_v41 = vpop.f32.mrb[17].mxu0  ;;  %v23472_v17 = vld [vmem:[%s24906_s8 + $0x608] sm:$0xff]  }
 0x31f   : > { %32044 = vst [vmem:[#allocation257_spill] sm:$0xff] %v26097_v41  ;;  %v26102_v43 = vpop.f32.mrb[18].mxu0 }
 0x320   : > { %32046 = vst [vmem:[#allocation258_spill] sm:$0xff] %v26102_v43  ;;  %v26107_v7 = vpop.f32.mrb[19].mxu0 }
 0x321   : > { %32048 = vst [vmem:[#allocation259_spill] sm:$0xff] %v26107_v7 }
 0x322   : > { %23016 = vmatmul.mubr.msk.bf16.gmra.mrb[124].mxu0 %vm2330_vm0, %v23470_v49 }
 0x323   : > { %23019 = vmatprep.mubr.msk.bf16.mxu0 %vm2330_vm0, %v23471_v25 }
 0x325   : > { %v26113_v31 = vpop.f32.mrb[20].mxu0 }
 0x326   : > { %32050 = vst [vmem:[#allocation260_spill] sm:$0xff] %v26113_v31  ;;  %v26117_v58 = vpop.f32.mrb[21].mxu0  ;;  %v23474_v31 = vld [vmem:[%s24906_s8 + $0x618] sm:$0xff]  }
 0x327   : > { %32052 = vst [vmem:[#allocation261_spill] sm:$0xff] %v26117_v58  ;;  %v26122_v63 = vpop.f32.mrb[22].mxu0 }
 0x328   : > { %32054 = vst [vmem:[#allocation262_spill] sm:$0xff] %v26122_v63  ;;  %v26127_v25 = vpop.f32.mrb[23].mxu0 }
 0x329   : > { %32056 = vst [vmem:[#allocation263_spill] sm:$0xff] %v26127_v25 }
 0x32a   : > { %23020 = vmatmul.mubr.msk.bf16.gmra.mrb[128].mxu0 %vm2330_vm0, %v23472_v17 }
 0x32b   : > { %23023 = vmatprep.mubr.msk.bf16.mxu0 %vm2330_vm0, %v23473_v46 }
 0x32d   : > { %v26133_v41 = vpop.f32.mrb[24].mxu0 }
 0x32e   : > { %32058 = vst [vmem:[#allocation264_spill] sm:$0xff] %v26133_v41  ;;  %v26137_v55 = vpop.f32.mrb[25].mxu0  ;;  %v23476_v41 = vld [vmem:[%s24906_s8 + $0x628] sm:$0xff]  }
 0x32f   : > { %32060 = vst [vmem:[#allocation265_spill] sm:$0xff] %v26137_v55  ;;  %v26142_v49 = vpop.f32.mrb[26].mxu0 }
 0x330   : > { %32062 = vst [vmem:[#allocation266_spill] sm:$0xff] %v26142_v49  ;;  %v26147_v46 = vpop.f32.mrb[27].mxu0 }
 0x331   : > { %32064 = vst [vmem:[#allocation267_spill] sm:$0xff] %v26147_v46 }
 0x332   : > { %23024 = vmatmul.mubr.msk.bf16.gmra.mrb[132].mxu0 %vm2330_vm0, %v23474_v31 }
 0x333   : > { %23027 = vmatprep.mubr.msk.bf16.mxu0 %vm2330_vm0, %v23475_v52 }
 0x335   : > { %v26153_v58 = vpop.f32.mrb[28].mxu0 }
 0x336   : > { %32066 = vst [vmem:[#allocation268_spill] sm:$0xff] %v26153_v58  ;;  %v26157_v7 = vpop.f32.mrb[29].mxu0  ;;  %v23479_v58 = vld [vmem:[%s24906_s8 + $0x640] sm:$0xff]  }
 0x337   : > { %32068 = vst [vmem:[#allocation269_spill] sm:$0xff] %v26157_v7  ;;  %v26162_v17 = vpop.f32.mrb[30].mxu0  ;;  %v23478_v7 = vld [vmem:[%s24906_s8 + $0x638] sm:$0xff]  }
 0x338   : > { %32070 = vst [vmem:[#allocation270_spill] sm:$0xff] %v26162_v17  ;;  %v26167_v52 = vpop.f32.mrb[31].mxu0 }
 0x339   : > { %32072 = vst [vmem:[#allocation271_spill] sm:$0xff] %v26167_v52 }
 0x33a   : > { %23028 = vmatmul.mubr.msk.bf16.gmra.mrb[136].mxu0 %vm2330_vm0, %v23476_v41 }
 0x33b   : > { %23031 = vmatprep.mubr.msk.bf16.mxu0 %vm2330_vm0, %v23477_v11  ;;  %v23480_v11 = vld [vmem:[%s24906_s8 + $0x648] sm:$0xff]  }
 0x33d   : > { %v26173_v55 = vpop.f32.mrb[32].mxu0 }
 0x33e   : > { %v26175_v49 = vpop.f32.mrb[33].mxu0 }
 0x33f   : > { %v26178_v25 = vpop.f32.mrb[34].mxu0 }
 0x340   : > { %v26181_v46 = vpop.f32.mrb[35].mxu0 }
 0x342   : > { %23032 = vmatmul.mubr.msk.bf16.gmra.mrb[140].mxu0 %vm2330_vm0, %v23478_v7 }
 0x343   : > { %23035 = vmatprep.mubr.msk.bf16.mxu0 %vm2330_vm0, %v23479_v58  ;;  %v23482_v58 = vld [vmem:[%s24906_s8 + $0x658] sm:$0xff]  }
 0x345   : > { %v26185_v43 = vpop.f32.mrb[36].mxu0 }
 0x346   : > { %v26187_v41 = vpop.f32.mrb[37].mxu0 }
 0x347   : > { %v26190_v52 = vpop.f32.mrb[38].mxu0 }
 0x348   : > { %v26193_v17 = vpop.f32.mrb[39].mxu0 }
 0x34a   : > { %23036 = vmatmul.mubr.msk.bf16.gmra.mrb[144].mxu0 %vm2330_vm0, %v23480_v11 }
 0x34b   : > { %23039 = vmatprep.mubr.msk.bf16.mxu0 %vm2330_vm0, %v23481_v37  ;;  %v23484_v37 = vld [vmem:[%s24906_s8 + $0x668] sm:$0xff]  }
 0x34d   : > { %v26197_v31 = vpop.f32.mrb[40].mxu0 }
 0x34e   : > { %v26199_v7 = vpop.f32.mrb[41].mxu0 }
 0x34f   : > { %v26202_v63 = vpop.f32.mrb[42].mxu0 }
 0x350   : > { %v26205_v23 = vpop.f32.mrb[43].mxu0 }
 0x352   : > { %23040 = vmatmul.mubr.msk.bf16.gmra.mrb[148].mxu0 %vm2330_vm0, %v23482_v58 }
 0x353   : > { %23043 = vmatprep.mubr.msk.bf16.mxu0 %vm2330_vm0, %v23483_v40  ;;  %v23486_v40 = vld [vmem:[%s24906_s8 + $0x678] sm:$0xff]  }
 0x355   : > { %v26209_v19 = vpop.f32.mrb[44].mxu0 }
 0x356   : > { %v26211_v11 = vpop.f32.mrb[45].mxu0 }
 0x357   : > { %v26214_v13 = vpop.f32.mrb[46].mxu0 }
 0x358   : > { %v26217_v5 = vpop.f32.mrb[47].mxu0 }
 0x35a   : > { %23044 = vmatmul.mubr.msk.bf16.gmra.mrb[152].mxu0 %vm2330_vm0, %v23484_v37 }
 0x35b   : > { %23047 = vmatprep.mubr.msk.bf16.mxu0 %vm2330_vm0, %v23485_v34  ;;  %v23488_v34 = vld [vmem:[%s24906_s8 + $0x688] sm:$0xff]  }
 0x35d   : > { %v26221_v1 = vpop.f32.mrb[48].mxu0 }
 0x35e   : > { %v26223_v58 = vpop.f32.mrb[49].mxu0 }
 0x35f   : > { %v26226_v60 = vpop.f32.mrb[50].mxu0 }
 0x360   : > { %v26229_v57 = vpop.f32.mrb[51].mxu0 }
 0x362   : > { %23048 = vmatmul.mubr.msk.bf16.gmra.mrb[156].mxu0 %vm2330_vm0, %v23486_v40 }
 0x363   : > { %23051 = vmatprep.mubr.msk.bf16.mxu0 %vm2330_vm0, %v23487_v28  ;;  %v23490_v28 = vld [vmem:[%s24906_s8 + $0x698] sm:$0xff]  }
 0x365   : > { %v26233_v56 = vpop.f32.mrb[52].mxu0 }
 0x366   : > { %v26235_v37 = vpop.f32.mrb[53].mxu0 }
 0x367   : > { %v26238_v54 = vpop.f32.mrb[54].mxu0 }
 0x368   : > { %v26241_v51 = vpop.f32.mrb[55].mxu0 }
 0x36a   : > { %23052 = vmatmul.mubr.msk.bf16.gmra.mrb[160].mxu0 %vm2330_vm0, %v23488_v34 }
 0x36b   : > { %23055 = vmatprep.mubr.msk.bf16.mxu0 %vm2330_vm0, %v23489_v22  ;;  %v23492_v22 = vld [vmem:[%s24906_s8 + $0x6a8] sm:$0xff]  }
 0x36d   : > { %v26245_v50 = vpop.f32.mrb[56].mxu0 }
 0x36e   : > { %32074 = vst [vmem:[#allocation272_spill] sm:$0xff] %v26245_v50  ;;  %v26247_v40 = vpop.f32.mrb[57].mxu0  ;;  %v32198_v50 = vld [vmem:[#allocation135_spill] sm:$0xff] }
 0x36f   : > { %32075 = vst [vmem:[#allocation273_spill] sm:$0xff] %v26247_v40  ;;  %v26250_v48 = vpop.f32.mrb[58].mxu0  ;;  %v32197_v40 = vmax.f32 %v32195_v4, %v32196_v33  ;;  %v32199_v32 = vmax.f32 %v25026_v0, %v32198_v50  ;;  %v23650_v0 = vld [vmem:[%s31445_s3 + $0x1210] sm:$0xff]   ;;  %v23569_v50 = vld [vmem:[%s24906_s8 + $0x888] sm:$0xff]  }
 0x370   : > { %32076 = vst [vmem:[#allocation274_spill] sm:$0xff] %v26250_v48  ;;  %v26253_v45 = vpop.f32.mrb[59].mxu0 }
 0x371   : > { %32077 = vst [vmem:[#allocation275_spill] sm:$0xff] %v26253_v45 }
 0x372   : > { %23056 = vmatmul.mubr.msk.bf16.gmra.mrb[164].mxu0 %vm2330_vm0, %v23490_v28 }
 0x373   : > { %23059 = vmatprep.mubr.msk.bf16.mxu0 %vm2330_vm0, %v23491_v16  ;;  %v23494_v16 = vld [vmem:[%s24906_s8 + $0x6b8] sm:$0xff]  }
 0x375   : > { %v26257_v44 = vpop.f32.mrb[60].mxu0 }
 0x376   : > { %32078 = vst [vmem:[#allocation276_spill] sm:$0xff] %v26257_v44  ;;  %v26259_v34 = vpop.f32.mrb[61].mxu0 }
 0x377   : > { %32079 = vst [vmem:[#allocation277_spill] sm:$0xff] %v26259_v34  ;;  %v26262_v42 = vpop.f32.mrb[62].mxu0  ;;  %v23495_v34 = vld [vmem:[%s24906_s8 + $0x6c0] sm:$0xff]  }
 0x378   : > { %32080 = vst [vmem:[#allocation278_spill] sm:$0xff] %v26262_v42  ;;  %v26265_v39 = vpop.f32.mrb[63].mxu0 }
 0x379   : > { %32081 = vst [vmem:[#allocation279_spill] sm:$0xff] %v26265_v39 }
 0x37a   : > { %23060 = vmatmul.mubr.msk.bf16.gmra.mrb[168].mxu0 %vm2330_vm0, %v23492_v22 }
 0x37b   : > { %23063 = vmatprep.mubr.msk.bf16.mxu0 %vm2330_vm0, %v23493_v10  ;;  %v23496_v10 = vld [vmem:[%s24906_s8 + $0x6c8] sm:$0xff]  }
 0x37d   : > { %v26269_v38 = vpop.f32.mrb[64].mxu0 }
 0x37e   : > { %32082 = vst [vmem:[#allocation280_spill] sm:$0xff] %v26269_v38  ;;  %v26271_v28 = vpop.f32.mrb[65].mxu0 }
 0x37f   : > { %32083 = vst [vmem:[#allocation281_spill] sm:$0xff] %v26271_v28  ;;  %v26274_v44 = vpop.f32.mrb[66].mxu0  ;;  %v23497_v28 = vld [vmem:[%s24906_s8 + $0x6d0] sm:$0xff]  }
 0x380   : > { %32084 = vst [vmem:[#allocation282_spill] sm:$0xff] %v26274_v44  ;;  %v26277_v36 = vpop.f32.mrb[67].mxu0 }
 0x381   : > { %32085 = vst [vmem:[#allocation283_spill] sm:$0xff] %v26277_v36 }
 0x382   : > { %23064 = vmatmul.mubr.msk.bf16.gmra.mrb[172].mxu0 %vm2330_vm0, %v23494_v16 }
 0x383   : > { %23067 = vmatprep.mubr.msk.bf16.mxu0 %vm2330_vm0, %v23495_v34  ;;  %v23498_v34 = vld [vmem:[%s24906_s8 + $0x6d8] sm:$0xff]  }
 0x385   : > { %v26281_v39 = vpop.f32.mrb[68].mxu0 }
 0x386   : > { %32086 = vst [vmem:[#allocation284_spill] sm:$0xff] %v26281_v39  ;;  %v26283_v22 = vpop.f32.mrb[69].mxu0 }
 0x387   : > { %32087 = vst [vmem:[#allocation285_spill] sm:$0xff] %v26283_v22  ;;  %v26286_v38 = vpop.f32.mrb[70].mxu0  ;;  %v23499_v22 = vld [vmem:[%s24906_s8 + $0x6e0] sm:$0xff]  }
 0x388   : > { %32088 = vst [vmem:[#allocation286_spill] sm:$0xff] %v26286_v38  ;;  %v26289_v42 = vpop.f32.mrb[71].mxu0 }
 0x389   : > { %32089 = vst [vmem:[#allocation287_spill] sm:$0xff] %v26289_v42 }
 0x38a   : > { %23068 = vmatmul.mubr.msk.bf16.gmra.mrb[176].mxu0 %vm2330_vm0, %v23496_v10 }
 0x38b   : > { %23071 = vmatprep.mubr.msk.bf16.mxu0 %vm2330_vm0, %v23497_v28  ;;  %v23500_v28 = vld [vmem:[%s24906_s8 + $0x6e8] sm:$0xff]  }
 0x38d   : > { %v26293_v36 = vpop.f32.mrb[72].mxu0 }
 0x38e   : > { %32090 = vst [vmem:[#allocation288_spill] sm:$0xff] %v26293_v36  ;;  %v26295_v16 = vpop.f32.mrb[73].mxu0 }
 0x38f   : > { %32091 = vst [vmem:[#allocation289_spill] sm:$0xff] %v26295_v16  ;;  %v26298_v39 = vpop.f32.mrb[74].mxu0  ;;  %v23501_v16 = vld [vmem:[%s24906_s8 + $0x6f0] sm:$0xff]  }
 0x390   : > { %32092 = vst [vmem:[#allocation290_spill] sm:$0xff] %v26298_v39  ;;  %v26301_v44 = vpop.f32.mrb[75].mxu0 }
 0x391   : > { %32093 = vst [vmem:[#allocation291_spill] sm:$0xff] %v26301_v44 }
 0x392   : > { %23072 = vmatmul.mubr.msk.bf16.gmra.mrb[180].mxu0 %vm2330_vm0, %v23498_v34 }
 0x393   : > { %23075 = vmatprep.mubr.msk.bf16.mxu0 %vm2330_vm0, %v23499_v22  ;;  %v23502_v22 = vld [vmem:[%s24906_s8 + $0x6f8] sm:$0xff]  }
 0x395   : > { %v26305_v42 = vpop.f32.mrb[76].mxu0 }
 0x396   : > { %32094 = vst [vmem:[#allocation292_spill] sm:$0xff] %v26305_v42  ;;  %v26307_v10 = vpop.f32.mrb[77].mxu0 }
 0x397   : > { %32095 = vst [vmem:[#allocation293_spill] sm:$0xff] %v26307_v10  ;;  %v26310_v36 = vpop.f32.mrb[78].mxu0  ;;  %v23503_v10 = vld [vmem:[%s24906_s8 + $0x700] sm:$0xff]  }
 0x398   : > { %32096 = vst [vmem:[#allocation294_spill] sm:$0xff] %v26310_v36  ;;  %v26313_v38 = vpop.f32.mrb[79].mxu0 }
 0x399   : > { %32097 = vst [vmem:[#allocation295_spill] sm:$0xff] %v26313_v38 }
 0x39a   : > { %23076 = vmatmul.mubr.msk.bf16.gmra.mrb[184].mxu0 %vm2330_vm0, %v23500_v28 }
 0x39b   : > { %23079 = vmatprep.mubr.msk.bf16.mxu0 %vm2330_vm0, %v23501_v16  ;;  %v23504_v16 = vld [vmem:[%s24906_s8 + $0x708] sm:$0xff]  }
 0x39d   : > { %v26317_v44 = vpop.f32.mrb[80].mxu0 }
 0x39e   : > { %32098 = vst [vmem:[#allocation296_spill] sm:$0xff] %v26317_v44  ;;  %v26319_v34 = vpop.f32.mrb[81].mxu0 }
 0x39f   : > { %32099 = vst [vmem:[#allocation297_spill] sm:$0xff] %v26319_v34  ;;  %v26322_v42 = vpop.f32.mrb[82].mxu0  ;;  %v23505_v34 = vld [vmem:[%s24906_s8 + $0x710] sm:$0xff]  }
 0x3a0   : > { %32100 = vst [vmem:[#allocation298_spill] sm:$0xff] %v26322_v42  ;;  %v26325_v39 = vpop.f32.mrb[83].mxu0 }
 0x3a1   : > { %32101 = vst [vmem:[#allocation299_spill] sm:$0xff] %v26325_v39 }
 0x3a2   : > { %23080 = vmatmul.mubr.msk.bf16.gmra.mrb[188].mxu0 %vm2330_vm0, %v23502_v22 }
 0x3a3   : > { %23083 = vmatprep.mubr.msk.bf16.mxu0 %vm2330_vm0, %v23503_v10  ;;  %v23506_v10 = vld [vmem:[%s24906_s8 + $0x718] sm:$0xff]  }
 0x3a5   : > { %v26329_v38 = vpop.f32.mrb[84].mxu0 }
 0x3a6   : > { %32102 = vst [vmem:[#allocation300_spill] sm:$0xff] %v26329_v38  ;;  %v26331_v28 = vpop.f32.mrb[85].mxu0 }
 0x3a7   : > { %32103 = vst [vmem:[#allocation301_spill] sm:$0xff] %v26331_v28  ;;  %v26334_v44 = vpop.f32.mrb[86].mxu0  ;;  %v23507_v28 = vld [vmem:[%s24906_s8 + $0x720] sm:$0xff]  }
 0x3a8   : > { %32104 = vst [vmem:[#allocation302_spill] sm:$0xff] %v26334_v44  ;;  %v26337_v36 = vpop.f32.mrb[87].mxu0 }
 0x3a9   : > { %32105 = vst [vmem:[#allocation303_spill] sm:$0xff] %v26337_v36 }
 0x3aa   : > { %23084 = vmatmul.mubr.msk.bf16.gmra.mrb[192].mxu0 %vm2330_vm0, %v23504_v16 }
 0x3ab   : > { %23087 = vmatprep.mubr.msk.bf16.mxu0 %vm2330_vm0, %v23505_v34  ;;  %v23508_v34 = vld [vmem:[%s24906_s8 + $0x728] sm:$0xff]  }
 0x3ad   : > { %v26341_v39 = vpop.f32.mrb[88].mxu0 }
 0x3ae   : > { %32106 = vst [vmem:[#allocation304_spill] sm:$0xff] %v26341_v39  ;;  %v26343_v22 = vpop.f32.mrb[89].mxu0 }
 0x3af   : > { %32107 = vst [vmem:[#allocation305_spill] sm:$0xff] %v26343_v22  ;;  %v26346_v38 = vpop.f32.mrb[90].mxu0  ;;  %v23509_v22 = vld [vmem:[%s24906_s8 + $0x730] sm:$0xff]  }
 0x3b0   : > { %32108 = vst [vmem:[#allocation306_spill] sm:$0xff] %v26346_v38  ;;  %v26349_v42 = vpop.f32.mrb[91].mxu0 }
 0x3b1   : > { %32109 = vst [vmem:[#allocation307_spill] sm:$0xff] %v26349_v42 }
 0x3b2   : > { %23088 = vmatmul.mubr.msk.bf16.gmra.mrb[196].mxu0 %vm2330_vm0, %v23506_v10 }
 0x3b3   : > { %23091 = vmatprep.mubr.msk.bf16.mxu0 %vm2330_vm0, %v23507_v28  ;;  %v23510_v28 = vld [vmem:[%s24906_s8 + $0x738] sm:$0xff]  }
 0x3b5   : > { %v26353_v36 = vpop.f32.mrb[92].mxu0 }
 0x3b6   : > { %32110 = vst [vmem:[#allocation308_spill] sm:$0xff] %v26353_v36  ;;  %v26355_v16 = vpop.f32.mrb[93].mxu0 }
 0x3b7   : > { %32111 = vst [vmem:[#allocation309_spill] sm:$0xff] %v26355_v16  ;;  %v26358_v39 = vpop.f32.mrb[94].mxu0  ;;  %v23511_v16 = vld [vmem:[%s24906_s8 + $0x740] sm:$0xff]  }
 0x3b8   : > { %32112 = vst [vmem:[#allocation310_spill] sm:$0xff] %v26358_v39  ;;  %v26361_v44 = vpop.f32.mrb[95].mxu0 }
 0x3b9   : > { %32113 = vst [vmem:[#allocation311_spill] sm:$0xff] %v26361_v44 }
 0x3ba   : > { %23092 = vmatmul.mubr.msk.bf16.gmra.mrb[200].mxu0 %vm2330_vm0, %v23508_v34 }
 0x3bb   : > { %23095 = vmatprep.mubr.msk.bf16.mxu0 %vm2330_vm0, %v23509_v22  ;;  %v23512_v22 = vld [vmem:[%s24906_s8 + $0x748] sm:$0xff]  }
 0x3bd   : > { %v26365_v42 = vpop.f32.mrb[96].mxu0 }
 0x3be   : > { %32114 = vst [vmem:[#allocation312_spill] sm:$0xff] %v26365_v42  ;;  %v26367_v10 = vpop.f32.mrb[97].mxu0 }
 0x3bf   : > { %32115 = vst [vmem:[#allocation313_spill] sm:$0xff] %v26367_v10  ;;  %v26370_v36 = vpop.f32.mrb[98].mxu0  ;;  %v23513_v10 = vld [vmem:[%s24906_s8 + $0x750] sm:$0xff]  }
 0x3c0   : > { %32116 = vst [vmem:[#allocation314_spill] sm:$0xff] %v26370_v36  ;;  %v26373_v38 = vpop.f32.mrb[99].mxu0  ;;  %v23545_v36 = vld [vmem:[%s31445_s3 + $0x40] sm:$0xff]  }
 0x3c1   : > { %32117 = vst [vmem:[#allocation315_spill] sm:$0xff] %v26373_v38  ;;  %21032 = vmatprep.subr.bf16.mxu1 %v23545_v36  ;;  %v23515_v38 = vld [vmem:[%s24906_s8 + $0x760] sm:$0xff]  }
 0x3c2   : > { %23096 = vmatmul.mubr.msk.bf16.gmra.mrb[204].mxu0 %vm2330_vm0, %v23510_v28  ;;  %v23514_v28 = vld [vmem:[%s24906_s8 + $0x758] sm:$0xff]  }
 0x3c3   : > { %23099 = vmatprep.mubr.msk.bf16.mxu0 %vm2330_vm0, %v23511_v16  ;;  %v23546_v16 = vld [vmem:[%s31445_s3] sm:$0xff]  }
 0x3c4   : > { %21033 = vmatpush3.bf16.msra.mxu1 %v23546_v16  ;;  %v23552_v16 = vld [vmem:[%s31445_s3 + $0x10] sm:$0xff]  }
 0x3c5   : > { %v26377_v44 = vpop.f32.mrb[100].mxu0 }
 0x3c6   : > { %32118 = vst [vmem:[#allocation316_spill] sm:$0xff] %v26377_v44  ;;  %v26379_v34 = vpop.f32.mrb[101].mxu0 }
 0x3c7   : > { %32119 = vst [vmem:[#allocation317_spill] sm:$0xff] %v26379_v34  ;;  %v26382_v42 = vpop.f32.mrb[102].mxu0 }
 0x3c8   : > { %32120 = vst [vmem:[#allocation318_spill] sm:$0xff] %v26382_v42  ;;  %v26385_v39 = vpop.f32.mrb[103].mxu0 }
 0x3c9   : > { %32121 = vst [vmem:[#allocation319_spill] sm:$0xff] %v26385_v39  ;;  %v23547_v39 = vld [vmem:[%s31445_s3 + $0x48] sm:$0xff]  }
 0x3ca   : > { %23100 = vmatmul.mubr.msk.bf16.gmra.mrb[208].mxu0 %vm2330_vm0, %v23512_v22  ;;  %v23548_v22 = vld [vmem:[%s31445_s3 + $0x8] sm:$0xff]   ;;  %21034 = vmatprep.subr.bf16.mxu1 %v23547_v39 }
 0x3cb   : > { %23103 = vmatprep.mubr.msk.bf16.mxu0 %vm2330_vm0, %v23513_v10  ;;  %21035 = vmatpush3.bf16.msra.mxu1 %v23548_v22  ;;  %v23551_v10 = vld [vmem:[%s31445_s3 + $0x50] sm:$0xff]   ;;  %v23553_v22 = vld [vmem:[%s31445_s3 + $0x58] sm:$0xff]  }
 0x3cc   : > { %21036 = vmatprep.subr.bf16.mxu1 %v23551_v10  ;;  %v23557_v10 = vld [vmem:[%s31445_s3 + $0x60] sm:$0xff]  }
 0x3cd   : > { %v26396_v42 = vpop.f32.mrb[104].mxu0 }
 0x3ce   : > { %32122 = vst [vmem:[#allocation320_spill] sm:$0xff] %v26396_v42  ;;  %v26401_v34 = vpop.f32.mrb[105].mxu0  ;;  %v23517_v42 = vld [vmem:[%s24906_s8 + $0x770] sm:$0xff]  }
 0x3cf   : > { %32123 = vst [vmem:[#allocation321_spill] sm:$0xff] %v26401_v34  ;;  %v26406_v44 = vpop.f32.mrb[106].mxu0  ;;  %21037 = vmatpush3.bf16.msra.mxu1 %v23552_v16  ;;  %v23558_v16 = vld [vmem:[%s31445_s3 + $0x20] sm:$0xff]  }
 0x3d0   : > { %32124 = vst [vmem:[#allocation322_spill] sm:$0xff] %v26406_v44  ;;  %v26409_v36 = vpop.f32.mrb[107].mxu0  ;;  %v23516_v44 = vld [vmem:[%s24906_s8 + $0x768] sm:$0xff]   ;;  %21038 = vmatprep.subr.bf16.mxu1 %v23553_v22 }
 0x3d1   : > { %32125 = vst [vmem:[#allocation323_spill] sm:$0xff] %v26409_v36 }
 0x3d2   : > { %23104 = vmatmul.mubr.msk.bf16.gmra.mrb[212].mxu0 %vm2330_vm0, %v23514_v28  ;;  %v23554_v28 = vld [vmem:[%s31445_s3 + $0x18] sm:$0xff]  }
 0x3d3   : > { %23107 = vmatprep.mubr.msk.bf16.mxu0 %vm2330_vm0, %v23515_v38  ;;  %21039 = vmatpush3.bf16.msra.mxu1 %v23554_v28  ;;  %v23559_v28 = vld [vmem:[%s31445_s3 + $0x68] sm:$0xff]  }
 0x3d4   : > { %21040 = vmatprep.subr.bf16.mxu1 %v23557_v10  ;;  %v23563_v10 = vld [vmem:[%s31445_s3 + $0x70] sm:$0xff]  }
 0x3d5   : > { %v26420_v39 = vpop.f32.mrb[108].mxu0 }
 0x3d6   : > { %32126 = vst [vmem:[#allocation324_spill] sm:$0xff] %v26420_v39  ;;  %v26425_v36 = vpop.f32.mrb[109].mxu0  ;;  %v23519_v39 = vld [vmem:[%s24906_s8 + $0x780] sm:$0xff]  }
 0x3d7   : > { %32127 = vst [vmem:[#allocation325_spill] sm:$0xff] %v26425_v36  ;;  %v26430_v34 = vpop.f32.mrb[110].mxu0  ;;  %21041 = vmatpush3.bf16.msra.mxu1 %v23558_v16  ;;  %v23564_v16 = vld [vmem:[%s31445_s3 + $0x30] sm:$0xff]  }
 0x3d8   : > { %32128 = vst [vmem:[#allocation326_spill] sm:$0xff] %v26430_v34  ;;  %v26433_v38 = vpop.f32.mrb[111].mxu0  ;;  %v23518_v34 = vld [vmem:[%s24906_s8 + $0x778] sm:$0xff]   ;;  %21042 = vmatprep.subr.bf16.mxu1 %v23559_v28 }
 0x3d9   : > { %32129 = vst [vmem:[#allocation327_spill] sm:$0xff] %v26433_v38 }
 0x3da   : > { %23108 = vmatmul.mubr.msk.bf16.gmra.mrb[216].mxu0 %vm2330_vm0, %v23516_v44  ;;  %v23560_v44 = vld [vmem:[%s31445_s3 + $0x28] sm:$0xff]  }
 0x3db   : > { %23111 = vmatprep.mubr.msk.bf16.mxu0 %vm2330_vm0, %v23517_v42  ;;  %21043 = vmatpush3.bf16.msra.mxu1 %v23560_v44  ;;  %v23565_v44 = vld [vmem:[%s31445_s3 + $0x78] sm:$0xff]  }
 0x3dc   : > { %21044 = vmatprep.subr.bf16.mxu1 %v23563_v10 }
 0x3dd   : > { %v26444_v22 = vpop.f32.mrb[112].mxu0 }
 0x3de   : > { %32130 = vst [vmem:[#allocation328_spill] sm:$0xff] %v26444_v22  ;;  %v26449_v38 = vpop.f32.mrb[113].mxu0  ;;  %v23525_v22 = vld [vmem:[%s24906_s8 + $0x7b0] sm:$0xff]  }
 0x3df   : > { %32131 = vst [vmem:[#allocation329_spill] sm:$0xff] %v26449_v38  ;;  %v26454_v36 = vpop.f32.mrb[114].mxu0  ;;  %21045 = vmatpush3.bf16.msra.mxu1 %v23564_v16  ;;  %v23571_v16 = vld [vmem:[%s31445_s3 + $0xc0] sm:$0xff]  }
 0x3e0   : > { %32132 = vst [vmem:[#allocation330_spill] sm:$0xff] %v26454_v36  ;;  %v26457_v42 = vpop.f32.mrb[115].mxu0  ;;  %v23520_v36 = vld [vmem:[%s24906_s8 + $0x788] sm:$0xff]   ;;  %21046 = vmatprep.subr.bf16.mxu1 %v23565_v44 }
 0x3e1   : > { %32133 = vst [vmem:[#allocation331_spill] sm:$0xff] %v26457_v42 }
 0x3e2   : > { %23112 = vmatmul.mubr.msk.bf16.gmra.mrb[220].mxu0 %vm2330_vm0, %v23518_v34  ;;  %v23566_v34 = vld [vmem:[%s31445_s3 + $0x38] sm:$0xff]  }
 0x3e3   : > { %23115 = vmatprep.mubr.msk.bf16.mxu0 %vm2330_vm0, %v23519_v39  ;;  %v23521_v39 = vld [vmem:[%s24906_s8 + $0x790] sm:$0xff]   ;;  %21047 = vmatpush3.bf16.msra.mxu1 %v23566_v34  ;;  %v23568_v34 = vld [vmem:[%s31445_s3 + $0x1240] sm:$0xff]  }
 0x3e4   : > { %21054 = vmatprep.subr.bf16.mxu1 %v23571_v16  ;;  %21824 = vmatprep.subr.bf16.mxu0 %v23568_v34  ;;  %v23526_v34 = vld [vmem:[%s24906_s8 + $0x7b8] sm:$0xff]  }
 0x3e5   : > { %v26468_v28 = vpop.f32.mrb[116].mxu0 }
 0x3e6   : > { %32134 = vst [vmem:[#allocation332_spill] sm:$0xff] %v26468_v28  ;;  %v26473_v42 = vpop.f32.mrb[117].mxu0 }
 0x3e7   : > { %32135 = vst [vmem:[#allocation333_spill] sm:$0xff] %v26473_v42  ;;  %v26478_v38 = vpop.f32.mrb[118].mxu0 }
 0x3e8   : > { %32136 = vst [vmem:[#allocation334_spill] sm:$0xff] %v26478_v38  ;;  %v26481_v10 = vpop.f32.mrb[119].mxu0  ;;  %v23522_v38 = vld [vmem:[%s24906_s8 + $0x798] sm:$0xff]  }
 0x3e9   : > { %32137 = vst [vmem:[#allocation335_spill] sm:$0xff] %v26481_v10  ;;  %v23523_v10 = vld [vmem:[%s24906_s8 + $0x7a0] sm:$0xff]  }
 0x3ea   : > { %23116 = vmatmul.mubr.msk.bf16.gmra.mrb[224].mxu0 %vm2330_vm0, %v23520_v36  ;;  %v23570_v36 = vld [vmem:[%s31445_s3 + $0x1200] sm:$0xff]  }
 0x3eb   : > { %23119 = vmatprep.mubr.msk.bf16.mxu0 %vm2330_vm0, %v23521_v39  ;;  %21825 = vmatpush3.bf16.msra.mxu0 %v23570_v36 }
 0x3ed   : > { %v26488_v42 = vpop.f32.mrb[120].mxu0 }
 0x3ee   : > { %32138 = vst [vmem:[#allocation336_spill] sm:$0xff] %v26488_v42  ;;  %v26490_v28 = vpop.f32.mrb[121].mxu0 }
 0x3ef   : > { %32139 = vst [vmem:[#allocation337_spill] sm:$0xff] %v26490_v28  ;;  %v26493_v44 = vpop.f32.mrb[122].mxu0  ;;  %v23524_v28 = vld [vmem:[%s24906_s8 + $0x7a8] sm:$0xff]  }
 0x3f0   : > { %32140 = vst [vmem:[#allocation338_spill] sm:$0xff] %v26493_v44  ;;  %v26502_v39 = vpop.f32.mrb[123].mxu0 }
 0x3f1   : > { %32141 = vst [vmem:[#allocation339_spill] sm:$0xff] %v26502_v39 }
 0x3f2   : > { %23120 = vmatmul.mubr.msk.bf16.gmra.mrb[228].mxu0 %vm2330_vm0, %v23522_v38 }
 0x3f3   : > { %23123 = vmatprep.mubr.msk.bf16.mxu0 %vm2330_vm0, %v23523_v10 }
 0x3f5   : > { %v26506_v16 = vpop.f32.mrb[124].mxu0 }
 0x3f6   : > { %32142 = vst [vmem:[#allocation340_spill] sm:$0xff] %v26506_v16  ;;  %v26508_v44 = vpop.f32.mrb[125].mxu0 }
 0x3f7   : > { %32143 = vst [vmem:[#allocation341_spill] sm:$0xff] %v26508_v44  ;;  %v26511_v42 = vpop.f32.mrb[126].mxu0  ;;  %v23527_v44 = vld [vmem:[%s24906_s8 + $0x7c0] sm:$0xff]  }
 0x3f8   : > { %32144 = vst [vmem:[#allocation342_spill] sm:$0xff] %v26511_v42  ;;  %v26514_v45 = vpop.f32.mrb[127].mxu0 }
 0x3f9   : > { %32145 = vst [vmem:[#allocation343_spill] sm:$0xff] %v26514_v45 }
 0x3fa   : > { %23124 = vmatmul.mubr.msk.bf16.gmra.mrb[232].mxu0 %vm2330_vm0, %v23524_v28 }
 0x3fb   : > { %23127 = vmatprep.mubr.msk.bf16.mxu0 %vm2330_vm0, %v23525_v22  ;;  %v23528_v22 = vld [vmem:[%s24906_s8 + $0x7c8] sm:$0xff]  }
 0x3fd   : > { %v26518_v38 = vpop.f32.mrb[128].mxu0 }
 0x3fe   : > { %32146 = vst [vmem:[#allocation344_spill] sm:$0xff] %v26518_v38  ;;  %v26520_v10 = vpop.f32.mrb[129].mxu0 }
 0x3ff   : > { %32147 = vst [vmem:[#allocation345_spill] sm:$0xff] %v26520_v10  ;;  %v26523_v36 = vpop.f32.mrb[130].mxu0  ;;  %v23529_v10 = vld [vmem:[%s24906_s8 + $0x7d0] sm:$0xff]  }
 0x400   : > { %32148 = vst [vmem:[#allocation346_spill] sm:$0xff] %v26523_v36  ;;  %v26526_v16 = vpop.f32.mrb[131].mxu0 }
 0x401   : > { %32149 = vst [vmem:[#allocation347_spill] sm:$0xff] %v26526_v16 }
 0x402   : > { %23128 = vmatmul.mubr.msk.bf16.gmra.mrb[236].mxu0 %vm2330_vm0, %v23526_v34 }
 0x403   : > { %23131 = vmatprep.mubr.msk.bf16.mxu0 %vm2330_vm0, %v23527_v44  ;;  %v23530_v44 = vld [vmem:[%s24906_s8 + $0x7d8] sm:$0xff]  }
 0x405   : > { %v26530_v45 = vpop.f32.mrb[132].mxu0 }
 0x406   : > { %32150 = vst [vmem:[#allocation348_spill] sm:$0xff] %v26530_v45  ;;  %v26532_v28 = vpop.f32.mrb[133].mxu0 }
 0x407   : > { %32151 = vst [vmem:[#allocation349_spill] sm:$0xff] %v26532_v28  ;;  %v26535_v38 = vpop.f32.mrb[134].mxu0  ;;  %v23531_v28 = vld [vmem:[%s24906_s8 + $0x7e0] sm:$0xff]  }
 0x408   : > { %32152 = vst [vmem:[#allocation350_spill] sm:$0xff] %v26535_v38  ;;  %v26538_v42 = vpop.f32.mrb[135].mxu0 }
 0x409   : > { %32153 = vst [vmem:[#allocation351_spill] sm:$0xff] %v26538_v42 }
 0x40a   : > { %23132 = vmatmul.mubr.msk.bf16.gmra.mrb[240].mxu0 %vm2330_vm0, %v23528_v22 }
 0x40b   : > { %23135 = vmatprep.mubr.msk.bf16.mxu0 %vm2330_vm0, %v23529_v10  ;;  %v23532_v10 = vld [vmem:[%s24906_s8 + $0x7e8] sm:$0xff]  }
 0x40d   : > { %v26542_v16 = vpop.f32.mrb[136].mxu0 }
 0x40e   : > { %32154 = vst [vmem:[#allocation352_spill] sm:$0xff] %v26542_v16  ;;  %v26544_v34 = vpop.f32.mrb[137].mxu0 }
 0x40f   : > { %32155 = vst [vmem:[#allocation353_spill] sm:$0xff] %v26544_v34  ;;  %v26547_v45 = vpop.f32.mrb[138].mxu0  ;;  %v23533_v34 = vld [vmem:[%s24906_s8 + $0x7f0] sm:$0xff]  }
 0x410   : > { %32156 = vst [vmem:[#allocation354_spill] sm:$0xff] %v26547_v45  ;;  %v26550_v36 = vpop.f32.mrb[139].mxu0 }
 0x411   : > { %32157 = vst [vmem:[#allocation355_spill] sm:$0xff] %v26550_v36 }
 0x412   : > { %23136 = vmatmul.mubr.msk.bf16.gmra.mrb[244].mxu0 %vm2330_vm0, %v23530_v44 }
 0x413   : > { %23139 = vmatprep.mubr.msk.bf16.mxu0 %vm2330_vm0, %v23531_v28  ;;  %v23534_v28 = vld [vmem:[%s24906_s8 + $0x7f8] sm:$0xff]  }
 0x415   : > { %v26554_v42 = vpop.f32.mrb[140].mxu0 }
 0x416   : > { %32158 = vst [vmem:[#allocation356_spill] sm:$0xff] %v26554_v42  ;;  %v26556_v22 = vpop.f32.mrb[141].mxu0 }
 0x417   : > { %32159 = vst [vmem:[#allocation357_spill] sm:$0xff] %v26556_v22  ;;  %v26559_v16 = vpop.f32.mrb[142].mxu0  ;;  %v23535_v22 = vld [vmem:[%s24906_s8 + $0x800] sm:$0xff]  }
 0x418   : > { %32160 = vst [vmem:[#allocation358_spill] sm:$0xff] %v26559_v16  ;;  %v26562_v38 = vpop.f32.mrb[143].mxu0 }
 0x419   : > { %32161 = vst [vmem:[#allocation359_spill] sm:$0xff] %v26562_v38 }
 0x41a   : > { %23140 = vmatmul.mubr.msk.bf16.gmra.mrb[248].mxu0 %vm2330_vm0, %v23532_v10 }
 0x41b   : > { %23143 = vmatprep.mubr.msk.bf16.mxu0 %vm2330_vm0, %v23533_v34  ;;  %v23536_v34 = vld [vmem:[%s24906_s8 + $0x808] sm:$0xff]  }
 0x41d   : > { %v26566_v36 = vpop.f32.mrb[144].mxu0 }
 0x41e   : > { %32162 = vst [vmem:[#allocation360_spill] sm:$0xff] %v26566_v36  ;;  %v26568_v44 = vpop.f32.mrb[145].mxu0 }
 0x41f   : > { %32163 = vst [vmem:[#allocation361_spill] sm:$0xff] %v26568_v44  ;;  %v26571_v42 = vpop.f32.mrb[146].mxu0  ;;  %v23537_v44 = vld [vmem:[%s24906_s8 + $0x810] sm:$0xff]  }
 0x420   : > { %32164 = vst [vmem:[#allocation362_spill] sm:$0xff] %v26571_v42  ;;  %v26574_v45 = vpop.f32.mrb[147].mxu0 }
 0x421   : > { %32165 = vst [vmem:[#allocation363_spill] sm:$0xff] %v26574_v45 }
 0x422   : > { %23144 = vmatmul.mubr.msk.bf16.gmra.mrb[252].mxu0 %vm2330_vm0, %v23534_v28 }
 0x423   : > { %23147 = vmatprep.mubr.msk.bf16.mxu0 %vm2330_vm0, %v23535_v22  ;;  %v23538_v22 = vld [vmem:[%s24906_s8 + $0x818] sm:$0xff]  }
 0x425   : > { %v26578_v38 = vpop.f32.mrb[148].mxu0 }
 0x426   : > { %32166 = vst [vmem:[#allocation364_spill] sm:$0xff] %v26578_v38  ;;  %v26580_v10 = vpop.f32.mrb[149].mxu0 }
 0x427   : > { %32167 = vst [vmem:[#allocation365_spill] sm:$0xff] %v26580_v10  ;;  %v26583_v36 = vpop.f32.mrb[150].mxu0  ;;  %v23539_v10 = vld [vmem:[%s24906_s8 + $0x820] sm:$0xff]  }
 0x428   : > { %32168 = vst [vmem:[#allocation366_spill] sm:$0xff] %v26583_v36  ;;  %v26586_v16 = vpop.f32.mrb[151].mxu0 }
 0x429   : > { %32169 = vst [vmem:[#allocation367_spill] sm:$0xff] %v26586_v16 }
 0x42a   : > { %23148 = vmatmul.mubr.msk.bf16.gmra.mrb[0].mxu0 %vm2330_vm0, %v23536_v34 }
 0x42b   : > { %23151 = vmatprep.mubr.msk.bf16.mxu0 %vm2330_vm0, %v23537_v44  ;;  %v23540_v44 = vld [vmem:[%s24906_s8 + $0x828] sm:$0xff]  }
 0x42d   : > { %v26590_v45 = vpop.f32.mrb[152].mxu0 }
 0x42e   : > { %32170 = vst [vmem:[#allocation368_spill] sm:$0xff] %v26590_v45  ;;  %v26592_v28 = vpop.f32.mrb[153].mxu0 }
 0x42f   : > { %32171 = vst [vmem:[#allocation369_spill] sm:$0xff] %v26592_v28  ;;  %v26595_v38 = vpop.f32.mrb[154].mxu0  ;;  %v23541_v28 = vld [vmem:[%s24906_s8 + $0x830] sm:$0xff]  }
 0x430   : > { %32172 = vst [vmem:[#allocation370_spill] sm:$0xff] %v26595_v38  ;;  %v26598_v42 = vpop.f32.mrb[155].mxu0 }
 0x431   : > { %32173 = vst [vmem:[#allocation371_spill] sm:$0xff] %v26598_v42 }
 0x432   : > { %23152 = vmatmul.mubr.msk.bf16.gmra.mrb[4].mxu0 %vm2330_vm0, %v23538_v22 }
 0x433   : > { %23155 = vmatprep.mubr.msk.bf16.mxu0 %vm2330_vm0, %v23539_v10  ;;  %v23542_v10 = vld [vmem:[%s24906_s8 + $0x838] sm:$0xff]  }
 0x435   : > { %v26602_v16 = vpop.f32.mrb[156].mxu0 }
 0x436   : > { %32174 = vst [vmem:[#allocation372_spill] sm:$0xff] %v26602_v16  ;;  %v26604_v34 = vpop.f32.mrb[157].mxu0 }
 0x437   : > { %32175 = vst [vmem:[#allocation373_spill] sm:$0xff] %v26604_v34  ;;  %v26607_v45 = vpop.f32.mrb[158].mxu0  ;;  %v23543_v34 = vld [vmem:[%s24906_s8 + $0x840] sm:$0xff]  }
 0x438   : > { %32176 = vst [vmem:[#allocation374_spill] sm:$0xff] %v26607_v45  ;;  %v26610_v36 = vpop.f32.mrb[159].mxu0 }
 0x439   : > { %32177 = vst [vmem:[#allocation375_spill] sm:$0xff] %v26610_v36 }
 0x43a   : > { %23156 = vmatmul.mubr.msk.bf16.gmra.mrb[8].mxu0 %vm2330_vm0, %v23540_v44 }
 0x43b   : > { %23159 = vmatprep.mubr.msk.bf16.mxu0 %vm2330_vm0, %v23541_v28  ;;  %v23544_v28 = vld [vmem:[%s24906_s8 + $0x848] sm:$0xff]  }
 0x43d   : > { %v26614_v42 = vpop.f32.mrb[160].mxu0 }
 0x43e   : > { %32178 = vst [vmem:[#allocation376_spill] sm:$0xff] %v26614_v42  ;;  %v26616_v22 = vpop.f32.mrb[161].mxu0 }
 0x43f   : > { %32179 = vst [vmem:[#allocation377_spill] sm:$0xff] %v26616_v22  ;;  %v26619_v16 = vpop.f32.mrb[162].mxu0  ;;  %v23549_v22 = vld [vmem:[%s24906_s8 + $0x850] sm:$0xff]  }
 0x440   : > { %32180 = vst [vmem:[#allocation378_spill] sm:$0xff] %v26619_v16  ;;  %v26622_v38 = vpop.f32.mrb[163].mxu0 }
 0x441   : > { %32181 = vst [vmem:[#allocation379_spill] sm:$0xff] %v26622_v38 }
 0x442   : > { %23160 = vmatmul.mubr.msk.bf16.gmra.mrb[12].mxu0 %vm2330_vm0, %v23542_v10 }
 0x443   : > { %23163 = vmatprep.mubr.msk.bf16.mxu0 %vm2330_vm0, %v23543_v34  ;;  %v23550_v34 = vld [vmem:[%s24906_s8 + $0x858] sm:$0xff]  }
 0x445   : > { %v26626_v36 = vpop.f32.mrb[164].mxu0 }
 0x446   : > { %32182 = vst [vmem:[#allocation380_spill] sm:$0xff] %v26626_v36  ;;  %v26628_v44 = vpop.f32.mrb[165].mxu0 }
 0x447   : > { %32183 = vst [vmem:[#allocation381_spill] sm:$0xff] %v26628_v44  ;;  %v26631_v42 = vpop.f32.mrb[166].mxu0  ;;  %v23555_v44 = vld [vmem:[%s24906_s8 + $0x860] sm:$0xff]  }
 0x448   : > { %32184 = vst [vmem:[#allocation382_spill] sm:$0xff] %v26631_v42  ;;  %v26634_v45 = vpop.f32.mrb[167].mxu0 }
 0x449   : > { %32185 = vst [vmem:[#allocation383_spill] sm:$0xff] %v26634_v45 }
 0x44a   : > { %23164 = vmatmul.mubr.msk.bf16.gmra.mrb[16].mxu0 %vm2330_vm0, %v23544_v28 }
 0x44b   : > { %23167 = vmatprep.mubr.msk.bf16.mxu0 %vm2330_vm0, %v23549_v22  ;;  %v23556_v22 = vld [vmem:[%s24906_s8 + $0x868] sm:$0xff]  }
 0x44d   : > { %v26638_v38 = vpop.f32.mrb[168].mxu0 }
 0x44e   : > { %32186 = vst [vmem:[#allocation384_spill] sm:$0xff] %v26638_v38  ;;  %v26640_v10 = vpop.f32.mrb[169].mxu0 }
 0x44f   : > { %32187 = vst [vmem:[#allocation385_spill] sm:$0xff] %v26640_v10  ;;  %v26643_v36 = vpop.f32.mrb[170].mxu0  ;;  %v23561_v10 = vld [vmem:[%s24906_s8 + $0x870] sm:$0xff]  }
 0x450   : > { %32188 = vst [vmem:[#allocation386_spill] sm:$0xff] %v26643_v36  ;;  %v26646_v16 = vpop.f32.mrb[171].mxu0 }
 0x451   : > { %32189 = vst [vmem:[#allocation387_spill] sm:$0xff] %v26646_v16 }
 0x452   : > { %23168 = vmatmul.mubr.msk.bf16.gmra.mrb[20].mxu0 %vm2330_vm0, %v23550_v34 }
 0x453   : > { %23171 = vmatprep.mubr.msk.bf16.mxu0 %vm2330_vm0, %v23555_v44  ;;  %v26666_v44 = vld [vmem:[%s31444_s2] ss:$0 sm:$0xff] }
 0x455   : > { %v26650_v45 = vpop.f32.mrb[172].mxu0 }
 0x456   : > { %32190 = vst [vmem:[#allocation388_spill] sm:$0xff] %v26650_v45  ;;  %v26652_v28 = vpop.f32.mrb[173].mxu0 }
 0x457   : > { %32191 = vst [vmem:[#allocation389_spill] sm:$0xff] %v26652_v28  ;;  %v26655_v38 = vpop.f32.mrb[174].mxu0  ;;  %v23562_v28 = vld [vmem:[%s24906_s8 + $0x878] sm:$0xff]  }
 0x458   : > { %32192 = vst [vmem:[#allocation390_spill] sm:$0xff] %v26655_v38  ;;  %v26658_v42 = vpop.f32.mrb[175].mxu0  ;;  %v23644_v38 = vld [vmem:[%s31445_s3 + $0x1248] sm:$0xff]  }
 0x459   : > { %32193 = vst [vmem:[#allocation391_spill] sm:$0xff] %v26658_v42  ;;  %21826 = vmatprep.subr.bf16.mxu0 %v23644_v38  ;;  %v23652_v38 = vld [vmem:[%s31445_s3 + $0x1258] sm:$0xff]  }
 0x45a   : > { %23172 = vmatmul.mubr.msk.bf16.gmra.mrb[24].mxu0 %vm2330_vm0, %v23556_v22  ;;  %v23567_v22 = vld [vmem:[%s24906_s8 + $0x880] sm:$0xff]  }
 0x45b   : > { %23175 = vmatprep.mubr.msk.bf16.mxu0 %vm2330_vm0, %v23561_v10  ;;  %v23646_v10 = vld [vmem:[%s31445_s3 + $0x1208] sm:$0xff]  }
 0x45c   : > { %21827 = vmatpush3.bf16.msra.mxu0 %v23646_v10  ;;  %v32202_v10 = vmax.f32 %v25033_v3, %v25473_v29  ;;  %v32206_v3 = vld [vmem:[#allocation138_spill] sm:$0xff] }
 0x45d   : > { %v23069_v16 = vpop.f32.mrb[176].mxu0  ;;  %v32207_v29 = vmax.f32 %v25038_v6, %v32206_v3 }
 0x45e   : > { %v5682_v34 = vmax.f32 %v26173_v55, %v23069_v16  ;;  %v4961_v45 = vpop.f32.mrb[177].mxu0  ;;  %v32194_v55 = vmax.f32 %v25021_v61, %v25453_v35  ;;  %v23648_v61 = vld [vmem:[%s31445_s3 + $0x1250] sm:$0xff]  }
 0x45f   : > { %v5680_v42 = vmax.f32 %v26175_v49, %v4961_v45  ;;  %v23070_v36 = vpop.f32.mrb[178].mxu0  ;;  %21828 = vmatprep.subr.bf16.mxu0 %v23648_v61  ;;  %v32204_v61 = vld [vmem:[#allocation137_spill] sm:$0xff] }
 0x460   : > { %v26680_v16 = vmax.f32 %v32194_v55, %v5682_v34  ;;  %v5683_v39 = vmax.f32 %v26178_v25, %v23070_v36  ;;  %v4964_v48 = vpop.f32.mrb[179].mxu0  ;;  %v32200_v25 = vld [vmem:[#allocation136_spill] sm:$0xff]  ;;  %21829 = vmatpush3.bf16.msra.mxu0 %v23650_v0 }
 0x461   : > { %v5824_v45 = vmax.f32 %v32197_v40, %v5680_v42  ;;  %v5681_v49 = vmax.f32 %v26181_v46, %v4964_v48  ;;  %v32201_v33 = vmax.f32 %v25029_v2, %v32200_v25  ;;  %v23575_v2 = vld [vmem:[%s24906_s8 + $0x890] sm:$0xff]   ;;  %21830 = vmatprep.subr.bf16.mxu0 %v23652_v38 }
 0x462   : > { %v5827_v30 = vmax.f32 %v32199_v32, %v5683_v39  ;;  %23176 = vmatmul.mubr.msk.bf16.gmra.mrb[28].mxu0 %vm2330_vm0, %v23562_v28 }
 0x463   : > { %v5975_v35 = vadd.f32 %v26666_v44, %v5824_v45  ;;  %v5825_v4 = vmax.f32 %v32201_v33, %v5681_v49  ;;  %23179 = vmatprep.mubr.msk.bf16.mxu0 %vm2330_vm0, %v23567_v22  ;;  %v23654_v22 = vld [vmem:[%s31445_s3 + $0x1218] sm:$0xff]   ;;  %v23572_v49 = vld [vmem:[%s31445_s3 + $0x80] sm:$0xff]  }
 0x464   : > { %v5978_v32 = vadd.f32 %v26666_v44, %v5827_v30  ;;  %21831 = vmatpush3.bf16.msra.mxu0 %v23654_v22  ;;  %v23581_v22 = vld [vmem:[%s24906_s8 + $0x8a0] sm:$0xff]  }
 0x465   : > { %v23073_v48 = vpop.f32.mrb[180].mxu0  ;;  %v5976_v46 = vadd.f32 %v26666_v44, %v5825_v4  ;;  %v6119_v39 = vmax.f32 %v5975_v35, 0.0 }
 0x466   : > { %v5686_v40 = vmax.f32 %v26185_v43, %v23073_v48  ;;  %v4977_v42 = vpop.f32.mrb[181].mxu0  ;;  %v6122_v30 = vmax.f32 %v5978_v32, 0.0  ;;  %v23573_v32 = vld [vmem:[%s31445_s3 + $0xc8] sm:$0xff]   ;;  %v23656_v48 = vld [vmem:[%s31445_s3 + $0x1260] sm:$0xff]  }
 0x467   : > { %v5684_v36 = vmax.f32 %v26187_v41, %v4977_v42  ;;  %v23074_v28 = vpop.f32.mrb[182].mxu0  ;;  %v6120_v34 = vmax.f32 %v5976_v46, 0.0  ;;  %v32203_v41 = vld [vmem:[#allocation7_spill] sm:$0xff]  ;;  %v23574_v42 = vld [vmem:[%s31445_s3 + $0x88] sm:$0xff]   ;;  %21832 = vmatprep.subr.bf16.mxu0 %v23656_v48 }
 0x468   : > { %v26717_v43 = vmax.f32 %v32202_v10, %v5686_v40  ;;  %v5687_v55 = vmax.f32 %v26190_v52, %v23074_v28  ;;  %v4980_v45 = vpop.f32.mrb[183].mxu0  ;;  %v32205_v35 = vmax.f32 %v32203_v41, %v32204_v61  ;;  %v6551_v52 = vpack.c.bf16 %v6119_v39, %v6119_v39  ;;  %v23660_v28 = vld [vmem:[%s31445_s3 + $0x1268] sm:$0xff]   ;;  %v23578_v41 = vld [vmem:[%s31445_s3 + $0x90] sm:$0xff]   ;;  %v32212_v61 = vld [vmem:[#allocation140_spill] sm:$0xff] }
 0x469   : > { %v5685_v33 = vmax.f32 %v26193_v17, %v4980_v45  ;;  %v6552_v4 = vpack.c.bf16 %v6120_v34, %v6120_v34  ;;  %v32208_v17 = vld [vmem:[#allocation139_spill] sm:$0xff]  ;;  %v6554_v6 = vpack.c.bf16 %v6122_v30, %v6122_v30  ;;  %v23662_v10 = vld [vmem:[%s31445_s3 + $0x1228] sm:$0xff]  }
 0x46a   : > { %v26726_v25 = vmax.f32 %v32205_v35, %v5684_v36  ;;  %v26732_v0 = vmax.f32 %v32207_v29, %v5687_v55  ;;  %23180 = vmatmul.mubr.msk.bf16.gmra.mrb[32].mxu0 %vm2330_vm0, %v23569_v50  ;;  %v32209_v46 = vmax.f32 %v25041_v8, %v32208_v17  ;;  %v23658_v50 = vld [vmem:[%s31445_s3 + $0x1220] sm:$0xff]   ;;  %v23576_v8 = vld [vmem:[%s24906_s8 + $0x898] sm:$0xff]   ;;  %v23664_v29 = vld [vmem:[%s31445_s3 + $0x1270] sm:$0xff]  }
 0x46b   : > { %15950 = vmatprep.mubr.bf16.mxu1 %v6552_v4  ;;  %23183 = vmatprep.mubr.msk.bf16.mxu0 %vm2330_vm0, %v23575_v2  ;;  %v23577_v2 = vld [vmem:[%s31445_s3 + $0xd0] sm:$0xff]   ;;  %v23580_v48 = vld [vmem:[%s31445_s3 + $0x98] sm:$0xff]  }
 0x46c   : > { %v26744_v40 = vmax.f32 %v32209_v46, %v5685_v33  ;;  %15951 = vmatmul.mubr.bf16.vlgmr.msra.gmra.mrb[0].mxu1 %v6551_v52  ;;  %21833 = vmatpush3.bf16.msra.mxu0 %v23658_v50  ;;  %v32216_v52 = vld [vmem:[#allocation142_spill] sm:$0xff]  ;;  %v23582_v46 = vld [vmem:[%s24906_s8 + $0x8a8] sm:$0xff]   ;;  %v23583_v50 = vld [vmem:[%s31445_s3 + $0xe0] sm:$0xff]  }
 0x46d   : > { %21055 = vmatpush3.bf16.msra.mxu1 %v23572_v49  ;;  %v23077_v39 = vpop.f32.mrb[184].mxu0  ;;  %15990 = vmatprep.mubr.bf16.mxu1 %v6554_v6 }
 0x46e   : > { %v5690_v38 = vmax.f32 %v26197_v31, %v23077_v39  ;;  %v4993_v36 = vpop.f32.mrb[185].mxu0  ;;  %21056 = vmatprep.subr.bf16.mxu1 %v23573_v32  ;;  %v32210_v31 = vmax.f32 %v25045_v9, %v25493_v59  ;;  %21834 = vmatprep.subr.bf16.mxu0 %v23660_v28  ;;  %v32214_v9 = vld [vmem:[#allocation141_spill] sm:$0xff] }
 0x46f   : > { %v5688_v34 = vmax.f32 %v26199_v7, %v4993_v36  ;;  %v23078_v30 = vpop.f32.mrb[186].mxu0  ;;  %v32211_v7 = vld [vmem:[#allocation8_spill] sm:$0xff]  ;;  %v32215_v59 = vmax.f32 %v25050_v12, %v32214_v9  ;;  %v23666_v12 = vld [vmem:[%s31445_s3 + $0x1230] sm:$0xff]   ;;  %v23670_v36 = vld [vmem:[%s31445_s3 + $0x1238] sm:$0xff]  }
 0x470   : > { %v26769_v55 = vmax.f32 %v32210_v31, %v5690_v38  ;;  %v5691_v45 = vmax.f32 %v26202_v63, %v23078_v30  ;;  %v4996_v49 = vpop.f32.mrb[187].mxu0  ;;  %v32213_v35 = vmax.f32 %v32211_v7, %v32212_v61  ;;  %v23579_v63 = vld [vmem:[%s31445_s3 + $0xd8] sm:$0xff]   ;;  %21835 = vmatpush3.bf16.msra.mxu0 %v23662_v10  ;;  %v23587_v38 = vld [vmem:[%s24906_s8 + $0x8b0] sm:$0xff]   ;;  %v23584_v30 = vld [vmem:[%s31445_s3 + $0xa0] sm:$0xff]  }
 0x471   : > { %v5689_v4 = vmax.f32 %v26205_v23, %v4996_v49  ;;  %21057 = vmatpush3.bf16.msra.mxu1 %v23574_v42  ;;  %v32217_v23 = vmax.f32 %v25053_v14, %v32216_v52  ;;  %21836 = vmatprep.subr.bf16.mxu0 %v23664_v29  ;;  %v23668_v42 = vld [vmem:[%s31445_s3 + $0x1278] sm:$0xff]   ;;  %v23593_v52 = vld [vmem:[%s24906_s8 + $0x8c0] sm:$0xff]  }
 0x472   : > { %v26778_v33 = vmax.f32 %v32213_v35, %v5688_v34  ;;  %v26784_v3 = vmax.f32 %v32215_v59, %v5691_v45  ;;  %23184 = vmatmul.mubr.msk.bf16.gmra.mrb[36].mxu0 %vm2330_vm0, %v23576_v8  ;;  %21058 = vmatprep.subr.bf16.mxu1 %v23577_v2  ;;  %v23586_v35 = vld [vmem:[%s31445_s3 + $0xa8] sm:$0xff]   ;;  %v23588_v59 = vld [vmem:[%s24906_s8 + $0x8b8] sm:$0xff]  }
 0x473   : > { %v26796_v32 = vmax.f32 %v32217_v23, %v5689_v4  ;;  %23187 = vmatprep.mubr.msk.bf16.mxu0 %vm2330_vm0, %v23581_v22  ;;  %v32220_v22 = vld [vmem:[#allocation143_spill] sm:$0xff]  ;;  %v32226_v23 = vmax.f32 %v25069_v21, %v25533_v47  ;;  %v5977_v21 = vadd.f32 %v26666_v44, %v26680_v16 }
 0x474   : > { %21837 = vmatpush3.bf16.msra.mxu0 %v23666_v12  ;;  %v32230_v47 = vld [vmem:[#allocation147_spill] sm:$0xff] }
 0x475   : > { %21059 = vmatpush3.bf16.msra.mxu1 %v23578_v41  ;;  %v23081_v17 = vpop.f32.mrb[188].mxu0  ;;  %21838 = vmatprep.subr.bf16.mxu0 %v23668_v42  ;;  %v23672_v41 = vld [vmem:[%s31445_s3 + $0x1340] sm:$0xff]  }
 0x476   : > { %v5694_v14 = vmax.f32 %v26209_v19, %v23081_v17  ;;  %v5009_v6 = vpop.f32.mrb[189].mxu0  ;;  %21060 = vmatprep.subr.bf16.mxu1 %v23579_v63  ;;  %v32218_v19 = vmax.f32 %v25057_v15, %v25513_v53  ;;  %v32222_v15 = vld [vmem:[#allocation144_spill] sm:$0xff] }
 0x477   : > { %v5692_v39 = vmax.f32 %v26211_v11, %v5009_v6  ;;  %v23082_v8 = vpop.f32.mrb[190].mxu0  ;;  %v32219_v11 = vld [vmem:[#allocation9_spill] sm:$0xff]  ;;  %v32223_v53 = vmax.f32 %v25062_v18, %v32222_v15 }
 0x478   : > { %v26821_v2 = vmax.f32 %v32218_v19, %v5694_v14  ;;  %v5695_v28 = vmax.f32 %v26214_v13, %v23082_v8  ;;  %v5012_v34 = vpop.f32.mrb[191].mxu0  ;;  %v32221_v10 = vmax.f32 %v32219_v11, %v32220_v22  ;;  %v23585_v13 = vld [vmem:[%s31445_s3 + $0xe8] sm:$0xff]   ;;  %21839 = vmatpush3.bf16.msra.mxu0 %v23670_v36  ;;  %v32228_v14 = vld [vmem:[#allocation146_spill] sm:$0xff]  ;;  %v32232_v8 = vld [vmem:[#allocation148_spill] sm:$0xff]  ;;  %v6121_v19 = vmax.f32 %v5977_v21, 0.0 }
 0x479   : > { %v5693_v45 = vmax.f32 %v26217_v5, %v5012_v34  ;;  %21061 = vmatpush3.bf16.msra.mxu1 %v23580_v48  ;;  %v32224_v5 = vld [vmem:[#allocation145_spill] sm:$0xff]  ;;  %21868 = vmatprep.subr.bf16.mxu0 %v23672_v41  ;;  %v23592_v36 = vld [vmem:[%s31445_s3 + $0xb8] sm:$0xff]  }
 0x47a   : > { %v26830_v31 = vmax.f32 %v32221_v10, %v5692_v39  ;;  %v26836_v49 = vmax.f32 %v32223_v53, %v5695_v28  ;;  %23188 = vmatmul.mubr.msk.bf16.gmra.mrb[40].mxu0 %vm2330_vm0, %v23582_v46  ;;  %21062 = vmatprep.subr.bf16.mxu1 %v23583_v50  ;;  %v32225_v7 = vmax.f32 %v25065_v20, %v32224_v5  ;;  %v23589_v20 = vld [vmem:[%s31445_s3 + $0xf0] sm:$0xff]   ;;  %v23591_v39 = vld [vmem:[%s31445_s3 + $0xf8] sm:$0xff]   ;;  %v32236_v5 = vld [vmem:[#allocation149_spill] sm:$0xff] }
 0x47b   : > { %23191 = vmatprep.mubr.msk.bf16.mxu0 %vm2330_vm0, %v23587_v38  ;;  %v32227_v46 = vld [vmem:[#allocation10_spill] sm:$0xff]  ;;  %v32233_v38 = vmax.f32 %v25077_v26, %v32232_v8  ;;  %v23595_v26 = vld [vmem:[%s31445_s3 + $0x140] sm:$0xff]   ;;  %v32235_v41 = vld [vmem:[#allocation11_spill] sm:$0xff] }
 0x47c   : > { %v26848_v61 = vmax.f32 %v32225_v7, %v5693_v45  ;;  %v32229_v6 = vmax.f32 %v32227_v46, %v32228_v14  ;;  %v23599_v10 = vld [vmem:[%s24906_s8 + $0x8d0] sm:$0xff]   ;;  %v32234_v45 = vmax.f32 %v25081_v27, %v25553_v62  ;;  %v32237_v7 = vmax.f32 %v32235_v41, %v32236_v5  ;;  %v32238_v27 = vld [vmem:[#allocation12_spill] sm:$0xff]  ;;  %v32258_v41 = vld [vmem:[#allocation155_spill] sm:$0xff] }
 0x47d   : > { %21063 = vmatpush3.bf16.msra.mxu1 %v23584_v30  ;;  %v23085_v18 = vpop.f32.mrb[192].mxu0  ;;  %v23594_v30 = vld [vmem:[%s24906_s8 + $0x8c8] sm:$0xff]   ;;  %v32239_v62 = vld [vmem:[#allocation150_spill] sm:$0xff] }
 0x47e   : > { %v5698_v4 = vmax.f32 %v26221_v1, %v23085_v18  ;;  %v5025_v9 = vpop.f32.mrb[193].mxu0  ;;  %21064 = vmatprep.subr.bf16.mxu1 %v23585_v13  ;;  %v23590_v1 = vld [vmem:[%s31445_s3 + $0xb0] sm:$0xff]   ;;  %v23596_v13 = vld [vmem:[%s31445_s3 + $0x100] sm:$0xff]  }
 0x47f   : > { %v5696_v63 = vmax.f32 %v26223_v58, %v5025_v9  ;;  %v23086_v29 = vpop.f32.mrb[194].mxu0  ;;  %v23601_v14 = vld [vmem:[%s31445_s3 + $0x150] sm:$0xff]  }
 0x480   : > { %v26864_v12 = vmax.f32 %v32226_v23, %v5698_v4  ;;  %v5699_v48 = vmax.f32 %v26226_v60, %v23086_v29  ;;  %v5028_v17 = vpop.f32.mrb[195].mxu0  ;;  %v32231_v60 = vmax.f32 %v25074_v24, %v32230_v47  ;;  %v32240_v4 = vmax.f32 %v32238_v27, %v32239_v62  ;;  %v23605_v47 = vld [vmem:[%s24906_s8 + $0x8e0] sm:$0xff]   ;;  %v23606_v27 = vld [vmem:[%s24906_s8 + $0x8e8] sm:$0xff]  }
 0x481   : > { %v26873_v50 = vmax.f32 %v32229_v6, %v5696_v63  ;;  %v5697_v58 = vmax.f32 %v26229_v57, %v5028_v17  ;;  %21065 = vmatpush3.bf16.msra.mxu1 %v23586_v35  ;;  %v5980_v57 = vadd.f32 %v26666_v44, %v26744_v40  ;;  %v6553_v35 = vpack.c.bf16 %v6121_v19, %v6121_v19  ;;  %v32244_v17 = vld [vmem:[#allocation272_spill] sm:$0xff]  ;;  %v32245_v6 = vld [vmem:[#allocation273_spill] sm:$0xff]  ;;  %v23602_v19 = vld [vmem:[%s31445_s3 + $0x110] sm:$0xff]  }
 0x482   : > { %v26881_v42 = vmax.f32 %v32231_v60, %v5699_v48  ;;  %23192 = vmatmul.mubr.msk.bf16.gmra.mrb[44].mxu0 %vm2330_vm0, %v23588_v59  ;;  %21066 = vmatprep.subr.bf16.mxu1 %v23589_v20  ;;  %v32241_v59 = vld [vmem:[#allocation13_spill] sm:$0xff]  ;;  %v32242_v20 = vld [vmem:[#allocation151_spill] sm:$0xff]  ;;  %v32246_v60 = vld [vmem:[#allocation14_spill] sm:$0xff] }
 0x483   : > { %v26892_v16 = vmax.f32 %v32233_v38, %v5697_v58  ;;  %23195 = vmatprep.mubr.msk.bf16.mxu0 %vm2330_vm0, %v23593_v52  ;;  %v6124_v22 = vmax.f32 %v5980_v57, 0.0  ;;  %v32243_v63 = vmax.f32 %v32241_v59, %v32242_v20  ;;  %v23598_v52 = vld [vmem:[%s31445_s3 + $0x108] sm:$0xff]   ;;  %v23600_v48 = vld [vmem:[%s24906_s8 + $0x8d8] sm:$0xff]   ;;  %v32249_v38 = vld [vmem:[#allocation274_spill] sm:$0xff] }
 0x484   : > { %v32260_v62 = vld [vmem:[#allocation276_spill] sm:$0xff]  ;;  %v32261_v20 = vld [vmem:[#allocation277_spill] sm:$0xff] }
 0x485   : > { %21067 = vmatpush3.bf16.msra.mxu1 %v23590_v1  ;;  %v23089_v24 = vpop.f32.mrb[196].mxu0  ;;  %v23607_v59 = vld [vmem:[%s31445_s3 + $0x160] sm:$0xff]  }
 0x486   : > { %v5702_v28 = vmax.f32 %v26233_v56, %v23089_v24  ;;  %v5041_v34 = vpop.f32.mrb[197].mxu0  ;;  %21068 = vmatprep.subr.bf16.mxu1 %v23591_v39  ;;  %v32247_v39 = vld [vmem:[#allocation152_spill] sm:$0xff] }
 0x487   : > { %v5700_v40 = vmax.f32 %v26235_v37, %v5041_v34  ;;  %v23090_v11 = vpop.f32.mrb[198].mxu0  ;;  %v32248_v57 = vmax.f32 %v32246_v60, %v32247_v39  ;;  %v32250_v34 = vld [vmem:[#allocation15_spill] sm:$0xff]  ;;  %v32267_v60 = vld [vmem:[#allocation157_spill] sm:$0xff] }
 0x488   : > { %v26908_v15 = vmax.f32 %v32234_v45, %v5702_v28  ;;  %v5703_v53 = vmax.f32 %v26238_v54, %v23090_v11  ;;  %v5044_v56 = vpop.f32.mrb[199].mxu0  ;;  %v23597_v54 = vld [vmem:[%s31445_s3 + $0x148] sm:$0xff]   ;;  %v23603_v28 = vld [vmem:[%s31445_s3 + $0x158] sm:$0xff]   ;;  %v32255_v45 = vld [vmem:[#allocation154_spill] sm:$0xff] }
 0x489   : > { %v26917_v18 = vmax.f32 %v32237_v7, %v5700_v40  ;;  %v5701_v37 = vmax.f32 %v26241_v51, %v5044_v56  ;;  %21069 = vmatpush3.bf16.msra.mxu1 %v23592_v36  ;;  %v6556_v51 = vpack.c.bf16 %v6124_v22, %v6124_v22  ;;  %v32253_v11 = vld [vmem:[#allocation275_spill] sm:$0xff] }
 0x48a   : > { %v26923_v9 = vmax.f32 %v32240_v4, %v5703_v53  ;;  %23196 = vmatmul.mubr.msk.bf16.gmra.mrb[48].mxu0 %vm2330_vm0, %v23594_v30  ;;  %21076 = vmatprep.subr.bf16.mxu1 %v23595_v26  ;;  %v32251_v30 = vld [vmem:[#allocation153_spill] sm:$0xff] }
 0x48b   : > { %v26932_v29 = vmax.f32 %v32243_v63, %v5701_v37  ;;  %23199 = vmatprep.mubr.msk.bf16.mxu0 %vm2330_vm0, %v23599_v10  ;;  %v32252_v26 = vmax.f32 %v32250_v34, %v32251_v30  ;;  %v32254_v10 = vld [vmem:[#allocation16_spill] sm:$0xff]  ;;  %v23604_v37 = vld [vmem:[%s31445_s3 + $0x118] sm:$0xff]   ;;  %v32273_v30 = vld [vmem:[#allocation21_spill] sm:$0xff] }
 0x48c   : > { %15991 = vmatmul.mubr.bf16.vlgmr.msra.gmra.mrb[4].mxu1 %v6553_v35  ;;  %v32256_v53 = vmax.f32 %v32254_v10, %v32255_v45  ;;  %v23610_v10 = vld [vmem:[%s31445_s3 + $0x128] sm:$0xff]  }
 0x48d   : > { %21077 = vmatpush3.bf16.msra.mxu1 %v23596_v13  ;;  %16030 = vmatprep.mubr.bf16.mxu1 %v6556_v51  ;;  %v23093_v23 = vpop.f32.mrb[200].mxu0  ;;  %v32257_v13 = vld [vmem:[#allocation17_spill] sm:$0xff] }
 0x48e   : > { %v5706_v1 = vmax.f32 %v32244_v17, %v23093_v23  ;;  %v5057_v46 = vpop.f32.mrb[201].mxu0  ;;  %21078 = vmatprep.subr.bf16.mxu1 %v23597_v54  ;;  %v32259_v5 = vmax.f32 %v32257_v13, %v32258_v41  ;;  %v32262_v23 = vld [vmem:[#allocation18_spill] sm:$0xff]  ;;  %v32276_v13 = vld [vmem:[#allocation280_spill] sm:$0xff] }
 0x48f   : > { %v5704_v58 = vmax.f32 %v32245_v6, %v5057_v46  ;;  %v23094_v21 = vpop.f32.mrb[202].mxu0  ;;  %v32265_v46 = vld [vmem:[#allocation278_spill] sm:$0xff] }
 0x490   : > { %v26948_v8 = vmax.f32 %v32248_v57, %v5706_v1  ;;  %v5707_v24 = vmax.f32 %v32249_v38, %v23094_v21  ;;  %v5060_v36 = vpop.f32.mrb[203].mxu0  ;;  %v23609_v21 = vld [vmem:[%s31445_s3 + $0x168] sm:$0xff]   ;;  %v32269_v38 = vld [vmem:[#allocation279_spill] sm:$0xff] }
 0x491   : > { %v26960_v40 = vmax.f32 %v32252_v26, %v5704_v58  ;;  %v5705_v22 = vmax.f32 %v32253_v11, %v5060_v36  ;;  %21079 = vmatpush3.bf16.msra.mxu1 %v23598_v52  ;;  %v23611_v52 = vld [vmem:[%s24906_s8 + $0x8f0] sm:$0xff]   ;;  %v23608_v58 = vld [vmem:[%s31445_s3 + $0x120] sm:$0xff]   ;;  %v32274_v26 = vld [vmem:[#allocation159_spill] sm:$0xff] }
 0x492   : > { %v26966_v56 = vmax.f32 %v32256_v53, %v5707_v24  ;;  %23200 = vmatmul.mubr.msk.bf16.gmra.mrb[52].mxu0 %vm2330_vm0, %v23600_v48  ;;  %21080 = vmatprep.subr.bf16.mxu1 %v23601_v14  ;;  %v32263_v48 = vld [vmem:[#allocation156_spill] sm:$0xff]  ;;  %v32275_v11 = vmax.f32 %v32273_v30, %v32274_v26  ;;  %v23612_v53 = vld [vmem:[%s24906_s8 + $0x8f8] sm:$0xff]   ;;  %s269_s8 = sand.u32 1, %s24788_s25  }
 0x493   : > { %v26972_v7 = vmax.f32 %v32259_v5, %v5705_v22  ;;  %23203 = vmatprep.mubr.msk.bf16.mxu0 %vm2330_vm0, %v23605_v47  ;;  %v32264_v17 = vmax.f32 %v32262_v23, %v32263_v48  ;;  %v32266_v47 = vld [vmem:[#allocation19_spill] sm:$0xff]  ;;  %v32270_v36 = vld [vmem:[#allocation20_spill] sm:$0xff]  ;;  %v23614_v23 = vld [vmem:[%s31445_s3 + $0x130] sm:$0xff]   ;;  %s18989_s23 = sshll.u32 %s269_s8, 3  ;;  %s18913_s19 = scalar_lea.sflag [#allocation4], %s269_s8 }
 0x494   : > { %v32268_v39 = vmax.f32 %v32266_v47, %v32267_v60  ;;  %v23615_v48 = vld [vmem:[%s31445_s3 + $0x178] sm:$0xff]   ;;  %v5979_v47 = vadd.f32 %v26666_v44, %v26726_v25  ;;  %v32287_v60 = vld [vmem:[#allocation24_spill] sm:$0xff]  ;;  %s271_s14 = scalar_lea.vmem [#allocation3], %s18989_s23 }
 0x495   : > { %21081 = vmatpush3.bf16.msra.mxu1 %v23602_v19  ;;  %v23097_v35 = vpop.f32.mrb[204].mxu0  ;;  %v32271_v19 = vld [vmem:[#allocation158_spill] sm:$0xff]  ;;  %v23616_v25 = vld [vmem:[%s31445_s3 + $0x138] sm:$0xff]   ;;  %s18926_s15 = sshll.u32 %s271_s14, 4  ;;  %s31402_s15 = int_to_ptr.vmem [resolvable:$true] %s18926_s15 }
 0x496   : > { %v5710_v4 = vmax.f32 %v32260_v62, %v23097_v35  ;;  %v5073_v54 = vpop.f32.mrb[205].mxu0  ;;  %21082 = vmatprep.subr.bf16.mxu1 %v23603_v28  ;;  %v32272_v28 = vmax.f32 %v32270_v36, %v32271_v19  ;;  %v32277_v35 = vld [vmem:[#allocation281_spill] sm:$0xff]  ;;  %v5982_v36 = vadd.f32 %v26666_v44, %v26732_v0  ;;  %s24734_s28 = scalar_lea.vmem %s31402_s15, 128  ;;  %p24741_p0 = scmp.lt.s32.totalorder %s31402_s15, %s24739_s21 }
 0x497   : > { %v5708_v63 = vmax.f32 %v32261_v20, %v5073_v54  ;;  %v23098_v51 = vpop.f32.mrb[206].mxu0  ;;  %v32279_v54 = vld [vmem:[#allocation160_spill] sm:$0xff]  ;;  %v32290_v19 = vld [vmem:[#allocation25_spill] sm:$0xff]  ;;  %p24735_p11 = scmp.ne.s32.totalorder %s31402_s15, %s24734_s28  ;;  %p24742_p1 = scmp.lt.s32.totalorder %s24740_s22, %s24734_s28 }
 0x498   : > { %v26988_v1 = vmax.f32 %v32264_v17, %v5710_v4  ;;  %v5711_v14 = vmax.f32 %v32265_v46, %v23098_v51  ;;  %v5076_v6 = vpop.f32.mrb[207].mxu0  ;;  %v32278_v4 = vld [vmem:[#allocation22_spill] sm:$0xff]  ;;  %v32283_v17 = vld [vmem:[#allocation23_spill] sm:$0xff]  ;;  %v32284_v46 = vld [vmem:[#allocation161_spill] sm:$0xff] }
 0x499   : > { %v27000_v57 = vmax.f32 %v32268_v39, %v5708_v63  ;;  %v5709_v24 = vmax.f32 %v32269_v38, %v5076_v6  ;;  %21083 = vmatpush3.bf16.msra.mxu1 %v23604_v37  ;;  %v23613_v37 = vld [vmem:[%s31445_s3 + $0x170] sm:$0xff]   ;;  %v32294_v0 = vld [vmem:[#allocation285_spill] sm:$0xff]  ;;  %p24736_p12 = pnand %p24735_p11, %p24879_p5  ;;  %p24743_p2 = por %p24742_p1, %p24741_p0 }
 0x49a   : > { %v27006_v34 = vmax.f32 %v32272_v28, %v5711_v14  ;;  %23204 = vmatmul.mubr.msk.bf16.gmra.mrb[56].mxu0 %vm2330_vm0, %v23606_v27  ;;  %21084 = vmatprep.subr.bf16.mxu1 %v23607_v59  ;;  %v32280_v59 = vmax.f32 %v32278_v4, %v32279_v54  ;;  %v32282_v63 = vld [vmem:[#allocation282_spill] sm:$0xff]  ;;  %v32285_v14 = vmax.f32 %v32283_v17, %v32284_v46  ;;  %v32291_v28 = vld [vmem:[#allocation163_spill] sm:$0xff]  ;;  %v32301_v17 = vld [vmem:[#allocation165_spill] sm:$0xff] }
 0x49b   : > { %v27012_v22 = vmax.f32 %v32275_v11, %v5709_v24  ;;  %23207 = vmatprep.mubr.msk.bf16.mxu0 %vm2330_vm0, %v23611_v52  ;;  %v32288_v39 = vld [vmem:[#allocation162_spill] sm:$0xff]  ;;  %v32292_v30 = vmax.f32 %v32290_v19, %v32291_v28  ;;  %v32309_v19 = vld [vmem:[#allocation29_spill] sm:$0xff]  ;;  %v32310_v28 = vld [vmem:[#allocation167_spill] sm:$0xff]  ;;  %p24737_p13 = pneg %p24736_p12 }
 0x49c   : > { %v32289_v38 = vmax.f32 %v32287_v60, %v32288_v39  ;;  %v32305_v60 = vld [vmem:[#allocation28_spill] sm:$0xff]  ;;  %v32306_v39 = vld [vmem:[#allocation166_spill] sm:$0xff] }
 0x49d   : > { %21085 = vmatpush3.bf16.msra.mxu1 %v23608_v58  ;;  %v23101_v45 = vpop.f32.mrb[208].mxu0  ;;  %v32286_v58 = vld [vmem:[#allocation283_spill] sm:$0xff]  ;;  %p24744_p3 = pnand %p24743_p2, %p24737_p13 }
 0x49e   : > { %v5714_v41 = vmax.f32 %v32276_v13, %v23101_v45  ;;  %v5089_v5 = vpop.f32.mrb[209].mxu0  ;;  %21086 = vmatprep.subr.bf16.mxu1 %v23609_v21  ;;  %v6123_v45 = vmax.f32 %v5979_v47, 0.0 }
 0x49f   : > { %v5712_v27 = vmax.f32 %v32277_v35, %v5089_v5  ;;  %v23102_v62 = vpop.f32.mrb[210].mxu0  ;;  %v6126_v35 = vmax.f32 %v5982_v36, 0.0 }
 0x4a0   : > { %v27027_v20 = vmax.f32 %v32280_v59, %v5714_v41  ;;  %v5715_v51 = vmax.f32 %v32282_v63, %v23102_v62  ;;  %v5092_v52 = vpop.f32.mrb[211].mxu0  ;;  %v32296_v62 = vld [vmem:[#allocation164_spill] sm:$0xff]  ;;  %v32299_v59 = vld [vmem:[#allocation286_spill] sm:$0xff]  ;;  %v6555_v47 = vpack.c.bf16 %v6123_v45, %v6123_v45 }
 0x4a1   : > { %v27039_v6 = vmax.f32 %v32285_v14, %v5712_v27  ;;  %v5713_v21 = vmax.f32 %v32286_v58, %v5092_v52  ;;  %21087 = vmatpush3.bf16.msra.mxu1 %v23610_v10  ;;  %v23617_v10 = vld [vmem:[%s31445_s3 + $0x1c0] sm:$0xff]   ;;  %v32295_v27 = vld [vmem:[#allocation26_spill] sm:$0xff]  ;;  %v32304_v58 = vld [vmem:[#allocation287_spill] sm:$0xff] }
 0x4a2   : > { %32281 = vst [vmem:[#allocation6_spill] sm:$0xff] %v27027_v20  ;;  %v27047_v24 = vmax.f32 %v32289_v38, %v5715_v51  ;;  %23208 = vmatmul.mubr.msk.bf16.gmra.mrb[60].mxu0 %vm2330_vm0, %v23612_v53  ;;  %21088 = vmatprep.subr.bf16.mxu1 %v23613_v37  ;;  %v32293_v53 = vld [vmem:[#allocation284_spill] sm:$0xff]  ;;  %v32297_v4 = vmax.f32 %v32295_v27, %v32296_v62 }
 0x4a3   : > { %v27055_v26 = vmax.f32 %v32292_v30, %v5713_v21  ;;  %v23618_v52 = vld [vmem:[%s31445_s3 + $0x180] sm:$0xff]   ;;  %v32307_v38 = vmax.f32 %v32305_v60, %v32306_v39  ;;  %v32311_v30 = vmax.f32 %v32309_v19, %v32310_v28 }
 0x4a4   : > { %v32313_v45 = vld [vmem:[#allocation288_spill] sm:$0xff] }
 0x4a5   : > { %21089 = vmatpush3.bf16.msra.mxu1 %v23614_v23  ;;  %v23105_v11 = vpop.f32.mrb[212].mxu0  ;;  %v23619_v23 = vld [vmem:[%s31445_s3 + $0x1c8] sm:$0xff]   ;;  %v32316_v62 = vld [vmem:[#allocation168_spill] sm:$0xff] }
 0x4a6   : > { %v5718_v13 = vmax.f32 %v32293_v53, %v23105_v11  ;;  %v5105_v41 = vpop.f32.mrb[213].mxu0  ;;  %21090 = vmatprep.subr.bf16.mxu1 %v23615_v48  ;;  %v32300_v48 = vld [vmem:[#allocation27_spill] sm:$0xff]  ;;  %v6558_v53 = vpack.c.bf16 %v6126_v35, %v6126_v35  ;;  %v32315_v35 = vld [vmem:[#allocation30_spill] sm:$0xff]  ;;  %v32325_v39 = vld [vmem:[#allocation32_spill] sm:$0xff] }
 0x4a7   : > { %v5716_v5 = vmax.f32 %v32294_v0, %v5105_v41  ;;  %v23106_v37 = vpop.f32.mrb[214].mxu0  ;;  %v32302_v46 = vmax.f32 %v32300_v48, %v32301_v17  ;;  %v23622_v48 = vld [vmem:[%s31445_s3 + $0x190] sm:$0xff]   ;;  %v32320_v17 = vld [vmem:[#allocation31_spill] sm:$0xff] }
 0x4a8   : > { %v27068_v54 = vmax.f32 %v32297_v4, %v5718_v13  ;;  %v5719_v63 = vmax.f32 %v32299_v59, %v23106_v37  ;;  %v5108_v51 = vpop.f32.mrb[215].mxu0  ;;  %v32317_v4 = vmax.f32 %v32315_v35, %v32316_v62 }
 0x4a9   : > { %v27080_v14 = vmax.f32 %v32302_v46, %v5716_v5  ;;  %v5717_v21 = vmax.f32 %v32304_v58, %v5108_v51  ;;  %21091 = vmatpush3.bf16.msra.mxu1 %v23616_v25  ;;  %v23620_v25 = vld [vmem:[%s31445_s3 + $0x188] sm:$0xff]  }
 0x4aa   : > { %32298 = vst [vmem:[#allocation134_spill] sm:$0xff] %v27068_v54  ;;  %v27086_v36 = vmax.f32 %v32307_v38, %v5719_v63  ;;  %21098 = vmatprep.subr.bf16.mxu1 %v23617_v10  ;;  %v23621_v10 = vld [vmem:[%s31445_s3 + $0x1d0] sm:$0xff]   ;;  %v32314_v5 = vld [vmem:[#allocation289_spill] sm:$0xff]  ;;  %v32682_v54 = vld [vmem:[#allocation108_spill] sm:$0xff] }
 0x4ab   : > { %32303 = vst [vmem:[#allocation135_spill] sm:$0xff] %v27080_v14  ;;  %v27091_v11 = vmax.f32 %v32311_v30, %v5717_v21  ;;  %v32319_v63 = vld [vmem:[#allocation290_spill] sm:$0xff]  ;;  %v32321_v46 = vld [vmem:[#allocation169_spill] sm:$0xff]  ;;  %v32719_v14 = vld [vmem:[#allocation116_spill] sm:$0xff] }
 0x4ac   : > { %32308 = vst [vmem:[#allocation136_spill] sm:$0xff] %v27086_v36  ;;  %16031 = vmatmul.mubr.bf16.vlgmr.msra.gmra.mrb[8].mxu1 %v6555_v47  ;;  %v32322_v58 = vmax.f32 %v32320_v17, %v32321_v46  ;;  %v32324_v47 = vld [vmem:[#allocation291_spill] sm:$0xff]  ;;  %v32326_v38 = vld [vmem:[#allocation170_spill] sm:$0xff]  ;;  %v32329_v30 = vld [vmem:[#allocation33_spill] sm:$0xff] }
 0x4ad   : > { %32312 = vst [vmem:[#allocation7_spill] sm:$0xff] %v27091_v11  ;;  %21099 = vmatpush3.bf16.msra.mxu1 %v23618_v52  ;;  %16070 = vmatprep.mubr.bf16.mxu1 %v6558_v53  ;;  %v23109_v13 = vpop.f32.mrb[216].mxu0  ;;  %v32327_v19 = vmax.f32 %v32325_v39, %v32326_v38  ;;  %v32330_v53 = vld [vmem:[#allocation171_spill] sm:$0xff] }
 0x4ae   : > { %v5722_v41 = vmax.f32 %v32313_v45, %v23109_v13  ;;  %v5121_v0 = vpop.f32.mrb[217].mxu0  ;;  %21100 = vmatprep.subr.bf16.mxu1 %v23619_v23  ;;  %v23623_v23 = vld [vmem:[%s31445_s3 + $0x1d8] sm:$0xff]   ;;  %v32331_v13 = vmax.f32 %v32329_v30, %v32330_v53  ;;  %v32345_v53 = vld [vmem:[#allocation36_spill] sm:$0xff] }
 0x4af   : > { %v5720_v37 = vmax.f32 %v32314_v5, %v5121_v0  ;;  %v23110_v27 = vpop.f32.mrb[218].mxu0  ;;  %v23624_v0 = vld [vmem:[%s31445_s3 + $0x198] sm:$0xff]   ;;  %v32333_v5 = vld [vmem:[#allocation292_spill] sm:$0xff] }
 0x4b0   : > { %v27104_v59 = vmax.f32 %v32317_v4, %v5722_v41  ;;  %v5723_v51 = vmax.f32 %v32319_v63, %v23110_v27  ;;  %v5124_v52 = vpop.f32.mrb[219].mxu0  ;;  %v23625_v27 = vld [vmem:[%s31445_s3 + $0x1e0] sm:$0xff]   ;;  %v32335_v4 = vld [vmem:[#allocation34_spill] sm:$0xff] }
 0x4b1   : > { %v27116_v21 = vmax.f32 %v32322_v58, %v5720_v37  ;;  %v5721_v60 = vmax.f32 %v32324_v47, %v5124_v52  ;;  %21101 = vmatpush3.bf16.msra.mxu1 %v23620_v25  ;;  %v32336_v63 = vld [vmem:[#allocation172_spill] sm:$0xff]  ;;  %v32340_v47 = vld [vmem:[#allocation35_spill] sm:$0xff] }
 0x4b2   : > { %32318 = vst [vmem:[#allocation137_spill] sm:$0xff] %v27104_v59  ;;  %v27122_v28 = vmax.f32 %v32327_v19, %v5723_v51  ;;  %21102 = vmatprep.subr.bf16.mxu1 %v23621_v10  ;;  %v32334_v10 = vld [vmem:[#allocation293_spill] sm:$0xff]  ;;  %v32337_v51 = vmax.f32 %v32335_v4, %v32336_v63  ;;  %v23626_v58 = vld [vmem:[%s31445_s3 + $0x1a0] sm:$0xff]   ;;  %v32344_v19 = vld [vmem:[#allocation295_spill] sm:$0xff] }
 0x4b3   : > { %32323 = vst [vmem:[#allocation138_spill] sm:$0xff] %v27116_v21  ;;  %v27127_v45 = vmax.f32 %v32331_v13, %v5721_v60  ;;  %v32341_v60 = vld [vmem:[#allocation173_spill] sm:$0xff]  ;;  %v32346_v13 = vld [vmem:[#allocation174_spill] sm:$0xff]  ;;  %v32353_v63 = vld [vmem:[#allocation296_spill] sm:$0xff] }
 0x4b4   : > { %32328 = vst [vmem:[#allocation139_spill] sm:$0xff] %v27122_v28  ;;  %v32342_v39 = vmax.f32 %v32340_v47, %v32341_v60  ;;  %v32355_v47 = vld [vmem:[#allocation38_spill] sm:$0xff]  ;;  %v32356_v60 = vld [vmem:[#allocation176_spill] sm:$0xff] }
 0x4b5   : > { %32332 = vst [vmem:[#allocation8_spill] sm:$0xff] %v27127_v45  ;;  %21103 = vmatpush3.bf16.msra.mxu1 %v23622_v48  ;;  %v23113_v41 = vpop.f32.mrb[220].mxu0  ;;  %v32339_v48 = vld [vmem:[#allocation294_spill] sm:$0xff]  ;;  %v32646_v28 = vld [vmem:[#allocation100_spill] sm:$0xff] }
 0x4b6   : > { %v5726_v37 = vmax.f32 %v32333_v5, %v23113_v41  ;;  %v5137_v25 = vpop.f32.mrb[221].mxu0  ;;  %21104 = vmatprep.subr.bf16.mxu1 %v23623_v23  ;;  %v23627_v23 = vld [vmem:[%s31445_s3 + $0x1e8] sm:$0xff]   ;;  %v32347_v41 = vmax.f32 %v32345_v53, %v32346_v13  ;;  %v23630_v13 = vld [vmem:[%s31445_s3 + $0x1b0] sm:$0xff]  }
 0x4b7   : > { %v5724_v35 = vmax.f32 %v32334_v10, %v5137_v25  ;;  %v23114_v62 = vpop.f32.mrb[222].mxu0  ;;  %v32350_v25 = vld [vmem:[#allocation175_spill] sm:$0xff] }
 0x4b8   : > { %v27140_v52 = vmax.f32 %v32337_v51, %v5726_v37  ;;  %v5727_v17 = vmax.f32 %v32339_v48, %v23114_v62  ;;  %v5140_v46 = vpop.f32.mrb[223].mxu0  ;;  %v32349_v37 = vld [vmem:[#allocation37_spill] sm:$0xff]  ;;  %v23629_v48 = vld [vmem:[%s31445_s3 + $0x1f0] sm:$0xff]  }
 0x4b9   : > { %v27152_v38 = vmax.f32 %v32342_v39, %v5724_v35  ;;  %v5725_v30 = vmax.f32 %v32344_v19, %v5140_v46  ;;  %21105 = vmatpush3.bf16.msra.mxu1 %v23624_v0  ;;  %v32351_v10 = vmax.f32 %v32349_v37, %v32350_v25  ;;  %v23628_v35 = vld [vmem:[%s31445_s3 + $0x1a8] sm:$0xff]   ;;  %v32357_v39 = vmax.f32 %v32355_v47, %v32356_v60  ;;  %v32359_v19 = vld [vmem:[#allocation298_spill] sm:$0xff] }
 0x4ba   : > { %32338 = vst [vmem:[#allocation140_spill] sm:$0xff] %v27140_v52  ;;  %v27158_v5 = vmax.f32 %v32347_v41, %v5727_v17  ;;  %21106 = vmatprep.subr.bf16.mxu1 %v23625_v27  ;;  %v32354_v27 = vld [vmem:[#allocation297_spill] sm:$0xff]  ;;  %v32360_v41 = vld [vmem:[#allocation39_spill] sm:$0xff]  ;;  %v5984_v60 = vadd.f32 %v26666_v44, %v26796_v32 }
 0x4bb   : > { %32343 = vst [vmem:[#allocation141_spill] sm:$0xff] %v27152_v38  ;;  %v27163_v62 = vmax.f32 %v32351_v10, %v5725_v30  ;;  %v32361_v37 = vld [vmem:[#allocation177_spill] sm:$0xff] }
 0x4bc   : > { %32348 = vst [vmem:[#allocation142_spill] sm:$0xff] %v27158_v5  ;;  %v32362_v25 = vmax.f32 %v32360_v41, %v32361_v37  ;;  %v32574_v5 = vld [vmem:[#allocation84_spill] sm:$0xff] }
 0x4bd   : > { %32352 = vst [vmem:[#allocation9_spill] sm:$0xff] %v27163_v62  ;;  %21107 = vmatpush3.bf16.msra.mxu1 %v23626_v58  ;;  %v23117_v4 = vpop.f32.mrb[224].mxu0  ;;  %v32610_v62 = vld [vmem:[#allocation92_spill] sm:$0xff] }
 0x4be   : > { %v5730_v51 = vmax.f32 %v32353_v63, %v23117_v4  ;;  %v5153_v0 = vpop.f32.mrb[225].mxu0  ;;  %21108 = vmatprep.subr.bf16.mxu1 %v23627_v23  ;;  %v23631_v23 = vld [vmem:[%s31445_s3 + $0x1f8] sm:$0xff]  }
 0x4bf   : > { %v5728_v17 = vmax.f32 %v32354_v27, %v5153_v0  ;;  %v23118_v46 = vpop.f32.mrb[226].mxu0  ;;  %v32364_v4 = vld [vmem:[#allocation299_spill] sm:$0xff]  ;;  %v32365_v0 = vld [vmem:[#allocation40_spill] sm:$0xff]  ;;  %v32366_v27 = vld [vmem:[#allocation178_spill] sm:$0xff] }
 0x4c0   : > { %v27176_v58 = vmax.f32 %v32357_v39, %v5730_v51  ;;  %v5731_v30 = vmax.f32 %v32359_v19, %v23118_v46  ;;  %v5156_v53 = vpop.f32.mrb[227].mxu0  ;;  %v5981_v51 = vadd.f32 %v26666_v44, %v26717_v43  ;;  %v32367_v46 = vmax.f32 %v32365_v0, %v32366_v27  ;;  %v32369_v39 = vld [vmem:[#allocation41_spill] sm:$0xff]  ;;  %v32370_v19 = vld [vmem:[#allocation179_spill] sm:$0xff]  ;;  %v32375_v0 = vld [vmem:[#allocation42_spill] sm:$0xff] }
 0x4c1   : > { %v27188_v10 = vmax.f32 %v32362_v25, %v5728_v17  ;;  %v5729_v63 = vmax.f32 %v32364_v4, %v5156_v53  ;;  %21109 = vmatpush3.bf16.msra.mxu1 %v23628_v35  ;;  %v32371_v41 = vmax.f32 %v32369_v39, %v32370_v19  ;;  %v23632_v35 = vld [vmem:[%s31445_s3 + $0x1b8] sm:$0xff]   ;;  %v32374_v44 = vld [vmem:[#allocation301_spill] sm:$0xff]  ;;  %v32376_v27 = vld [vmem:[#allocation180_spill] sm:$0xff] }
 0x4c2   : > { %32358 = vst [vmem:[#allocation143_spill] sm:$0xff] %v27176_v58  ;;  %v27196_v47 = vmax.f32 %v32367_v46, %v5731_v30  ;;  %21110 = vmatprep.subr.bf16.mxu1 %v23629_v48  ;;  %v23633_v30 = vld [vmem:[%s31445_s3 + $0x240] sm:$0xff]   ;;  %v6125_v53 = vmax.f32 %v5981_v51, 0.0  ;;  %v32377_v46 = vmax.f32 %v32375_v0, %v32376_v27  ;;  %v32390_v58 = vld [vmem:[#allocation183_spill] sm:$0xff] }
 0x4c3   : > { %32363 = vst [vmem:[#allocation144_spill] sm:$0xff] %v27188_v10  ;;  %v27203_v17 = vmax.f32 %v32371_v41, %v5729_v63  ;;  %v32373_v48 = vld [vmem:[#allocation300_spill] sm:$0xff]  ;;  %v6128_v63 = vmax.f32 %v5984_v60, 0.0 }
 0x4c4   : > { %32368 = vst [vmem:[#allocation145_spill] sm:$0xff] %v27196_v47  ;;  %v23634_v51 = vld [vmem:[%s31445_s3 + $0x200] sm:$0xff]  }
 0x4c5   : > { %32372 = vst [vmem:[#allocation10_spill] sm:$0xff] %v27203_v17  ;;  %21111 = vmatpush3.bf16.msra.mxu1 %v23630_v13  ;;  %v23121_v43 = vpop.f32.mrb[228].mxu0  ;;  %v32379_v13 = vld [vmem:[#allocation302_spill] sm:$0xff]  ;;  %v32385_v27 = vld [vmem:[#allocation44_spill] sm:$0xff]  ;;  %v6560_v17 = vpack.c.bf16 %v6128_v63, %v6128_v63 }
 0x4c6   : > { %v5734_v37 = vmax.f32 %v32373_v48, %v23121_v43  ;;  %v5169_v25 = vpop.f32.mrb[229].mxu0  ;;  %21112 = vmatprep.subr.bf16.mxu1 %v23631_v23  ;;  %v23635_v23 = vld [vmem:[%s31445_s3 + $0x248] sm:$0xff]   ;;  %v32380_v43 = vld [vmem:[#allocation43_spill] sm:$0xff]  ;;  %v32395_v63 = vld [vmem:[#allocation46_spill] sm:$0xff] }
 0x4c7   : > { %v5732_v32 = vmax.f32 %v32374_v44, %v5169_v25  ;;  %v23122_v4 = vpop.f32.mrb[230].mxu0  ;;  %v32381_v48 = vld [vmem:[#allocation181_spill] sm:$0xff]  ;;  %v32384_v44 = vld [vmem:[#allocation303_spill] sm:$0xff] }
 0x4c8   : > { %v27216_v39 = vmax.f32 %v32377_v46, %v5734_v37  ;;  %v5735_v19 = vmax.f32 %v32379_v13, %v23122_v4  ;;  %v5172_v41 = vpop.f32.mrb[231].mxu0  ;;  %v32382_v25 = vmax.f32 %v32380_v43, %v32381_v48  ;;  %v6557_v37 = vpack.c.bf16 %v6125_v53, %v6125_v53  ;;  %v32386_v4 = vld [vmem:[#allocation182_spill] sm:$0xff]  ;;  %v32393_v53 = vld [vmem:[#allocation304_spill] sm:$0xff] }
 0x4c9   : > { %v5733_v0 = vmax.f32 %v32384_v44, %v5172_v41  ;;  %21113 = vmatpush3.bf16.msra.mxu1 %v23632_v35  ;;  %v32387_v46 = vmax.f32 %v32385_v27, %v32386_v4  ;;  %v23636_v35 = vld [vmem:[%s31445_s3 + $0x208] sm:$0xff]   ;;  %v32399_v48 = vld [vmem:[#allocation306_spill] sm:$0xff] }
 0x4ca   : > { %32378 = vst [vmem:[#allocation146_spill] sm:$0xff] %v27216_v39  ;;  %v27228_v60 = vmax.f32 %v32382_v25, %v5732_v32  ;;  %21120 = vmatprep.subr.bf16.mxu1 %v23633_v30  ;;  %v32389_v39 = vld [vmem:[#allocation45_spill] sm:$0xff]  ;;  %v23637_v30 = vld [vmem:[%s31445_s3 + $0x250] sm:$0xff]  }
 0x4cb   : > { %v27234_v13 = vmax.f32 %v32387_v46, %v5735_v19  ;;  %v32391_v47 = vmax.f32 %v32389_v39, %v32390_v58  ;;  %v32394_v58 = vld [vmem:[#allocation305_spill] sm:$0xff]  ;;  %v32396_v19 = vld [vmem:[#allocation184_spill] sm:$0xff] }
 0x4cc   : > { %32383 = vst [vmem:[#allocation147_spill] sm:$0xff] %v27228_v60  ;;  %16071 = vmatmul.mubr.bf16.vlgmr.msra.gmra.mrb[12].mxu1 %v6557_v37  ;;  %v32401_v37 = vld [vmem:[#allocation185_spill] sm:$0xff] }
 0x4cd   : > { %32388 = vst [vmem:[#allocation148_spill] sm:$0xff] %v27234_v13  ;;  %v27239_v10 = vmax.f32 %v32391_v47, %v5733_v0  ;;  %21121 = vmatpush3.bf16.msra.mxu1 %v23634_v51  ;;  %16110 = vmatprep.mubr.bf16.mxu1 %v6560_v17  ;;  %v23125_v32 = vpop.f32.mrb[232].mxu0  ;;  %v32397_v51 = vmax.f32 %v32395_v63, %v32396_v19  ;;  %v32400_v0 = vld [vmem:[#allocation47_spill] sm:$0xff]  ;;  %v32409_v63 = vld [vmem:[#allocation49_spill] sm:$0xff] }
 0x4ce   : > { %v5738_v41 = vmax.f32 %v32393_v53, %v23125_v32  ;;  %v5185_v43 = vpop.f32.mrb[233].mxu0  ;;  %21122 = vmatprep.subr.bf16.mxu1 %v23635_v23  ;;  %v32402_v27 = vmax.f32 %v32400_v0, %v32401_v37  ;;  %v32404_v23 = vld [vmem:[#allocation307_spill] sm:$0xff]  ;;  %v23638_v32 = vld [vmem:[%s31445_s3 + $0x210] sm:$0xff]   ;;  %v32405_v53 = vld [vmem:[#allocation48_spill] sm:$0xff] }
 0x4cf   : > { %32392 = vst [vmem:[#allocation11_spill] sm:$0xff] %v27239_v10  ;;  %v5736_v47 = vmax.f32 %v32394_v58, %v5185_v43  ;;  %v23126_v39 = vpop.f32.mrb[234].mxu0  ;;  %v32406_v43 = vld [vmem:[#allocation186_spill] sm:$0xff]  ;;  %v32414_v37 = vld [vmem:[#allocation309_spill] sm:$0xff] }
 0x4d0   : > { %v27252_v17 = vmax.f32 %v32397_v51, %v5738_v41  ;;  %v5739_v25 = vmax.f32 %v32399_v48, %v23126_v39  ;;  %v5188_v44 = vpop.f32.mrb[235].mxu0  ;;  %v32407_v58 = vmax.f32 %v32405_v53, %v32406_v43  ;;  %v23639_v39 = vld [vmem:[%s31445_s3 + $0x258] sm:$0xff]   ;;  %v32415_v53 = vld [vmem:[#allocation50_spill] sm:$0xff] }
 0x4d1   : > { %v27258_v4 = vmax.f32 %v32402_v27, %v5736_v47  ;;  %v5737_v46 = vmax.f32 %v32404_v23, %v5188_v44  ;;  %21123 = vmatpush3.bf16.msra.mxu1 %v23636_v35  ;;  %v32410_v47 = vld [vmem:[#allocation187_spill] sm:$0xff]  ;;  %v32413_v44 = vld [vmem:[#allocation308_spill] sm:$0xff] }
 0x4d2   : > { %32398 = vst [vmem:[#allocation149_spill] sm:$0xff] %v27252_v17  ;;  %v27267_v41 = vmax.f32 %v32407_v58, %v5739_v25  ;;  %21124 = vmatprep.subr.bf16.mxu1 %v23637_v30  ;;  %v32411_v19 = vmax.f32 %v32409_v63, %v32410_v47  ;;  %v23640_v48 = vld [vmem:[%s31445_s3 + $0x218] sm:$0xff]   ;;  %v23641_v30 = vld [vmem:[%s31445_s3 + $0x260] sm:$0xff]   ;;  %v32419_v58 = vld [vmem:[#allocation310_spill] sm:$0xff] }
 0x4d3   : > { %32403 = vst [vmem:[#allocation12_spill] sm:$0xff] %v27258_v4  ;;  %v32421_v17 = vld [vmem:[#allocation189_spill] sm:$0xff]  ;;  %v32426_v4 = vld [vmem:[#allocation190_spill] sm:$0xff] }
 0x4d4   : > { %32408 = vst [vmem:[#allocation150_spill] sm:$0xff] %v27267_v41  ;;  %v27275_v51 = vmax.f32 %v32411_v19, %v5737_v46  ;;  %v32416_v46 = vld [vmem:[#allocation188_spill] sm:$0xff]  ;;  %v32420_v19 = vld [vmem:[#allocation51_spill] sm:$0xff] }
 0x4d5   : > { %21125 = vmatpush3.bf16.msra.mxu1 %v23638_v32  ;;  %v23129_v35 = vpop.f32.mrb[236].mxu0  ;;  %v32417_v43 = vmax.f32 %v32415_v53, %v32416_v46 }
 0x4d6   : > { %32412 = vst [vmem:[#allocation13_spill] sm:$0xff] %v27275_v51  ;;  %v5742_v0 = vmax.f32 %v32413_v44, %v23129_v35  ;;  %v5201_v25 = vpop.f32.mrb[237].mxu0  ;;  %21126 = vmatprep.subr.bf16.mxu1 %v23639_v39  ;;  %v32422_v35 = vmax.f32 %v32420_v19, %v32421_v17  ;;  %v32424_v39 = vld [vmem:[#allocation311_spill] sm:$0xff]  ;;  %v32429_v17 = vld [vmem:[#allocation53_spill] sm:$0xff] }
 0x4d7   : > { %v5740_v27 = vmax.f32 %v32414_v37, %v5201_v25  ;;  %v23130_v23 = vpop.f32.mrb[238].mxu0  ;;  %v23642_v25 = vld [vmem:[%s31445_s3 + $0x220] sm:$0xff]   ;;  %v32434_v19 = vld [vmem:[#allocation313_spill] sm:$0xff] }
 0x4d8   : > { %v27288_v32 = vmax.f32 %v32417_v43, %v5742_v0  ;;  %v5743_v63 = vmax.f32 %v32419_v58, %v23130_v23  ;;  %v5204_v47 = vpop.f32.mrb[239].mxu0  ;;  %v32425_v37 = vld [vmem:[#allocation52_spill] sm:$0xff]  ;;  %v23643_v23 = vld [vmem:[%s31445_s3 + $0x268] sm:$0xff]  }
 0x4d9   : > { %v27294_v44 = vmax.f32 %v32422_v35, %v5740_v27  ;;  %v5741_v41 = vmax.f32 %v32424_v39, %v5204_v47  ;;  %21127 = vmatpush3.bf16.msra.mxu1 %v23640_v48  ;;  %v32427_v53 = vmax.f32 %v32425_v37, %v32426_v4  ;;  %v32430_v27 = vld [vmem:[#allocation191_spill] sm:$0xff]  ;;  %v23645_v58 = vld [vmem:[%s31445_s3 + $0x228] sm:$0xff]   ;;  %v32433_v47 = vld [vmem:[#allocation312_spill] sm:$0xff] }
 0x4da   : > { %32418 = vst [vmem:[#allocation151_spill] sm:$0xff] %v27288_v32  ;;  %21128 = vmatprep.subr.bf16.mxu1 %v23641_v30  ;;  %v32431_v46 = vmax.f32 %v32429_v17, %v32430_v27  ;;  %v23647_v30 = vld [vmem:[%s31445_s3 + $0x270] sm:$0xff]   ;;  %v32440_v32 = vld [vmem:[#allocation55_spill] sm:$0xff] }
 0x4db   : > { %32423 = vst [vmem:[#allocation272_spill] sm:$0xff] %v27294_v44  ;;  %v27303_v0 = vmax.f32 %v32427_v53, %v5743_v63  ;;  %v32435_v37 = vld [vmem:[#allocation54_spill] sm:$0xff] }
 0x4dc   : > { %v27311_v43 = vmax.f32 %v32431_v46, %v5741_v41  ;;  %v32436_v41 = vld [vmem:[#allocation192_spill] sm:$0xff]  ;;  %v32439_v17 = vld [vmem:[#allocation314_spill] sm:$0xff] }
 0x4dd   : > { %32428 = vst [vmem:[#allocation273_spill] sm:$0xff] %v27303_v0  ;;  %21129 = vmatpush3.bf16.msra.mxu1 %v23642_v25  ;;  %v23133_v48 = vpop.f32.mrb[240].mxu0  ;;  %v32437_v53 = vmax.f32 %v32435_v37, %v32436_v41  ;;  %v32441_v0 = vld [vmem:[#allocation193_spill] sm:$0xff]  ;;  %v32446_v37 = vld [vmem:[#allocation194_spill] sm:$0xff] }
 0x4de   : > { %32432 = vst [vmem:[#allocation14_spill] sm:$0xff] %v27311_v43  ;;  %v5746_v4 = vmax.f32 %v32433_v47, %v23133_v48  ;;  %v5217_v63 = vpop.f32.mrb[241].mxu0  ;;  %21130 = vmatprep.subr.bf16.mxu1 %v23643_v23  ;;  %v32442_v48 = vmax.f32 %v32440_v32, %v32441_v0  ;;  %v32444_v23 = vld [vmem:[#allocation315_spill] sm:$0xff]  ;;  %v32449_v41 = vld [vmem:[#allocation57_spill] sm:$0xff] }
 0x4df   : > { %v5744_v35 = vmax.f32 %v32434_v19, %v5217_v63  ;;  %v23134_v39 = vpop.f32.mrb[242].mxu0  ;;  %v23649_v63 = vld [vmem:[%s31445_s3 + $0x230] sm:$0xff]   ;;  %v32464_v43 = vld [vmem:[#allocation319_spill] sm:$0xff] }
 0x4e0   : > { %v27324_v25 = vmax.f32 %v32437_v53, %v5746_v4  ;;  %v5747_v27 = vmax.f32 %v32439_v17, %v23134_v39  ;;  %v5220_v46 = vpop.f32.mrb[243].mxu0  ;;  %v27339_v4 = vld [vmem:[%s31444_s2] ss:$0 sm:$0xff]  ;;  %v32450_v53 = vld [vmem:[#allocation195_spill] sm:$0xff] }
 0x4e1   : > { %v27330_v47 = vmax.f32 %v32442_v48, %v5744_v35  ;;  %v5745_v44 = vmax.f32 %v32444_v23, %v5220_v46  ;;  %21131 = vmatpush3.bf16.msra.mxu1 %v23645_v58  ;;  %v5983_v19 = vadd.f32 %v27339_v4, %v26778_v33  ;;  %v32445_v39 = vld [vmem:[#allocation56_spill] sm:$0xff]  ;;  %v23651_v58 = vld [vmem:[%s31445_s3 + $0x278] sm:$0xff]   ;;  %v5986_v35 = vadd.f32 %v27339_v4, %v26784_v3 }
 0x4e2   : > { %32438 = vst [vmem:[#allocation152_spill] sm:$0xff] %v27324_v25  ;;  %v32447_v32 = vmax.f32 %v32445_v39, %v32446_v37  ;;  %21132 = vmatprep.subr.bf16.mxu1 %v23647_v30  ;;  %v32451_v17 = vmax.f32 %v32449_v41, %v32450_v53  ;;  %v32453_v30 = vld [vmem:[#allocation316_spill] sm:$0xff]  ;;  %v32454_v37 = vld [vmem:[#allocation317_spill] sm:$0xff]  ;;  %v32455_v53 = vld [vmem:[#allocation58_spill] sm:$0xff] }
 0x4e3   : > { %32443 = vst [vmem:[#allocation274_spill] sm:$0xff] %v27330_v47  ;;  %v6127_v48 = vmax.f32 %v5983_v19, 0.0  ;;  %v23655_v3 = vld [vmem:[%s31445_s3 + $0x2c0] sm:$0xff]  }
 0x4e4   : > { %v27346_v0 = vmax.f32 %v32447_v32, %v5747_v27  ;;  %v27356_v46 = vmax.f32 %v32451_v17, %v5745_v44  ;;  %v23653_v27 = vld [vmem:[%s31445_s3 + $0x238] sm:$0xff]   ;;  %v6130_v44 = vmax.f32 %v5986_v35, 0.0  ;;  %v23657_v35 = vld [vmem:[%s31445_s3 + $0x280] sm:$0xff]  }
 0x4e5   : > { %21133 = vmatpush3.bf16.msra.mxu1 %v23649_v63  ;;  %v23137_v33 = vpop.f32.mrb[244].mxu0  ;;  %v32456_v63 = vld [vmem:[#allocation196_spill] sm:$0xff] }
 0x4e6   : > { %32448 = vst [vmem:[#allocation15_spill] sm:$0xff] %v27346_v0  ;;  %32452 = vst [vmem:[#allocation153_spill] sm:$0xff] %v27356_v46  ;;  %v5750_v23 = vmax.f32 %v32453_v30, %v23137_v33  ;;  %v5233_v39 = vpop.f32.mrb[245].mxu0  ;;  %21134 = vmatprep.subr.bf16.mxu1 %v23651_v58  ;;  %v32457_v17 = vmax.f32 %v32455_v53, %v32456_v63  ;;  %v32459_v0 = vld [vmem:[#allocation318_spill] sm:$0xff]  ;;  %v32460_v46 = vld [vmem:[#allocation59_spill] sm:$0xff] }
 0x4e7   : > { %v5748_v32 = vmax.f32 %v32454_v37, %v5233_v39  ;;  %v23138_v41 = vpop.f32.mrb[246].mxu0  ;;  %v32461_v33 = vld [vmem:[#allocation197_spill] sm:$0xff]  ;;  %v6559_v39 = vpack.c.bf16 %v6127_v48, %v6127_v48  ;;  %v32465_v37 = vld [vmem:[#allocation60_spill] sm:$0xff]  ;;  %v32466_v53 = vld [vmem:[#allocation198_spill] sm:$0xff] }
 0x4e8   : > { %v27369_v25 = vmax.f32 %v32457_v17, %v5750_v23  ;;  %v5751_v47 = vmax.f32 %v32459_v0, %v23138_v41  ;;  %v5236_v19 = vpop.f32.mrb[247].mxu0  ;;  %v32462_v30 = vmax.f32 %v32460_v46, %v32461_v33  ;;  %v32467_v23 = vmax.f32 %v32465_v37, %v32466_v53  ;;  %v23659_v0 = vld [vmem:[%s31445_s3 + $0x2c8] sm:$0xff]   ;;  %v32473_v17 = vld [vmem:[#allocation320_spill] sm:$0xff]  ;;  %v23663_v33 = vld [vmem:[%s31445_s3 + $0x2d0] sm:$0xff]  }
 0x4e9   : > { %v5749_v51 = vmax.f32 %v32464_v43, %v5236_v19  ;;  %21135 = vmatpush3.bf16.msra.mxu1 %v23653_v27  ;;  %v32469_v46 = vld [vmem:[#allocation61_spill] sm:$0xff]  ;;  %v6562_v27 = vpack.c.bf16 %v6130_v44, %v6130_v44  ;;  %v32475_v44 = vld [vmem:[#allocation62_spill] sm:$0xff] }
 0x4ea   : > { %32458 = vst [vmem:[#allocation275_spill] sm:$0xff] %v27369_v25  ;;  %v27375_v58 = vmax.f32 %v32462_v30, %v5748_v32  ;;  %v27384_v63 = vmax.f32 %v32467_v23, %v5751_v47  ;;  %21142 = vmatprep.subr.bf16.mxu1 %v23655_v3  ;;  %v32470_v32 = vld [vmem:[#allocation199_spill] sm:$0xff]  ;;  %v23661_v47 = vld [vmem:[%s31445_s3 + $0x288] sm:$0xff]   ;;  %v32479_v23 = vld [vmem:[#allocation322_spill] sm:$0xff] }
 0x4eb   : > { %v32471_v41 = vmax.f32 %v32469_v46, %v32470_v32  ;;  %v32474_v30 = vld [vmem:[#allocation321_spill] sm:$0xff] }
 0x4ec   : > { %32463 = vst [vmem:[#allocation16_spill] sm:$0xff] %v27375_v58  ;;  %32468 = vst [vmem:[#allocation154_spill] sm:$0xff] %v27384_v63  ;;  %16111 = vmatmul.mubr.bf16.vlgmr.msra.gmra.mrb[16].mxu1 %v6559_v39  ;;  %v32476_v39 = vld [vmem:[#allocation200_spill] sm:$0xff]  ;;  %v32485_v63 = vld [vmem:[#allocation202_spill] sm:$0xff] }
 0x4ed   : > { %v27392_v43 = vmax.f32 %v32471_v41, %v5749_v51  ;;  %21143 = vmatpush3.bf16.msra.mxu1 %v23657_v35  ;;  %16150 = vmatprep.mubr.bf16.mxu1 %v6562_v27  ;;  %v23141_v48 = vpop.f32.mrb[248].mxu0  ;;  %v32477_v35 = vmax.f32 %v32475_v44, %v32476_v39  ;;  %v32480_v41 = vld [vmem:[#allocation63_spill] sm:$0xff]  ;;  %v32481_v27 = vld [vmem:[#allocation201_spill] sm:$0xff] }
 0x4ee   : > { %v5754_v3 = vmax.f32 %v32473_v17, %v23141_v48  ;;  %v5249_v19 = vpop.f32.mrb[249].mxu0  ;;  %21144 = vmatprep.subr.bf16.mxu1 %v23659_v0  ;;  %v32482_v48 = vmax.f32 %v32480_v41, %v32481_v27  ;;  %v32483_v0 = vld [vmem:[#allocation323_spill] sm:$0xff]  ;;  %v23671_v27 = vld [vmem:[%s31445_s3 + $0x2e0] sm:$0xff]  }
 0x4ef   : > { %32472 = vst [vmem:[#allocation17_spill] sm:$0xff] %v27392_v43  ;;  %v5752_v51 = vmax.f32 %v32474_v30, %v5249_v19  ;;  %v23142_v37 = vpop.f32.mrb[250].mxu0  ;;  %v23665_v19 = vld [vmem:[%s31445_s3 + $0x290] sm:$0xff]   ;;  %v32484_v30 = vld [vmem:[#allocation64_spill] sm:$0xff]  ;;  %v32489_v39 = vld [vmem:[#allocation203_spill] sm:$0xff] }
 0x4f0   : > { %v27405_v53 = vmax.f32 %v32477_v35, %v5754_v3  ;;  %v5755_v46 = vmax.f32 %v32479_v23, %v23142_v37  ;;  %v5252_v32 = vpop.f32.mrb[251].mxu0  ;;  %v32486_v58 = vmax.f32 %v32484_v30, %v32485_v63  ;;  %v23667_v3 = vld [vmem:[%s31445_s3 + $0x2d8] sm:$0xff]   ;;  %v32493_v30 = vld [vmem:[#allocation66_spill] sm:$0xff] }
 0x4f1   : > { %v5896_v17 = vmax.f32 %v32482_v48, %v5752_v51  ;;  %v5753_v25 = vmax.f32 %v32483_v0, %v5252_v32  ;;  %21145 = vmatpush3.bf16.msra.mxu1 %v23661_v47  ;;  %v32488_v51 = vld [vmem:[#allocation65_spill] sm:$0xff] }
 0x4f2   : > { %32478 = vst [vmem:[#allocation155_spill] sm:$0xff] %v27405_v53  ;;  %v27418_v44 = vmax.f32 %v32486_v58, %v5755_v46  ;;  %21146 = vmatprep.subr.bf16.mxu1 %v23663_v33  ;;  %v32490_v35 = vmax.f32 %v32488_v51, %v32489_v39  ;;  %v23669_v58 = vld [vmem:[%s31445_s3 + $0x298] sm:$0xff]   ;;  %v32491_v33 = vld [vmem:[#allocation324_spill] sm:$0xff]  ;;  %v32492_v48 = vld [vmem:[#allocation325_spill] sm:$0xff] }
 0x4f3   : > { %v6047_v37 = vadd.f32 %v27339_v4, %v5896_v17  ;;  %v32498_v53 = vld [vmem:[#allocation67_spill] sm:$0xff] }
 0x4f4   : > { %32487 = vst [vmem:[#allocation276_spill] sm:$0xff] %v27418_v44  ;;  %v5897_v47 = vmax.f32 %v32490_v35, %v5753_v25  ;;  %v32497_v35 = vld [vmem:[#allocation326_spill] sm:$0xff]  ;;  %v32501_v44 = vld [vmem:[#allocation327_spill] sm:$0xff] }
 0x4f5   : > { %21147 = vmatpush3.bf16.msra.mxu1 %v23665_v19  ;;  %v23145_v32 = vpop.f32.mrb[252].mxu0  ;;  %v6191_v63 = vmax.f32 %v6047_v37, 0.0  ;;  %v32494_v19 = vld [vmem:[#allocation204_spill] sm:$0xff] }
 0x4f6   : > { %v6048_v23 = vadd.f32 %v27339_v4, %v5897_v47  ;;  %v5758_v46 = vmax.f32 %v32491_v33, %v23145_v32  ;;  %v5265_v41 = vpop.f32.mrb[253].mxu0  ;;  %21148 = vmatprep.subr.bf16.mxu1 %v23667_v3  ;;  %v32495_v51 = vmax.f32 %v32493_v30, %v32494_v19  ;;  %v32499_v32 = vld [vmem:[#allocation205_spill] sm:$0xff] }
 0x4f7   : > { %v5756_v17 = vmax.f32 %v32492_v48, %v5265_v41  ;;  %v23146_v25 = vpop.f32.mrb[254].mxu0  ;;  %v32500_v33 = vmax.f32 %v32498_v53, %v32499_v32  ;;  %v6623_v41 = vpack.c.bf16 %v6191_v63, %v6191_v63  ;;  %v32502_v48 = vld [vmem:[#allocation68_spill] sm:$0xff]  ;;  %v23675_v53 = vld [vmem:[%s31445_s3 + $0x2e8] sm:$0xff]  }
 0x4f8   : > { %v6192_v0 = vmax.f32 %v6048_v23, 0.0  ;;  %v27439_v39 = vmax.f32 %v32495_v51, %v5758_v46  ;;  %v5759_v47 = vmax.f32 %v32497_v35, %v23146_v25  ;;  %v5268_v37 = vpop.f32.mrb[255].mxu0  ;;  %v23673_v23 = vld [vmem:[%s31445_s3 + $0x2a0] sm:$0xff]   ;;  %v32503_v25 = vld [vmem:[#allocation206_spill] sm:$0xff] }
 0x4f9   : > { %v27445_v3 = vmax.f32 %v32500_v33, %v5756_v17  ;;  %v5757_v43 = vmax.f32 %v32501_v44, %v5268_v37  ;;  %21149 = vmatpush3.bf16.msra.mxu1 %v23669_v58  ;;  %v23674_v46 = vld [vmem:[%s31445_s3 + $0x1300] sm:$0xff]   ;;  %v32504_v30 = vmax.f32 %v32502_v48, %v32503_v25  ;;  %v23676_v44 = vld [vmem:[%s31445_s3 + $0x1348] sm:$0xff]   ;;  %v32507_v17 = vld [vmem:[#allocation207_spill] sm:$0xff] }
 0x4fa   : > { %32496 = vst [vmem:[#allocation277_spill] sm:$0xff] %v27439_v39  ;;  %v6624_v13 = vpack.c.bf16 %v6192_v0, %v6192_v0  ;;  %21150 = vmatprep.subr.bf16.mxu1 %v23671_v27  ;;  %v32506_v58 = vld [vmem:[#allocation69_spill] sm:$0xff]  ;;  %v32509_v37 = vld [vmem:[#allocation328_spill] sm:$0xff]  ;;  %v32511_v25 = vld [vmem:[#allocation70_spill] sm:$0xff] }
 0x4fb   : > { %v27457_v19 = vmax.f32 %v32504_v30, %v5759_v47  ;;  %v32508_v0 = vmax.f32 %v32506_v58, %v32507_v17  ;;  %v23677_v27 = vld [vmem:[%s31445_s3 + $0x2a8] sm:$0xff]   ;;  %v32512_v30 = vld [vmem:[#allocation208_spill] sm:$0xff] }
 0x4fc   : > { %17390 = vmatprep.mubr.bf16.mxu0 %v6624_v13  ;;  %v23678_v47 = vld [vmem:[%s31445_s3 + $0x1308] sm:$0xff]   ;;  %v23679_v13 = vld [vmem:[%s31445_s3 + $0x2f0] sm:$0xff]   ;;  %v32513_v58 = vmax.f32 %v32511_v25, %v32512_v30 }
 0x4fd   : > { %32505 = vst [vmem:[#allocation18_spill] sm:$0xff] %v27457_v19  ;;  %v5901_v51 = vmax.f32 %v32508_v0, %v5757_v43  ;;  %17391 = vmatmul.mubr.bf16.vlgmr.msra.gmra.mrb[64].mxu0 %v6623_v41  ;;  %21151 = vmatpush3.bf16.msra.mxu1 %v23673_v23  ;;  %v23149_v35 = vpop.f32.mrb[0].mxu0  ;;  %v23680_v43 = vld [vmem:[%s31445_s3 + $0x1350] sm:$0xff]   ;;  %v32510_v23 = vld [vmem:[#allocation329_spill] sm:$0xff]  ;;  %v32519_v19 = vld [vmem:[#allocation331_spill] sm:$0xff] }
 0x4fe   : > { %21869 = vmatpush3.bf16.msra.mxu0 %v23674_v46  ;;  %v5762_v32 = vmax.f32 %v32509_v37, %v23149_v35  ;;  %v5281_v33 = vpop.f32.mrb[1].mxu0  ;;  %21152 = vmatprep.subr.bf16.mxu1 %v23675_v53  ;;  %v32515_v0 = vld [vmem:[#allocation330_spill] sm:$0xff]  ;;  %v32517_v35 = vld [vmem:[#allocation209_spill] sm:$0xff] }
 0x4ff   : > { %v6052_v63 = vadd.f32 %v27339_v4, %v5901_v51  ;;  %21870 = vmatprep.subr.bf16.mxu0 %v23676_v44  ;;  %v5760_v46 = vmax.f32 %v32510_v23, %v5281_v33  ;;  %v23150_v41 = vpop.f32.mrb[2].mxu0  ;;  %v32516_v51 = vld [vmem:[#allocation71_spill] sm:$0xff]  ;;  %v5985_v23 = vadd.f32 %v27339_v4, %v26769_v55  ;;  %v32521_v25 = vld [vmem:[#allocation210_spill] sm:$0xff] }
 0x500   : > { %v27486_v17 = vmax.f32 %v32513_v58, %v5762_v32  ;;  %v5763_v53 = vmax.f32 %v32515_v0, %v23150_v41  ;;  %v5284_v44 = vpop.f32.mrb[3].mxu0  ;;  %v32518_v37 = vmax.f32 %v32516_v51, %v32517_v35  ;;  %v23682_v32 = vld [vmem:[%s31445_s3 + $0x1310] sm:$0xff]   ;;  %v32520_v41 = vld [vmem:[#allocation72_spill] sm:$0xff]  ;;  %v32525_v55 = vld [vmem:[#allocation211_spill] sm:$0xff] }
 0x501   : > { %v6196_v48 = vmax.f32 %v6052_v63, 0.0  ;;  %v5761_v60 = vmax.f32 %v32519_v19, %v5284_v44  ;;  %21153 = vmatpush3.bf16.msra.mxu1 %v23677_v27  ;;  %v23681_v63 = vld [vmem:[%s31445_s3 + $0x2b0] sm:$0xff]   ;;  %v23683_v19 = vld [vmem:[%s31445_s3 + $0x2f8] sm:$0xff]   ;;  %v6129_v44 = vmax.f32 %v5985_v23, 0.0  ;;  %v32527_v51 = vld [vmem:[#allocation332_spill] sm:$0xff] }
 0x502   : > { %32514 = vst [vmem:[#allocation156_spill] sm:$0xff] %v27486_v17  ;;  %v27492_v39 = vmax.f32 %v32518_v37, %v5760_v46  ;;  %21871 = vmatpush3.bf16.msra.mxu0 %v23678_v47  ;;  %v32522_v46 = vmax.f32 %v32520_v41, %v32521_v25  ;;  %21154 = vmatprep.subr.bf16.mxu1 %v23679_v13  ;;  %v23684_v27 = vld [vmem:[%s31445_s3 + $0x1358] sm:$0xff]   ;;  %v23688_v37 = vld [vmem:[%s31445_s3 + $0x1360] sm:$0xff]   ;;  %v32529_v25 = vld [vmem:[#allocation74_spill] sm:$0xff] }
 0x503   : > { %v6628_v33 = vpack.c.bf16 %v6196_v48, %v6196_v48  ;;  %21872 = vmatprep.subr.bf16.mxu0 %v23680_v43  ;;  %v5988_v47 = vadd.f32 %v27339_v4, %v26848_v61  ;;  %v32524_v48 = vld [vmem:[#allocation73_spill] sm:$0xff]  ;;  %v23685_v43 = vld [vmem:[%s31445_s3 + $0x2b8] sm:$0xff]  }
 0x504   : > { %v27506_v30 = vmax.f32 %v32522_v46, %v5763_v53  ;;  %v32526_v58 = vmax.f32 %v32524_v48, %v32525_v55  ;;  %v23686_v53 = vld [vmem:[%s31445_s3 + $0x1318] sm:$0xff]   ;;  %v32530_v46 = vld [vmem:[#allocation212_spill] sm:$0xff]  ;;  %v32533_v55 = vld [vmem:[#allocation334_spill] sm:$0xff] }
 0x505   : > { %17470 = vmatprep.mubr.bf16.mxu0 %v6628_v33  ;;  %21155 = vmatpush3.bf16.msra.mxu1 %v23681_v63  ;;  %v23153_v13 = vpop.f32.mrb[4].mxu0  ;;  %v32528_v33 = vld [vmem:[#allocation333_spill] sm:$0xff]  ;;  %v6132_v41 = vmax.f32 %v5988_v47, 0.0  ;;  %v32531_v23 = vmax.f32 %v32529_v25, %v32530_v46  ;;  %v23689_v47 = vld [vmem:[%s31445_s3 + $0x300] sm:$0xff]  }
 0x506   : > { %32523 = vst [vmem:[#allocation278_spill] sm:$0xff] %v27506_v30  ;;  %v27519_v0 = vmax.f32 %v32526_v58, %v5761_v60  ;;  %21873 = vmatpush3.bf16.msra.mxu0 %v23682_v32  ;;  %v5766_v61 = vmax.f32 %v32527_v51, %v23153_v13  ;;  %v5297_v35 = vpop.f32.mrb[5].mxu0  ;;  %21156 = vmatprep.subr.bf16.mxu1 %v23683_v19  ;;  %v23687_v60 = vld [vmem:[%s31445_s3 + $0x340] sm:$0xff]   ;;  %v32534_v58 = vld [vmem:[#allocation75_spill] sm:$0xff]  ;;  %v32535_v13 = vld [vmem:[#allocation213_spill] sm:$0xff] }
 0x507   : > { %21874 = vmatprep.subr.bf16.mxu0 %v23684_v27  ;;  %v5764_v63 = vmax.f32 %v32528_v33, %v5297_v35  ;;  %v23154_v32 = vpop.f32.mrb[6].mxu0  ;;  %v32536_v51 = vmax.f32 %v32534_v58, %v32535_v13  ;;  %v32537_v30 = vld [vmem:[#allocation335_spill] sm:$0xff]  ;;  %v6561_v35 = vpack.c.bf16 %v6129_v44, %v6129_v44  ;;  %v32538_v33 = vld [vmem:[#allocation76_spill] sm:$0xff]  ;;  %v6564_v44 = vpack.c.bf16 %v6132_v41, %v6132_v41  ;;  %v23695_v41 = vld [vmem:[%s31445_s3 + $0x350] sm:$0xff]  }
 0x508   : > { %v27538_v48 = vmax.f32 %v32531_v23, %v5766_v61  ;;  %v5767_v19 = vmax.f32 %v32533_v55, %v23154_v32  ;;  %v5300_v27 = vpop.f32.mrb[7].mxu0  ;;  %v32539_v61 = vld [vmem:[#allocation214_spill] sm:$0xff]  ;;  %v23692_v55 = vld [vmem:[%s31445_s3 + $0x1368] sm:$0xff]  }
 0x509   : > { %v27544_v17 = vmax.f32 %v32536_v51, %v5764_v63  ;;  %v5765_v10 = vmax.f32 %v32537_v30, %v5300_v27  ;;  %21157 = vmatpush3.bf16.msra.mxu1 %v23685_v43  ;;  %v32540_v25 = vmax.f32 %v32538_v33, %v32539_v61  ;;  %v23690_v63 = vld [vmem:[%s31445_s3 + $0x1320] sm:$0xff]   ;;  %v23691_v30 = vld [vmem:[%s31445_s3 + $0x348] sm:$0xff]   ;;  %v32547_v33 = vld [vmem:[#allocation78_spill] sm:$0xff] }
 0x50a   : > { %32532 = vst [vmem:[#allocation19_spill] sm:$0xff] %v27538_v48  ;;  %21875 = vmatpush3.bf16.msra.mxu0 %v23686_v53  ;;  %21164 = vmatprep.subr.bf16.mxu1 %v23687_v60  ;;  %v32542_v43 = vld [vmem:[#allocation77_spill] sm:$0xff]  ;;  %v32543_v53 = vld [vmem:[#allocation215_spill] sm:$0xff]  ;;  %v32548_v61 = vld [vmem:[#allocation216_spill] sm:$0xff] }
 0x50b   : > { %v27553_v46 = vmax.f32 %v32540_v25, %v5767_v19  ;;  %21876 = vmatprep.subr.bf16.mxu0 %v23688_v37  ;;  %v32544_v32 = vmax.f32 %v32542_v43, %v32543_v53  ;;  %v23693_v37 = vld [vmem:[%s31445_s3 + $0x308] sm:$0xff]   ;;  %v32545_v19 = vld [vmem:[#allocation336_spill] sm:$0xff]  ;;  %v32549_v25 = vmax.f32 %v32547_v33, %v32548_v61 }
 0x50c   : > { %16151 = vmatmul.mubr.bf16.vlgmr.msra.gmra.mrb[20].mxu1 %v6561_v35  ;;  %v32546_v13 = vld [vmem:[#allocation337_spill] sm:$0xff]  ;;  %v23696_v35 = vld [vmem:[%s31445_s3 + $0x1370] sm:$0xff]   ;;  %v32556_v48 = vld [vmem:[#allocation80_spill] sm:$0xff] }
 0x50d   : > { %32541 = vst [vmem:[#allocation157_spill] sm:$0xff] %v27553_v46  ;;  %v27564_v23 = vmax.f32 %v32544_v32, %v5765_v10  ;;  %21165 = vmatpush3.bf16.msra.mxu1 %v23689_v47  ;;  %16190 = vmatprep.mubr.bf16.mxu1 %v6564_v44  ;;  %v23157_v60 = vpop.f32.mrb[8].mxu0  ;;  %v23694_v10 = vld [vmem:[%s31445_s3 + $0x1328] sm:$0xff]   ;;  %v32552_v32 = vld [vmem:[#allocation79_spill] sm:$0xff]  ;;  %v32557_v46 = vld [vmem:[#allocation218_spill] sm:$0xff] }
 0x50e   : > { %21877 = vmatpush3.bf16.msra.mxu0 %v23690_v63  ;;  %v5770_v27 = vmax.f32 %v32545_v19, %v23157_v60  ;;  %v5313_v58 = vpop.f32.mrb[9].mxu0  ;;  %21166 = vmatprep.subr.bf16.mxu1 %v23691_v30  ;;  %v32551_v30 = vld [vmem:[#allocation338_spill] sm:$0xff]  ;;  %v32553_v44 = vld [vmem:[#allocation217_spill] sm:$0xff]  ;;  %v32558_v33 = vmax.f32 %v32556_v48, %v32557_v46  ;;  %v23700_v48 = vld [vmem:[%s31445_s3 + $0x1378] sm:$0xff]   ;;  %v6056_v46 = vadd.f32 %v27339_v4, %v27519_v0 }
 0x50f   : > { %v5768_v51 = vmax.f32 %v32546_v13, %v5313_v58  ;;  %v23158_v47 = vpop.f32.mrb[10].mxu0  ;;  %21878 = vmatprep.subr.bf16.mxu0 %v23692_v55  ;;  %v32554_v60 = vmax.f32 %v32552_v32, %v32553_v44  ;;  %v32555_v58 = vld [vmem:[#allocation339_spill] sm:$0xff]  ;;  %v23697_v55 = vld [vmem:[%s31445_s3 + $0x310] sm:$0xff]   ;;  %v32560_v61 = vld [vmem:[#allocation81_spill] sm:$0xff] }
 0x510   : > { %v27586_v63 = vmax.f32 %v32549_v25, %v5770_v27  ;;  %v5771_v43 = vmax.f32 %v32551_v30, %v23158_v47  ;;  %v5316_v53 = vpop.f32.mrb[11].mxu0  ;;  %v23698_v47 = vld [vmem:[%s31445_s3 + $0x1330] sm:$0xff]   ;;  %v32561_v25 = vld [vmem:[#allocation219_spill] sm:$0xff]  ;;  %v23703_v44 = vld [vmem:[%s31445_s3 + $0x360] sm:$0xff]  }
 0x511   : > { %v27592_v19 = vmax.f32 %v32554_v60, %v5768_v51  ;;  %v5769_v13 = vmax.f32 %v32555_v58, %v5316_v53  ;;  %21167 = vmatpush3.bf16.msra.mxu1 %v23693_v37  ;;  %v23699_v51 = vld [vmem:[%s31445_s3 + $0x358] sm:$0xff]   ;;  %v6051_v37 = vadd.f32 %v27339_v4, %v27445_v3  ;;  %v32562_v30 = vmax.f32 %v32560_v61, %v32561_v25  ;;  %v32563_v3 = vld [vmem:[#allocation340_spill] sm:$0xff]  ;;  %v32564_v60 = vld [vmem:[#allocation341_spill] sm:$0xff] }
 0x512   : > { %32550 = vst [vmem:[#allocation279_spill] sm:$0xff] %v27586_v63  ;;  %v27601_v27 = vmax.f32 %v32558_v33, %v5771_v43  ;;  %21879 = vmatpush3.bf16.msra.mxu0 %v23694_v10  ;;  %21168 = vmatprep.subr.bf16.mxu1 %v23695_v41  ;;  %v23701_v41 = vld [vmem:[%s31445_s3 + $0x318] sm:$0xff]   ;;  %v32565_v33 = vld [vmem:[#allocation82_spill] sm:$0xff] }
 0x513   : > { %v27614_v53 = vmax.f32 %v32562_v30, %v5769_v13  ;;  %21880 = vmatprep.subr.bf16.mxu0 %v23696_v35  ;;  %v23702_v35 = vld [vmem:[%s31445_s3 + $0x1338] sm:$0xff]   ;;  %v6195_v0 = vmax.f32 %v6051_v37, 0.0  ;;  %v32569_v25 = vld [vmem:[#allocation342_spill] sm:$0xff] }
 0x514   : > { %32559 = vst [vmem:[#allocation20_spill] sm:$0xff] %v27601_v27  ;;  %v32570_v63 = vld [vmem:[#allocation83_spill] sm:$0xff]  ;;  %v32571_v27 = vld [vmem:[#allocation221_spill] sm:$0xff] }
 0x515   : > { %21169 = vmatpush3.bf16.msra.mxu1 %v23697_v55  ;;  %v23161_v10 = vpop.f32.mrb[12].mxu0  ;;  %v23704_v55 = vld [vmem:[%s31445_s3 + $0x1440] sm:$0xff]   ;;  %v32572_v37 = vmax.f32 %v32570_v63, %v32571_v27  ;;  %v6627_v27 = vpack.c.bf16 %v6195_v0, %v6195_v0  ;;  %v23709_v0 = vld [vmem:[%s31445_s3 + $0x328] sm:$0xff]  }
 0x516   : > { %21881 = vmatpush3.bf16.msra.mxu0 %v23698_v47  ;;  %v5774_v43 = vmax.f32 %v32563_v3, %v23161_v10  ;;  %v5329_v32 = vpop.f32.mrb[13].mxu0  ;;  %21170 = vmatprep.subr.bf16.mxu1 %v23699_v51  ;;  %v32566_v47 = vld [vmem:[#allocation220_spill] sm:$0xff]  ;;  %v6200_v3 = vmax.f32 %v6056_v46, 0.0  ;;  %v32578_v46 = vld [vmem:[#allocation85_spill] sm:$0xff] }
 0x517   : > { %v5772_v58 = vmax.f32 %v32564_v60, %v5329_v32  ;;  %v23162_v13 = vpop.f32.mrb[14].mxu0  ;;  %21882 = vmatprep.subr.bf16.mxu0 %v23700_v48  ;;  %v32567_v51 = vmax.f32 %v32565_v33, %v32566_v47  ;;  %v32573_v32 = vld [vmem:[#allocation343_spill] sm:$0xff]  ;;  %v23705_v60 = vld [vmem:[%s31445_s3 + $0x320] sm:$0xff]   ;;  %v32575_v33 = vld [vmem:[#allocation222_spill] sm:$0xff] }
 0x518   : > { %v5775_v30 = vmax.f32 %v32569_v25, %v23162_v13  ;;  %v5332_v10 = vpop.f32.mrb[15].mxu0  ;;  %v23706_v63 = vld [vmem:[%s31445_s3 + $0x1400] sm:$0xff]  }
 0x519   : > { %v27638_v61 = vmax.f32 %v32567_v51, %v5774_v43  ;;  %v27644_v52 = vmax.f32 %v32572_v37, %v5772_v58  ;;  %v5773_v48 = vmax.f32 %v32573_v32, %v5332_v10  ;;  %21171 = vmatpush3.bf16.msra.mxu1 %v23701_v41  ;;  %v32576_v43 = vmax.f32 %v32574_v5, %v32575_v33  ;;  %v32579_v58 = vld [vmem:[#allocation223_spill] sm:$0xff]  ;;  %v23707_v51 = vld [vmem:[%s31445_s3 + $0x368] sm:$0xff]   ;;  %v32581_v25 = vld [vmem:[#allocation344_spill] sm:$0xff] }
 0x51a   : > { %21883 = vmatpush3.bf16.msra.mxu0 %v23702_v35  ;;  %21172 = vmatprep.subr.bf16.mxu1 %v23703_v44  ;;  %v32580_v13 = vmax.f32 %v32578_v46, %v32579_v58  ;;  %v23708_v5 = vld [vmem:[%s31445_s3 + $0x1448] sm:$0xff]   ;;  %v6632_v35 = vpack.c.bf16 %v6200_v3, %v6200_v3  ;;  %v23711_v3 = vld [vmem:[%s31445_s3 + $0x370] sm:$0xff]  }
 0x51b   : > { %32568 = vst [vmem:[#allocation158_spill] sm:$0xff] %v27638_v61  ;;  %v27653_v47 = vmax.f32 %v32576_v43, %v5775_v30  ;;  %21912 = vmatprep.subr.bf16.mxu0 %v23704_v55  ;;  %v23710_v10 = vld [vmem:[%s31445_s3 + $0x1408] sm:$0xff]   ;;  %v32583_v33 = vld [vmem:[#allocation86_spill] sm:$0xff]  ;;  %v32584_v43 = vld [vmem:[#allocation224_spill] sm:$0xff] }
 0x51c   : > { %v27661_v41 = vmax.f32 %v32580_v13, %v5773_v48  ;;  %v32582_v37 = vld [vmem:[#allocation345_spill] sm:$0xff]  ;;  %v32587_v46 = vld [vmem:[#allocation346_spill] sm:$0xff] }
 0x51d   : > { %32577 = vst [vmem:[#allocation21_spill] sm:$0xff] %v27653_v47  ;;  %17471 = vmatmul.mubr.bf16.vlgmr.msra.gmra.mrb[68].mxu0 %v6627_v27  ;;  %21173 = vmatpush3.bf16.msra.mxu1 %v23705_v60  ;;  %v23165_v44 = vpop.f32.mrb[16].mxu0  ;;  %v23712_v60 = vld [vmem:[%s31445_s3 + $0x1450] sm:$0xff]  }
 0x51e   : > { %21913 = vmatpush3.bf16.msra.mxu0 %v23706_v63  ;;  %17550 = vmatprep.mubr.bf16.mxu0 %v6632_v35  ;;  %v5778_v55 = vmax.f32 %v32581_v25, %v23165_v44  ;;  %v5345_v30 = vpop.f32.mrb[17].mxu0  ;;  %v32585_v63 = vmax.f32 %v32583_v33, %v32584_v43  ;;  %v32588_v35 = vld [vmem:[#allocation87_spill] sm:$0xff]  ;;  %v32589_v44 = vld [vmem:[#allocation225_spill] sm:$0xff]  ;;  %v32593_v33 = vld [vmem:[#allocation226_spill] sm:$0xff] }
 0x51f   : > { %v5776_v32 = vmax.f32 %v32582_v37, %v5345_v30  ;;  %v23166_v48 = vpop.f32.mrb[18].mxu0  ;;  %21174 = vmatprep.subr.bf16.mxu1 %v23707_v51  ;;  %21914 = vmatprep.subr.bf16.mxu0 %v23708_v5  ;;  %v32590_v25 = vmax.f32 %v32588_v35, %v32589_v44  ;;  %v32591_v30 = vld [vmem:[#allocation347_spill] sm:$0xff]  ;;  %v23713_v5 = vld [vmem:[%s31445_s3 + $0x330] sm:$0xff]   ;;  %v5987_v37 = vadd.f32 %v27339_v4, %v26830_v31 }
 0x520   : > { %v27686_v27 = vmax.f32 %v32585_v63, %v5778_v55  ;;  %v5779_v58 = vmax.f32 %v32587_v46, %v23166_v48  ;;  %v5348_v13 = vpop.f32.mrb[19].mxu0  ;;  %v32592_v55 = vld [vmem:[#allocation88_spill] sm:$0xff]  ;;  %v5990_v63 = vadd.f32 %v27339_v4, %v26836_v49  ;;  %v32596_v46 = vld [vmem:[#allocation89_spill] sm:$0xff]  ;;  %v32597_v31 = vld [vmem:[#allocation227_spill] sm:$0xff] }
 0x521   : > { %v27692_v61 = vmax.f32 %v32590_v25, %v5776_v32  ;;  %v5777_v51 = vmax.f32 %v32591_v30, %v5348_v13  ;;  %21175 = vmatpush3.bf16.msra.mxu1 %v23709_v0  ;;  %v32594_v43 = vmax.f32 %v32592_v55, %v32593_v33  ;;  %v23714_v32 = vld [vmem:[%s31445_s3 + $0x1410] sm:$0xff]   ;;  %v23715_v0 = vld [vmem:[%s31445_s3 + $0x378] sm:$0xff]   ;;  %v32598_v13 = vmax.f32 %v32596_v46, %v32597_v31  ;;  %v32599_v25 = vld [vmem:[#allocation348_spill] sm:$0xff] }
 0x522   : > { %32586 = vst [vmem:[#allocation159_spill] sm:$0xff] %v27686_v27  ;;  %21915 = vmatpush3.bf16.msra.mxu0 %v23710_v10  ;;  %21176 = vmatprep.subr.bf16.mxu1 %v23711_v3  ;;  %v23716_v10 = vld [vmem:[%s31445_s3 + $0x1458] sm:$0xff]   ;;  %v6131_v44 = vmax.f32 %v5987_v37, 0.0  ;;  %v23720_v37 = vld [vmem:[%s31445_s3 + $0x1460] sm:$0xff]  }
 0x523   : > { %v27703_v48 = vmax.f32 %v32594_v43, %v5779_v58  ;;  %v27716_v35 = vmax.f32 %v32598_v13, %v5777_v51  ;;  %21916 = vmatprep.subr.bf16.mxu0 %v23712_v60  ;;  %v23717_v58 = vld [vmem:[%s31445_s3 + $0x338] sm:$0xff]   ;;  %v23719_v51 = vld [vmem:[%s31445_s3 + $0x3c0] sm:$0xff]   ;;  %v6134_v43 = vmax.f32 %v5990_v63, 0.0  ;;  %v32605_v13 = vld [vmem:[#allocation350_spill] sm:$0xff] }
 0x524   : > { %v23718_v60 = vld [vmem:[%s31445_s3 + $0x1418] sm:$0xff]   ;;  %v32602_v46 = vld [vmem:[#allocation228_spill] sm:$0xff] }
 0x525   : > { %32595 = vst [vmem:[#allocation280_spill] sm:$0xff] %v27703_v48  ;;  %21177 = vmatpush3.bf16.msra.mxu1 %v23713_v5  ;;  %v23169_v3 = vpop.f32.mrb[20].mxu0  ;;  %v32600_v5 = vld [vmem:[#allocation349_spill] sm:$0xff]  ;;  %v32606_v27 = vld [vmem:[#allocation91_spill] sm:$0xff]  ;;  %v23721_v63 = vld [vmem:[%s31445_s3 + $0x380] sm:$0xff]  }
 0x526   : > { %21917 = vmatpush3.bf16.msra.mxu0 %v23714_v32  ;;  %v5782_v49 = vmax.f32 %v32599_v25, %v23169_v3  ;;  %v5361_v30 = vpop.f32.mrb[21].mxu0  ;;  %21178 = vmatprep.subr.bf16.mxu1 %v23715_v0  ;;  %v32601_v32 = vld [vmem:[#allocation90_spill] sm:$0xff]  ;;  %v32607_v48 = vld [vmem:[#allocation229_spill] sm:$0xff] }
 0x527   : > { %v5780_v55 = vmax.f32 %v32600_v5, %v5361_v30  ;;  %v23170_v33 = vpop.f32.mrb[22].mxu0  ;;  %21918 = vmatprep.subr.bf16.mxu0 %v23716_v10  ;;  %v32603_v0 = vmax.f32 %v32601_v32, %v32602_v46  ;;  %v32608_v47 = vmax.f32 %v32606_v27, %v32607_v48  ;;  %v32609_v30 = vld [vmem:[#allocation351_spill] sm:$0xff]  ;;  %v6563_v5 = vpack.c.bf16 %v6131_v44, %v6131_v44  ;;  %v32611_v32 = vld [vmem:[#allocation230_spill] sm:$0xff]  ;;  %v23723_v27 = vld [vmem:[%s31445_s3 + $0x3c8] sm:$0xff]  }
 0x528   : > { %v5783_v3 = vmax.f32 %v32605_v13, %v23170_v33  ;;  %v5364_v25 = vpop.f32.mrb[23].mxu0  ;;  %v32614_v48 = vld [vmem:[#allocation93_spill] sm:$0xff]  ;;  %v6566_v44 = vpack.c.bf16 %v6134_v43, %v6134_v43  ;;  %v23727_v43 = vld [vmem:[%s31445_s3 + $0x3d0] sm:$0xff]  }
 0x529   : > { %v27738_v31 = vmax.f32 %v32603_v0, %v5782_v49  ;;  %v27744_v38 = vmax.f32 %v32608_v47, %v5780_v55  ;;  %v5781_v10 = vmax.f32 %v32609_v30, %v5364_v25  ;;  %21179 = vmatpush3.bf16.msra.mxu1 %v23717_v58  ;;  %v32612_v49 = vmax.f32 %v32610_v62, %v32611_v32  ;;  %v23722_v47 = vld [vmem:[%s31445_s3 + $0x1420] sm:$0xff]   ;;  %v32615_v58 = vld [vmem:[#allocation231_spill] sm:$0xff]  ;;  %v23724_v62 = vld [vmem:[%s31445_s3 + $0x1468] sm:$0xff]  }
 0x52a   : > { %21919 = vmatpush3.bf16.msra.mxu0 %v23718_v60  ;;  %21186 = vmatprep.subr.bf16.mxu1 %v23719_v51  ;;  %v32616_v55 = vmax.f32 %v32614_v48, %v32615_v58  ;;  %v23725_v51 = vld [vmem:[%s31445_s3 + $0x388] sm:$0xff]   ;;  %v32617_v0 = vld [vmem:[#allocation352_spill] sm:$0xff] }
 0x52b   : > { %32604 = vst [vmem:[#allocation281_spill] sm:$0xff] %v27738_v31  ;;  %v27753_v46 = vmax.f32 %v32612_v49, %v5783_v3  ;;  %21920 = vmatprep.subr.bf16.mxu0 %v23720_v37  ;;  %v23726_v37 = vld [vmem:[%s31445_s3 + $0x1428] sm:$0xff]   ;;  %v32620_v32 = vld [vmem:[#allocation232_spill] sm:$0xff] }
 0x52c   : > { %v27764_v33 = vmax.f32 %v32616_v55, %v5781_v10  ;;  %16191 = vmatmul.mubr.bf16.vlgmr.msra.gmra.mrb[24].mxu1 %v6563_v5  ;;  %v32618_v25 = vld [vmem:[#allocation353_spill] sm:$0xff]  ;;  %v32619_v5 = vld [vmem:[#allocation94_spill] sm:$0xff]  ;;  %v32624_v55 = vld [vmem:[#allocation95_spill] sm:$0xff] }
 0x52d   : > { %32613 = vst [vmem:[#allocation22_spill] sm:$0xff] %v27753_v46  ;;  %21187 = vmatpush3.bf16.msra.mxu1 %v23721_v63  ;;  %16230 = vmatprep.mubr.bf16.mxu1 %v6566_v44  ;;  %v23173_v60 = vpop.f32.mrb[24].mxu0  ;;  %v23728_v63 = vld [vmem:[%s31445_s3 + $0x1470] sm:$0xff]   ;;  %v32621_v49 = vmax.f32 %v32619_v5, %v32620_v32  ;;  %v32625_v44 = vld [vmem:[#allocation233_spill] sm:$0xff]  ;;  %v32628_v31 = vld [vmem:[#allocation96_spill] sm:$0xff] }
 0x52e   : > { %21921 = vmatpush3.bf16.msra.mxu0 %v23722_v47  ;;  %v5786_v13 = vmax.f32 %v32617_v0, %v23173_v60  ;;  %v5377_v3 = vpop.f32.mrb[25].mxu0  ;;  %21188 = vmatprep.subr.bf16.mxu1 %v23723_v27  ;;  %v32623_v27 = vld [vmem:[#allocation354_spill] sm:$0xff]  ;;  %v32626_v60 = vmax.f32 %v32624_v55, %v32625_v44  ;;  %v32632_v32 = vld [vmem:[#allocation97_spill] sm:$0xff]  ;;  %v23735_v44 = vld [vmem:[%s31445_s3 + $0x3e0] sm:$0xff]  }
 0x52f   : > { %v5784_v30 = vmax.f32 %v32618_v25, %v5377_v3  ;;  %v23174_v10 = vpop.f32.mrb[26].mxu0  ;;  %21922 = vmatprep.subr.bf16.mxu0 %v23724_v62  ;;  %v32627_v3 = vld [vmem:[#allocation355_spill] sm:$0xff]  ;;  %v23729_v62 = vld [vmem:[%s31445_s3 + $0x390] sm:$0xff]  }
 0x530   : > { %v27786_v47 = vmax.f32 %v32621_v49, %v5786_v13  ;;  %v5787_v48 = vmax.f32 %v32623_v27, %v23174_v10  ;;  %v5380_v58 = vpop.f32.mrb[27].mxu0  ;;  %v32629_v46 = vld [vmem:[#allocation234_spill] sm:$0xff]  ;;  %v32633_v49 = vld [vmem:[#allocation235_spill] sm:$0xff] }
 0x531   : > { %v27792_v0 = vmax.f32 %v32626_v60, %v5784_v30  ;;  %v5785_v25 = vmax.f32 %v32627_v3, %v5380_v58  ;;  %21189 = vmatpush3.bf16.msra.mxu1 %v23725_v51  ;;  %v32630_v5 = vmax.f32 %v32628_v31, %v32629_v46  ;;  %v23730_v10 = vld [vmem:[%s31445_s3 + $0x1430] sm:$0xff]   ;;  %v23731_v30 = vld [vmem:[%s31445_s3 + $0x3d8] sm:$0xff]   ;;  %v6055_v51 = vadd.f32 %v27339_v4, %v27492_v39  ;;  %v32635_v39 = vld [vmem:[#allocation356_spill] sm:$0xff] }
 0x532   : > { %32622 = vst [vmem:[#allocation160_spill] sm:$0xff] %v27786_v47  ;;  %21923 = vmatpush3.bf16.msra.mxu0 %v23726_v37  ;;  %21190 = vmatprep.subr.bf16.mxu1 %v23727_v43  ;;  %v32634_v27 = vmax.f32 %v32632_v32, %v32633_v49  ;;  %v23732_v31 = vld [vmem:[%s31445_s3 + $0x1478] sm:$0xff]   ;;  %v6060_v46 = vadd.f32 %v27339_v4, %v27564_v23  ;;  %v32636_v60 = vld [vmem:[#allocation357_spill] sm:$0xff]  ;;  %v32641_v49 = vld [vmem:[#allocation358_spill] sm:$0xff] }
 0x533   : > { %v27801_v13 = vmax.f32 %v32630_v5, %v5787_v48  ;;  %21924 = vmatprep.subr.bf16.mxu0 %v23728_v63  ;;  %v23733_v43 = vld [vmem:[%s31445_s3 + $0x398] sm:$0xff]   ;;  %v6199_v23 = vmax.f32 %v6055_v51, 0.0  ;;  %v32637_v5 = vld [vmem:[#allocation98_spill] sm:$0xff] }
 0x534   : > { %v27814_v58 = vmax.f32 %v32634_v27, %v5785_v25  ;;  %v23734_v63 = vld [vmem:[%s31445_s3 + $0x1438] sm:$0xff]  }
 0x535   : > { %32631 = vst [vmem:[#allocation282_spill] sm:$0xff] %v27801_v13  ;;  %21191 = vmatpush3.bf16.msra.mxu1 %v23729_v62  ;;  %v23177_v37 = vpop.f32.mrb[28].mxu0  ;;  %v23736_v62 = vld [vmem:[%s31445_s3 + $0x1540] sm:$0xff]   ;;  %v32642_v47 = vld [vmem:[#allocation99_spill] sm:$0xff]  ;;  %v32643_v13 = vld [vmem:[#allocation237_spill] sm:$0xff] }
 0x536   : > { %21925 = vmatpush3.bf16.msra.mxu0 %v23730_v10  ;;  %v5790_v48 = vmax.f32 %v32635_v39, %v23177_v37  ;;  %v5393_v55 = vpop.f32.mrb[29].mxu0  ;;  %21192 = vmatprep.subr.bf16.mxu1 %v23731_v30  ;;  %v32638_v10 = vld [vmem:[#allocation236_spill] sm:$0xff]  ;;  %v6204_v39 = vmax.f32 %v6060_v46, 0.0  ;;  %v32644_v51 = vmax.f32 %v32642_v47, %v32643_v13  ;;  %v6631_v13 = vpack.c.bf16 %v6199_v23, %v6199_v23  ;;  %v32650_v46 = vld [vmem:[#allocation101_spill] sm:$0xff] }
 0x537   : > { %v5788_v3 = vmax.f32 %v32636_v60, %v5393_v55  ;;  %v23178_v25 = vpop.f32.mrb[30].mxu0  ;;  %21926 = vmatprep.subr.bf16.mxu0 %v23732_v31  ;;  %v32639_v30 = vmax.f32 %v32637_v5, %v32638_v10  ;;  %v32645_v55 = vld [vmem:[#allocation359_spill] sm:$0xff]  ;;  %v23737_v60 = vld [vmem:[%s31445_s3 + $0x3a0] sm:$0xff]   ;;  %v32647_v5 = vld [vmem:[#allocation238_spill] sm:$0xff] }
 0x538   : > { %v5791_v27 = vmax.f32 %v32641_v49, %v23178_v25  ;;  %v5396_v37 = vpop.f32.mrb[31].mxu0  ;;  %v23738_v47 = vld [vmem:[%s31445_s3 + $0x1500] sm:$0xff]   ;;  %v23741_v23 = vld [vmem:[%s31445_s3 + $0x3a8] sm:$0xff]  }
 0x539   : > { %v27838_v32 = vmax.f32 %v32639_v30, %v5790_v48  ;;  %v27844_v59 = vmax.f32 %v32644_v51, %v5788_v3  ;;  %v5789_v31 = vmax.f32 %v32645_v55, %v5396_v37  ;;  %21193 = vmatpush3.bf16.msra.mxu1 %v23733_v43  ;;  %v32648_v48 = vmax.f32 %v32646_v28, %v32647_v5  ;;  %v32651_v3 = vld [vmem:[#allocation239_spill] sm:$0xff]  ;;  %v23739_v30 = vld [vmem:[%s31445_s3 + $0x3e8] sm:$0xff]   ;;  %v32653_v49 = vld [vmem:[#allocation360_spill] sm:$0xff] }
 0x53a   : > { %21927 = vmatpush3.bf16.msra.mxu0 %v23734_v63  ;;  %21194 = vmatprep.subr.bf16.mxu1 %v23735_v44  ;;  %v32652_v25 = vmax.f32 %v32650_v46, %v32651_v3  ;;  %v23740_v28 = vld [vmem:[%s31445_s3 + $0x1548] sm:$0xff]   ;;  %v6636_v63 = vpack.c.bf16 %v6204_v39, %v6204_v39  ;;  %v23743_v39 = vld [vmem:[%s31445_s3 + $0x3f0] sm:$0xff]  }
 0x53b   : > { %32640 = vst [vmem:[#allocation23_spill] sm:$0xff] %v27838_v32  ;;  %v27853_v10 = vmax.f32 %v32648_v48, %v5791_v27  ;;  %21956 = vmatprep.subr.bf16.mxu0 %v23736_v62  ;;  %v23742_v37 = vld [vmem:[%s31445_s3 + $0x1508] sm:$0xff]   ;;  %v23744_v5 = vld [vmem:[%s31445_s3 + $0x1550] sm:$0xff]  }
 0x53c   : > { %v27861_v43 = vmax.f32 %v32652_v25, %v5789_v31  ;;  %v32654_v51 = vld [vmem:[#allocation361_spill] sm:$0xff]  ;;  %v32655_v48 = vld [vmem:[#allocation102_spill] sm:$0xff] }
 0x53d   : > { %32649 = vst [vmem:[#allocation161_spill] sm:$0xff] %v27853_v10  ;;  %17551 = vmatmul.mubr.bf16.vlgmr.msra.gmra.mrb[72].mxu0 %v6631_v13  ;;  %21195 = vmatpush3.bf16.msra.mxu1 %v23737_v60  ;;  %v23181_v44 = vpop.f32.mrb[32].mxu0  ;;  %v32659_v3 = vld [vmem:[#allocation362_spill] sm:$0xff]  ;;  %v32661_v32 = vld [vmem:[#allocation241_spill] sm:$0xff] }
 0x53e   : > { %21957 = vmatpush3.bf16.msra.mxu0 %v23738_v47  ;;  %17630 = vmatprep.mubr.bf16.mxu0 %v6636_v63  ;;  %v5794_v62 = vmax.f32 %v32653_v49, %v23181_v44  ;;  %v5409_v27 = vpop.f32.mrb[33].mxu0  ;;  %v32656_v47 = vld [vmem:[#allocation240_spill] sm:$0xff]  ;;  %v32660_v49 = vld [vmem:[#allocation103_spill] sm:$0xff] }
 0x53f   : > { %v5792_v55 = vmax.f32 %v32654_v51, %v5409_v27  ;;  %v23182_v31 = vpop.f32.mrb[34].mxu0  ;;  %v21048_v60 = vpop.f32.mrb[0].mxu1  ;;  %21196 = vmatprep.subr.bf16.mxu1 %v23739_v30  ;;  %21958 = vmatprep.subr.bf16.mxu0 %v23740_v28  ;;  %v32657_v13 = vmax.f32 %v32655_v48, %v32656_v47  ;;  %v32662_v27 = vmax.f32 %v32660_v49, %v32661_v32  ;;  %v32663_v30 = vld [vmem:[#allocation363_spill] sm:$0xff]  ;;  %v32664_v48 = vld [vmem:[#allocation104_spill] sm:$0xff]  ;;  %v32665_v47 = vld [vmem:[#allocation242_spill] sm:$0xff] }
 0x540   : > { %v5795_v25 = vmax.f32 %v32659_v3, %v23182_v31  ;;  %v5412_v63 = vpop.f32.mrb[35].mxu0  ;;  %v21049_v44 = vpop.f32.mrb[1].mxu1  ;;  %v5989_v31 = vadd.f32 %v27339_v4, %v26821_v2  ;;  %v32668_v2 = vld [vmem:[#allocation105_spill] sm:$0xff] }
 0x541   : > { %v27886_v46 = vmax.f32 %v32657_v13, %v5794_v62  ;;  %v27892_v51 = vmax.f32 %v32662_v27, %v5792_v55  ;;  %v5793_v28 = vmax.f32 %v32663_v30, %v5412_v63  ;;  %v27895_v10 = vadd.f32 %v21049_v44, %v21048_v60  ;;  %21197 = vmatpush3.bf16.msra.mxu1 %v23741_v23  ;;  %v21051_v21 = vpop.f32.mrb[2].mxu1  ;;  %v23745_v62 = vld [vmem:[%s31445_s3 + $0x3b0] sm:$0xff]   ;;  %v32669_v60 = vld [vmem:[#allocation243_spill] sm:$0xff]  ;;  %v32671_v27 = vld [vmem:[#allocation364_spill] sm:$0xff] }
 0x542   : > { %v32666_v13 = vmax.f32 %v32664_v48, %v32665_v47  ;;  %21959 = vmatpush3.bf16.msra.mxu0 %v23742_v37  ;;  %v21052_v32 = vpop.f32.mrb[3].mxu1  ;;  %21198 = vmatprep.subr.bf16.mxu1 %v23743_v39  ;;  %v23746_v23 = vld [vmem:[%s31445_s3 + $0x1510] sm:$0xff]   ;;  %v23747_v21 = vld [vmem:[%s31445_s3 + $0x3f8] sm:$0xff]   ;;  %v5992_v55 = vadd.f32 %v27339_v4, %v26892_v16  ;;  %v32670_v63 = vmax.f32 %v32668_v2, %v32669_v60  ;;  %v6133_v49 = vmax.f32 %v5989_v31, 0.0  ;;  %v23752_v31 = vld [vmem:[%s31445_s3 + $0x1560] sm:$0xff]  }
 0x543   : > { %32658 = vst [vmem:[#allocation283_spill] sm:$0xff] %v27886_v46  ;;  %21960 = vmatprep.subr.bf16.mxu0 %v23744_v5  ;;  %v23748_v37 = vld [vmem:[%s31445_s3 + $0x1558] sm:$0xff]   ;;  %v32673_v32 = vld [vmem:[#allocation106_spill] sm:$0xff]  ;;  %v32679_v46 = vld [vmem:[#allocation245_spill] sm:$0xff] }
 0x544   : > { %v27905_v3 = vmax.f32 %v32666_v13, %v5795_v25  ;;  %v27918_v44 = vmax.f32 %v32670_v63, %v5793_v28  ;;  %v23749_v25 = vld [vmem:[%s31445_s3 + $0x3b8] sm:$0xff]   ;;  %v23751_v28 = vld [vmem:[%s31445_s3 + $0x440] sm:$0xff]   ;;  %v6136_v13 = vmax.f32 %v5992_v55, 0.0  ;;  %v32677_v60 = vld [vmem:[#allocation366_spill] sm:$0xff] }
 0x545   : > { %21199 = vmatpush3.bf16.msra.mxu1 %v23745_v62  ;;  %v23185_v39 = vpop.f32.mrb[36].mxu0  ;;  %v23750_v5 = vld [vmem:[%s31445_s3 + $0x1518] sm:$0xff]   ;;  %v32672_v62 = vld [vmem:[#allocation365_spill] sm:$0xff]  ;;  %v23753_v55 = vld [vmem:[%s31445_s3 + $0x400] sm:$0xff]  }
 0x546   : > { %32667 = vst [vmem:[#allocation24_spill] sm:$0xff] %v27905_v3  ;;  %21961 = vmatpush3.bf16.msra.mxu0 %v23746_v23  ;;  %v5798_v16 = vmax.f32 %v32671_v27, %v23185_v39  ;;  %v5425_v30 = vpop.f32.mrb[37].mxu0  ;;  %21200 = vmatprep.subr.bf16.mxu1 %v23747_v21  ;;  %v32674_v23 = vld [vmem:[#allocation244_spill] sm:$0xff]  ;;  %v32678_v27 = vld [vmem:[#allocation107_spill] sm:$0xff] }
 0x547   : > { %v5796_v48 = vmax.f32 %v32672_v62, %v5425_v30  ;;  %v23186_v47 = vpop.f32.mrb[38].mxu0  ;;  %21962 = vmatprep.subr.bf16.mxu0 %v23748_v37  ;;  %v32675_v21 = vmax.f32 %v32673_v32, %v32674_v23  ;;  %v32680_v3 = vmax.f32 %v32678_v27, %v32679_v46  ;;  %v32681_v30 = vld [vmem:[#allocation367_spill] sm:$0xff]  ;;  %v6565_v62 = vpack.c.bf16 %v6133_v49, %v6133_v49  ;;  %v32683_v32 = vld [vmem:[#allocation246_spill] sm:$0xff]  ;;  %v23754_v46 = vld [vmem:[%s31445_s3 + $0x1520] sm:$0xff]  }
 0x548   : > { %v5799_v63 = vmax.f32 %v32677_v60, %v23186_v47  ;;  %v5428_v39 = vpop.f32.mrb[39].mxu0  ;;  %v6568_v49 = vpack.c.bf16 %v6136_v13, %v6136_v13  ;;  %v32689_v60 = vld [vmem:[#allocation368_spill] sm:$0xff]  ;;  %v23759_v13 = vld [vmem:[%s31445_s3 + $0x450] sm:$0xff]   ;;  %v32690_v27 = vld [vmem:[#allocation369_spill] sm:$0xff] }
 0x549   : > { %v27940_v2 = vmax.f32 %v32675_v21, %v5798_v16  ;;  %v27946_v45 = vmax.f32 %v32680_v3, %v5796_v48  ;;  %v5797_v37 = vmax.f32 %v32681_v30, %v5428_v39  ;;  %21201 = vmatpush3.bf16.msra.mxu1 %v23749_v25  ;;  %v32684_v16 = vmax.f32 %v32682_v54, %v32683_v32  ;;  %v23755_v3 = vld [vmem:[%s31445_s3 + $0x448] sm:$0xff]   ;;  %v32687_v48 = vld [vmem:[#allocation247_spill] sm:$0xff]  ;;  %v32692_v32 = vld [vmem:[#allocation248_spill] sm:$0xff] }
 0x54a   : > { %21963 = vmatpush3.bf16.msra.mxu0 %v23750_v5  ;;  %21208 = vmatprep.subr.bf16.mxu1 %v23751_v28  ;;  %v32686_v25 = vld [vmem:[#allocation109_spill] sm:$0xff] }
 0x54b   : > { %32676 = vst [vmem:[#allocation162_spill] sm:$0xff] %v27940_v2  ;;  %v27955_v23 = vmax.f32 %v32684_v16, %v5799_v63  ;;  %v32688_v47 = vmax.f32 %v32686_v25, %v32687_v48  ;;  %21964 = vmatprep.subr.bf16.mxu0 %v23752_v31  ;;  %v23756_v54 = vld [vmem:[%s31445_s3 + $0x1568] sm:$0xff]   ;;  %v32700_v2 = vld [vmem:[#allocation112_spill] sm:$0xff] }
 0x54c   : > { %16231 = vmatmul.mubr.bf16.vlgmr.msra.gmra.mrb[28].mxu1 %v6565_v62  ;;  %v23757_v28 = vld [vmem:[%s31445_s3 + $0x408] sm:$0xff]   ;;  %v32691_v62 = vld [vmem:[#allocation110_spill] sm:$0xff] }
 0x54d   : > { %32685 = vst [vmem:[#allocation25_spill] sm:$0xff] %v27955_v23  ;;  %v27966_v21 = vmax.f32 %v32688_v47, %v5797_v37  ;;  %21209 = vmatpush3.bf16.msra.mxu1 %v23753_v55  ;;  %16270 = vmatprep.mubr.bf16.mxu1 %v6568_v49  ;;  %v23189_v5 = vpop.f32.mrb[40].mxu0  ;;  %v23758_v31 = vld [vmem:[%s31445_s3 + $0x1528] sm:$0xff]   ;;  %v23760_v55 = vld [vmem:[%s31445_s3 + $0x1570] sm:$0xff]   ;;  %v32693_v16 = vmax.f32 %v32691_v62, %v32692_v32  ;;  %v32696_v47 = vld [vmem:[#allocation111_spill] sm:$0xff] }
 0x54e   : > { %21965 = vmatpush3.bf16.msra.mxu0 %v23754_v46  ;;  %v5802_v63 = vmax.f32 %v32689_v60, %v23189_v5  ;;  %v5441_v39 = vpop.f32.mrb[41].mxu0  ;;  %21210 = vmatprep.subr.bf16.mxu1 %v23755_v3  ;;  %v32695_v3 = vld [vmem:[#allocation370_spill] sm:$0xff]  ;;  %v32697_v49 = vld [vmem:[#allocation249_spill] sm:$0xff] }
 0x54f   : > { %v5800_v30 = vmax.f32 %v32690_v27, %v5441_v39  ;;  %v23190_v37 = vpop.f32.mrb[42].mxu0  ;;  %21966 = vmatprep.subr.bf16.mxu0 %v23756_v54  ;;  %v32698_v5 = vmax.f32 %v32696_v47, %v32697_v49  ;;  %v32699_v39 = vld [vmem:[#allocation371_spill] sm:$0xff]  ;;  %v23761_v54 = vld [vmem:[%s31445_s3 + $0x410] sm:$0xff]   ;;  %v32704_v32 = vld [vmem:[#allocation113_spill] sm:$0xff] }
 0x550   : > { %v27988_v46 = vmax.f32 %v32693_v16, %v5802_v63  ;;  %v5803_v25 = vmax.f32 %v32695_v3, %v23190_v37  ;;  %v5444_v48 = vpop.f32.mrb[43].mxu0  ;;  %v32701_v23 = vld [vmem:[#allocation250_spill] sm:$0xff]  ;;  %v32705_v16 = vld [vmem:[#allocation251_spill] sm:$0xff]  ;;  %v23767_v49 = vld [vmem:[%s31445_s3 + $0x460] sm:$0xff]  }
 0x551   : > { %v27994_v60 = vmax.f32 %v32698_v5, %v5800_v30  ;;  %v5801_v27 = vmax.f32 %v32699_v39, %v5444_v48  ;;  %21211 = vmatpush3.bf16.msra.mxu1 %v23757_v28  ;;  %v32702_v62 = vmax.f32 %v32700_v2, %v32701_v23  ;;  %v23762_v37 = vld [vmem:[%s31445_s3 + $0x1530] sm:$0xff]   ;;  %v23763_v30 = vld [vmem:[%s31445_s3 + $0x458] sm:$0xff]   ;;  %v6059_v28 = vadd.f32 %v27339_v4, %v27544_v17  ;;  %v32707_v17 = vld [vmem:[#allocation372_spill] sm:$0xff] }
 0x552   : > { %32694 = vst [vmem:[#allocation163_spill] sm:$0xff] %v27988_v46  ;;  %21967 = vmatpush3.bf16.msra.mxu0 %v23758_v31  ;;  %21212 = vmatprep.subr.bf16.mxu1 %v23759_v13  ;;  %v32706_v3 = vmax.f32 %v32704_v32, %v32705_v16  ;;  %v23764_v2 = vld [vmem:[%s31445_s3 + $0x1578] sm:$0xff]   ;;  %v6064_v23 = vadd.f32 %v27339_v4, %v27614_v53  ;;  %v32708_v5 = vld [vmem:[#allocation373_spill] sm:$0xff]  ;;  %v32713_v16 = vld [vmem:[#allocation374_spill] sm:$0xff] }
 0x553   : > { %v28003_v63 = vmax.f32 %v32702_v62, %v5803_v25  ;;  %21968 = vmatprep.subr.bf16.mxu0 %v23760_v55  ;;  %v23765_v13 = vld [vmem:[%s31445_s3 + $0x418] sm:$0xff]   ;;  %v6203_v53 = vmax.f32 %v6059_v28, 0.0  ;;  %v32709_v62 = vld [vmem:[#allocation114_spill] sm:$0xff] }
 0x554   : > { %v28016_v48 = vmax.f32 %v32706_v3, %v5801_v27  ;;  %v23766_v55 = vld [vmem:[%s31445_s3 + $0x1538] sm:$0xff]  }
 0x555   : > { %32703 = vst [vmem:[#allocation284_spill] sm:$0xff] %v28003_v63  ;;  %21213 = vmatpush3.bf16.msra.mxu1 %v23761_v54  ;;  %v23193_v31 = vpop.f32.mrb[44].mxu0  ;;  %v23768_v54 = vld [vmem:[%s31445_s3 + $0x1640] sm:$0xff]   ;;  %v32714_v46 = vld [vmem:[#allocation115_spill] sm:$0xff]  ;;  %v32715_v63 = vld [vmem:[#allocation253_spill] sm:$0xff] }
 0x556   : > { %21969 = vmatpush3.bf16.msra.mxu0 %v23762_v37  ;;  %v5806_v25 = vmax.f32 %v32707_v17, %v23193_v31  ;;  %v5457_v47 = vpop.f32.mrb[45].mxu0  ;;  %21214 = vmatprep.subr.bf16.mxu1 %v23763_v30  ;;  %v32710_v37 = vld [vmem:[#allocation252_spill] sm:$0xff]  ;;  %v6208_v17 = vmax.f32 %v6064_v23, 0.0  ;;  %v32716_v28 = vmax.f32 %v32714_v46, %v32715_v63  ;;  %v6635_v63 = vpack.c.bf16 %v6203_v53, %v6203_v53  ;;  %v32723_v23 = vld [vmem:[#allocation117_spill] sm:$0xff] }
 0x557   : > { %v5804_v39 = vmax.f32 %v32708_v5, %v5457_v47  ;;  %v23194_v27 = vpop.f32.mrb[46].mxu0  ;;  %21970 = vmatprep.subr.bf16.mxu0 %v23764_v2  ;;  %v32711_v30 = vmax.f32 %v32709_v62, %v32710_v37  ;;  %v32718_v47 = vld [vmem:[#allocation375_spill] sm:$0xff]  ;;  %v23769_v5 = vld [vmem:[%s31445_s3 + $0x420] sm:$0xff]   ;;  %v32720_v62 = vld [vmem:[#allocation254_spill] sm:$0xff] }
 0x558   : > { %v5807_v3 = vmax.f32 %v32713_v16, %v23194_v27  ;;  %v5460_v31 = vpop.f32.mrb[47].mxu0  ;;  %v23770_v46 = vld [vmem:[%s31445_s3 + $0x1600] sm:$0xff]   ;;  %v23773_v53 = vld [vmem:[%s31445_s3 + $0x428] sm:$0xff]  }
 0x559   : > { %v28040_v32 = vmax.f32 %v32711_v30, %v5806_v25  ;;  %v28046_v36 = vmax.f32 %v32716_v28, %v5804_v39  ;;  %v5805_v2 = vmax.f32 %v32718_v47, %v5460_v31  ;;  %21215 = vmatpush3.bf16.msra.mxu1 %v23765_v13  ;;  %v32721_v25 = vmax.f32 %v32719_v14, %v32720_v62  ;;  %v32724_v39 = vld [vmem:[#allocation255_spill] sm:$0xff]  ;;  %v23771_v30 = vld [vmem:[%s31445_s3 + $0x468] sm:$0xff]   ;;  %v32726_v16 = vld [vmem:[#allocation376_spill] sm:$0xff] }
 0x55a   : > { %21971 = vmatpush3.bf16.msra.mxu0 %v23766_v55  ;;  %21216 = vmatprep.subr.bf16.mxu1 %v23767_v49  ;;  %v32725_v27 = vmax.f32 %v32723_v23, %v32724_v39  ;;  %v23772_v14 = vld [vmem:[%s31445_s3 + $0x1648] sm:$0xff]   ;;  %v6640_v55 = vpack.c.bf16 %v6208_v17, %v6208_v17  ;;  %v23775_v28 = vld [vmem:[%s31445_s3 + $0x470] sm:$0xff]  }
 0x55b   : > { %32712 = vst [vmem:[#allocation285_spill] sm:$0xff] %v28040_v32  ;;  %32717 = vst [vmem:[#allocation26_spill] sm:$0xff] %v28046_v36  ;;  %v28055_v37 = vmax.f32 %v32721_v25, %v5807_v3  ;;  %22000 = vmatprep.subr.bf16.mxu0 %v23768_v54  ;;  %v19573_v54 = vld [vmem:[%s31446_s4] ss:$0 sm:$0xff]  ;;  %v23774_v17 = vld [vmem:[%s31445_s3 + $0x1608] sm:$0xff]  }
 0x55c   : > { %v28063_v13 = vmax.f32 %v32725_v27, %v5805_v2  ;;  %v32727_v47 = vld [vmem:[#allocation377_spill] sm:$0xff]  ;;  %v23776_v25 = vld [vmem:[%s31445_s3 + $0x1650] sm:$0xff]   ;;  %v15953_v32 = vadd.f32 %v27895_v10, %v19573_v54  ;;  %v32736_v36 = vld [vmem:[#allocation379_spill] sm:$0xff] }
 0x55d   : > { %32722 = vst [vmem:[#allocation164_spill] sm:$0xff] %v28055_v37  ;;  %17631 = vmatmul.mubr.bf16.vlgmr.msra.gmra.mrb[76].mxu0 %v6635_v63  ;;  %21217 = vmatpush3.bf16.msra.mxu1 %v23769_v5  ;;  %v23197_v49 = vpop.f32.mrb[48].mxu0  ;;  %v32729_v63 = vld [vmem:[#allocation256_spill] sm:$0xff]  ;;  %v32732_v27 = vld [vmem:[#allocation378_spill] sm:$0xff] }
 0x55e   : > { %22001 = vmatpush3.bf16.msra.mxu0 %v23770_v46  ;;  %17710 = vmatprep.mubr.bf16.mxu0 %v6640_v55  ;;  %v5810_v3 = vmax.f32 %v32726_v16, %v23197_v49  ;;  %v5473_v31 = vpop.f32.mrb[49].mxu0  ;;  %v32728_v46 = vld [vmem:[#allocation118_spill] sm:$0xff] }
 0x55f   : > { %v5808_v2 = vmax.f32 %v32727_v47, %v5473_v31  ;;  %v21070_v5 = vpop.f32.mrb[4].mxu1  ;;  %v23198_v62 = vpop.f32.mrb[50].mxu0  ;;  %21218 = vmatprep.subr.bf16.mxu1 %v23771_v30  ;;  %22002 = vmatprep.subr.bf16.mxu0 %v23772_v14  ;;  %v32730_v23 = vmax.f32 %v32728_v46, %v32729_v63  ;;  %v32733_v31 = vld [vmem:[#allocation119_spill] sm:$0xff]  ;;  %v32734_v47 = vld [vmem:[#allocation257_spill] sm:$0xff]  ;;  %v32737_v46 = vld [vmem:[#allocation120_spill] sm:$0xff] }
 0x560   : > { %v5811_v55 = vmax.f32 %v32732_v27, %v23198_v62  ;;  %v21071_v49 = vpop.f32.mrb[5].mxu1  ;;  %v5476_v16 = vpop.f32.mrb[51].mxu0  ;;  %v32735_v37 = vmax.f32 %v32733_v31, %v32734_v47  ;;  %v5991_v62 = vadd.f32 %v27339_v4, %v26873_v50  ;;  %v32738_v63 = vld [vmem:[#allocation258_spill] sm:$0xff] }
 0x561   : > { %v28091_v39 = vmax.f32 %v32730_v23, %v5810_v3  ;;  %v21072_v14 = vadd.f32 %v21071_v49, %v21070_v5  ;;  %v5809_v11 = vmax.f32 %v32736_v36, %v5476_v16  ;;  %v21073_v20 = vpop.f32.mrb[6].mxu1  ;;  %21219 = vmatpush3.bf16.msra.mxu1 %v23773_v53  ;;  %v23777_v3 = vld [vmem:[%s31445_s3 + $0x430] sm:$0xff]   ;;  %v32739_v10 = vmax.f32 %v32737_v46, %v32738_v63  ;;  %v23779_v36 = vld [vmem:[%s31445_s3 + $0x478] sm:$0xff]   ;;  %v32745_v16 = vld [vmem:[#allocation381_spill] sm:$0xff] }
 0x562   : > { %v28098_v30 = vmax.f32 %v32735_v37, %v5808_v2  ;;  %22003 = vmatpush3.bf16.msra.mxu0 %v23774_v17  ;;  %v21074_v37 = vpop.f32.mrb[7].mxu1  ;;  %21220 = vmatprep.subr.bf16.mxu1 %v23775_v28  ;;  %v23778_v20 = vld [vmem:[%s31445_s3 + $0x1610] sm:$0xff]   ;;  %v5994_v53 = vadd.f32 %v27339_v4, %v26881_v42  ;;  %v32741_v2 = vld [vmem:[#allocation121_spill] sm:$0xff]  ;;  %v32742_v5 = vld [vmem:[#allocation259_spill] sm:$0xff]  ;;  %v6135_v49 = vmax.f32 %v5991_v62, 0.0 }
 0x563   : > { %32731 = vst [vmem:[#allocation286_spill] sm:$0xff] %v28091_v39  ;;  %v28109_v54 = vmax.f32 %v32739_v10, %v5811_v55  ;;  %v28119_v50 = vadd.f32 %v21072_v14, %v15953_v32  ;;  %v32743_v23 = vmax.f32 %v32741_v2, %v32742_v5  ;;  %22004 = vmatprep.subr.bf16.mxu0 %v23776_v25  ;;  %v23780_v17 = vld [vmem:[%s31445_s3 + $0x1658] sm:$0xff]   ;;  %v32744_v42 = vld [vmem:[#allocation380_spill] sm:$0xff]  ;;  %v32746_v62 = vld [vmem:[#allocation122_spill] sm:$0xff] }
 0x564   : > { %v23781_v55 = vld [vmem:[%s31445_s3 + $0x438] sm:$0xff]   ;;  %v23783_v25 = vld [vmem:[%s31445_s3 + $0x4c0] sm:$0xff]   ;;  %v32750_v37 = vld [vmem:[#allocation382_spill] sm:$0xff] }
 0x565   : > { %32740 = vst [vmem:[#allocation27_spill] sm:$0xff] %v28109_v54  ;;  %v28124_v27 = vmax.f32 %v32743_v23, %v5809_v11  ;;  %21221 = vmatpush3.bf16.msra.mxu1 %v23777_v3  ;;  %v23201_v28 = vpop.f32.mrb[52].mxu0  ;;  %v23782_v11 = vld [vmem:[%s31445_s3 + $0x1618] sm:$0xff]   ;;  %v23784_v14 = vld [vmem:[%s31445_s3 + $0x1660] sm:$0xff]   ;;  %v6138_v3 = vmax.f32 %v5994_v53, 0.0  ;;  %v32752_v5 = vld [vmem:[#allocation261_spill] sm:$0xff] }
 0x566   : > { %22005 = vmatpush3.bf16.msra.mxu0 %v23778_v20  ;;  %v5814_v4 = vmax.f32 %v32744_v42, %v23201_v28  ;;  %v5489_v32 = vpop.f32.mrb[53].mxu0  ;;  %21222 = vmatprep.subr.bf16.mxu1 %v23779_v36  ;;  %v32747_v46 = vld [vmem:[#allocation260_spill] sm:$0xff]  ;;  %v32751_v2 = vld [vmem:[#allocation123_spill] sm:$0xff]  ;;  %v32788_v39 = vld [vmem:[#allocation269_spill] sm:$0xff] }
 0x567   : > { %v5812_v31 = vmax.f32 %v32745_v16, %v5489_v32  ;;  %v23202_v47 = vpop.f32.mrb[54].mxu0  ;;  %22006 = vmatprep.subr.bf16.mxu0 %v23780_v17  ;;  %v32748_v63 = vmax.f32 %v32746_v62, %v32747_v46  ;;  %v32753_v23 = vmax.f32 %v32751_v2, %v32752_v5  ;;  %v32754_v42 = vld [vmem:[#allocation383_spill] sm:$0xff]  ;;  %v23785_v53 = vld [vmem:[%s31445_s3 + $0x480] sm:$0xff]   ;;  %v6567_v32 = vpack.c.bf16 %v6135_v49, %v6135_v49  ;;  %v32756_v62 = vld [vmem:[#allocation262_spill] sm:$0xff] }
 0x568   : > { %v5815_v20 = vmax.f32 %v32750_v37, %v23202_v47  ;;  %v5492_v36 = vpop.f32.mrb[55].mxu0  ;;  %v32755_v16 = vld [vmem:[#allocation124_spill] sm:$0xff]  ;;  %v32759_v47 = vld [vmem:[#allocation125_spill] sm:$0xff]  ;;  %v6570_v49 = vpack.c.bf16 %v6138_v3, %v6138_v3  ;;  %v23791_v3 = vld [vmem:[%s31445_s3 + $0x4d0] sm:$0xff]  }
 0x569   : > { %v28146_v10 = vmax.f32 %v32748_v63, %v5814_v4  ;;  %v28152_v28 = vmax.f32 %v32753_v23, %v5812_v31  ;;  %v5813_v17 = vmax.f32 %v32754_v42, %v5492_v36  ;;  %21223 = vmatpush3.bf16.msra.mxu1 %v23781_v55  ;;  %v32757_v4 = vmax.f32 %v32755_v16, %v32756_v62  ;;  %v23786_v31 = vld [vmem:[%s31445_s3 + $0x1620] sm:$0xff]   ;;  %v23787_v55 = vld [vmem:[%s31445_s3 + $0x4c8] sm:$0xff]   ;;  %v32760_v63 = vld [vmem:[#allocation263_spill] sm:$0xff] }
 0x56a   : > { %22007 = vmatpush3.bf16.msra.mxu0 %v23782_v11  ;;  %21230 = vmatprep.subr.bf16.mxu1 %v23783_v25  ;;  %v32761_v37 = vmax.f32 %v32759_v47, %v32760_v63  ;;  %v23788_v11 = vld [vmem:[%s31445_s3 + $0x1668] sm:$0xff]   ;;  %v32762_v2 = vld [vmem:[#allocation384_spill] sm:$0xff]  ;;  %v32764_v16 = vld [vmem:[#allocation126_spill] sm:$0xff] }
 0x56b   : > { %32749 = vst [vmem:[#allocation165_spill] sm:$0xff] %v28146_v10  ;;  %v28161_v46 = vmax.f32 %v32757_v4, %v5815_v20  ;;  %22008 = vmatprep.subr.bf16.mxu0 %v23784_v14  ;;  %v23789_v20 = vld [vmem:[%s31445_s3 + $0x488] sm:$0xff]   ;;  %v32765_v62 = vld [vmem:[#allocation264_spill] sm:$0xff] }
 0x56c   : > { %v28172_v36 = vmax.f32 %v32761_v37, %v5813_v17  ;;  %16271 = vmatmul.mubr.bf16.vlgmr.msra.gmra.mrb[32].mxu1 %v6567_v32  ;;  %v23790_v14 = vld [vmem:[%s31445_s3 + $0x1628] sm:$0xff]   ;;  %v23792_v32 = vld [vmem:[%s31445_s3 + $0x1670] sm:$0xff]   ;;  %v32766_v4 = vmax.f32 %v32764_v16, %v32765_v62  ;;  %v32769_v37 = vld [vmem:[#allocation127_spill] sm:$0xff] }
 0x56d   : > { %32758 = vst [vmem:[#allocation287_spill] sm:$0xff] %v28161_v46  ;;  %21231 = vmatpush3.bf16.msra.mxu1 %v23785_v53  ;;  %16310 = vmatprep.mubr.bf16.mxu1 %v6570_v49  ;;  %v23205_v25 = vpop.f32.mrb[56].mxu0  ;;  %v32763_v42 = vld [vmem:[#allocation385_spill] sm:$0xff]  ;;  %v32774_v10 = vld [vmem:[#allocation128_spill] sm:$0xff]  ;;  %v32775_v46 = vld [vmem:[#allocation266_spill] sm:$0xff] }
 0x56e   : > { %22009 = vmatpush3.bf16.msra.mxu0 %v23786_v31  ;;  %v5818_v5 = vmax.f32 %v32762_v2, %v23205_v25  ;;  %v5505_v23 = vpop.f32.mrb[57].mxu0  ;;  %21232 = vmatprep.subr.bf16.mxu1 %v23787_v55  ;;  %v32768_v55 = vld [vmem:[#allocation386_spill] sm:$0xff]  ;;  %v32770_v49 = vld [vmem:[#allocation265_spill] sm:$0xff]  ;;  %v32776_v16 = vmax.f32 %v32774_v10, %v32775_v46  ;;  %v32779_v62 = vld [vmem:[#allocation267_spill] sm:$0xff] }
 0x56f   : > { %v5816_v17 = vmax.f32 %v32763_v42, %v5505_v23  ;;  %v23206_v53 = vpop.f32.mrb[58].mxu0  ;;  %22010 = vmatprep.subr.bf16.mxu0 %v23788_v11  ;;  %v32771_v25 = vmax.f32 %v32769_v37, %v32770_v49  ;;  %v32773_v23 = vld [vmem:[#allocation387_spill] sm:$0xff]  ;;  %v23793_v11 = vld [vmem:[%s31445_s3 + $0x490] sm:$0xff]   ;;  %v32778_v46 = vld [vmem:[#allocation129_spill] sm:$0xff] }
 0x570   : > { %v28194_v31 = vmax.f32 %v32766_v4, %v5818_v5  ;;  %v5819_v47 = vmax.f32 %v32768_v55, %v23206_v53  ;;  %v5508_v63 = vpop.f32.mrb[59].mxu0  ;;  %v23794_v53 = vld [vmem:[%s31445_s3 + $0x1630] sm:$0xff]   ;;  %v23796_v4 = vld [vmem:[%s31445_s3 + $0x1678] sm:$0xff]  }
 0x571   : > { %v28200_v2 = vmax.f32 %v32771_v25, %v5816_v17  ;;  %v5817_v42 = vmax.f32 %v32773_v23, %v5508_v63  ;;  %21233 = vmatpush3.bf16.msra.mxu1 %v23789_v20  ;;  %v23795_v17 = vld [vmem:[%s31445_s3 + $0x4d8] sm:$0xff]   ;;  %v28220_v20 = vld [vmem:[%s31444_s2] ss:$0 sm:$0xff]  ;;  %v32782_v23 = vld [vmem:[#allocation389_spill] sm:$0xff] }
 0x572   : > { %32767 = vst [vmem:[#allocation28_spill] sm:$0xff] %v28194_v31  ;;  %v28209_v5 = vmax.f32 %v32776_v16, %v5819_v47  ;;  %22011 = vmatpush3.bf16.msra.mxu0 %v23790_v14  ;;  %21234 = vmatprep.subr.bf16.mxu1 %v23791_v3  ;;  %v6063_v10 = vadd.f32 %v28220_v20, %v27592_v19  ;;  %v23797_v63 = vld [vmem:[%s31445_s3 + $0x498] sm:$0xff]   ;;  %v32781_v19 = vld [vmem:[#allocation388_spill] sm:$0xff] }
 0x573   : > { %32772 = vst [vmem:[#allocation166_spill] sm:$0xff] %v28200_v2  ;;  %v32780_v14 = vmax.f32 %v32778_v46, %v32779_v62  ;;  %22012 = vmatprep.subr.bf16.mxu0 %v23792_v32  ;;  %v6068_v55 = vadd.f32 %v28220_v20, %v27661_v41  ;;  %v23798_v32 = vld [vmem:[%s31445_s3 + $0x1638] sm:$0xff]   ;;  %v23799_v25 = vld [vmem:[%s31445_s3 + $0x4e0] sm:$0xff]  }
 0x574   : > { %32777 = vst [vmem:[#allocation29_spill] sm:$0xff] %v28209_v5  ;;  %v6207_v41 = vmax.f32 %v6063_v10, 0.0  ;;  %v23800_v16 = vld [vmem:[%s31445_s3 + $0x1740] sm:$0xff]   ;;  %v32787_v5 = vld [vmem:[#allocation131_spill] sm:$0xff] }
 0x575   : > { %v28227_v3 = vmax.f32 %v32780_v14, %v5817_v42  ;;  %21235 = vmatpush3.bf16.msra.mxu1 %v23793_v11  ;;  %v23209_v47 = vpop.f32.mrb[60].mxu0  ;;  %v32784_v46 = vld [vmem:[#allocation268_spill] sm:$0xff]  ;;  %v32786_v14 = vld [vmem:[#allocation390_spill] sm:$0xff]  ;;  %v6212_v31 = vmax.f32 %v6068_v55, 0.0  ;;  %v32789_v10 = vmax.f32 %v32787_v5, %v32788_v39  ;;  %v32794_v55 = vld [vmem:[#allocation133_spill] sm:$0xff] }
 0x576   : > { %22013 = vmatpush3.bf16.msra.mxu0 %v23794_v53  ;;  %v5822_v37 = vmax.f32 %v32781_v19, %v23209_v47  ;;  %v5521_v49 = vpop.f32.mrb[61].mxu0  ;;  %21236 = vmatprep.subr.bf16.mxu1 %v23795_v17  ;;  %v32783_v53 = vld [vmem:[#allocation130_spill] sm:$0xff]  ;;  %v32791_v2 = vld [vmem:[#allocation132_spill] sm:$0xff]  ;;  %v6639_v5 = vpack.c.bf16 %v6207_v41, %v6207_v41  ;;  %v23806_v41 = vld [vmem:[%s31445_s3 + $0x1708] sm:$0xff]  }
 0x577   : > { %v5820_v42 = vmax.f32 %v32782_v23, %v5521_v49  ;;  %v23210_v11 = vpop.f32.mrb[62].mxu0  ;;  %22014 = vmatprep.subr.bf16.mxu0 %v23796_v4  ;;  %v32785_v17 = vmax.f32 %v32783_v53, %v32784_v46  ;;  %v32790_v49 = vld [vmem:[#allocation391_spill] sm:$0xff]  ;;  %v23801_v23 = vld [vmem:[%s31445_s3 + $0x4a0] sm:$0xff]   ;;  %v32792_v53 = vld [vmem:[#allocation270_spill] sm:$0xff] }
 0x578   : > { %v5823_v47 = vmax.f32 %v32786_v14, %v23210_v11  ;;  %v5524_v19 = vpop.f32.mrb[63].mxu0  ;;  %v23802_v39 = vld [vmem:[%s31445_s3 + $0x1700] sm:$0xff]  }
 0x579   : > { %v28251_v62 = vmax.f32 %v32785_v17, %v5822_v37  ;;  %v28257_v54 = vmax.f32 %v32789_v10, %v5820_v42  ;;  %v5821_v4 = vmax.f32 %v32790_v49, %v5524_v19  ;;  %21237 = vmatpush3.bf16.msra.mxu1 %v23797_v63  ;;  %v32793_v37 = vmax.f32 %v32791_v2, %v32792_v53  ;;  %v32795_v42 = vld [vmem:[#allocation271_spill] sm:$0xff]  ;;  %v23803_v17 = vld [vmem:[%s31445_s3 + $0x4e8] sm:$0xff]   ;;  %v23809_v49 = vld [vmem:[%s31445_s3 + $0x4b0] sm:$0xff]  }
 0x57a   : > { %22015 = vmatpush3.bf16.msra.mxu0 %v23798_v32  ;;  %21238 = vmatprep.subr.bf16.mxu1 %v23799_v25  ;;  %v32796_v11 = vmax.f32 %v32794_v55, %v32795_v42  ;;  %v23804_v2 = vld [vmem:[%s31445_s3 + $0x1748] sm:$0xff]   ;;  %v6644_v32 = vpack.c.bf16 %v6212_v31, %v6212_v31  ;;  %v23808_v31 = vld [vmem:[%s31445_s3 + $0x1750] sm:$0xff]   ;;  %v23813_v55 = vld [vmem:[%s31445_s3 + $0x4b8] sm:$0xff]  }
 0x57b   : > { %v28266_v46 = vmax.f32 %v32793_v37, %v5823_v47  ;;  %22044 = vmatprep.subr.bf16.mxu0 %v23800_v16  ;;  %v23805_v25 = vld [vmem:[%s31445_s3 + $0x4a8] sm:$0xff]   ;;  %v23807_v16 = vld [vmem:[%s31445_s3 + $0x4f0] sm:$0xff]   ;;  %v23811_v37 = vld [vmem:[%s31445_s3 + $0x4f8] sm:$0xff]  }
 0x57c   : > { %v28274_v63 = vmax.f32 %v32796_v11, %v5821_v4  ;;  %v5993_v4 = vadd.f32 %v28220_v20, %v26864_v12  ;;  %v23810_v53 = vld [vmem:[%s31445_s3 + $0x1710] sm:$0xff]   ;;  %v23812_v12 = vld [vmem:[%s31445_s3 + $0x1758] sm:$0xff]   ;;  %v23816_v11 = vld [vmem:[%s31445_s3 + $0x1760] sm:$0xff]  }
 0x57d   : > { %17711 = vmatmul.mubr.bf16.vlgmr.msra.gmra.mrb[80].mxu0 %v6639_v5  ;;  %21239 = vmatpush3.bf16.msra.mxu1 %v23801_v23 }
 0x57e   : > { %22045 = vmatpush3.bf16.msra.mxu0 %v23802_v39  ;;  %17790 = vmatprep.mubr.bf16.mxu0 %v6644_v32  ;;  %v5996_v39 = vadd.f32 %v28220_v20, %v26932_v29  ;;  %v6137_v42 = vmax.f32 %v5993_v4, 0.0  ;;  %v23814_v29 = vld [vmem:[%s31445_s3 + $0x1718] sm:$0xff]   ;;  %v23826_v4 = vld [vmem:[%s31445_s3 + $0x1730] sm:$0xff]  }
 0x57f   : > { %v21092_v14 = vpop.f32.mrb[8].mxu1  ;;  %21240 = vmatprep.subr.bf16.mxu1 %v23803_v17  ;;  %22046 = vmatprep.subr.bf16.mxu0 %v23804_v2  ;;  %v23817_v2 = vld [vmem:[%s31445_s3 + $0x500] sm:$0xff]  }
 0x580   : > { %v21093_v47 = vpop.f32.mrb[9].mxu1  ;;  %v6140_v17 = vmax.f32 %v5996_v39, 0.0  ;;  %v6569_v32 = vpack.c.bf16 %v6137_v42, %v6137_v42  ;;  %v6072_v39 = vadd.f32 %v28220_v20, %v27716_v35  ;;  %v23832_v35 = vld [vmem:[%s31445_s3 + $0x1840] sm:$0xff]  }
 0x581   : > { %v21094_v19 = vadd.f32 %v21093_v47, %v21092_v14  ;;  %v21095_v10 = vpop.f32.mrb[10].mxu1  ;;  %21241 = vmatpush3.bf16.msra.mxu1 %v23805_v25  ;;  %v23818_v25 = vld [vmem:[%s31445_s3 + $0x1720] sm:$0xff]   ;;  %v23820_v14 = vld [vmem:[%s31445_s3 + $0x1768] sm:$0xff]  }
 0x582   : > { %22047 = vmatpush3.bf16.msra.mxu0 %v23806_v41  ;;  %v21096_v23 = vpop.f32.mrb[11].mxu1  ;;  %21242 = vmatprep.subr.bf16.mxu1 %v23807_v16  ;;  %v23819_v41 = vld [vmem:[%s31445_s3 + $0x548] sm:$0xff]   ;;  %v6572_v16 = vpack.c.bf16 %v6140_v17, %v6140_v17  ;;  %v23824_v10 = vld [vmem:[%s31445_s3 + $0x1770] sm:$0xff]  }
 0x583   : > { %v28308_v5 = vadd.f32 %v21094_v19, %v28119_v50  ;;  %22048 = vmatprep.subr.bf16.mxu0 %v23808_v31  ;;  %v23815_v50 = vld [vmem:[%s31445_s3 + $0x540] sm:$0xff]   ;;  %v23821_v31 = vld [vmem:[%s31445_s3 + $0x508] sm:$0xff]   ;;  %v23823_v19 = vld [vmem:[%s31445_s3 + $0x550] sm:$0xff]  }
 0x584   : > { %v23822_v47 = vld [vmem:[%s31445_s3 + $0x1728] sm:$0xff]   ;;  %v23827_v23 = vld [vmem:[%s31445_s3 + $0x558] sm:$0xff]  }
 0x585   : > { %21243 = vmatpush3.bf16.msra.mxu1 %v23809_v49  ;;  %v23825_v49 = vld [vmem:[%s31445_s3 + $0x510] sm:$0xff]  }
 0x586   : > { %22049 = vmatpush3.bf16.msra.mxu0 %v23810_v53  ;;  %21244 = vmatprep.subr.bf16.mxu1 %v23811_v37  ;;  %v6067_v53 = vadd.f32 %v28220_v20, %v27644_v52  ;;  %v23828_v37 = vld [vmem:[%s31445_s3 + $0x1778] sm:$0xff]   ;;  %v23831_v52 = vld [vmem:[%s31445_s3 + $0x560] sm:$0xff]  }
 0x587   : > { %22050 = vmatprep.subr.bf16.mxu0 %v23812_v12  ;;  %v23829_v12 = vld [vmem:[%s31445_s3 + $0x518] sm:$0xff]  }
 0x588   : > { %v6211_v42 = vmax.f32 %v6067_v53, 0.0 }
 0x589   : > { %21245 = vmatpush3.bf16.msra.mxu1 %v23813_v55  ;;  %v23830_v55 = vld [vmem:[%s31445_s3 + $0x1738] sm:$0xff]  }
 0x58a   : > { %22051 = vmatpush3.bf16.msra.mxu0 %v23814_v29  ;;  %21252 = vmatprep.subr.bf16.mxu1 %v23815_v50  ;;  %v6216_v29 = vmax.f32 %v6072_v39, 0.0  ;;  %v23833_v50 = vld [vmem:[%s31445_s3 + $0x520] sm:$0xff]   ;;  %v6643_v17 = vpack.c.bf16 %v6211_v42, %v6211_v42  ;;  %v23843_v39 = vld [vmem:[%s31445_s3 + $0x578] sm:$0xff]  }
 0x58b   : > { %22052 = vmatprep.subr.bf16.mxu0 %v23816_v11  ;;  %v23834_v11 = vld [vmem:[%s31445_s3 + $0x1800] sm:$0xff]  }
 0x58c   : > { %16311 = vmatmul.mubr.bf16.vlgmr.msra.gmra.mrb[36].mxu1 %v6569_v32  ;;  %v23836_v32 = vld [vmem:[%s31445_s3 + $0x1848] sm:$0xff]  }
 0x58d   : > { %21253 = vmatpush3.bf16.msra.mxu1 %v23817_v2  ;;  %16350 = vmatprep.mubr.bf16.mxu1 %v6572_v16  ;;  %v23835_v2 = vld [vmem:[%s31445_s3 + $0x568] sm:$0xff]  }
 0x58e   : > { %22053 = vmatpush3.bf16.msra.mxu0 %v23818_v25  ;;  %21254 = vmatprep.subr.bf16.mxu1 %v23819_v41  ;;  %v6648_v25 = vpack.c.bf16 %v6216_v29, %v6216_v29  ;;  %v23837_v41 = vld [vmem:[%s31445_s3 + $0x528] sm:$0xff]  }
 0x58f   : > { %22054 = vmatprep.subr.bf16.mxu0 %v23820_v14  ;;  %v23838_v16 = vld [vmem:[%s31445_s3 + $0x1808] sm:$0xff]   ;;  %v23839_v14 = vld [vmem:[%s31445_s3 + $0x570] sm:$0xff]  }
 0x591   : > { %21255 = vmatpush3.bf16.msra.mxu1 %v23821_v31 }
 0x592   : > { %22055 = vmatpush3.bf16.msra.mxu0 %v23822_v47  ;;  %21256 = vmatprep.subr.bf16.mxu1 %v23823_v19  ;;  %v23840_v47 = vld [vmem:[%s31445_s3 + $0x1850] sm:$0xff]  }
 0x593   : > { %22056 = vmatprep.subr.bf16.mxu0 %v23824_v10 }
 0x595   : > { %21257 = vmatpush3.bf16.msra.mxu1 %v23825_v49 }
 0x596   : > { %22057 = vmatpush3.bf16.msra.mxu0 %v23826_v4  ;;  %21258 = vmatprep.subr.bf16.mxu1 %v23827_v23  ;;  %v23841_v4 = vld [vmem:[%s31445_s3 + $0x530] sm:$0xff]   ;;  %v5995_v23 = vadd.f32 %v28220_v20, %v26917_v18  ;;  %v23844_v18 = vld [vmem:[%s31445_s3 + $0x1858] sm:$0xff]  }
 0x597   : > { %22058 = vmatprep.subr.bf16.mxu0 %v23828_v37  ;;  %v23842_v37 = vld [vmem:[%s31445_s3 + $0x1810] sm:$0xff]  }
 0x598   : > { %v6139_v42 = vmax.f32 %v5995_v23, 0.0  ;;  %v6076_v23 = vadd.f32 %v28220_v20, %v27764_v33  ;;  %v23864_v33 = vld [vmem:[%s31445_s3 + $0x1940] sm:$0xff]  }
 0x599   : > { %21259 = vmatpush3.bf16.msra.mxu1 %v23829_v12  ;;  %v5998_v12 = vadd.f32 %v28220_v20, %v26923_v9  ;;  %v23846_v9 = vld [vmem:[%s31445_s3 + $0x1818] sm:$0xff]  }
 0x59a   : > { %22059 = vmatpush3.bf16.msra.mxu0 %v23830_v55  ;;  %21260 = vmatprep.subr.bf16.mxu1 %v23831_v52  ;;  %v23845_v52 = vld [vmem:[%s31445_s3 + $0x538] sm:$0xff]  }
 0x59b   : > { %22088 = vmatprep.subr.bf16.mxu0 %v23832_v35  ;;  %v23848_v35 = vld [vmem:[%s31445_s3 + $0x1860] sm:$0xff]   ;;  %v6142_v29 = vmax.f32 %v5998_v12, 0.0  ;;  %v6220_v12 = vmax.f32 %v6076_v23, 0.0 }
 0x59d   : > { %17791 = vmatmul.mubr.bf16.vlgmr.msra.gmra.mrb[84].mxu0 %v6643_v17  ;;  %21261 = vmatpush3.bf16.msra.mxu1 %v23833_v50  ;;  %v23849_v50 = vld [vmem:[%s31445_s3 + $0x580] sm:$0xff]  }
 0x59e   : > { %22089 = vmatpush3.bf16.msra.mxu0 %v23834_v11  ;;  %17870 = vmatprep.mubr.bf16.mxu0 %v6648_v25  ;;  %v6571_v11 = vpack.c.bf16 %v6139_v42, %v6139_v42  ;;  %v23850_v17 = vld [vmem:[%s31445_s3 + $0x1820] sm:$0xff]   ;;  %v23852_v25 = vld [vmem:[%s31445_s3 + $0x1868] sm:$0xff]  }
 0x59f   : > { %v21114_v31 = vpop.f32.mrb[12].mxu1  ;;  %21262 = vmatprep.subr.bf16.mxu1 %v23835_v2  ;;  %22090 = vmatprep.subr.bf16.mxu0 %v23836_v32  ;;  %v23851_v2 = vld [vmem:[%s31445_s3 + $0x5c8] sm:$0xff]   ;;  %v6574_v32 = vpack.c.bf16 %v6142_v29, %v6142_v29 }
 0x5a0   : > { %v21115_v19 = vpop.f32.mrb[13].mxu1  ;;  %v23869_v29 = vld [vmem:[%s31445_s3 + $0x5a8] sm:$0xff]  }
 0x5a1   : > { %v21116_v10 = vadd.f32 %v21115_v19, %v21114_v31  ;;  %v21117_v49 = vpop.f32.mrb[14].mxu1  ;;  %21263 = vmatpush3.bf16.msra.mxu1 %v23837_v41  ;;  %v23853_v41 = vld [vmem:[%s31445_s3 + $0x588] sm:$0xff]   ;;  %v23856_v31 = vld [vmem:[%s31445_s3 + $0x1870] sm:$0xff]  }
 0x5a2   : > { %22091 = vmatpush3.bf16.msra.mxu0 %v23838_v16  ;;  %v21118_v53 = vpop.f32.mrb[15].mxu1  ;;  %21264 = vmatprep.subr.bf16.mxu1 %v23839_v14  ;;  %v23854_v16 = vld [vmem:[%s31445_s3 + $0x1828] sm:$0xff]   ;;  %v23855_v14 = vld [vmem:[%s31445_s3 + $0x5d0] sm:$0xff]   ;;  %v6071_v49 = vadd.f32 %v28220_v20, %v27692_v61  ;;  %v23863_v61 = vld [vmem:[%s31445_s3 + $0x5e0] sm:$0xff]  }
 0x5a3   : > { %v28415_v55 = vadd.f32 %v21116_v10, %v28308_v5  ;;  %22092 = vmatprep.subr.bf16.mxu0 %v23840_v47  ;;  %v23847_v5 = vld [vmem:[%s31445_s3 + $0x5c0] sm:$0xff]   ;;  %v23857_v47 = vld [vmem:[%s31445_s3 + $0x590] sm:$0xff]   ;;  %v23859_v10 = vld [vmem:[%s31445_s3 + $0x5d8] sm:$0xff]  }
 0x5a4   : > { %v23858_v19 = vld [vmem:[%s31445_s3 + $0x1830] sm:$0xff]   ;;  %v23861_v53 = vld [vmem:[%s31445_s3 + $0x598] sm:$0xff]  }
 0x5a5   : > { %21265 = vmatpush3.bf16.msra.mxu1 %v23841_v4  ;;  %v23860_v4 = vld [vmem:[%s31445_s3 + $0x1878] sm:$0xff]  }
 0x5a6   : > { %22093 = vmatpush3.bf16.msra.mxu0 %v23842_v37  ;;  %21266 = vmatprep.subr.bf16.mxu1 %v23843_v39  ;;  %v23862_v37 = vld [vmem:[%s31445_s3 + $0x1838] sm:$0xff]   ;;  %v6215_v39 = vmax.f32 %v6071_v49, 0.0 }
 0x5a7   : > { %22094 = vmatprep.subr.bf16.mxu0 %v23844_v18  ;;  %v23865_v18 = vld [vmem:[%s31445_s3 + $0x5a0] sm:$0xff]  }
 0x5a8   : > { %v6647_v42 = vpack.c.bf16 %v6215_v39, %v6215_v39 }
 0x5a9   : > { %21267 = vmatpush3.bf16.msra.mxu1 %v23845_v52  ;;  %v23866_v52 = vld [vmem:[%s31445_s3 + $0x1900] sm:$0xff]  }
 0x5aa   : > { %22095 = vmatpush3.bf16.msra.mxu0 %v23846_v9  ;;  %21274 = vmatprep.subr.bf16.mxu1 %v23847_v5  ;;  %v23867_v9 = vld [vmem:[%s31445_s3 + $0x5e8] sm:$0xff]  }
 0x5ab   : > { %22096 = vmatprep.subr.bf16.mxu0 %v23848_v35  ;;  %v23868_v5 = vld [vmem:[%s31445_s3 + $0x1948] sm:$0xff]   ;;  %v6652_v35 = vpack.c.bf16 %v6220_v12, %v6220_v12 }
 0x5ac   : > { %16351 = vmatmul.mubr.bf16.vlgmr.msra.gmra.mrb[40].mxu1 %v6571_v11  ;;  %v23871_v11 = vld [vmem:[%s31445_s3 + $0x5f0] sm:$0xff]   ;;  %v23883_v12 = vld [vmem:[%s31445_s3 + $0x648] sm:$0xff]  }
 0x5ad   : > { %21275 = vmatpush3.bf16.msra.mxu1 %v23849_v50  ;;  %16390 = vmatprep.mubr.bf16.mxu1 %v6574_v32  ;;  %v23870_v50 = vld [vmem:[%s31445_s3 + $0x1908] sm:$0xff]  }
 0x5ae   : > { %22097 = vmatpush3.bf16.msra.mxu0 %v23850_v17  ;;  %21276 = vmatprep.subr.bf16.mxu1 %v23851_v2  ;;  %v23872_v2 = vld [vmem:[%s31445_s3 + $0x1950] sm:$0xff]  }
 0x5af   : > { %22098 = vmatprep.subr.bf16.mxu0 %v23852_v25 }
 0x5b1   : > { %21277 = vmatpush3.bf16.msra.mxu1 %v23853_v41 }
 0x5b2   : > { %22099 = vmatpush3.bf16.msra.mxu0 %v23854_v16  ;;  %21278 = vmatprep.subr.bf16.mxu1 %v23855_v14  ;;  %v23873_v16 = vld [vmem:[%s31445_s3 + $0x5b0] sm:$0xff]   ;;  %v5997_v14 = vadd.f32 %v28220_v20, %v26908_v15  ;;  %v23876_v15 = vld [vmem:[%s31445_s3 + $0x1958] sm:$0xff]  }
 0x5b3   : > { %22100 = vmatprep.subr.bf16.mxu0 %v23856_v31 }
 0x5b4   : > { %v6141_v23 = vmax.f32 %v5997_v14, 0.0  ;;  %v23892_v14 = vld [vmem:[%s31445_s3 + $0x1978] sm:$0xff]  }
 0x5b5   : > { %21279 = vmatpush3.bf16.msra.mxu1 %v23857_v47  ;;  %v23874_v47 = vld [vmem:[%s31445_s3 + $0x1910] sm:$0xff]  }
 0x5b6   : > { %22101 = vmatpush3.bf16.msra.mxu0 %v23858_v19  ;;  %21280 = vmatprep.subr.bf16.mxu1 %v23859_v10  ;;  %v23875_v19 = vld [vmem:[%s31445_s3 + $0x5f8] sm:$0xff]   ;;  %v6000_v10 = vadd.f32 %v28220_v20, %v26972_v7  ;;  %v6573_v39 = vpack.c.bf16 %v6141_v23, %v6141_v23  ;;  %v23898_v23 = vld [vmem:[%s31445_s3 + $0x1a00] sm:$0xff]  }
 0x5b7   : > { %22102 = vmatprep.subr.bf16.mxu0 %v23860_v4  ;;  %v23877_v4 = vld [vmem:[%s31445_s3 + $0x5b8] sm:$0xff]  }
 0x5b8   : > { %v23878_v7 = vld [vmem:[%s31445_s3 + $0x1918] sm:$0xff]  }
 0x5b9   : > { %21281 = vmatpush3.bf16.msra.mxu1 %v23861_v53  ;;  %v23880_v53 = vld [vmem:[%s31445_s3 + $0x1960] sm:$0xff]  }
 0x5ba   : > { %22103 = vmatpush3.bf16.msra.mxu0 %v23862_v37  ;;  %21282 = vmatprep.subr.bf16.mxu1 %v23863_v61  ;;  %v6144_v37 = vmax.f32 %v6000_v10, 0.0  ;;  %v23881_v61 = vld [vmem:[%s31445_s3 + $0x600] sm:$0xff]  }
 0x5bb   : > { %22132 = vmatprep.subr.bf16.mxu0 %v23864_v33  ;;  %v23882_v33 = vld [vmem:[%s31445_s3 + $0x1920] sm:$0xff]  }
 0x5bd   : > { %17871 = vmatmul.mubr.bf16.vlgmr.msra.gmra.mrb[88].mxu0 %v6647_v42  ;;  %21283 = vmatpush3.bf16.msra.mxu1 %v23865_v18  ;;  %v6576_v18 = vpack.c.bf16 %v6144_v37, %v6144_v37  ;;  %v23885_v42 = vld [vmem:[%s31445_s3 + $0x608] sm:$0xff]  }
 0x5be   : > { %22133 = vmatpush3.bf16.msra.mxu0 %v23866_v52  ;;  %17950 = vmatprep.mubr.bf16.mxu0 %v6652_v35  ;;  %v23884_v52 = vld [vmem:[%s31445_s3 + $0x1968] sm:$0xff]  }
 0x5bf   : > { %v21136_v17 = vpop.f32.mrb[16].mxu1  ;;  %21284 = vmatprep.subr.bf16.mxu1 %v23867_v9  ;;  %22134 = vmatprep.subr.bf16.mxu0 %v23868_v5  ;;  %v23886_v9 = vld [vmem:[%s31445_s3 + $0x1928] sm:$0xff]   ;;  %v23887_v5 = vld [vmem:[%s31445_s3 + $0x650] sm:$0xff]  }
 0x5c0   : > { %v21137_v32 = vpop.f32.mrb[17].mxu1 }
 0x5c1   : > { %v21138_v25 = vadd.f32 %v21137_v32, %v21136_v17  ;;  %v21139_v41 = vpop.f32.mrb[18].mxu1  ;;  %21285 = vmatpush3.bf16.msra.mxu1 %v23869_v29  ;;  %v23888_v29 = vld [vmem:[%s31445_s3 + $0x1970] sm:$0xff]  }
 0x5c2   : > { %22135 = vmatpush3.bf16.msra.mxu0 %v23870_v50  ;;  %v21140_v31 = vpop.f32.mrb[19].mxu1  ;;  %21286 = vmatprep.subr.bf16.mxu1 %v23871_v11  ;;  %v23891_v41 = vld [vmem:[%s31445_s3 + $0x658] sm:$0xff]  }
 0x5c3   : > { %v28522_v49 = vadd.f32 %v21138_v25, %v28415_v55  ;;  %22136 = vmatprep.subr.bf16.mxu0 %v23872_v2  ;;  %v23879_v55 = vld [vmem:[%s31445_s3 + $0x640] sm:$0xff]   ;;  %v23889_v2 = vld [vmem:[%s31445_s3 + $0x610] sm:$0xff]   ;;  %v6080_v31 = vadd.f32 %v28220_v20, %v27814_v58 }
 0x5c4   : > { %v23890_v25 = vld [vmem:[%s31445_s3 + $0x1930] sm:$0xff]   ;;  %v23896_v58 = vld [vmem:[%s31445_s3 + $0x1a40] sm:$0xff]  }
 0x5c5   : > { %21287 = vmatpush3.bf16.msra.mxu1 %v23873_v16  ;;  %v6075_v16 = vadd.f32 %v28220_v20, %v27744_v38  ;;  %v23895_v38 = vld [vmem:[%s31445_s3 + $0x660] sm:$0xff]  }
 0x5c6   : > { %22137 = vmatpush3.bf16.msra.mxu0 %v23874_v47  ;;  %21288 = vmatprep.subr.bf16.mxu1 %v23875_v19  ;;  %v23893_v47 = vld [vmem:[%s31445_s3 + $0x618] sm:$0xff]  }
 0x5c7   : > { %22138 = vmatprep.subr.bf16.mxu0 %v23876_v15  ;;  %v23894_v19 = vld [vmem:[%s31445_s3 + $0x1938] sm:$0xff]   ;;  %v6219_v10 = vmax.f32 %v6075_v16, 0.0  ;;  %v6224_v15 = vmax.f32 %v6080_v31, 0.0  ;;  %v23912_v16 = vld [vmem:[%s31445_s3 + $0x1a60] sm:$0xff]  }
 0x5c8   : > { %v23913_v31 = vld [vmem:[%s31445_s3 + $0x680] sm:$0xff]  }
 0x5c9   : > { %21289 = vmatpush3.bf16.msra.mxu1 %v23877_v4  ;;  %v23897_v4 = vld [vmem:[%s31445_s3 + $0x620] sm:$0xff]   ;;  %v6656_v37 = vpack.c.bf16 %v6224_v15, %v6224_v15  ;;  %v23917_v15 = vld [vmem:[%s31445_s3 + $0x688] sm:$0xff]  }
 0x5ca   : > { %22139 = vmatpush3.bf16.msra.mxu0 %v23878_v7  ;;  %21296 = vmatprep.subr.bf16.mxu1 %v23879_v55  ;;  %v6651_v7 = vpack.c.bf16 %v6219_v10, %v6219_v10  ;;  %v23899_v55 = vld [vmem:[%s31445_s3 + $0x668] sm:$0xff]  }
 0x5cb   : > { %22140 = vmatprep.subr.bf16.mxu0 %v23880_v53  ;;  %v23900_v53 = vld [vmem:[%s31445_s3 + $0x1a48] sm:$0xff]  }
 0x5cc   : > { %16391 = vmatmul.mubr.bf16.vlgmr.msra.gmra.mrb[44].mxu1 %v6573_v39  ;;  %v23902_v39 = vld [vmem:[%s31445_s3 + $0x1a08] sm:$0xff]  }
 0x5cd   : > { %21297 = vmatpush3.bf16.msra.mxu1 %v23881_v61  ;;  %16430 = vmatprep.mubr.bf16.mxu1 %v6576_v18  ;;  %v23901_v61 = vld [vmem:[%s31445_s3 + $0x628] sm:$0xff]   ;;  %v23904_v18 = vld [vmem:[%s31445_s3 + $0x1a50] sm:$0xff]  }
 0x5ce   : > { %22141 = vmatpush3.bf16.msra.mxu0 %v23882_v33  ;;  %21298 = vmatprep.subr.bf16.mxu1 %v23883_v12  ;;  %v23903_v33 = vld [vmem:[%s31445_s3 + $0x670] sm:$0xff]  }
 0x5cf   : > { %22142 = vmatprep.subr.bf16.mxu0 %v23884_v52 }
 0x5d0   : > { %v21840_v35 = vpop.f32.mrb[64].mxu0 }
 0x5d1   : > { %v21841_v50 = vpop.f32.mrb[65].mxu0  ;;  %21299 = vmatpush3.bf16.msra.mxu1 %v23885_v42 }
 0x5d2   : > { %v28563_v11 = vadd.f32 %v21841_v50, %v21840_v35  ;;  %v21843_v17 = vpop.f32.mrb[66].mxu0  ;;  %22143 = vmatpush3.bf16.msra.mxu0 %v23886_v9  ;;  %21300 = vmatprep.subr.bf16.mxu1 %v23887_v5  ;;  %v23905_v5 = vld [vmem:[%s31445_s3 + $0x630] sm:$0xff]   ;;  %v5999_v35 = vadd.f32 %v28220_v20, %v26960_v40  ;;  %v23908_v40 = vld [vmem:[%s31445_s3 + $0x1a58] sm:$0xff]  }
 0x5d3   : > { %v21844_v32 = vpop.f32.mrb[67].mxu0  ;;  %22144 = vmatprep.subr.bf16.mxu0 %v23888_v29  ;;  %v23906_v50 = vld [vmem:[%s31445_s3 + $0x1a10] sm:$0xff]   ;;  %v23907_v17 = vld [vmem:[%s31445_s3 + $0x678] sm:$0xff]  }
 0x5d5   : > { %21301 = vmatpush3.bf16.msra.mxu1 %v23889_v2  ;;  %v6002_v2 = vadd.f32 %v28220_v20, %v26966_v56  ;;  %v23910_v56 = vld [vmem:[%s31445_s3 + $0x1a18] sm:$0xff]  }
 0x5d6   : > { %22145 = vmatpush3.bf16.msra.mxu0 %v23890_v25  ;;  %21302 = vmatprep.subr.bf16.mxu1 %v23891_v41  ;;  %v23909_v25 = vld [vmem:[%s31445_s3 + $0x638] sm:$0xff]   ;;  %v6143_v41 = vmax.f32 %v5999_v35, 0.0  ;;  %v23927_v35 = vld [vmem:[%s31445_s3 + $0x6e0] sm:$0xff]  }
 0x5d7   : > { %22146 = vmatprep.subr.bf16.mxu0 %v23892_v14  ;;  %v6146_v14 = vmax.f32 %v6002_v2, 0.0  ;;  %v23930_v2 = vld [vmem:[%s31445_s3 + $0x1b00] sm:$0xff]  }
 0x5d9   : > { %21303 = vmatpush3.bf16.msra.mxu1 %v23893_v47  ;;  %v6575_v47 = vpack.c.bf16 %v6143_v41, %v6143_v41  ;;  %v6578_v10 = vpack.c.bf16 %v6146_v14, %v6146_v14  ;;  %v23932_v41 = vld [vmem:[%s31445_s3 + $0x1b48] sm:$0xff]   ;;  %v23935_v14 = vld [vmem:[%s31445_s3 + $0x6f0] sm:$0xff]  }
 0x5da   : > { %22147 = vmatpush3.bf16.msra.mxu0 %v23894_v19  ;;  %21304 = vmatprep.subr.bf16.mxu1 %v23895_v38  ;;  %v23914_v19 = vld [vmem:[%s31445_s3 + $0x1a20] sm:$0xff]   ;;  %v23915_v38 = vld [vmem:[%s31445_s3 + $0x6c8] sm:$0xff]  }
 0x5db   : > { %22176 = vmatprep.subr.bf16.mxu0 %v23896_v58  ;;  %v23916_v58 = vld [vmem:[%s31445_s3 + $0x1a68] sm:$0xff]  }
 0x5dd   : > { %17951 = vmatmul.mubr.bf16.vlgmr.msra.gmra.mrb[92].mxu0 %v6651_v7  ;;  %21305 = vmatpush3.bf16.msra.mxu1 %v23897_v4  ;;  %v23918_v4 = vld [vmem:[%s31445_s3 + $0x1a28] sm:$0xff]   ;;  %v23920_v7 = vld [vmem:[%s31445_s3 + $0x1a70] sm:$0xff]  }
 0x5de   : > { %22177 = vmatpush3.bf16.msra.mxu0 %v23898_v23  ;;  %18030 = vmatprep.mubr.bf16.mxu0 %v6656_v37  ;;  %v23919_v23 = vld [vmem:[%s31445_s3 + $0x6d0] sm:$0xff]  }
 0x5df   : > { %v21158_v12 = vpop.f32.mrb[20].mxu1  ;;  %21306 = vmatprep.subr.bf16.mxu1 %v23899_v55  ;;  %22178 = vmatprep.subr.bf16.mxu0 %v23900_v53  ;;  %v23921_v37 = vld [vmem:[%s31445_s3 + $0x690] sm:$0xff]  }
 0x5e0   : > { %v21159_v52 = vpop.f32.mrb[21].mxu1 }
 0x5e1   : > { %v21160_v42 = vadd.f32 %v21159_v52, %v21158_v12  ;;  %v21161_v9 = vpop.f32.mrb[22].mxu1  ;;  %21307 = vmatpush3.bf16.msra.mxu1 %v23901_v61  ;;  %v23923_v12 = vld [vmem:[%s31445_s3 + $0x6d8] sm:$0xff]  }
 0x5e2   : > { %22179 = vmatpush3.bf16.msra.mxu0 %v23902_v39  ;;  %v21162_v29 = vpop.f32.mrb[23].mxu1  ;;  %21308 = vmatprep.subr.bf16.mxu1 %v23903_v33  ;;  %v23922_v33 = vld [vmem:[%s31445_s3 + $0x1a30] sm:$0xff]   ;;  %v6084_v9 = vadd.f32 %v28220_v20, %v27861_v43  ;;  %v23928_v43 = vld [vmem:[%s31445_s3 + $0x1b40] sm:$0xff]  }
 0x5e3   : > { %v28631_v32 = vadd.f32 %v21160_v42, %v28522_v49  ;;  %22180 = vmatprep.subr.bf16.mxu0 %v23904_v18  ;;  %v23911_v49 = vld [vmem:[%s31445_s3 + $0x6c0] sm:$0xff]   ;;  %v6079_v18 = vadd.f32 %v28220_v20, %v27792_v0  ;;  %v23924_v42 = vld [vmem:[%s31445_s3 + $0x1a78] sm:$0xff]  }
 0x5e4   : > { %v23926_v0 = vld [vmem:[%s31445_s3 + $0x1a38] sm:$0xff]  }
 0x5e5   : > { %21309 = vmatpush3.bf16.msra.mxu1 %v23905_v5  ;;  %v23925_v5 = vld [vmem:[%s31445_s3 + $0x698] sm:$0xff]   ;;  %v6223_v29 = vmax.f32 %v6079_v18, 0.0  ;;  %v23945_v18 = vld [vmem:[%s31445_s3 + $0x700] sm:$0xff]  }
 0x5e6   : > { %22181 = vmatpush3.bf16.msra.mxu0 %v23906_v50  ;;  %21310 = vmatprep.subr.bf16.mxu1 %v23907_v17  ;;  %v6228_v50 = vmax.f32 %v6084_v9, 0.0  ;;  %v23929_v17 = vld [vmem:[%s31445_s3 + $0x6a0] sm:$0xff]   ;;  %v23947_v9 = vld [vmem:[%s31445_s3 + $0x748] sm:$0xff]  }
 0x5e7   : > { %22182 = vmatprep.subr.bf16.mxu0 %v23908_v40  ;;  %v6655_v40 = vpack.c.bf16 %v6223_v29, %v6223_v29  ;;  %v23950_v29 = vld [vmem:[%s31445_s3 + $0x1b28] sm:$0xff]  }
 0x5e9   : > { %21311 = vmatpush3.bf16.msra.mxu1 %v23909_v25  ;;  %v23931_v25 = vld [vmem:[%s31445_s3 + $0x6e8] sm:$0xff]  }
 0x5ea   : > { %22183 = vmatpush3.bf16.msra.mxu0 %v23910_v56  ;;  %21318 = vmatprep.subr.bf16.mxu1 %v23911_v49  ;;  %v6660_v56 = vpack.c.bf16 %v6228_v50, %v6228_v50  ;;  %v23933_v49 = vld [vmem:[%s31445_s3 + $0x6a8] sm:$0xff]   ;;  %v23952_v50 = vld [vmem:[%s31445_s3 + $0x1b70] sm:$0xff]  }
 0x5eb   : > { %22184 = vmatprep.subr.bf16.mxu0 %v23912_v16  ;;  %v23934_v16 = vld [vmem:[%s31445_s3 + $0x1b08] sm:$0xff]  }
 0x5ec   : > { %16431 = vmatmul.mubr.bf16.vlgmr.msra.gmra.mrb[48].mxu1 %v6575_v47  ;;  %v23936_v47 = vld [vmem:[%s31445_s3 + $0x1b50] sm:$0xff]  }
 0x5ed   : > { %21319 = vmatpush3.bf16.msra.mxu1 %v23913_v31  ;;  %16470 = vmatprep.mubr.bf16.mxu1 %v6578_v10 }
 0x5ee   : > { %22185 = vmatpush3.bf16.msra.mxu0 %v23914_v19  ;;  %21320 = vmatprep.subr.bf16.mxu1 %v23915_v38 }
 0x5ef   : > { %22186 = vmatprep.subr.bf16.mxu0 %v23916_v58  ;;  %v23937_v58 = vld [vmem:[%s31445_s3 + $0x6b0] sm:$0xff]  }
 0x5f0   : > { %v21884_v55 = vpop.f32.mrb[68].mxu0 }
 0x5f1   : > { %v21885_v53 = vpop.f32.mrb[69].mxu0  ;;  %21321 = vmatpush3.bf16.msra.mxu1 %v23917_v15  ;;  %v6001_v15 = vadd.f32 %v28220_v20, %v26948_v8  ;;  %v23940_v8 = vld [vmem:[%s31445_s3 + $0x1b58] sm:$0xff]  }
 0x5f2   : > { %v28675_v61 = vadd.f32 %v21885_v53, %v21884_v55  ;;  %v21887_v39 = vpop.f32.mrb[70].mxu0  ;;  %22187 = vmatpush3.bf16.msra.mxu0 %v23918_v4  ;;  %21322 = vmatprep.subr.bf16.mxu1 %v23919_v23  ;;  %v23938_v23 = vld [vmem:[%s31445_s3 + $0x1b10] sm:$0xff]   ;;  %v6004_v55 = vadd.f32 %v28220_v20, %v27012_v22  ;;  %v23942_v22 = vld [vmem:[%s31445_s3 + $0x1b18] sm:$0xff]  }
 0x5f3   : > { %v21888_v52 = vpop.f32.mrb[71].mxu0  ;;  %22188 = vmatprep.subr.bf16.mxu0 %v23920_v7  ;;  %v23939_v7 = vld [vmem:[%s31445_s3 + $0x6f8] sm:$0xff]   ;;  %v6145_v39 = vmax.f32 %v6001_v15, 0.0  ;;  %v23961_v15 = vld [vmem:[%s31445_s3 + $0x720] sm:$0xff]  }
 0x5f5   : > { %21323 = vmatpush3.bf16.msra.mxu1 %v23921_v37  ;;  %v23941_v37 = vld [vmem:[%s31445_s3 + $0x6b8] sm:$0xff]   ;;  %v6577_v52 = vpack.c.bf16 %v6145_v39, %v6145_v39  ;;  %v23966_v39 = vld [vmem:[%s31445_s3 + $0x1c08] sm:$0xff]  }
 0x5f6   : > { %22189 = vmatpush3.bf16.msra.mxu0 %v23922_v33  ;;  %21324 = vmatprep.subr.bf16.mxu1 %v23923_v12  ;;  %v23944_v33 = vld [vmem:[%s31445_s3 + $0x1b60] sm:$0xff]   ;;  %v6148_v12 = vmax.f32 %v6004_v55, 0.0  ;;  %v23964_v55 = vld [vmem:[%s31445_s3 + $0x1c48] sm:$0xff]  }
 0x5f7   : > { %22190 = vmatprep.subr.bf16.mxu0 %v23924_v42  ;;  %v23946_v42 = vld [vmem:[%s31445_s3 + $0x1b20] sm:$0xff]  }
 0x5f9   : > { %21325 = vmatpush3.bf16.msra.mxu1 %v23925_v5  ;;  %v6580_v5 = vpack.c.bf16 %v6148_v12, %v6148_v12 }
 0x5fa   : > { %22191 = vmatpush3.bf16.msra.mxu0 %v23926_v0  ;;  %21326 = vmatprep.subr.bf16.mxu1 %v23927_v35  ;;  %v23948_v0 = vld [vmem:[%s31445_s3 + $0x1b68] sm:$0xff]  }
 0x5fb   : > { %22220 = vmatprep.subr.bf16.mxu0 %v23928_v43  ;;  %v23949_v35 = vld [vmem:[%s31445_s3 + $0x708] sm:$0xff]   ;;  %v23951_v43 = vld [vmem:[%s31445_s3 + $0x750] sm:$0xff]  }
 0x5fd   : > { %18031 = vmatmul.mubr.bf16.vlgmr.msra.gmra.mrb[96].mxu0 %v6655_v40  ;;  %21327 = vmatpush3.bf16.msra.mxu1 %v23929_v17  ;;  %v23953_v40 = vld [vmem:[%s31445_s3 + $0x710] sm:$0xff]  }
 0x5fe   : > { %22221 = vmatpush3.bf16.msra.mxu0 %v23930_v2  ;;  %18110 = vmatprep.mubr.bf16.mxu0 %v6660_v56  ;;  %v23954_v56 = vld [vmem:[%s31445_s3 + $0x1b30] sm:$0xff]  }
 0x5ff   : > { %v21180_v31 = vpop.f32.mrb[24].mxu1  ;;  %21328 = vmatprep.subr.bf16.mxu1 %v23931_v25  ;;  %22222 = vmatprep.subr.bf16.mxu0 %v23932_v41 }
 0x600   : > { %v21181_v19 = vpop.f32.mrb[25].mxu1 }
 0x601   : > { %v21182_v38 = vadd.f32 %v21181_v19, %v21180_v31  ;;  %v21183_v10 = vpop.f32.mrb[26].mxu1  ;;  %21329 = vmatpush3.bf16.msra.mxu1 %v23933_v49  ;;  %v23955_v49 = vld [vmem:[%s31445_s3 + $0x758] sm:$0xff]  }
 0x602   : > { %22223 = vmatpush3.bf16.msra.mxu0 %v23934_v16  ;;  %v21184_v4 = vpop.f32.mrb[27].mxu1  ;;  %21330 = vmatprep.subr.bf16.mxu1 %v23935_v14  ;;  %v6083_v16 = vadd.f32 %v28220_v20, %v27844_v59  ;;  %v23956_v31 = vld [vmem:[%s31445_s3 + $0x1b78] sm:$0xff]  }
 0x603   : > { %v28740_v53 = vadd.f32 %v21182_v38, %v28631_v32  ;;  %22224 = vmatprep.subr.bf16.mxu0 %v23936_v47  ;;  %v23943_v32 = vld [vmem:[%s31445_s3 + $0x740] sm:$0xff]   ;;  %v6088_v47 = vadd.f32 %v28220_v20, %v27918_v44  ;;  %v23957_v19 = vld [vmem:[%s31445_s3 + $0x718] sm:$0xff]  }
 0x604   : > { %v23958_v59 = vld [vmem:[%s31445_s3 + $0x1b38] sm:$0xff]   ;;  %v23959_v38 = vld [vmem:[%s31445_s3 + $0x760] sm:$0xff]   ;;  %v6227_v10 = vmax.f32 %v6083_v16, 0.0 }
 0x605   : > { %21331 = vmatpush3.bf16.msra.mxu1 %v23937_v58  ;;  %v23960_v44 = vld [vmem:[%s31445_s3 + $0x1c40] sm:$0xff]   ;;  %v6232_v58 = vmax.f32 %v6088_v47, 0.0  ;;  %v23982_v47 = vld [vmem:[%s31445_s3 + $0x1c28] sm:$0xff]  }
 0x606   : > { %22225 = vmatpush3.bf16.msra.mxu0 %v23938_v23  ;;  %21332 = vmatprep.subr.bf16.mxu1 %v23939_v7  ;;  %v23962_v4 = vld [vmem:[%s31445_s3 + $0x1c00] sm:$0xff]   ;;  %v6659_v23 = vpack.c.bf16 %v6227_v10, %v6227_v10  ;;  %v23963_v7 = vld [vmem:[%s31445_s3 + $0x768] sm:$0xff]  }
 0x607   : > { %22226 = vmatprep.subr.bf16.mxu0 %v23940_v8  ;;  %v6664_v8 = vpack.c.bf16 %v6232_v58, %v6232_v58 }
 0x609   : > { %21333 = vmatpush3.bf16.msra.mxu1 %v23941_v37  ;;  %v23965_v37 = vld [vmem:[%s31445_s3 + $0x728] sm:$0xff]  }
 0x60a   : > { %22227 = vmatpush3.bf16.msra.mxu0 %v23942_v22  ;;  %21340 = vmatprep.subr.bf16.mxu1 %v23943_v32  ;;  %v23967_v22 = vld [vmem:[%s31445_s3 + $0x770] sm:$0xff]  }
 0x60b   : > { %22228 = vmatprep.subr.bf16.mxu0 %v23944_v33  ;;  %v23968_v33 = vld [vmem:[%s31445_s3 + $0x1c50] sm:$0xff]  }
 0x60c   : > { %16471 = vmatmul.mubr.bf16.vlgmr.msra.gmra.mrb[52].mxu1 %v6577_v52 }
 0x60d   : > { %21341 = vmatpush3.bf16.msra.mxu1 %v23945_v18  ;;  %16510 = vmatprep.mubr.bf16.mxu1 %v6580_v5 }
 0x60e   : > { %22229 = vmatpush3.bf16.msra.mxu0 %v23946_v42  ;;  %21342 = vmatprep.subr.bf16.mxu1 %v23947_v9  ;;  %v23969_v42 = vld [vmem:[%s31445_s3 + $0x730] sm:$0xff]   ;;  %v6003_v9 = vadd.f32 %v28220_v20, %v27000_v57  ;;  %v23972_v57 = vld [vmem:[%s31445_s3 + $0x1c58] sm:$0xff]  }
 0x60f   : > { %22230 = vmatprep.subr.bf16.mxu0 %v23948_v0  ;;  %v23970_v0 = vld [vmem:[%s31445_s3 + $0x1c10] sm:$0xff]  }
 0x610   : > { %v21928_v17 = vpop.f32.mrb[72].mxu0 }
 0x611   : > { %v21929_v2 = vpop.f32.mrb[73].mxu0  ;;  %21343 = vmatpush3.bf16.msra.mxu1 %v23949_v35  ;;  %v23971_v35 = vld [vmem:[%s31445_s3 + $0x778] sm:$0xff]  }
 0x612   : > { %v28784_v25 = vadd.f32 %v21929_v2, %v21928_v17  ;;  %v21931_v41 = vpop.f32.mrb[74].mxu0  ;;  %22231 = vmatpush3.bf16.msra.mxu0 %v23950_v29  ;;  %21344 = vmatprep.subr.bf16.mxu1 %v23951_v43  ;;  %v6006_v29 = vadd.f32 %v28220_v20, %v27006_v34  ;;  %v6147_v17 = vmax.f32 %v6003_v9, 0.0  ;;  %v23974_v34 = vld [vmem:[%s31445_s3 + $0x1c18] sm:$0xff]   ;;  %v23975_v20 = vld [vmem:[%s31445_s3 + $0x7c0] sm:$0xff]   ;;  %v23995_v9 = vld [vmem:[%s31445_s3 + $0x7e8] sm:$0xff]  }
 0x613   : > { %v21932_v14 = vpop.f32.mrb[75].mxu0  ;;  %22232 = vmatprep.subr.bf16.mxu0 %v23952_v50  ;;  %v23973_v50 = vld [vmem:[%s31445_s3 + $0x738] sm:$0xff]  }
 0x614   : > { %v6150_v2 = vmax.f32 %v6006_v29, 0.0  ;;  %v6579_v41 = vpack.c.bf16 %v6147_v17, %v6147_v17  ;;  %v23980_v14 = vld [vmem:[%s31445_s3 + $0x1c68] sm:$0xff]   ;;  %v24000_v17 = vld [vmem:[%s31445_s3 + $0x1d50] sm:$0xff]  }
 0x615   : > { %21345 = vmatpush3.bf16.msra.mxu1 %v23953_v40  ;;  %v23977_v40 = vld [vmem:[%s31445_s3 + $0x780] sm:$0xff]   ;;  %v23998_v29 = vld [vmem:[%s31445_s3 + $0x1d08] sm:$0xff]  }
 0x616   : > { %22233 = vmatpush3.bf16.msra.mxu0 %v23954_v56  ;;  %21346 = vmatprep.subr.bf16.mxu1 %v23955_v49  ;;  %v23978_v56 = vld [vmem:[%s31445_s3 + $0x1c20] sm:$0xff]   ;;  %v23979_v49 = vld [vmem:[%s31445_s3 + $0x7c8] sm:$0xff]   ;;  %v6582_v16 = vpack.c.bf16 %v6150_v2, %v6150_v2  ;;  %v24001_v2 = vld [vmem:[%s31445_s3 + $0x7b0] sm:$0xff]  }
 0x617   : > { %22234 = vmatprep.subr.bf16.mxu0 %v23956_v31  ;;  %v23981_v31 = vld [vmem:[%s31445_s3 + $0x788] sm:$0xff]  }
 0x619   : > { %21347 = vmatpush3.bf16.msra.mxu1 %v23957_v19  ;;  %v23983_v19 = vld [vmem:[%s31445_s3 + $0x7d0] sm:$0xff]  }
 0x61a   : > { %22235 = vmatpush3.bf16.msra.mxu0 %v23958_v59  ;;  %21348 = vmatprep.subr.bf16.mxu1 %v23959_v38  ;;  %v23984_v59 = vld [vmem:[%s31445_s3 + $0x1c70] sm:$0xff]  }
 0x61b   : > { %22264 = vmatprep.subr.bf16.mxu0 %v23960_v44  ;;  %v23985_v44 = vld [vmem:[%s31445_s3 + $0x790] sm:$0xff]  }
 0x61d   : > { %18111 = vmatmul.mubr.bf16.vlgmr.msra.gmra.mrb[100].mxu0 %v6659_v23  ;;  %21349 = vmatpush3.bf16.msra.mxu1 %v23961_v15  ;;  %v23987_v23 = vld [vmem:[%s31445_s3 + $0x7d8] sm:$0xff]  }
 0x61e   : > { %22265 = vmatpush3.bf16.msra.mxu0 %v23962_v4  ;;  %18190 = vmatprep.mubr.bf16.mxu0 %v6664_v8  ;;  %v23986_v4 = vld [vmem:[%s31445_s3 + $0x1c30] sm:$0xff]  }
 0x61f   : > { %v21202_v32 = vpop.f32.mrb[28].mxu1  ;;  %21350 = vmatprep.subr.bf16.mxu1 %v23963_v7  ;;  %22266 = vmatprep.subr.bf16.mxu0 %v23964_v55  ;;  %v28904_v7 = vld [vmem:[%s31444_s2] ss:$0 sm:$0xff] }
 0x620   : > { %v21203_v12 = vpop.f32.mrb[29].mxu1  ;;  %v6087_v55 = vadd.f32 %v28904_v7, %v27892_v51  ;;  %v23990_v51 = vld [vmem:[%s31445_s3 + $0x1c38] sm:$0xff]  }
 0x621   : > { %v21204_v18 = vadd.f32 %v21203_v12, %v21202_v32  ;;  %v21205_v52 = vpop.f32.mrb[30].mxu1  ;;  %21351 = vmatpush3.bf16.msra.mxu1 %v23965_v37  ;;  %v23988_v37 = vld [vmem:[%s31445_s3 + $0x1c78] sm:$0xff]   ;;  %v23991_v32 = vld [vmem:[%s31445_s3 + $0x7e0] sm:$0xff]  }
 0x622   : > { %22267 = vmatpush3.bf16.msra.mxu0 %v23966_v39  ;;  %v21206_v5 = vpop.f32.mrb[31].mxu1  ;;  %21352 = vmatprep.subr.bf16.mxu1 %v23967_v22  ;;  %v6092_v39 = vadd.f32 %v28904_v7, %v27966_v21  ;;  %v23989_v22 = vld [vmem:[%s31445_s3 + $0x798] sm:$0xff]   ;;  %v23992_v21 = vld [vmem:[%s31445_s3 + $0x1d40] sm:$0xff]  }
 0x623   : > { %v28849_v43 = vadd.f32 %v21204_v18, %v28740_v53  ;;  %22268 = vmatprep.subr.bf16.mxu0 %v23968_v33  ;;  %v23976_v53 = vld [vmem:[%s31445_s3 + $0x1c60] sm:$0xff]   ;;  %v6231_v33 = vmax.f32 %v6087_v55, 0.0  ;;  %v23996_v5 = vld [vmem:[%s31445_s3 + $0x1d48] sm:$0xff]  }
 0x624   : > { %v6236_v12 = vmax.f32 %v6092_v39, 0.0  ;;  %v23993_v18 = vld [vmem:[%s31445_s3 + $0x7a0] sm:$0xff]   ;;  %v24013_v55 = vld [vmem:[%s31445_s3 + $0x808] sm:$0xff]   ;;  %v24016_v39 = vld [vmem:[%s31445_s3 + $0x1d70] sm:$0xff]  }
 0x625   : > { %21353 = vmatpush3.bf16.msra.mxu1 %v23969_v42  ;;  %v23994_v52 = vld [vmem:[%s31445_s3 + $0x1d00] sm:$0xff]   ;;  %v6663_v42 = vpack.c.bf16 %v6231_v33, %v6231_v33 }
 0x626   : > { %22269 = vmatpush3.bf16.msra.mxu0 %v23970_v0  ;;  %21354 = vmatprep.subr.bf16.mxu1 %v23971_v35  ;;  %v6668_v0 = vpack.c.bf16 %v6236_v12, %v6236_v12  ;;  %v23997_v35 = vld [vmem:[%s31445_s3 + $0x7a8] sm:$0xff]   ;;  %v24018_v12 = vld [vmem:[%s31445_s3 + $0x1d30] sm:$0xff]  }
 0x627   : > { %22270 = vmatprep.subr.bf16.mxu0 %v23972_v57  ;;  %v23999_v57 = vld [vmem:[%s31445_s3 + $0x7f0] sm:$0xff]  }
 0x629   : > { %21355 = vmatpush3.bf16.msra.mxu1 %v23973_v50 }
 0x62a   : > { %22271 = vmatpush3.bf16.msra.mxu0 %v23974_v34  ;;  %21362 = vmatprep.subr.bf16.mxu1 %v23975_v20 }
 0x62b   : > { %22272 = vmatprep.subr.bf16.mxu0 %v23976_v53 }
 0x62c   : > { %16511 = vmatmul.mubr.bf16.vlgmr.msra.gmra.mrb[56].mxu1 %v6579_v41 }
 0x62d   : > { %21363 = vmatpush3.bf16.msra.mxu1 %v23977_v40  ;;  %16550 = vmatprep.mubr.bf16.mxu1 %v6582_v16  ;;  %v6005_v40 = vadd.f32 %v28904_v7, %v26988_v1  ;;  %v6008_v16 = vadd.f32 %v28904_v7, %v27055_v26  ;;  %v24004_v1 = vld [vmem:[%s31445_s3 + $0x1d58] sm:$0xff]  }
 0x62e   : > { %22273 = vmatpush3.bf16.msra.mxu0 %v23978_v56  ;;  %21364 = vmatprep.subr.bf16.mxu1 %v23979_v49  ;;  %v24002_v56 = vld [vmem:[%s31445_s3 + $0x1d10] sm:$0xff]   ;;  %v24003_v49 = vld [vmem:[%s31445_s3 + $0x7f8] sm:$0xff]  }
 0x62f   : > { %22274 = vmatprep.subr.bf16.mxu0 %v23980_v14  ;;  %v24006_v26 = vld [vmem:[%s31445_s3 + $0x1d18] sm:$0xff]  }
 0x630   : > { %v21972_v38 = vpop.f32.mrb[76].mxu0 }
 0x631   : > { %v21973_v10 = vpop.f32.mrb[77].mxu0  ;;  %21365 = vmatpush3.bf16.msra.mxu1 %v23981_v31  ;;  %v24005_v31 = vld [vmem:[%s31445_s3 + $0x7b8] sm:$0xff]  }
 0x632   : > { %v28893_v58 = vadd.f32 %v21973_v10, %v21972_v38  ;;  %v21975_v15 = vpop.f32.mrb[78].mxu0  ;;  %22275 = vmatpush3.bf16.msra.mxu0 %v23982_v47  ;;  %21366 = vmatprep.subr.bf16.mxu1 %v23983_v19  ;;  %v6149_v47 = vmax.f32 %v6005_v40, 0.0  ;;  %v24008_v19 = vld [vmem:[%s31445_s3 + $0x1d60] sm:$0xff]   ;;  %v24029_v40 = vld [vmem:[%s31445_s3 + $0x828] sm:$0xff]  }
 0x633   : > { %v21976_v8 = vpop.f32.mrb[79].mxu0  ;;  %22276 = vmatprep.subr.bf16.mxu0 %v23984_v59  ;;  %v6152_v59 = vmax.f32 %v6008_v16, 0.0  ;;  %v24009_v38 = vld [vmem:[%s31445_s3 + $0x800] sm:$0xff]   ;;  %v24011_v15 = vld [vmem:[%s31445_s3 + $0x848] sm:$0xff]   ;;  %v24032_v16 = vld [vmem:[%s31445_s3 + $0x1e50] sm:$0xff]  }
 0x634   : > { %v6581_v10 = vpack.c.bf16 %v6149_v47, %v6149_v47  ;;  %v24014_v8 = vld [vmem:[%s31445_s3 + $0x1d28] sm:$0xff]  }
 0x635   : > { %21367 = vmatpush3.bf16.msra.mxu1 %v23985_v44  ;;  %v24010_v44 = vld [vmem:[%s31445_s3 + $0x1d20] sm:$0xff]  }
 0x636   : > { %22277 = vmatpush3.bf16.msra.mxu0 %v23986_v4  ;;  %21368 = vmatprep.subr.bf16.mxu1 %v23987_v23  ;;  %v6584_v4 = vpack.c.bf16 %v6152_v59, %v6152_v59  ;;  %v24012_v23 = vld [vmem:[%s31445_s3 + $0x1d68] sm:$0xff]   ;;  %v24034_v59 = vld [vmem:[%s31445_s3 + $0x1e10] sm:$0xff]  }
 0x637   : > { %22278 = vmatprep.subr.bf16.mxu0 %v23988_v37  ;;  %v24015_v37 = vld [vmem:[%s31445_s3 + $0x850] sm:$0xff]  }
 0x639   : > { %21369 = vmatpush3.bf16.msra.mxu1 %v23989_v22 }
 0x63a   : > { %22279 = vmatpush3.bf16.msra.mxu0 %v23990_v51  ;;  %21370 = vmatprep.subr.bf16.mxu1 %v23991_v32  ;;  %v24017_v32 = vld [vmem:[%s31445_s3 + $0x810] sm:$0xff]  }
 0x63b   : > { %22308 = vmatprep.subr.bf16.mxu0 %v23992_v21 }
 0x63d   : > { %18191 = vmatmul.mubr.bf16.vlgmr.msra.gmra.mrb[104].mxu0 %v6663_v42  ;;  %21371 = vmatpush3.bf16.msra.mxu1 %v23993_v18  ;;  %v24019_v18 = vld [vmem:[%s31445_s3 + $0x858] sm:$0xff]  }
 0x63e   : > { %22309 = vmatpush3.bf16.msra.mxu0 %v23994_v52  ;;  %18270 = vmatprep.mubr.bf16.mxu0 %v6668_v0  ;;  %v6091_v52 = vadd.f32 %v28904_v7, %v27946_v45  ;;  %v24021_v0 = vld [vmem:[%s31445_s3 + $0x818] sm:$0xff]  }
 0x63f   : > { %v21224_v50 = vpop.f32.mrb[32].mxu1  ;;  %21372 = vmatprep.subr.bf16.mxu1 %v23995_v9  ;;  %22310 = vmatprep.subr.bf16.mxu0 %v23996_v5  ;;  %v24020_v9 = vld [vmem:[%s31445_s3 + $0x1d78] sm:$0xff]   ;;  %v6096_v5 = vadd.f32 %v28904_v7, %v28016_v48  ;;  %v24024_v48 = vld [vmem:[%s31445_s3 + $0x1e40] sm:$0xff]  }
 0x640   : > { %v21225_v34 = vpop.f32.mrb[33].mxu1  ;;  %v24022_v45 = vld [vmem:[%s31445_s3 + $0x1d38] sm:$0xff]  }
 0x641   : > { %v21226_v20 = vadd.f32 %v21225_v34, %v21224_v50  ;;  %v21227_v53 = vpop.f32.mrb[34].mxu1  ;;  %21373 = vmatpush3.bf16.msra.mxu1 %v23997_v35  ;;  %v24023_v35 = vld [vmem:[%s31445_s3 + $0x860] sm:$0xff]  }
 0x642   : > { %22311 = vmatpush3.bf16.msra.mxu0 %v23998_v29  ;;  %v21228_v41 = vpop.f32.mrb[35].mxu1  ;;  %21374 = vmatprep.subr.bf16.mxu1 %v23999_v57  ;;  %v6235_v29 = vmax.f32 %v6091_v52, 0.0  ;;  %v6240_v57 = vmax.f32 %v6096_v5, 0.0  ;;  %v24025_v50 = vld [vmem:[%s31445_s3 + $0x820] sm:$0xff]   ;;  %v24028_v53 = vld [vmem:[%s31445_s3 + $0x1e48] sm:$0xff]   ;;  %v24048_v52 = vld [vmem:[%s31445_s3 + $0x1e70] sm:$0xff]  }
 0x643   : > { %v28963_v14 = vadd.f32 %v21226_v20, %v28849_v43  ;;  %22312 = vmatprep.subr.bf16.mxu0 %v24000_v17  ;;  %v24007_v43 = vld [vmem:[%s31445_s3 + $0x840] sm:$0xff]   ;;  %v24027_v20 = vld [vmem:[%s31445_s3 + $0x868] sm:$0xff]   ;;  %v24049_v5 = vld [vmem:[%s31445_s3 + $0x890] sm:$0xff]  }
 0x644   : > { %v24026_v17 = vld [vmem:[%s31445_s3 + $0x1e00] sm:$0xff]   ;;  %v6667_v34 = vpack.c.bf16 %v6235_v29, %v6235_v29  ;;  %v24030_v41 = vld [vmem:[%s31445_s3 + $0x1e08] sm:$0xff]   ;;  %v24051_v29 = vld [vmem:[%s31445_s3 + $0x8d8] sm:$0xff]  }
 0x645   : > { %21375 = vmatpush3.bf16.msra.mxu1 %v24001_v2  ;;  %v6672_v2 = vpack.c.bf16 %v6240_v57, %v6240_v57 }
 0x646   : > { %22313 = vmatpush3.bf16.msra.mxu0 %v24002_v56  ;;  %21376 = vmatprep.subr.bf16.mxu1 %v24003_v49  ;;  %v24031_v56 = vld [vmem:[%s31445_s3 + $0x870] sm:$0xff]  }
 0x647   : > { %22314 = vmatprep.subr.bf16.mxu0 %v24004_v1 }
 0x649   : > { %21377 = vmatpush3.bf16.msra.mxu1 %v24005_v31 }
 0x64a   : > { %22315 = vmatpush3.bf16.msra.mxu0 %v24006_v26  ;;  %21384 = vmatprep.subr.bf16.mxu1 %v24007_v43  ;;  %v24033_v26 = vld [vmem:[%s31445_s3 + $0x830] sm:$0xff]   ;;  %v6007_v43 = vadd.f32 %v28904_v7, %v27039_v6  ;;  %v24036_v6 = vld [vmem:[%s31445_s3 + $0x1e58] sm:$0xff]  }
 0x64b   : > { %22316 = vmatprep.subr.bf16.mxu0 %v24008_v19 }
 0x64c   : > { %16551 = vmatmul.mubr.bf16.vlgmr.msra.gmra.mrb[60].mxu1 %v6581_v10  ;;  %v6010_v10 = vadd.f32 %v28904_v7, %v27047_v24  ;;  %v24038_v24 = vld [vmem:[%s31445_s3 + $0x1e18] sm:$0xff]  }
 0x64d   : > { %21385 = vmatpush3.bf16.msra.mxu1 %v24009_v38  ;;  %16590 = vmatprep.mubr.bf16.mxu1 %v6584_v4  ;;  %v24035_v38 = vld [vmem:[%s31445_s3 + $0x878] sm:$0xff]   ;;  %v6151_v4 = vmax.f32 %v6007_v43, 0.0 }
 0x64e   : > { %22317 = vmatpush3.bf16.msra.mxu0 %v24010_v44  ;;  %21386 = vmatprep.subr.bf16.mxu1 %v24011_v15  ;;  %v24037_v15 = vld [vmem:[%s31445_s3 + $0x838] sm:$0xff]  }
 0x64f   : > { %22318 = vmatprep.subr.bf16.mxu0 %v24012_v23  ;;  %v24040_v23 = vld [vmem:[%s31445_s3 + $0x1e60] sm:$0xff]  }
 0x650   : > { %v22016_v22 = vpop.f32.mrb[80].mxu0 }
 0x651   : > { %v22017_v51 = vpop.f32.mrb[81].mxu0  ;;  %21387 = vmatpush3.bf16.msra.mxu1 %v24013_v55  ;;  %v6154_v55 = vmax.f32 %v6010_v10, 0.0 }
 0x652   : > { %v29007_v33 = vadd.f32 %v22017_v51, %v22016_v22  ;;  %v22019_v21 = vpop.f32.mrb[82].mxu0  ;;  %22319 = vmatpush3.bf16.msra.mxu0 %v24014_v8  ;;  %21388 = vmatprep.subr.bf16.mxu1 %v24015_v37  ;;  %v24041_v8 = vld [vmem:[%s31445_s3 + $0x880] sm:$0xff]   ;;  %v6583_v37 = vpack.c.bf16 %v6151_v4, %v6151_v4  ;;  %v24043_v22 = vld [vmem:[%s31445_s3 + $0x8c8] sm:$0xff]  }
 0x653   : > { %v22020_v42 = vpop.f32.mrb[83].mxu0  ;;  %22320 = vmatprep.subr.bf16.mxu0 %v24016_v39  ;;  %v24042_v39 = vld [vmem:[%s31445_s3 + $0x1e20] sm:$0xff]   ;;  %v6586_v51 = vpack.c.bf16 %v6154_v55, %v6154_v55  ;;  %v24045_v21 = vld [vmem:[%s31445_s3 + $0x888] sm:$0xff]   ;;  %v32798_v55 = vld [vmem:[#allocation7_spill] sm:$0xff] }
 0x655   : > { %21389 = vmatpush3.bf16.msra.mxu1 %v24017_v32  ;;  %v24044_v32 = vld [vmem:[%s31445_s3 + $0x1e68] sm:$0xff]  }
 0x656   : > { %22321 = vmatpush3.bf16.msra.mxu0 %v24018_v12  ;;  %21390 = vmatprep.subr.bf16.mxu1 %v24019_v18  ;;  %v24046_v12 = vld [vmem:[%s31445_s3 + $0x1e28] sm:$0xff]   ;;  %v24047_v18 = vld [vmem:[%s31445_s3 + $0x8d0] sm:$0xff]  }
 0x657   : > { %22322 = vmatprep.subr.bf16.mxu0 %v24020_v9 }
 0x659   : > { %21391 = vmatpush3.bf16.msra.mxu1 %v24021_v0 }
 0x65a   : > { %22323 = vmatpush3.bf16.msra.mxu0 %v24022_v45  ;;  %21392 = vmatprep.subr.bf16.mxu1 %v24023_v35  ;;  %v24050_v35 = vld [vmem:[%s31445_s3 + $0x1e30] sm:$0xff]  }
 0x65b   : > { %22352 = vmatprep.subr.bf16.mxu0 %v24024_v48  ;;  %v6095_v48 = vadd.f32 %v28904_v7, %v27994_v60  ;;  %v24054_v60 = vld [vmem:[%s31445_s3 + $0x1e38] sm:$0xff]  }
 0x65d   : > { %18271 = vmatmul.mubr.bf16.vlgmr.msra.gmra.mrb[108].mxu0 %v6667_v34  ;;  %21393 = vmatpush3.bf16.msra.mxu1 %v24025_v50  ;;  %v24052_v50 = vld [vmem:[%s31445_s3 + $0x1e78] sm:$0xff]  }
 0x65e   : > { %22353 = vmatpush3.bf16.msra.mxu0 %v24026_v17  ;;  %18350 = vmatprep.mubr.bf16.mxu0 %v6672_v2  ;;  %v6100_v17 = vadd.f32 %v28904_v7, %v28063_v13  ;;  %v24053_v34 = vld [vmem:[%s31445_s3 + $0x898] sm:$0xff]   ;;  %v24056_v13 = vld [vmem:[%s31445_s3 + $0x1f40] sm:$0xff]  }
 0x65f   : > { %v21246_v49 = vpop.f32.mrb[36].mxu1  ;;  %21394 = vmatprep.subr.bf16.mxu1 %v24027_v20  ;;  %22354 = vmatprep.subr.bf16.mxu0 %v24028_v53  ;;  %v24055_v20 = vld [vmem:[%s31445_s3 + $0x8e0] sm:$0xff]   ;;  %v6239_v53 = vmax.f32 %v6095_v48, 0.0  ;;  %v24079_v48 = vld [vmem:[%s31445_s3 + $0x950] sm:$0xff]  }
 0x660   : > { %v21247_v1 = vpop.f32.mrb[37].mxu1  ;;  %v6244_v2 = vmax.f32 %v6100_v17, 0.0 }
 0x661   : > { %v21248_v31 = vadd.f32 %v21247_v1, %v21246_v49  ;;  %v21249_v47 = vpop.f32.mrb[38].mxu1  ;;  %21395 = vmatpush3.bf16.msra.mxu1 %v24029_v40  ;;  %v24057_v40 = vld [vmem:[%s31445_s3 + $0x8a0] sm:$0xff]   ;;  %v24059_v49 = vld [vmem:[%s31445_s3 + $0x8e8] sm:$0xff]  }
 0x662   : > { %22355 = vmatpush3.bf16.msra.mxu0 %v24030_v41  ;;  %v21250_v19 = vpop.f32.mrb[39].mxu1  ;;  %21396 = vmatprep.subr.bf16.mxu1 %v24031_v56  ;;  %v24058_v41 = vld [vmem:[%s31445_s3 + $0x1f00] sm:$0xff]   ;;  %v6671_v56 = vpack.c.bf16 %v6239_v53, %v6239_v53  ;;  %v6676_v1 = vpack.c.bf16 %v6244_v2, %v6244_v2  ;;  %v24062_v47 = vld [vmem:[%s31445_s3 + $0x1f08] sm:$0xff]   ;;  %v24082_v53 = vld [vmem:[%s31445_s3 + $0x1f30] sm:$0xff]  }
 0x663   : > { %v29072_v44 = vadd.f32 %v21248_v31, %v28963_v14  ;;  %22356 = vmatprep.subr.bf16.mxu0 %v24032_v16  ;;  %v24039_v14 = vld [vmem:[%s31445_s3 + $0x8c0] sm:$0xff]   ;;  %v24060_v16 = vld [vmem:[%s31445_s3 + $0x1f48] sm:$0xff]   ;;  %v24064_v19 = vld [vmem:[%s31445_s3 + $0x1f50] sm:$0xff]  }
 0x664   : > { %v24061_v31 = vld [vmem:[%s31445_s3 + $0x8a8] sm:$0xff]   ;;  %v32799_v2 = vld [vmem:[#allocation26_spill] sm:$0xff] }
 0x665   : > { %21397 = vmatpush3.bf16.msra.mxu1 %v24033_v26  ;;  %v24063_v26 = vld [vmem:[%s31445_s3 + $0x8f0] sm:$0xff]  }
 0x666   : > { %22357 = vmatpush3.bf16.msra.mxu0 %v24034_v59  ;;  %21398 = vmatprep.subr.bf16.mxu1 %v24035_v38 }
 0x667   : > { %22358 = vmatprep.subr.bf16.mxu0 %v24036_v6  ;;  %v24065_v6 = vld [vmem:[%s31445_s3 + $0x8b0] sm:$0xff]  }
 0x669   : > { %21399 = vmatpush3.bf16.msra.mxu1 %v24037_v15  ;;  %v32797_v15 = vld [vmem:[#allocation6_spill] sm:$0xff] }
 0x66a   : > { %22359 = vmatpush3.bf16.msra.mxu0 %v24038_v24  ;;  %21406 = vmatprep.subr.bf16.mxu1 %v24039_v14  ;;  %v6009_v4 = vadd.f32 %v28904_v7, %v32797_v15  ;;  %v24066_v14 = vld [vmem:[%s31445_s3 + $0x1f10] sm:$0xff]   ;;  %v24093_v15 = vld [vmem:[%s31445_s3 + $0x928] sm:$0xff]  }
 0x66b   : > { %22360 = vmatprep.subr.bf16.mxu0 %v24040_v23  ;;  %v24067_v23 = vld [vmem:[%s31445_s3 + $0x8f8] sm:$0xff]  }
 0x66c   : > { %16591 = vmatmul.mubr.bf16.vlgmr.msra.gmra.mrb[64].mxu1 %v6583_v37 }
 0x66d   : > { %21407 = vmatpush3.bf16.msra.mxu1 %v24041_v8  ;;  %16630 = vmatprep.mubr.bf16.mxu1 %v6586_v51  ;;  %v6012_v8 = vadd.f32 %v28904_v7, %v32798_v55  ;;  %v6153_v51 = vmax.f32 %v6009_v4, 0.0  ;;  %v24094_v4 = vld [vmem:[%s31445_s3 + $0x2008] sm:$0xff]  }
 0x66e   : > { %22361 = vmatpush3.bf16.msra.mxu0 %v24042_v39  ;;  %21408 = vmatprep.subr.bf16.mxu1 %v24043_v22  ;;  %v24068_v39 = vld [vmem:[%s31445_s3 + $0x1f58] sm:$0xff]  }
 0x66f   : > { %22362 = vmatprep.subr.bf16.mxu0 %v24044_v32  ;;  %v24069_v22 = vld [vmem:[%s31445_s3 + $0x8b8] sm:$0xff]  }
 0x670   : > { %v22060_v42 = vpop.f32.mrb[84].mxu0  ;;  %v24070_v32 = vld [vmem:[%s31445_s3 + $0x1f18] sm:$0xff]  }
 0x671   : > { %v22061_v9 = vpop.f32.mrb[85].mxu0  ;;  %21409 = vmatpush3.bf16.msra.mxu1 %v24045_v21  ;;  %v24072_v21 = vld [vmem:[%s31445_s3 + $0x1f60] sm:$0xff]  }
 0x672   : > { %v29116_v0 = vadd.f32 %v22061_v9, %v22060_v42  ;;  %v22063_v45 = vpop.f32.mrb[86].mxu0  ;;  %22363 = vmatpush3.bf16.msra.mxu0 %v24046_v12  ;;  %21410 = vmatprep.subr.bf16.mxu1 %v24047_v18  ;;  %v6156_v12 = vmax.f32 %v6012_v8, 0.0  ;;  %v24073_v18 = vld [vmem:[%s31445_s3 + $0x900] sm:$0xff]   ;;  %v24075_v9 = vld [vmem:[%s31445_s3 + $0x948] sm:$0xff]  }
 0x673   : > { %v22064_v57 = vpop.f32.mrb[87].mxu0  ;;  %22364 = vmatprep.subr.bf16.mxu0 %v24048_v52  ;;  %v6585_v52 = vpack.c.bf16 %v6153_v51, %v6153_v51  ;;  %v24074_v42 = vld [vmem:[%s31445_s3 + $0x1f20] sm:$0xff]   ;;  %v24076_v45 = vld [vmem:[%s31445_s3 + $0x1f68] sm:$0xff]   ;;  %v32800_v51 = vld [vmem:[#allocation135_spill] sm:$0xff] }
 0x674   : > { %v24080_v57 = vld [vmem:[%s31445_s3 + $0x1f70] sm:$0xff]  }
 0x675   : > { %21411 = vmatpush3.bf16.msra.mxu1 %v24049_v5  ;;  %v6588_v5 = vpack.c.bf16 %v6156_v12, %v6156_v12  ;;  %v24099_v12 = vld [vmem:[%s31445_s3 + $0x978] sm:$0xff]  }
 0x676   : > { %22365 = vmatpush3.bf16.msra.mxu0 %v24050_v35  ;;  %21412 = vmatprep.subr.bf16.mxu1 %v24051_v29  ;;  %v24077_v35 = vld [vmem:[%s31445_s3 + $0x908] sm:$0xff]  }
 0x677   : > { %22366 = vmatprep.subr.bf16.mxu0 %v24052_v50  ;;  %v24078_v29 = vld [vmem:[%s31445_s3 + $0x1f28] sm:$0xff]  }
 0x679   : > { %21413 = vmatpush3.bf16.msra.mxu1 %v24053_v34  ;;  %v24081_v34 = vld [vmem:[%s31445_s3 + $0x910] sm:$0xff]  }
 0x67a   : > { %22367 = vmatpush3.bf16.msra.mxu0 %v24054_v60  ;;  %21414 = vmatprep.subr.bf16.mxu1 %v24055_v20 }
 0x67b   : > { %22396 = vmatprep.subr.bf16.mxu0 %v24056_v13  ;;  %v24083_v13 = vld [vmem:[%s31445_s3 + $0x958] sm:$0xff]  }
 0x67d   : > { %18351 = vmatmul.mubr.bf16.vlgmr.msra.gmra.mrb[112].mxu0 %v6671_v56  ;;  %21415 = vmatpush3.bf16.msra.mxu1 %v24057_v40  ;;  %v6099_v40 = vadd.f32 %v28904_v7, %v32799_v2  ;;  %v24084_v56 = vld [vmem:[%s31445_s3 + $0x1f78] sm:$0xff]   ;;  %v24110_v2 = vld [vmem:[%s31445_s3 + $0x2028] sm:$0xff]  }
 0x67e   : > { %22397 = vmatpush3.bf16.msra.mxu0 %v24058_v41  ;;  %18430 = vmatprep.mubr.bf16.mxu0 %v6676_v1  ;;  %v24086_v1 = vld [vmem:[%s31445_s3 + $0x1f38] sm:$0xff]  }
 0x67f   : > { %v21268_v43 = vpop.f32.mrb[40].mxu1  ;;  %21416 = vmatprep.subr.bf16.mxu1 %v24059_v49  ;;  %22398 = vmatprep.subr.bf16.mxu0 %v24060_v16  ;;  %v6104_v49 = vadd.f32 %v28904_v7, %v28124_v27  ;;  %v24085_v16 = vld [vmem:[%s31445_s3 + $0x918] sm:$0xff]   ;;  %v24088_v27 = vld [vmem:[%s31445_s3 + $0x2040] sm:$0xff]  }
 0x680   : > { %v21269_v59 = vpop.f32.mrb[41].mxu1 }
 0x681   : > { %v21270_v38 = vadd.f32 %v21269_v59, %v21268_v43  ;;  %v21271_v10 = vpop.f32.mrb[42].mxu1  ;;  %21417 = vmatpush3.bf16.msra.mxu1 %v24061_v31  ;;  %v24087_v31 = vld [vmem:[%s31445_s3 + $0x960] sm:$0xff]  }
 0x682   : > { %22399 = vmatpush3.bf16.msra.mxu0 %v24062_v47  ;;  %v21272_v24 = vpop.f32.mrb[43].mxu1  ;;  %21418 = vmatprep.subr.bf16.mxu1 %v24063_v26  ;;  %v6243_v47 = vmax.f32 %v6099_v40, 0.0  ;;  %v6248_v26 = vmax.f32 %v6104_v49, 0.0  ;;  %v24089_v43 = vld [vmem:[%s31445_s3 + $0x920] sm:$0xff]   ;;  %v24092_v10 = vld [vmem:[%s31445_s3 + $0x2048] sm:$0xff]   ;;  %v24111_v40 = vld [vmem:[%s31445_s3 + $0x9d0] sm:$0xff]  }
 0x683   : > { %v29181_v37 = vadd.f32 %v21270_v38, %v29072_v44  ;;  %22400 = vmatprep.subr.bf16.mxu0 %v24064_v19  ;;  %v24071_v44 = vld [vmem:[%s31445_s3 + $0x940] sm:$0xff]   ;;  %v24091_v38 = vld [vmem:[%s31445_s3 + $0x968] sm:$0xff]   ;;  %v24095_v24 = vld [vmem:[%s31445_s3 + $0x970] sm:$0xff]  }
 0x684   : > { %v24090_v19 = vld [vmem:[%s31445_s3 + $0x2000] sm:$0xff]   ;;  %v6675_v59 = vpack.c.bf16 %v6243_v47, %v6243_v47  ;;  %v24114_v47 = vld [vmem:[%s31445_s3 + $0x2030] sm:$0xff]  }
 0x685   : > { %21419 = vmatpush3.bf16.msra.mxu1 %v24065_v6  ;;  %v6680_v6 = vpack.c.bf16 %v6248_v26, %v6248_v26  ;;  %v6103_v26 = vadd.f32 %v28904_v7, %v28098_v30  ;;  %v24118_v30 = vld [vmem:[%s31445_s3 + $0x2038] sm:$0xff]  }
 0x686   : > { %22401 = vmatpush3.bf16.msra.mxu0 %v24066_v14  ;;  %21420 = vmatprep.subr.bf16.mxu1 %v24067_v23  ;;  %v24096_v23 = vld [vmem:[%s31445_s3 + $0x2050] sm:$0xff]  }
 0x687   : > { %22402 = vmatprep.subr.bf16.mxu0 %v24068_v39 }
 0x689   : > { %21421 = vmatpush3.bf16.msra.mxu1 %v24069_v22  ;;  %v24097_v22 = vld [vmem:[%s31445_s3 + $0x930] sm:$0xff]  }
 0x68a   : > { %22403 = vmatpush3.bf16.msra.mxu0 %v24070_v32  ;;  %21428 = vmatprep.subr.bf16.mxu1 %v24071_v44  ;;  %v6011_v32 = vadd.f32 %v28904_v7, %v32800_v51  ;;  %v24127_v51 = vld [vmem:[%s31445_s3 + $0x9f0] sm:$0xff]  }
 0x68b   : > { %22404 = vmatprep.subr.bf16.mxu0 %v24072_v21  ;;  %v24098_v21 = vld [vmem:[%s31445_s3 + $0x2010] sm:$0xff]  }
 0x68c   : > { %16631 = vmatmul.mubr.bf16.vlgmr.msra.gmra.mrb[68].mxu1 %v6585_v52 }
 0x68d   : > { %21429 = vmatpush3.bf16.msra.mxu1 %v24073_v18  ;;  %16670 = vmatprep.mubr.bf16.mxu1 %v6588_v5  ;;  %v32801_v18 = vld [vmem:[#allocation136_spill] sm:$0xff]  ;;  %v24101_v5 = vld [vmem:[%s31445_s3 + $0x938] sm:$0xff]  }
 0x68e   : > { %22405 = vmatpush3.bf16.msra.mxu0 %v24074_v42  ;;  %21430 = vmatprep.subr.bf16.mxu1 %v24075_v9  ;;  %v6014_v52 = vadd.f32 %v28904_v7, %v32801_v18  ;;  %v24100_v9 = vld [vmem:[%s31445_s3 + $0x2058] sm:$0xff]  }
 0x68f   : > { %22406 = vmatprep.subr.bf16.mxu0 %v24076_v45  ;;  %v6155_v45 = vmax.f32 %v6011_v32, 0.0 }
 0x690   : > { %v22104_v50 = vpop.f32.mrb[88].mxu0 }
 0x691   : > { %v22105_v17 = vpop.f32.mrb[89].mxu0  ;;  %21431 = vmatpush3.bf16.msra.mxu1 %v24077_v35  ;;  %v24102_v35 = vld [vmem:[%s31445_s3 + $0x2018] sm:$0xff]  }
 0x692   : > { %v29225_v60 = vadd.f32 %v22105_v17, %v22104_v50  ;;  %v22107_v20 = vpop.f32.mrb[90].mxu0  ;;  %22407 = vmatpush3.bf16.msra.mxu0 %v24078_v29  ;;  %21432 = vmatprep.subr.bf16.mxu1 %v24079_v48  ;;  %v24104_v29 = vld [vmem:[%s31445_s3 + $0x2060] sm:$0xff]   ;;  %v6158_v48 = vmax.f32 %v6014_v52, 0.0  ;;  %v6587_v50 = vpack.c.bf16 %v6155_v45, %v6155_v45  ;;  %v24129_v52 = vld [vmem:[%s31445_s3 + $0x9b0] sm:$0xff]  }
 0x693   : > { %v22108_v41 = vpop.f32.mrb[91].mxu0  ;;  %22408 = vmatprep.subr.bf16.mxu0 %v24080_v57  ;;  %v24105_v57 = vld [vmem:[%s31445_s3 + $0x980] sm:$0xff]  }
 0x694   : > { %v24106_v17 = vld [vmem:[%s31445_s3 + $0x2020] sm:$0xff]   ;;  %v6590_v20 = vpack.c.bf16 %v6158_v48, %v6158_v48  ;;  %v24112_v41 = vld [vmem:[%s31445_s3 + $0x2070] sm:$0xff]  }
 0x695   : > { %21433 = vmatpush3.bf16.msra.mxu1 %v24081_v34  ;;  %v24107_v34 = vld [vmem:[%s31445_s3 + $0x9c8] sm:$0xff]  }
 0x696   : > { %22409 = vmatpush3.bf16.msra.mxu0 %v24082_v53  ;;  %21434 = vmatprep.subr.bf16.mxu1 %v24083_v13  ;;  %v24108_v53 = vld [vmem:[%s31445_s3 + $0x2068] sm:$0xff]  }
 0x697   : > { %22410 = vmatprep.subr.bf16.mxu0 %v24084_v56  ;;  %v24109_v13 = vld [vmem:[%s31445_s3 + $0x988] sm:$0xff]  }
 0x699   : > { %21435 = vmatpush3.bf16.msra.mxu1 %v24085_v16  ;;  %v24113_v16 = vld [vmem:[%s31445_s3 + $0x990] sm:$0xff]  }
 0x69a   : > { %22411 = vmatpush3.bf16.msra.mxu0 %v24086_v1  ;;  %21436 = vmatprep.subr.bf16.mxu1 %v24087_v31 }
 0x69b   : > { %22440 = vmatprep.subr.bf16.mxu0 %v24088_v27  ;;  %v24115_v27 = vld [vmem:[%s31445_s3 + $0x9d8] sm:$0xff]  }
 0x69d   : > { %18431 = vmatmul.mubr.bf16.vlgmr.msra.gmra.mrb[116].mxu0 %v6675_v59  ;;  %21437 = vmatpush3.bf16.msra.mxu1 %v24089_v43  ;;  %v6108_v59 = vadd.f32 %v28904_v7, %v28172_v36  ;;  %v24120_v36 = vld [vmem:[%s31445_s3 + $0x2140] sm:$0xff]  }
 0x69e   : > { %22441 = vmatpush3.bf16.msra.mxu0 %v24090_v19  ;;  %18510 = vmatprep.mubr.bf16.mxu0 %v6680_v6  ;;  %v24116_v19 = vld [vmem:[%s31445_s3 + $0x2078] sm:$0xff]   ;;  %v6247_v6 = vmax.f32 %v6103_v26, 0.0  ;;  %v24144_v26 = vld [vmem:[%s31445_s3 + $0x2170] sm:$0xff]  }
 0x69f   : > { %v21290_v14 = vpop.f32.mrb[44].mxu1  ;;  %21438 = vmatprep.subr.bf16.mxu1 %v24091_v38  ;;  %22442 = vmatprep.subr.bf16.mxu0 %v24092_v10  ;;  %v24117_v38 = vld [vmem:[%s31445_s3 + $0x998] sm:$0xff]   ;;  %v24119_v10 = vld [vmem:[%s31445_s3 + $0x9e0] sm:$0xff]  }
 0x6a0   : > { %v21291_v55 = vpop.f32.mrb[45].mxu1 }
 0x6a1   : > { %v21292_v8 = vadd.f32 %v21291_v55, %v21290_v14  ;;  %v21293_v39 = vpop.f32.mrb[46].mxu1  ;;  %21439 = vmatpush3.bf16.msra.mxu1 %v24093_v15  ;;  %v6252_v15 = vmax.f32 %v6108_v59, 0.0  ;;  %v6679_v14 = vpack.c.bf16 %v6247_v6, %v6247_v6  ;;  %v24124_v55 = vld [vmem:[%s31445_s3 + $0x2148] sm:$0xff]   ;;  %v24145_v59 = vld [vmem:[%s31445_s3 + $0xa10] sm:$0xff]   ;;  %v24147_v6 = vld [vmem:[%s31445_s3 + $0xa58] sm:$0xff]  }
 0x6a2   : > { %22443 = vmatpush3.bf16.msra.mxu0 %v24094_v4  ;;  %v21294_v44 = vpop.f32.mrb[47].mxu1  ;;  %21440 = vmatprep.subr.bf16.mxu1 %v24095_v24  ;;  %v24121_v4 = vld [vmem:[%s31445_s3 + $0x9a0] sm:$0xff]   ;;  %v24125_v39 = vld [vmem:[%s31445_s3 + $0x9a8] sm:$0xff]  }
 0x6a3   : > { %v29290_v42 = vadd.f32 %v21292_v8, %v29181_v37  ;;  %22444 = vmatprep.subr.bf16.mxu0 %v24096_v23  ;;  %v24103_v37 = vld [vmem:[%s31445_s3 + $0x9c0] sm:$0xff]   ;;  %v24123_v23 = vld [vmem:[%s31445_s3 + $0x9e8] sm:$0xff]   ;;  %v6684_v8 = vpack.c.bf16 %v6252_v15, %v6252_v15  ;;  %v24128_v44 = vld [vmem:[%s31445_s3 + $0x2150] sm:$0xff]  }
 0x6a4   : > { %v24122_v24 = vld [vmem:[%s31445_s3 + $0x2100] sm:$0xff]  }
 0x6a5   : > { %21441 = vmatpush3.bf16.msra.mxu1 %v24097_v22  ;;  %v24126_v22 = vld [vmem:[%s31445_s3 + $0x2108] sm:$0xff]  }
 0x6a6   : > { %22445 = vmatpush3.bf16.msra.mxu0 %v24098_v21  ;;  %21442 = vmatprep.subr.bf16.mxu1 %v24099_v12 }
 0x6a7   : > { %22446 = vmatprep.subr.bf16.mxu0 %v24100_v9  ;;  %v32802_v9 = vld [vmem:[#allocation134_spill] sm:$0xff] }
 0x6a9   : > { %21443 = vmatpush3.bf16.msra.mxu1 %v24101_v5  ;;  %v6013_v5 = vadd.f32 %v28904_v7, %v32802_v9 }
 0x6aa   : > { %22447 = vmatpush3.bf16.msra.mxu0 %v24102_v35  ;;  %21450 = vmatprep.subr.bf16.mxu1 %v24103_v37  ;;  %v24130_v35 = vld [vmem:[%s31445_s3 + $0x2110] sm:$0xff]   ;;  %v24131_v37 = vld [vmem:[%s31445_s3 + $0x9f8] sm:$0xff]  }
 0x6ab   : > { %22448 = vmatprep.subr.bf16.mxu0 %v24104_v29  ;;  %v32803_v29 = vld [vmem:[#allocation8_spill] sm:$0xff] }
 0x6ac   : > { %16671 = vmatmul.mubr.bf16.vlgmr.msra.gmra.mrb[72].mxu1 %v6587_v50  ;;  %v6016_v48 = vadd.f32 %v28904_v7, %v32803_v29  ;;  %v24132_v50 = vld [vmem:[%s31445_s3 + $0x2158] sm:$0xff]   ;;  %v24161_v29 = vld [vmem:[%s31445_s3 + $0xa30] sm:$0xff]  }
 0x6ad   : > { %21451 = vmatpush3.bf16.msra.mxu1 %v24105_v57  ;;  %16710 = vmatprep.mubr.bf16.mxu1 %v6590_v20  ;;  %v24134_v20 = vld [vmem:[%s31445_s3 + $0x2118] sm:$0xff]  }
 0x6ae   : > { %22449 = vmatpush3.bf16.msra.mxu0 %v24106_v17  ;;  %21452 = vmatprep.subr.bf16.mxu1 %v24107_v34  ;;  %v24133_v17 = vld [vmem:[%s31445_s3 + $0x9b8] sm:$0xff]   ;;  %v6157_v34 = vmax.f32 %v6013_v5, 0.0  ;;  %v24160_v5 = vld [vmem:[%s31445_s3 + $0x2250] sm:$0xff]  }
 0x6af   : > { %22450 = vmatprep.subr.bf16.mxu0 %v24108_v53  ;;  %v24136_v53 = vld [vmem:[%s31445_s3 + $0x2160] sm:$0xff]  }
 0x6b0   : > { %v22148_v56 = vpop.f32.mrb[92].mxu0 }
 0x6b1   : > { %v22149_v49 = vpop.f32.mrb[93].mxu0  ;;  %21453 = vmatpush3.bf16.msra.mxu1 %v24109_v13  ;;  %v6160_v13 = vmax.f32 %v6016_v48, 0.0  ;;  %v32804_v48 = vld [vmem:[#allocation138_spill] sm:$0xff] }
 0x6b2   : > { %v29334_v1 = vadd.f32 %v22149_v49, %v22148_v56  ;;  %v22151_v31 = vpop.f32.mrb[94].mxu0  ;;  %22451 = vmatpush3.bf16.msra.mxu0 %v24110_v2  ;;  %21454 = vmatprep.subr.bf16.mxu1 %v24111_v40  ;;  %v24137_v2 = vld [vmem:[%s31445_s3 + $0xa00] sm:$0xff]   ;;  %v6589_v40 = vpack.c.bf16 %v6157_v34, %v6157_v34  ;;  %v24139_v56 = vld [vmem:[%s31445_s3 + $0xa48] sm:$0xff]   ;;  %v24162_v34 = vld [vmem:[%s31445_s3 + $0x2210] sm:$0xff]  }
 0x6b3   : > { %v22152_v43 = vpop.f32.mrb[95].mxu0  ;;  %22452 = vmatprep.subr.bf16.mxu0 %v24112_v41  ;;  %v24138_v41 = vld [vmem:[%s31445_s3 + $0x2120] sm:$0xff]   ;;  %v6592_v49 = vpack.c.bf16 %v6160_v13, %v6160_v13  ;;  %v24141_v31 = vld [vmem:[%s31445_s3 + $0xa08] sm:$0xff]  }
 0x6b5   : > { %21455 = vmatpush3.bf16.msra.mxu1 %v24113_v16  ;;  %v24140_v16 = vld [vmem:[%s31445_s3 + $0x2168] sm:$0xff]  }
 0x6b6   : > { %22453 = vmatpush3.bf16.msra.mxu0 %v24114_v47  ;;  %21456 = vmatprep.subr.bf16.mxu1 %v24115_v27  ;;  %v24142_v47 = vld [vmem:[%s31445_s3 + $0x2128] sm:$0xff]   ;;  %v24143_v27 = vld [vmem:[%s31445_s3 + $0xa50] sm:$0xff]  }
 0x6b7   : > { %22454 = vmatprep.subr.bf16.mxu0 %v24116_v19 }
 0x6b9   : > { %21457 = vmatpush3.bf16.msra.mxu1 %v24117_v38 }
 0x6ba   : > { %22455 = vmatpush3.bf16.msra.mxu0 %v24118_v30  ;;  %21458 = vmatprep.subr.bf16.mxu1 %v24119_v10  ;;  %v24146_v10 = vld [vmem:[%s31445_s3 + $0x2130] sm:$0xff]  }
 0x6bb   : > { %22484 = vmatprep.subr.bf16.mxu0 %v24120_v36  ;;  %v6107_v36 = vadd.f32 %v28904_v7, %v28152_v28  ;;  %v24150_v28 = vld [vmem:[%s31445_s3 + $0x2138] sm:$0xff]  }
 0x6bd   : > { %18511 = vmatmul.mubr.bf16.vlgmr.msra.gmra.mrb[120].mxu0 %v6679_v14  ;;  %21459 = vmatpush3.bf16.msra.mxu1 %v24121_v4  ;;  %v24148_v4 = vld [vmem:[%s31445_s3 + $0x2178] sm:$0xff]  }
 0x6be   : > { %22485 = vmatpush3.bf16.msra.mxu0 %v24122_v24  ;;  %18590 = vmatprep.mubr.bf16.mxu0 %v6684_v8  ;;  %v6112_v24 = vadd.f32 %v28904_v7, %v28227_v3  ;;  %v24149_v14 = vld [vmem:[%s31445_s3 + $0xa18] sm:$0xff]   ;;  %v24152_v3 = vld [vmem:[%s31445_s3 + $0x2240] sm:$0xff]  }
 0x6bf   : > { %v21312_v32 = vpop.f32.mrb[48].mxu1  ;;  %21460 = vmatprep.subr.bf16.mxu1 %v24123_v23  ;;  %22486 = vmatprep.subr.bf16.mxu0 %v24124_v55  ;;  %v24151_v23 = vld [vmem:[%s31445_s3 + $0xa60] sm:$0xff]   ;;  %v6251_v55 = vmax.f32 %v6107_v36, 0.0 }
 0x6c0   : > { %v21313_v21 = vpop.f32.mrb[49].mxu1  ;;  %v6256_v8 = vmax.f32 %v6112_v24, 0.0 }
 0x6c1   : > { %v21314_v12 = vadd.f32 %v21313_v21, %v21312_v32  ;;  %v21315_v18 = vpop.f32.mrb[50].mxu1  ;;  %21461 = vmatpush3.bf16.msra.mxu1 %v24125_v39  ;;  %v24153_v39 = vld [vmem:[%s31445_s3 + $0xa20] sm:$0xff]   ;;  %v24155_v32 = vld [vmem:[%s31445_s3 + $0xa68] sm:$0xff]  }
 0x6c2   : > { %22487 = vmatpush3.bf16.msra.mxu0 %v24126_v22  ;;  %v21316_v45 = vpop.f32.mrb[51].mxu1  ;;  %21462 = vmatprep.subr.bf16.mxu1 %v24127_v51  ;;  %v24154_v22 = vld [vmem:[%s31445_s3 + $0x2200] sm:$0xff]   ;;  %v6683_v51 = vpack.c.bf16 %v6251_v55, %v6251_v55  ;;  %v6688_v21 = vpack.c.bf16 %v6256_v8, %v6256_v8  ;;  %v24158_v18 = vld [vmem:[%s31445_s3 + $0x2208] sm:$0xff]   ;;  %v32806_v55 = vld [vmem:[#allocation166_spill] sm:$0xff] }
 0x6c3   : > { %v29399_v57 = vadd.f32 %v21314_v12, %v29290_v42  ;;  %22488 = vmatprep.subr.bf16.mxu0 %v24128_v44  ;;  %v24135_v42 = vld [vmem:[%s31445_s3 + $0xa40] sm:$0xff]   ;;  %v24156_v44 = vld [vmem:[%s31445_s3 + $0x2248] sm:$0xff]  }
 0x6c4   : > { %v24157_v12 = vld [vmem:[%s31445_s3 + $0xa28] sm:$0xff]  }
 0x6c5   : > { %21463 = vmatpush3.bf16.msra.mxu1 %v24129_v52  ;;  %v24159_v52 = vld [vmem:[%s31445_s3 + $0xa70] sm:$0xff]  }
 0x6c6   : > { %22489 = vmatpush3.bf16.msra.mxu0 %v24130_v35  ;;  %21464 = vmatprep.subr.bf16.mxu1 %v24131_v37 }
 0x6c7   : > { %22490 = vmatprep.subr.bf16.mxu0 %v24132_v50  ;;  %v6015_v50 = vadd.f32 %v28904_v7, %v32804_v48  ;;  %v24191_v48 = vld [vmem:[%s31445_s3 + $0xaf0] sm:$0xff]  }
 0x6c9   : > { %21465 = vmatpush3.bf16.msra.mxu1 %v24133_v17 }
 0x6ca   : > { %22491 = vmatpush3.bf16.msra.mxu0 %v24134_v20  ;;  %21472 = vmatprep.subr.bf16.mxu1 %v24135_v42  ;;  %v24163_v20 = vld [vmem:[%s31445_s3 + $0xa78] sm:$0xff]  }
 0x6cb   : > { %22492 = vmatprep.subr.bf16.mxu0 %v24136_v53  ;;  %v32805_v42 = vld [vmem:[#allocation139_spill] sm:$0xff] }
 0x6cc   : > { %16711 = vmatmul.mubr.bf16.vlgmr.msra.gmra.mrb[76].mxu1 %v6589_v40  ;;  %v6018_v53 = vadd.f32 %v28904_v7, %v32805_v42  ;;  %v24165_v40 = vld [vmem:[%s31445_s3 + $0xa38] sm:$0xff]  }
 0x6cd   : > { %21473 = vmatpush3.bf16.msra.mxu1 %v24137_v2  ;;  %16750 = vmatprep.mubr.bf16.mxu1 %v6592_v49  ;;  %v24164_v2 = vld [vmem:[%s31445_s3 + $0x2258] sm:$0xff]  }
 0x6ce   : > { %22493 = vmatpush3.bf16.msra.mxu0 %v24138_v41  ;;  %21474 = vmatprep.subr.bf16.mxu1 %v24139_v56  ;;  %v6159_v41 = vmax.f32 %v6015_v50, 0.0  ;;  %v24166_v7 = vld [vmem:[%s31445_s3 + $0x2218] sm:$0xff]   ;;  %v24168_v56 = vld [vmem:[%s31445_s3 + $0x2260] sm:$0xff]   ;;  %v6162_v49 = vmax.f32 %v6018_v53, 0.0  ;;  %v24193_v53 = vld [vmem:[%s31445_s3 + $0xab0] sm:$0xff]  }
 0x6cf   : > { %22494 = vmatprep.subr.bf16.mxu0 %v24140_v16  ;;  %v24169_v16 = vld [vmem:[%s31445_s3 + $0xa80] sm:$0xff]  }
 0x6d0   : > { %v22192_v43 = vpop.f32.mrb[96].mxu0 }
 0x6d1   : > { %v22193_v19 = vpop.f32.mrb[97].mxu0  ;;  %21475 = vmatpush3.bf16.msra.mxu1 %v24141_v31  ;;  %v6591_v31 = vpack.c.bf16 %v6159_v41, %v6159_v41 }
 0x6d2   : > { %v29443_v38 = vadd.f32 %v22193_v19, %v22192_v43  ;;  %v22195_v30 = vpop.f32.mrb[98].mxu0  ;;  %22495 = vmatpush3.bf16.msra.mxu0 %v24142_v47  ;;  %21476 = vmatprep.subr.bf16.mxu1 %v24143_v27  ;;  %v24170_v47 = vld [vmem:[%s31445_s3 + $0x2220] sm:$0xff]   ;;  %v24171_v27 = vld [vmem:[%s31445_s3 + $0xac8] sm:$0xff]  }
 0x6d3   : > { %v22196_v15 = vpop.f32.mrb[99].mxu0  ;;  %22496 = vmatprep.subr.bf16.mxu0 %v24144_v26  ;;  %v6594_v26 = vpack.c.bf16 %v6162_v49, %v6162_v49  ;;  %v24172_v43 = vld [vmem:[%s31445_s3 + $0x2268] sm:$0xff]   ;;  %v24175_v30 = vld [vmem:[%s31445_s3 + $0xad0] sm:$0xff]  }
 0x6d4   : > { %v24173_v19 = vld [vmem:[%s31445_s3 + $0xa88] sm:$0xff]   ;;  %v24177_v15 = vld [vmem:[%s31445_s3 + $0xa90] sm:$0xff]  }
 0x6d5   : > { %21477 = vmatpush3.bf16.msra.mxu1 %v24145_v59  ;;  %v24174_v59 = vld [vmem:[%s31445_s3 + $0x2228] sm:$0xff]  }
 0x6d6   : > { %22497 = vmatpush3.bf16.msra.mxu0 %v24146_v10  ;;  %21478 = vmatprep.subr.bf16.mxu1 %v24147_v6  ;;  %v24176_v10 = vld [vmem:[%s31445_s3 + $0x2270] sm:$0xff]  }
 0x6d7   : > { %22498 = vmatprep.subr.bf16.mxu0 %v24148_v4 }
 0x6d9   : > { %21479 = vmatpush3.bf16.msra.mxu1 %v24149_v14  ;;  %v24178_v14 = vld [vmem:[%s31445_s3 + $0x2230] sm:$0xff]  }
 0x6da   : > { %22499 = vmatpush3.bf16.msra.mxu0 %v24150_v28  ;;  %21480 = vmatprep.subr.bf16.mxu1 %v24151_v23  ;;  %v24179_v28 = vld [vmem:[%s31445_s3 + $0xad8] sm:$0xff]   ;;  %v29563_v23 = vld [vmem:[%s31444_s2] ss:$0 sm:$0xff] }
 0x6db   : > { %22528 = vmatprep.subr.bf16.mxu0 %v24152_v3  ;;  %v6111_v3 = vadd.f32 %v29563_v23, %v32806_v55  ;;  %v24208_v55 = vld [vmem:[%s31445_s3 + $0x2370] sm:$0xff]  }
 0x6dd   : > { %18591 = vmatmul.mubr.bf16.vlgmr.msra.gmra.mrb[124].mxu0 %v6683_v51  ;;  %21481 = vmatpush3.bf16.msra.mxu1 %v24153_v39  ;;  %v24180_v39 = vld [vmem:[%s31445_s3 + $0x2278] sm:$0xff]  }
 0x6de   : > { %22529 = vmatpush3.bf16.msra.mxu0 %v24154_v22  ;;  %18670 = vmatprep.mubr.bf16.mxu0 %v6688_v21  ;;  %v6116_v22 = vadd.f32 %v29563_v23, %v28274_v63  ;;  %v24181_v51 = vld [vmem:[%s31445_s3 + $0xa98] sm:$0xff]   ;;  %v6255_v21 = vmax.f32 %v6111_v3, 0.0  ;;  %v24184_v63 = vld [vmem:[%s31445_s3 + $0x2340] sm:$0xff]  }
 0x6df   : > { %v21334_v9 = vpop.f32.mrb[52].mxu1  ;;  %21482 = vmatprep.subr.bf16.mxu1 %v24155_v32  ;;  %22530 = vmatprep.subr.bf16.mxu0 %v24156_v44  ;;  %v24182_v32 = vld [vmem:[%s31445_s3 + $0x2238] sm:$0xff]   ;;  %v24183_v44 = vld [vmem:[%s31445_s3 + $0xae0] sm:$0xff]  }
 0x6e0   : > { %v21335_v45 = vpop.f32.mrb[53].mxu1 }
 0x6e1   : > { %v21336_v35 = vadd.f32 %v21335_v45, %v21334_v9  ;;  %v21337_v37 = vpop.f32.mrb[54].mxu1  ;;  %21483 = vmatpush3.bf16.msra.mxu1 %v24157_v12  ;;  %v6260_v12 = vmax.f32 %v6116_v22, 0.0  ;;  %v6687_v9 = vpack.c.bf16 %v6255_v21, %v6255_v21  ;;  %v24188_v45 = vld [vmem:[%s31445_s3 + $0x2348] sm:$0xff]   ;;  %v6115_v21 = vadd.f32 %v29563_v23, %v28257_v54  ;;  %v24215_v54 = vld [vmem:[%s31445_s3 + $0xb60] sm:$0xff]  }
 0x6e2   : > { %22531 = vmatpush3.bf16.msra.mxu0 %v24158_v18  ;;  %v21338_v17 = vpop.f32.mrb[55].mxu1  ;;  %21484 = vmatprep.subr.bf16.mxu1 %v24159_v52  ;;  %v24185_v18 = vld [vmem:[%s31445_s3 + $0xaa0] sm:$0xff]   ;;  %v24189_v37 = vld [vmem:[%s31445_s3 + $0xaa8] sm:$0xff]  }
 0x6e3   : > { %v29508_v13 = vadd.f32 %v21336_v35, %v29399_v57  ;;  %22532 = vmatprep.subr.bf16.mxu0 %v24160_v5  ;;  %v24167_v57 = vld [vmem:[%s31445_s3 + $0xac0] sm:$0xff]   ;;  %v24187_v5 = vld [vmem:[%s31445_s3 + $0xae8] sm:$0xff]   ;;  %v6692_v35 = vpack.c.bf16 %v6260_v12, %v6260_v12  ;;  %v24192_v17 = vld [vmem:[%s31445_s3 + $0x2350] sm:$0xff]  }
 0x6e4   : > { %v24186_v52 = vld [vmem:[%s31445_s3 + $0x2300] sm:$0xff]   ;;  %v24212_v12 = vld [vmem:[%s31445_s3 + $0x2378] sm:$0xff]  }
 0x6e5   : > { %21485 = vmatpush3.bf16.msra.mxu1 %v24161_v29  ;;  %v24190_v29 = vld [vmem:[%s31445_s3 + $0x2308] sm:$0xff]  }
 0x6e6   : > { %22533 = vmatpush3.bf16.msra.mxu0 %v24162_v34  ;;  %21486 = vmatprep.subr.bf16.mxu1 %v24163_v20 }
 0x6e7   : > { %22534 = vmatprep.subr.bf16.mxu0 %v24164_v2  ;;  %v32807_v2 = vld [vmem:[#allocation137_spill] sm:$0xff] }
 0x6e9   : > { %21487 = vmatpush3.bf16.msra.mxu1 %v24165_v40  ;;  %v6017_v40 = vadd.f32 %v29563_v23, %v32807_v2 }
 0x6ea   : > { %22535 = vmatpush3.bf16.msra.mxu0 %v24166_v7  ;;  %21494 = vmatprep.subr.bf16.mxu1 %v24167_v57  ;;  %v24194_v7 = vld [vmem:[%s31445_s3 + $0x2310] sm:$0xff]   ;;  %v24195_v57 = vld [vmem:[%s31445_s3 + $0xaf8] sm:$0xff]  }
 0x6eb   : > { %22536 = vmatprep.subr.bf16.mxu0 %v24168_v56  ;;  %v32808_v56 = vld [vmem:[#allocation9_spill] sm:$0xff] }
 0x6ec   : > { %16751 = vmatmul.mubr.bf16.vlgmr.msra.gmra.mrb[80].mxu1 %v6591_v31  ;;  %v6020_v49 = vadd.f32 %v29563_v23, %v32808_v56  ;;  %v24196_v31 = vld [vmem:[%s31445_s3 + $0x2358] sm:$0xff]  }
 0x6ed   : > { %21495 = vmatpush3.bf16.msra.mxu1 %v24169_v16  ;;  %16790 = vmatprep.mubr.bf16.mxu1 %v6594_v26  ;;  %v24198_v26 = vld [vmem:[%s31445_s3 + $0x2318] sm:$0xff]  }
 0x6ee   : > { %22537 = vmatpush3.bf16.msra.mxu0 %v24170_v47  ;;  %21496 = vmatprep.subr.bf16.mxu1 %v24171_v27  ;;  %v24197_v47 = vld [vmem:[%s31445_s3 + $0xab8] sm:$0xff]   ;;  %v6161_v27 = vmax.f32 %v6017_v40, 0.0 }
 0x6ef   : > { %22538 = vmatprep.subr.bf16.mxu0 %v24172_v43  ;;  %v24200_v43 = vld [vmem:[%s31445_s3 + $0x2360] sm:$0xff]   ;;  %v24221_v40 = vld [vmem:[%s31445_s3 + $0xb78] sm:$0xff]  }
 0x6f0   : > { %v22236_v6 = vpop.f32.mrb[100].mxu0  ;;  %v24222_v56 = vld [vmem:[%s31445_s3 + $0xb38] sm:$0xff]  }
 0x6f1   : > { %v22237_v36 = vpop.f32.mrb[101].mxu0  ;;  %21497 = vmatpush3.bf16.msra.mxu1 %v24173_v19  ;;  %v6164_v19 = vmax.f32 %v6020_v49, 0.0 }
 0x6f2   : > { %v29552_v4 = vadd.f32 %v22237_v36, %v22236_v6  ;;  %v22239_v24 = vpop.f32.mrb[102].mxu0  ;;  %22539 = vmatpush3.bf16.msra.mxu0 %v24174_v59  ;;  %21498 = vmatprep.subr.bf16.mxu1 %v24175_v30  ;;  %v24201_v59 = vld [vmem:[%s31445_s3 + $0xb00] sm:$0xff]   ;;  %v6593_v30 = vpack.c.bf16 %v6161_v27, %v6161_v27  ;;  %v24203_v6 = vld [vmem:[%s31445_s3 + $0xb48] sm:$0xff]  }
 0x6f3   : > { %v22240_v8 = vpop.f32.mrb[103].mxu0  ;;  %22540 = vmatprep.subr.bf16.mxu0 %v24176_v10  ;;  %v24202_v10 = vld [vmem:[%s31445_s3 + $0x2320] sm:$0xff]   ;;  %v6596_v36 = vpack.c.bf16 %v6164_v19, %v6164_v19  ;;  %v24205_v24 = vld [vmem:[%s31445_s3 + $0xb08] sm:$0xff]   ;;  %v24227_v19 = vld [vmem:[%s31445_s3 + $0xbd0] sm:$0xff]  }
 0x6f4   : > { %v24224_v27 = vld [vmem:[%s31445_s3 + $0xb80] sm:$0xff]  }
 0x6f5   : > { %21499 = vmatpush3.bf16.msra.mxu1 %v24177_v15  ;;  %v24204_v15 = vld [vmem:[%s31445_s3 + $0x2368] sm:$0xff]  }
 0x6f6   : > { %22541 = vmatpush3.bf16.msra.mxu0 %v24178_v14  ;;  %21500 = vmatprep.subr.bf16.mxu1 %v24179_v28  ;;  %v24206_v14 = vld [vmem:[%s31445_s3 + $0x2328] sm:$0xff]   ;;  %v24207_v28 = vld [vmem:[%s31445_s3 + $0xb50] sm:$0xff]  }
 0x6f7   : > { %22542 = vmatprep.subr.bf16.mxu0 %v24180_v39  ;;  %v24209_v39 = vld [vmem:[%s31445_s3 + $0xb10] sm:$0xff]  }
 0x6f9   : > { %21501 = vmatpush3.bf16.msra.mxu1 %v24181_v51 }
 0x6fa   : > { %22543 = vmatpush3.bf16.msra.mxu0 %v24182_v32  ;;  %21502 = vmatprep.subr.bf16.mxu1 %v24183_v44  ;;  %v24210_v32 = vld [vmem:[%s31445_s3 + $0x2330] sm:$0xff]   ;;  %v24211_v44 = vld [vmem:[%s31445_s3 + $0xb58] sm:$0xff]  }
 0x6fb   : > { %22572 = vmatprep.subr.bf16.mxu0 %v24184_v63 }
 0x6fd   : > { %18671 = vmatmul.mubr.bf16.vlgmr.msra.gmra.mrb[128].mxu0 %v6687_v9  ;;  %21503 = vmatpush3.bf16.msra.mxu1 %v24185_v18  ;;  %v24213_v18 = vld [vmem:[%s31445_s3 + $0xb18] sm:$0xff]   ;;  %v6259_v9 = vmax.f32 %v6115_v21, 0.0 }
 0x6fe   : > { %22573 = vmatpush3.bf16.msra.mxu0 %v24186_v52  ;;  %18750 = vmatprep.mubr.bf16.mxu0 %v6692_v35  ;;  %v24214_v52 = vld [vmem:[%s31445_s3 + $0x2338] sm:$0xff]  }
 0x6ff   : > { %v21356_v50 = vpop.f32.mrb[56].mxu1  ;;  %21504 = vmatprep.subr.bf16.mxu1 %v24187_v5  ;;  %22574 = vmatprep.subr.bf16.mxu0 %v24188_v45  ;;  %v24216_v5 = vld [vmem:[%s31445_s3 + $0xb20] sm:$0xff]   ;;  %v24217_v45 = vld [vmem:[%s31445_s3 + $0xb68] sm:$0xff]   ;;  %v6691_v35 = vpack.c.bf16 %v6259_v9, %v6259_v9  ;;  %v32812_v9 = vld [vmem:[#allocation10_spill] sm:$0xff] }
 0x700   : > { %v21357_v34 = vpop.f32.mrb[57].mxu1 }
 0x701   : > { %v21358_v20 = vadd.f32 %v21357_v34, %v21356_v50  ;;  %v21359_v42 = vpop.f32.mrb[58].mxu1  ;;  %21505 = vmatpush3.bf16.msra.mxu1 %v24189_v37  ;;  %v24218_v37 = vld [vmem:[%s31445_s3 + $0xb28] sm:$0xff]  }
 0x702   : > { %22575 = vmatpush3.bf16.msra.mxu0 %v24190_v29  ;;  %v21360_v41 = vpop.f32.mrb[59].mxu1  ;;  %21506 = vmatprep.subr.bf16.mxu1 %v24191_v48  ;;  %v24219_v29 = vld [vmem:[%s31445_s3 + $0xb70] sm:$0xff]   ;;  %v32809_v42 = vld [vmem:[#allocation141_spill] sm:$0xff] }
 0x703   : > { %v29622_v16 = vadd.f32 %v21358_v20, %v29508_v13  ;;  %22576 = vmatprep.subr.bf16.mxu0 %v24192_v17  ;;  %v24199_v13 = vld [vmem:[%s31445_s3 + $0xb40] sm:$0xff]   ;;  %v24220_v20 = vld [vmem:[%s31445_s3 + $0xb30] sm:$0xff]  }
 0x704   : > { %v32810_v41 = vld [vmem:[#allocation142_spill] sm:$0xff] }
 0x705   : > { %21507 = vmatpush3.bf16.msra.mxu1 %v24193_v53  ;;  %v6019_v53 = vadd.f32 %v29563_v23, %v32809_v42  ;;  %v24242_v42 = vld [vmem:[%s31445_s3 + $0xc08] sm:$0xff]  }
 0x706   : > { %22577 = vmatpush3.bf16.msra.mxu0 %v24194_v7  ;;  %21508 = vmatprep.subr.bf16.mxu1 %v24195_v57  ;;  %v6022_v7 = vadd.f32 %v29563_v23, %v32810_v41  ;;  %v24244_v41 = vld [vmem:[%s31445_s3 + $0xc10] sm:$0xff]  }
 0x707   : > { %22578 = vmatprep.subr.bf16.mxu0 %v24196_v31  ;;  %v6163_v49 = vmax.f32 %v6019_v53, 0.0  ;;  %v24223_v31 = vld [vmem:[%s31445_s3 + $0xbc0] sm:$0xff]   ;;  %v24243_v53 = vld [vmem:[%s31445_s3 + $0xc50] sm:$0xff]  }
 0x709   : > { %21509 = vmatpush3.bf16.msra.mxu1 %v24197_v47  ;;  %v6166_v47 = vmax.f32 %v6022_v7, 0.0 }
 0x70a   : > { %22579 = vmatpush3.bf16.msra.mxu0 %v24198_v26  ;;  %21516 = vmatprep.subr.bf16.mxu1 %v24199_v13  ;;  %v6595_v26 = vpack.c.bf16 %v6163_v49, %v6163_v49 }
 0x70b   : > { %22580 = vmatprep.subr.bf16.mxu0 %v24200_v43  ;;  %v6598_v13 = vpack.c.bf16 %v6166_v47, %v6166_v47  ;;  %v24226_v43 = vld [vmem:[%s31445_s3 + $0xb88] sm:$0xff]   ;;  %v24247_v47 = vld [vmem:[%s31445_s3 + $0xc60] sm:$0xff]  }
 0x70c   : > { %16791 = vmatmul.mubr.bf16.vlgmr.msra.gmra.mrb[84].mxu1 %v6593_v30 }
 0x70d   : > { %21517 = vmatpush3.bf16.msra.mxu1 %v24201_v59  ;;  %16830 = vmatprep.mubr.bf16.mxu1 %v6596_v36 }
 0x70e   : > { %22581 = vmatpush3.bf16.msra.mxu0 %v24202_v10  ;;  %21518 = vmatprep.subr.bf16.mxu1 %v24203_v6  ;;  %v24228_v10 = vld [vmem:[%s31445_s3 + $0xb90] sm:$0xff]  }
 0x70f   : > { %22582 = vmatprep.subr.bf16.mxu0 %v24204_v15  ;;  %v24229_v15 = vld [vmem:[%s31445_s3 + $0xbd8] sm:$0xff]  }
 0x710   : > { %v22280_v3 = vpop.f32.mrb[104].mxu0 }
 0x711   : > { %v22281_v8 = vpop.f32.mrb[105].mxu0  ;;  %21519 = vmatpush3.bf16.msra.mxu1 %v24205_v24 }
 0x712   : > { %v29666_v22 = vadd.f32 %v22281_v8, %v22280_v3  ;;  %v22283_v51 = vpop.f32.mrb[106].mxu0  ;;  %22583 = vmatpush3.bf16.msra.mxu0 %v24206_v14  ;;  %21520 = vmatprep.subr.bf16.mxu1 %v24207_v28  ;;  %v24230_v14 = vld [vmem:[%s31445_s3 + $0xb98] sm:$0xff]   ;;  %v24231_v28 = vld [vmem:[%s31445_s3 + $0xbe0] sm:$0xff]   ;;  %v24233_v3 = vld [vmem:[%s31445_s3 + $0xbe8] sm:$0xff]  }
 0x713   : > { %v22284_v63 = vpop.f32.mrb[107].mxu0  ;;  %22584 = vmatprep.subr.bf16.mxu0 %v24208_v55  ;;  %v24232_v55 = vld [vmem:[%s31445_s3 + $0xba0] sm:$0xff]   ;;  %v24234_v8 = vld [vmem:[%s31445_s3 + $0xba8] sm:$0xff]  }
 0x714   : > { %v24236_v63 = vld [vmem:[%s31445_s3 + $0xbb0] sm:$0xff]  }
 0x715   : > { %21521 = vmatpush3.bf16.msra.mxu1 %v24209_v39  ;;  %v24235_v39 = vld [vmem:[%s31445_s3 + $0xbf0] sm:$0xff]  }
 0x716   : > { %22585 = vmatpush3.bf16.msra.mxu0 %v24210_v32  ;;  %21522 = vmatprep.subr.bf16.mxu1 %v24211_v44 }
 0x717   : > { %22586 = vmatprep.subr.bf16.mxu0 %v24212_v12  ;;  %v32811_v12 = vld [vmem:[#allocation140_spill] sm:$0xff] }
 0x719   : > { %21523 = vmatpush3.bf16.msra.mxu1 %v24213_v18  ;;  %v6021_v18 = vadd.f32 %v29563_v23, %v32811_v12 }
 0x71a   : > { %22587 = vmatpush3.bf16.msra.mxu0 %v24214_v52  ;;  %21524 = vmatprep.subr.bf16.mxu1 %v24215_v54  ;;  %v24237_v54 = vld [vmem:[%s31445_s3 + $0xbf8] sm:$0xff]  }
 0x71d   : > { %18751 = vmatmul.mubr.bf16.vlgmr.msra.gmra.mrb[132].mxu0 %v6691_v35  ;;  %21525 = vmatpush3.bf16.msra.mxu1 %v24216_v5  ;;  %v6024_v5 = vadd.f32 %v29563_v23, %v32812_v9  ;;  %v24238_v35 = vld [vmem:[%s31445_s3 + $0xbb8] sm:$0xff]  }
 0x71e   : > { %21526 = vmatprep.subr.bf16.mxu1 %v24217_v45 }
 0x71f   : > { %v21378_v48 = vpop.f32.mrb[60].mxu1 }
 0x720   : > { %v21379_v50 = vpop.f32.mrb[61].mxu1 }
 0x721   : > { %v21380_v17 = vadd.f32 %v21379_v50, %v21378_v48  ;;  %v21381_v34 = vpop.f32.mrb[62].mxu1  ;;  %21527 = vmatpush3.bf16.msra.mxu1 %v24218_v37  ;;  %v6165_v37 = vmax.f32 %v6021_v18, 0.0  ;;  %v6168_v48 = vmax.f32 %v6024_v5, 0.0  ;;  %v24240_v50 = vld [vmem:[%s31445_s3 + $0xc00] sm:$0xff]   ;;  %v24258_v18 = vld [vmem:[%s31445_s3 + $0xc88] sm:$0xff]   ;;  %v24260_v5 = vld [vmem:[%s31445_s3 + $0xc90] sm:$0xff]  }
 0x722   : > { %v21382_v2 = vpop.f32.mrb[63].mxu1  ;;  %21528 = vmatprep.subr.bf16.mxu1 %v24219_v29  ;;  %v24239_v29 = vld [vmem:[%s31445_s3 + $0xc40] sm:$0xff]   ;;  %v24241_v34 = vld [vmem:[%s31445_s3 + $0xc48] sm:$0xff]  }
 0x723   : > { %v16553_v57 = vadd.f32 %v21380_v17, %v29622_v16  ;;  %v24225_v16 = vld [vmem:[%s31445_s3 + $0xbc8] sm:$0xff]   ;;  %v6597_v17 = vpack.c.bf16 %v6165_v37, %v6165_v37  ;;  %v24261_v37 = vld [vmem:[%s31445_s3 + $0xcd8] sm:$0xff]  }
 0x725   : > { %21529 = vmatpush3.bf16.msra.mxu1 %v24220_v20  ;;  %v6600_v20 = vpack.c.bf16 %v6168_v48, %v6168_v48  ;;  %v24262_v48 = vld [vmem:[%s31445_s3 + $0xc98] sm:$0xff]  }
 0x726   : > { %21530 = vmatprep.subr.bf16.mxu1 %v24221_v40 }
 0x729   : > { %21531 = vmatpush3.bf16.msra.mxu1 %v24222_v56  ;;  %v24245_v56 = vld [vmem:[%s31445_s3 + $0xc58] sm:$0xff]  }
 0x72a   : > { %21538 = vmatprep.subr.bf16.mxu1 %v24223_v31  ;;  %v24246_v31 = vld [vmem:[%s31445_s3 + $0xc18] sm:$0xff]  }
 0x72c   : > { %16831 = vmatmul.mubr.bf16.vlgmr.msra.gmra.mrb[88].mxu1 %v6595_v26  ;;  %v24249_v26 = vld [vmem:[%s31445_s3 + $0xc68] sm:$0xff]  }
 0x72d   : > { %21539 = vmatpush3.bf16.msra.mxu1 %v24224_v27  ;;  %16870 = vmatprep.mubr.bf16.mxu1 %v6598_v13  ;;  %v24248_v27 = vld [vmem:[%s31445_s3 + $0xc20] sm:$0xff]   ;;  %v24251_v13 = vld [vmem:[%s31445_s3 + $0xc70] sm:$0xff]  }
 0x72e   : > { %21540 = vmatprep.subr.bf16.mxu1 %v24225_v16  ;;  %v24250_v16 = vld [vmem:[%s31445_s3 + $0xc28] sm:$0xff]  }
 0x730   : > { %v22324_v59 = vpop.f32.mrb[108].mxu0 }
 0x731   : > { %v22325_v30 = vpop.f32.mrb[109].mxu0  ;;  %21541 = vmatpush3.bf16.msra.mxu1 %v24226_v43 }
 0x732   : > { %v29732_v6 = vadd.f32 %v22325_v30, %v22324_v59  ;;  %v22327_v36 = vpop.f32.mrb[110].mxu0  ;;  %21542 = vmatprep.subr.bf16.mxu1 %v24227_v19 }
 0x733   : > { %v22328_v24 = vpop.f32.mrb[111].mxu0  ;;  %v32813_v36 = vld [vmem:[#allocation144_spill] sm:$0xff] }
 0x735   : > { %21543 = vmatpush3.bf16.msra.mxu1 %v24228_v10  ;;  %v24252_v10 = vld [vmem:[%s31445_s3 + $0xc30] sm:$0xff]  }
 0x736   : > { %21544 = vmatprep.subr.bf16.mxu1 %v24229_v15  ;;  %v6023_v15 = vadd.f32 %v29563_v23, %v32813_v36  ;;  %v24273_v36 = vld [vmem:[%s31445_s3 + $0xd48] sm:$0xff]  }
 0x739   : > { %21545 = vmatpush3.bf16.msra.mxu1 %v24230_v14  ;;  %v24253_v14 = vld [vmem:[%s31445_s3 + $0xc78] sm:$0xff]  }
 0x73a   : > { %21546 = vmatprep.subr.bf16.mxu1 %v24231_v28  ;;  %v32814_v28 = vld [vmem:[#allocation145_spill] sm:$0xff] }
 0x73d   : > { %21547 = vmatpush3.bf16.msra.mxu1 %v24232_v55  ;;  %v6026_v55 = vadd.f32 %v29563_v23, %v32814_v28 }
 0x73e   : > { %21548 = vmatprep.subr.bf16.mxu1 %v24233_v3 }
 0x73f   : > { %v21400_v51 = vpop.f32.mrb[64].mxu1 }
 0x740   : > { %v21401_v32 = vpop.f32.mrb[65].mxu1 }
 0x741   : > { %v21402_v44 = vadd.f32 %v21401_v32, %v21400_v51  ;;  %v21403_v21 = vpop.f32.mrb[66].mxu1  ;;  %21549 = vmatpush3.bf16.msra.mxu1 %v24234_v8  ;;  %v24254_v8 = vld [vmem:[%s31445_s3 + $0xc38] sm:$0xff]   ;;  %v24255_v51 = vld [vmem:[%s31445_s3 + $0xcc0] sm:$0xff]   ;;  %v6170_v32 = vmax.f32 %v6026_v55, 0.0 }
 0x742   : > { %v21404_v52 = vpop.f32.mrb[67].mxu1  ;;  %21550 = vmatprep.subr.bf16.mxu1 %v24235_v39  ;;  %v6167_v39 = vmax.f32 %v6023_v15, 0.0 }
 0x743   : > { %v16593_v45 = vadd.f32 %v21402_v44, %v16553_v57  ;;  %v24256_v44 = vld [vmem:[%s31445_s3 + $0xc80] sm:$0xff]   ;;  %v6602_v12 = vpack.c.bf16 %v6170_v32, %v6170_v32  ;;  %v24259_v52 = vld [vmem:[%s31445_s3 + $0xcd0] sm:$0xff]  }
 0x744   : > { %v6599_v21 = vpack.c.bf16 %v6167_v39, %v6167_v39 }
 0x745   : > { %21551 = vmatpush3.bf16.msra.mxu1 %v24236_v63  ;;  %v24257_v63 = vld [vmem:[%s31445_s3 + $0xcc8] sm:$0xff]  }
 0x746   : > { %21552 = vmatprep.subr.bf16.mxu1 %v24237_v54 }
 0x749   : > { %21553 = vmatpush3.bf16.msra.mxu1 %v24238_v35 }
 0x74a   : > { %21560 = vmatprep.subr.bf16.mxu1 %v24239_v29 }
 0x74c   : > { %16871 = vmatmul.mubr.bf16.vlgmr.msra.gmra.mrb[92].mxu1 %v6597_v17  ;;  %v24264_v17 = vld [vmem:[%s31445_s3 + $0xca0] sm:$0xff]  }
 0x74d   : > { %21561 = vmatpush3.bf16.msra.mxu1 %v24240_v50  ;;  %16910 = vmatprep.mubr.bf16.mxu1 %v6600_v20  ;;  %v24263_v50 = vld [vmem:[%s31445_s3 + $0xce0] sm:$0xff]   ;;  %v24266_v20 = vld [vmem:[%s31445_s3 + $0xca8] sm:$0xff]  }
 0x74e   : > { %21562 = vmatprep.subr.bf16.mxu1 %v24241_v34  ;;  %v24265_v34 = vld [vmem:[%s31445_s3 + $0xce8] sm:$0xff]  }
 0x750   : > { %v22368_v2 = vpop.f32.mrb[112].mxu0 }
 0x751   : > { %v22369_v40 = vpop.f32.mrb[113].mxu0  ;;  %21563 = vmatpush3.bf16.msra.mxu1 %v24242_v42  ;;  %v24267_v42 = vld [vmem:[%s31445_s3 + $0xcf0] sm:$0xff]  }
 0x752   : > { %v29786_v7 = vadd.f32 %v22369_v40, %v22368_v2  ;;  %v22371_v57 = vpop.f32.mrb[114].mxu0  ;;  %21564 = vmatprep.subr.bf16.mxu1 %v24243_v53 }
 0x753   : > { %v22372_v49 = vpop.f32.mrb[115].mxu0  ;;  %v24268_v57 = vld [vmem:[%s31445_s3 + $0xcb0] sm:$0xff]  }
 0x755   : > { %21565 = vmatpush3.bf16.msra.mxu1 %v24244_v41 }
 0x756   : > { %21566 = vmatprep.subr.bf16.mxu1 %v24245_v56  ;;  %v32815_v56 = vld [vmem:[#allocation143_spill] sm:$0xff] }
 0x757   : > { %v6025_v49 = vadd.f32 %v29563_v23, %v32815_v56 }
 0x759   : > { %21567 = vmatpush3.bf16.msra.mxu1 %v24246_v31 }
 0x75a   : > { %21568 = vmatprep.subr.bf16.mxu1 %v24247_v47  ;;  %v24269_v47 = vld [vmem:[%s31445_s3 + $0xcf8] sm:$0xff]  }
 0x75d   : > { %21569 = vmatpush3.bf16.msra.mxu1 %v24248_v27  ;;  %v32816_v27 = vld [vmem:[#allocation11_spill] sm:$0xff] }
 0x75e   : > { %21570 = vmatprep.subr.bf16.mxu1 %v24249_v26  ;;  %v6028_v26 = vadd.f32 %v29563_v23, %v32816_v27  ;;  %v24291_v27 = vld [vmem:[%s31445_s3 + $0xdd0] sm:$0xff]  }
 0x75f   : > { %v21422_v43 = vpop.f32.mrb[68].mxu1 }
 0x760   : > { %v21423_v19 = vpop.f32.mrb[69].mxu1 }
 0x761   : > { %v21424_v59 = vadd.f32 %v21423_v19, %v21422_v43  ;;  %v21425_v30 = vpop.f32.mrb[70].mxu1  ;;  %21571 = vmatpush3.bf16.msra.mxu1 %v24250_v16  ;;  %v6169_v43 = vmax.f32 %v6025_v49, 0.0  ;;  %v24271_v19 = vld [vmem:[%s31445_s3 + $0xd40] sm:$0xff]   ;;  %v24289_v49 = vld [vmem:[%s31445_s3 + $0xdc8] sm:$0xff]  }
 0x762   : > { %v21426_v24 = vpop.f32.mrb[71].mxu1  ;;  %21572 = vmatprep.subr.bf16.mxu1 %v24251_v13  ;;  %v24270_v13 = vld [vmem:[%s31445_s3 + $0xcb8] sm:$0xff]   ;;  %v24272_v30 = vld [vmem:[%s31445_s3 + $0xd00] sm:$0xff]  }
 0x763   : > { %v16633_v3 = vadd.f32 %v21424_v59, %v16593_v45  ;;  %v6172_v59 = vmax.f32 %v6028_v26, 0.0  ;;  %v24274_v24 = vld [vmem:[%s31445_s3 + $0xd08] sm:$0xff]  }
 0x765   : > { %21573 = vmatpush3.bf16.msra.mxu1 %v24252_v10  ;;  %v6601_v10 = vpack.c.bf16 %v6169_v43, %v6169_v43  ;;  %v6604_v15 = vpack.c.bf16 %v6172_v59, %v6172_v59  ;;  %v24293_v59 = vld [vmem:[%s31445_s3 + $0xdd8] sm:$0xff]  }
 0x766   : > { %21574 = vmatprep.subr.bf16.mxu1 %v24253_v14  ;;  %v24275_v14 = vld [vmem:[%s31445_s3 + $0xd50] sm:$0xff]  }
 0x769   : > { %21575 = vmatpush3.bf16.msra.mxu1 %v24254_v8 }
 0x76a   : > { %21582 = vmatprep.subr.bf16.mxu1 %v24255_v51  ;;  %v24277_v51 = vld [vmem:[%s31445_s3 + $0xd58] sm:$0xff]  }
 0x76c   : > { %16911 = vmatmul.mubr.bf16.vlgmr.msra.gmra.mrb[96].mxu1 %v6599_v21  ;;  %v24279_v21 = vld [vmem:[%s31445_s3 + $0xd60] sm:$0xff]  }
 0x76d   : > { %21583 = vmatpush3.bf16.msra.mxu1 %v24256_v44  ;;  %16950 = vmatprep.mubr.bf16.mxu1 %v6602_v12  ;;  %v24278_v44 = vld [vmem:[%s31445_s3 + $0xd18] sm:$0xff]   ;;  %v24281_v12 = vld [vmem:[%s31445_s3 + $0xd68] sm:$0xff]  }
 0x76e   : > { %21584 = vmatprep.subr.bf16.mxu1 %v24257_v63  ;;  %v24280_v63 = vld [vmem:[%s31445_s3 + $0xd20] sm:$0xff]  }
 0x770   : > { %v22412_v54 = vpop.f32.mrb[116].mxu0 }
 0x771   : > { %v22413_v9 = vpop.f32.mrb[117].mxu0  ;;  %21585 = vmatpush3.bf16.msra.mxu1 %v24258_v18  ;;  %v24282_v18 = vld [vmem:[%s31445_s3 + $0xd28] sm:$0xff]  }
 0x772   : > { %v29840_v45 = vadd.f32 %v22413_v9, %v22412_v54  ;;  %v22415_v35 = vpop.f32.mrb[118].mxu0  ;;  %21586 = vmatprep.subr.bf16.mxu1 %v24259_v52  ;;  %v24283_v52 = vld [vmem:[%s31445_s3 + $0xd70] sm:$0xff]  }
 0x773   : > { %v22416_v29 = vpop.f32.mrb[119].mxu0 }
 0x774   : > { %v32817_v29 = vld [vmem:[#allocation147_spill] sm:$0xff] }
 0x775   : > { %21587 = vmatpush3.bf16.msra.mxu1 %v24260_v5 }
 0x776   : > { %21588 = vmatprep.subr.bf16.mxu1 %v24261_v37  ;;  %v24284_v37 = vld [vmem:[%s31445_s3 + $0xd30] sm:$0xff]  }
 0x779   : > { %21589 = vmatpush3.bf16.msra.mxu1 %v24262_v48  ;;  %v6027_v48 = vadd.f32 %v29563_v23, %v32817_v29  ;;  %v24304_v29 = vld [vmem:[%s31445_s3 + $0xe00] sm:$0xff]  }
 0x77a   : > { %21590 = vmatprep.subr.bf16.mxu1 %v24263_v50 }
 0x77d   : > { %21591 = vmatpush3.bf16.msra.mxu1 %v24264_v17  ;;  %v24285_v17 = vld [vmem:[%s31445_s3 + $0xd78] sm:$0xff]  }
 0x77e   : > { %21592 = vmatprep.subr.bf16.mxu1 %v24265_v34  ;;  %v32818_v34 = vld [vmem:[#allocation148_spill] sm:$0xff] }
 0x77f   : > { %v21444_v53 = vpop.f32.mrb[72].mxu1 }
 0x780   : > { %v21445_v2 = vpop.f32.mrb[73].mxu1 }
 0x781   : > { %v21446_v40 = vadd.f32 %v21445_v2, %v21444_v53  ;;  %v21447_v41 = vpop.f32.mrb[74].mxu1  ;;  %21593 = vmatpush3.bf16.msra.mxu1 %v24266_v20  ;;  %v6030_v20 = vadd.f32 %v29563_v23, %v32818_v34  ;;  %v24286_v53 = vld [vmem:[%s31445_s3 + $0xd38] sm:$0xff]   ;;  %v6171_v2 = vmax.f32 %v6027_v48, 0.0  ;;  %v24306_v34 = vld [vmem:[%s31445_s3 + $0xe08] sm:$0xff]  }
 0x782   : > { %v21448_v31 = vpop.f32.mrb[75].mxu1  ;;  %21594 = vmatprep.subr.bf16.mxu1 %v24267_v42 }
 0x783   : > { %v16673_v16 = vadd.f32 %v21446_v40, %v16633_v3  ;;  %v24276_v3 = vld [vmem:[%s31445_s3 + $0xd10] sm:$0xff]   ;;  %v24287_v40 = vld [vmem:[%s31445_s3 + $0xdc0] sm:$0xff]   ;;  %v6174_v41 = vmax.f32 %v6030_v20, 0.0  ;;  %v6603_v56 = vpack.c.bf16 %v6171_v2, %v6171_v2 }
 0x784   : > { %v24307_v20 = vld [vmem:[%s31445_s3 + $0xe50] sm:$0xff]  }
 0x785   : > { %21595 = vmatpush3.bf16.msra.mxu1 %v24268_v57  ;;  %v24288_v57 = vld [vmem:[%s31445_s3 + $0xd80] sm:$0xff]   ;;  %v6606_v31 = vpack.c.bf16 %v6174_v41, %v6174_v41  ;;  %v24308_v2 = vld [vmem:[%s31445_s3 + $0xe10] sm:$0xff]  }
 0x786   : > { %21596 = vmatprep.subr.bf16.mxu1 %v24269_v47  ;;  %v24290_v47 = vld [vmem:[%s31445_s3 + $0xd88] sm:$0xff]  }
 0x789   : > { %21597 = vmatpush3.bf16.msra.mxu1 %v24270_v13  ;;  %v24292_v13 = vld [vmem:[%s31445_s3 + $0xd90] sm:$0xff]  }
 0x78a   : > { %21604 = vmatprep.subr.bf16.mxu1 %v24271_v19 }
 0x78c   : > { %16951 = vmatmul.mubr.bf16.vlgmr.msra.gmra.mrb[100].mxu1 %v6601_v10  ;;  %v24294_v10 = vld [vmem:[%s31445_s3 + $0xd98] sm:$0xff]  }
 0x78d   : > { %21605 = vmatpush3.bf16.msra.mxu1 %v24272_v30  ;;  %16990 = vmatprep.mubr.bf16.mxu1 %v6604_v15  ;;  %v24296_v15 = vld [vmem:[%s31445_s3 + $0xda0] sm:$0xff]  }
 0x78e   : > { %21606 = vmatprep.subr.bf16.mxu1 %v24273_v36  ;;  %v24295_v36 = vld [vmem:[%s31445_s3 + $0xde0] sm:$0xff]  }
 0x790   : > { %v22456_v28 = vpop.f32.mrb[120].mxu0 }
 0x791   : > { %v22457_v55 = vpop.f32.mrb[121].mxu0  ;;  %21607 = vmatpush3.bf16.msra.mxu1 %v24274_v24  ;;  %v24297_v24 = vld [vmem:[%s31445_s3 + $0xde8] sm:$0xff]  }
 0x792   : > { %v29894_v8 = vadd.f32 %v22457_v55, %v22456_v28  ;;  %v22459_v39 = vpop.f32.mrb[122].mxu0  ;;  %21608 = vmatprep.subr.bf16.mxu1 %v24275_v14  ;;  %v24298_v14 = vld [vmem:[%s31445_s3 + $0xda8] sm:$0xff]   ;;  %v24299_v28 = vld [vmem:[%s31445_s3 + $0xdf0] sm:$0xff]  }
 0x793   : > { %v22460_v32 = vpop.f32.mrb[123].mxu0 }
 0x794   : > { %v24300_v32 = vld [vmem:[%s31445_s3 + $0xdb0] sm:$0xff]  }
 0x795   : > { %21609 = vmatpush3.bf16.msra.mxu1 %v24276_v3 }
 0x796   : > { %21610 = vmatprep.subr.bf16.mxu1 %v24277_v51 }
 0x799   : > { %21611 = vmatpush3.bf16.msra.mxu1 %v24278_v44  ;;  %v32819_v44 = vld [vmem:[#allocation146_spill] sm:$0xff] }
 0x79a   : > { %21612 = vmatprep.subr.bf16.mxu1 %v24279_v21  ;;  %v6029_v21 = vadd.f32 %v29563_v23, %v32819_v44 }
 0x79d   : > { %21613 = vmatpush3.bf16.msra.mxu1 %v24280_v63 }
 0x79e   : > { %21614 = vmatprep.subr.bf16.mxu1 %v24281_v12  ;;  %v24301_v12 = vld [vmem:[%s31445_s3 + $0xdf8] sm:$0xff]  }
 0x79f   : > { %v21466_v54 = vpop.f32.mrb[76].mxu1 }
 0x7a0   : > { %v21467_v9 = vpop.f32.mrb[77].mxu1 }
 0x7a1   : > { %v21468_v5 = vadd.f32 %v21467_v9, %v21466_v54  ;;  %v21469_v35 = vpop.f32.mrb[78].mxu1  ;;  %21615 = vmatpush3.bf16.msra.mxu1 %v24282_v18  ;;  %v32820_v18 = vld [vmem:[#allocation13_spill] sm:$0xff]  ;;  %v24302_v9 = vld [vmem:[%s31445_s3 + $0xdb8] sm:$0xff]  }
 0x7a2   : > { %v21470_v50 = vpop.f32.mrb[79].mxu1  ;;  %21616 = vmatprep.subr.bf16.mxu1 %v24283_v52  ;;  %v6032_v52 = vadd.f32 %v29563_v23, %v32820_v18  ;;  %v24303_v35 = vld [vmem:[%s31445_s3 + $0xe40] sm:$0xff]  }
 0x7a3   : > { %v16713_v42 = vadd.f32 %v21468_v5, %v16673_v16  ;;  %v6173_v5 = vmax.f32 %v6029_v21, 0.0  ;;  %v24305_v50 = vld [vmem:[%s31445_s3 + $0xe48] sm:$0xff]   ;;  %v24320_v21 = vld [vmem:[%s31445_s3 + $0xe80] sm:$0xff]  }
 0x7a5   : > { %21617 = vmatpush3.bf16.msra.mxu1 %v24284_v37  ;;  %v6176_v37 = vmax.f32 %v6032_v52, 0.0  ;;  %v6605_v48 = vpack.c.bf16 %v6173_v5, %v6173_v5  ;;  %v24322_v52 = vld [vmem:[%s31445_s3 + $0xe88] sm:$0xff]  }
 0x7a6   : > { %21618 = vmatprep.subr.bf16.mxu1 %v24285_v17 }
 0x7a7   : > { %v6608_v17 = vpack.c.bf16 %v6176_v37, %v6176_v37 }
 0x7a9   : > { %21619 = vmatpush3.bf16.msra.mxu1 %v24286_v53 }
 0x7aa   : > { %21626 = vmatprep.subr.bf16.mxu1 %v24287_v40 }
 0x7ac   : > { %16991 = vmatmul.mubr.bf16.vlgmr.msra.gmra.mrb[104].mxu1 %v6603_v56 }
 0x7ad   : > { %21627 = vmatpush3.bf16.msra.mxu1 %v24288_v57  ;;  %17030 = vmatprep.mubr.bf16.mxu1 %v6606_v31  ;;  %v24309_v57 = vld [vmem:[%s31445_s3 + $0xe58] sm:$0xff]   ;;  %v24311_v31 = vld [vmem:[%s31445_s3 + $0xe60] sm:$0xff]  }
 0x7ae   : > { %21628 = vmatprep.subr.bf16.mxu1 %v24289_v49  ;;  %v24310_v49 = vld [vmem:[%s31445_s3 + $0xe18] sm:$0xff]  }
 0x7b0   : > { %v22500_v26 = vpop.f32.mrb[124].mxu0 }
 0x7b1   : > { %v22501_v16 = vpop.f32.mrb[125].mxu0  ;;  %21629 = vmatpush3.bf16.msra.mxu1 %v24290_v47  ;;  %v24312_v47 = vld [vmem:[%s31445_s3 + $0xe20] sm:$0xff]  }
 0x7b2   : > { %v29948_v43 = vadd.f32 %v22501_v16, %v22500_v26  ;;  %v22503_v19 = vpop.f32.mrb[126].mxu0  ;;  %21630 = vmatprep.subr.bf16.mxu1 %v24291_v27  ;;  %v24313_v27 = vld [vmem:[%s31445_s3 + $0xe68] sm:$0xff]   ;;  %v24315_v16 = vld [vmem:[%s31445_s3 + $0xe70] sm:$0xff]  }
 0x7b3   : > { %v22504_v30 = vpop.f32.mrb[127].mxu0  ;;  %v24314_v26 = vld [vmem:[%s31445_s3 + $0xe28] sm:$0xff]  }
 0x7b5   : > { %21631 = vmatpush3.bf16.msra.mxu1 %v24292_v13 }
 0x7b6   : > { %21632 = vmatprep.subr.bf16.mxu1 %v24293_v59 }
 0x7b9   : > { %21633 = vmatpush3.bf16.msra.mxu1 %v24294_v10  ;;  %v24316_v10 = vld [vmem:[%s31445_s3 + $0xe30] sm:$0xff]  }
 0x7ba   : > { %21634 = vmatprep.subr.bf16.mxu1 %v24295_v36  ;;  %v32821_v36 = vld [vmem:[#allocation12_spill] sm:$0xff] }
 0x7bd   : > { %21635 = vmatpush3.bf16.msra.mxu1 %v24296_v15  ;;  %v6031_v15 = vadd.f32 %v29563_v23, %v32821_v36  ;;  %v24335_v36 = vld [vmem:[%s31445_s3 + $0xf40] sm:$0xff]  }
 0x7be   : > { %21636 = vmatprep.subr.bf16.mxu1 %v24297_v24 }
 0x7bf   : > { %v21488_v55 = vpop.f32.mrb[80].mxu1 }
 0x7c0   : > { %v21489_v3 = vpop.f32.mrb[81].mxu1 }
 0x7c1   : > { %v21490_v39 = vadd.f32 %v21489_v3, %v21488_v55  ;;  %v21491_v51 = vpop.f32.mrb[82].mxu1  ;;  %21637 = vmatpush3.bf16.msra.mxu1 %v24298_v14  ;;  %v24317_v14 = vld [vmem:[%s31445_s3 + $0xe78] sm:$0xff]  }
 0x7c2   : > { %v21492_v63 = vpop.f32.mrb[83].mxu1  ;;  %21638 = vmatprep.subr.bf16.mxu1 %v24299_v28  ;;  %v32822_v28 = vld [vmem:[#allocation150_spill] sm:$0xff]  ;;  %v6175_v51 = vmax.f32 %v6031_v15, 0.0 }
 0x7c3   : > { %v16753_v54 = vadd.f32 %v21490_v39, %v16713_v42  ;;  %v6034_v55 = vadd.f32 %v29563_v23, %v32822_v28  ;;  %v24318_v39 = vld [vmem:[%s31445_s3 + $0xe38] sm:$0xff]  }
 0x7c4   : > { %v6607_v63 = vpack.c.bf16 %v6175_v51, %v6175_v51  ;;  %v24341_v51 = vld [vmem:[%s31445_s3 + $0xf58] sm:$0xff]  }
 0x7c5   : > { %21639 = vmatpush3.bf16.msra.mxu1 %v24300_v32  ;;  %v24319_v32 = vld [vmem:[%s31445_s3 + $0xec0] sm:$0xff]   ;;  %v6178_v44 = vmax.f32 %v6034_v55, 0.0  ;;  %v24338_v55 = vld [vmem:[%s31445_s3 + $0xf08] sm:$0xff]  }
 0x7c6   : > { %21640 = vmatprep.subr.bf16.mxu1 %v24301_v12  ;;  %v24321_v12 = vld [vmem:[%s31445_s3 + $0xec8] sm:$0xff]  }
 0x7c7   : > { %v6610_v18 = vpack.c.bf16 %v6178_v44, %v6178_v44  ;;  %v24343_v44 = vld [vmem:[%s31445_s3 + $0xf60] sm:$0xff]  }
 0x7c9   : > { %21641 = vmatpush3.bf16.msra.mxu1 %v24302_v9 }
 0x7ca   : > { %21648 = vmatprep.subr.bf16.mxu1 %v24303_v35  ;;  %v24324_v35 = vld [vmem:[%s31445_s3 + $0xe90] sm:$0xff]  }
 0x7cc   : > { %17031 = vmatmul.mubr.bf16.vlgmr.msra.gmra.mrb[108].mxu1 %v6605_v48  ;;  %v24325_v48 = vld [vmem:[%s31445_s3 + $0xed8] sm:$0xff]  }
 0x7cd   : > { %21649 = vmatpush3.bf16.msra.mxu1 %v24304_v29  ;;  %17070 = vmatprep.mubr.bf16.mxu1 %v6608_v17  ;;  %v24326_v17 = vld [vmem:[%s31445_s3 + $0xe98] sm:$0xff]  }
 0x7ce   : > { %21650 = vmatprep.subr.bf16.mxu1 %v24305_v50 }
 0x7d0   : > { %v22544_v42 = vpop.f32.mrb[128].mxu0 }
 0x7d1   : > { %v22545_v53 = vpop.f32.mrb[129].mxu0  ;;  %21651 = vmatpush3.bf16.msra.mxu1 %v24306_v34  ;;  %v24327_v34 = vld [vmem:[%s31445_s3 + $0xee0] sm:$0xff]  }
 0x7d2   : > { %v30002_v40 = vadd.f32 %v22545_v53, %v22544_v42  ;;  %v22547_v41 = vpop.f32.mrb[130].mxu0  ;;  %21652 = vmatprep.subr.bf16.mxu1 %v24307_v20  ;;  %v24328_v20 = vld [vmem:[%s31445_s3 + $0xea0] sm:$0xff]   ;;  %v24329_v42 = vld [vmem:[%s31445_s3 + $0xee8] sm:$0xff]  }
 0x7d3   : > { %v22548_v56 = vpop.f32.mrb[131].mxu0  ;;  %v24330_v53 = vld [vmem:[%s31445_s3 + $0xea8] sm:$0xff]  }
 0x7d5   : > { %21653 = vmatpush3.bf16.msra.mxu1 %v24308_v2  ;;  %v24331_v2 = vld [vmem:[%s31445_s3 + $0xef0] sm:$0xff]  }
 0x7d6   : > { %21654 = vmatprep.subr.bf16.mxu1 %v24309_v57 }
 0x7d9   : > { %21655 = vmatpush3.bf16.msra.mxu1 %v24310_v49 }
 0x7da   : > { %21656 = vmatprep.subr.bf16.mxu1 %v24311_v31  ;;  %v24332_v31 = vld [vmem:[%s31445_s3 + $0xeb0] sm:$0xff]  }
 0x7dd   : > { %21657 = vmatpush3.bf16.msra.mxu1 %v24312_v47  ;;  %v32823_v47 = vld [vmem:[#allocation149_spill] sm:$0xff] }
 0x7de   : > { %21658 = vmatprep.subr.bf16.mxu1 %v24313_v27  ;;  %v6033_v27 = vadd.f32 %v29563_v23, %v32823_v47  ;;  %v24353_v47 = vld [vmem:[%s31445_s3 + $0xfc8] sm:$0xff]  }
 0x7df   : > { %v21510_v13 = vpop.f32.mrb[84].mxu1 }
 0x7e0   : > { %v21511_v19 = vpop.f32.mrb[85].mxu1 }
 0x7e1   : > { %v21512_v59 = vadd.f32 %v21511_v19, %v21510_v13  ;;  %v21513_v30 = vpop.f32.mrb[86].mxu1  ;;  %21659 = vmatpush3.bf16.msra.mxu1 %v24314_v26  ;;  %v32824_v13 = vld [vmem:[#allocation14_spill] sm:$0xff] }
 0x7e2   : > { %v21514_v24 = vpop.f32.mrb[87].mxu1  ;;  %21660 = vmatprep.subr.bf16.mxu1 %v24315_v16  ;;  %v24333_v16 = vld [vmem:[%s31445_s3 + $0xef8] sm:$0xff]   ;;  %v6036_v19 = vadd.f32 %v29563_v23, %v32824_v13  ;;  %v24337_v23 = vld [vmem:[%s31445_s3 + $0xf48] sm:$0xff]   ;;  %v24356_v13 = vld [vmem:[%s31445_s3 + $0xf90] sm:$0xff]  }
 0x7e3   : > { %v16793_v3 = vadd.f32 %v21512_v59, %v16753_v54  ;;  %v24323_v54 = vld [vmem:[%s31445_s3 + $0xed0] sm:$0xff]   ;;  %v24334_v30 = vld [vmem:[%s31445_s3 + $0xeb8] sm:$0xff]   ;;  %v24336_v24 = vld [vmem:[%s31445_s3 + $0xf00] sm:$0xff]  }
 0x7e4   : > { %v6180_v15 = vmax.f32 %v6036_v19, 0.0  ;;  %v24357_v19 = vld [vmem:[%s31445_s3 + $0xfd8] sm:$0xff]  }
 0x7e5   : > { %21661 = vmatpush3.bf16.msra.mxu1 %v24316_v10  ;;  %v6177_v10 = vmax.f32 %v6033_v27, 0.0 }
 0x7e6   : > { %21662 = vmatprep.subr.bf16.mxu1 %v24317_v14  ;;  %v6612_v28 = vpack.c.bf16 %v6180_v15, %v6180_v15  ;;  %v24362_v15 = vld [vmem:[%s31445_s3 + $0xfa8] sm:$0xff]  }
 0x7e7   : > { %v6609_v14 = vpack.c.bf16 %v6177_v10, %v6177_v10  ;;  %v24360_v10 = vld [vmem:[%s31445_s3 + $0xfa0] sm:$0xff]  }
 0x7e9   : > { %21663 = vmatpush3.bf16.msra.mxu1 %v24318_v39  ;;  %v24340_v39 = vld [vmem:[%s31445_s3 + $0xf10] sm:$0xff]  }
 0x7ea   : > { %21670 = vmatprep.subr.bf16.mxu1 %v24319_v32  ;;  %v24342_v32 = vld [vmem:[%s31445_s3 + $0xf18] sm:$0xff]  }
 0x7ec   : > { %17071 = vmatmul.mubr.bf16.vlgmr.msra.gmra.mrb[112].mxu1 %v6607_v63  ;;  %v24345_v63 = vld [vmem:[%s31445_s3 + $0xf68] sm:$0xff]  }
 0x7ed   : > { %21671 = vmatpush3.bf16.msra.mxu1 %v24320_v21  ;;  %17110 = vmatprep.mubr.bf16.mxu1 %v6610_v18  ;;  %v24344_v21 = vld [vmem:[%s31445_s3 + $0xf20] sm:$0xff]   ;;  %v24347_v18 = vld [vmem:[%s31445_s3 + $0xf70] sm:$0xff]  }
 0x7ee   : > { %21672 = vmatprep.subr.bf16.mxu1 %v24321_v12  ;;  %v24346_v12 = vld [vmem:[%s31445_s3 + $0xf28] sm:$0xff]  }
 0x7f0   : > { %v22588_v9 = vpop.f32.mrb[132].mxu0 }
 0x7f1   : > { %v22589_v5 = vpop.f32.mrb[133].mxu0  ;;  %21673 = vmatpush3.bf16.msra.mxu1 %v24322_v52 }
 0x7f2   : > { %v30056_v37 = vadd.f32 %v22589_v5, %v22588_v9  ;;  %v22591_v29 = vpop.f32.mrb[134].mxu0  ;;  %21674 = vmatprep.subr.bf16.mxu1 %v24323_v54 }
 0x7f3   : > { %v22592_v50 = vpop.f32.mrb[135].mxu0  ;;  %v30137_v29 = vld [vmem:[%s31444_s2] ss:$0 sm:$0xff] }
 0x7f5   : > { %21675 = vmatpush3.bf16.msra.mxu1 %v24324_v35  ;;  %v24348_v35 = vld [vmem:[%s31445_s3 + $0xf30] sm:$0xff]  }
 0x7f6   : > { %21676 = vmatprep.subr.bf16.mxu1 %v24325_v48  ;;  %v32825_v48 = vld [vmem:[#allocation272_spill] sm:$0xff] }
 0x7f7   : > { %v6035_v50 = vadd.f32 %v30137_v29, %v32825_v48  ;;  %v24369_v48 = vld [vmem:[%s31445_s3 + $0x1048] sm:$0xff]  }
 0x7f9   : > { %21677 = vmatpush3.bf16.msra.mxu1 %v24326_v17 }
 0x7fa   : > { %21678 = vmatprep.subr.bf16.mxu1 %v24327_v34  ;;  %v24349_v34 = vld [vmem:[%s31445_s3 + $0xf78] sm:$0xff]  }
 0x7fd   : > { %21679 = vmatpush3.bf16.msra.mxu1 %v24328_v20  ;;  %v32826_v20 = vld [vmem:[#allocation273_spill] sm:$0xff] }
 0x7fe   : > { %21680 = vmatprep.subr.bf16.mxu1 %v24329_v42  ;;  %v6038_v42 = vadd.f32 %v30137_v29, %v32826_v20  ;;  %v24372_v20 = vld [vmem:[%s31445_s3 + $0x1010] sm:$0xff]  }
 0x7ff   : > { %v21532_v41 = vpop.f32.mrb[88].mxu1 }
 0x800   : > { %v21533_v57 = vpop.f32.mrb[89].mxu1 }
 0x801   : > { %v21534_v56 = vadd.f32 %v21533_v57, %v21532_v41  ;;  %v21535_v49 = vpop.f32.mrb[90].mxu1  ;;  %21681 = vmatpush3.bf16.msra.mxu1 %v24330_v53  ;;  %v6179_v41 = vmax.f32 %v6035_v50, 0.0  ;;  %v24351_v57 = vld [vmem:[%s31445_s3 + $0xfc0] sm:$0xff]  }
 0x802   : > { %v21536_v26 = vpop.f32.mrb[91].mxu1  ;;  %21682 = vmatprep.subr.bf16.mxu1 %v24331_v2  ;;  %v24350_v2 = vld [vmem:[%s31445_s3 + $0xf38] sm:$0xff]   ;;  %v24352_v49 = vld [vmem:[%s31445_s3 + $0xf80] sm:$0xff]  }
 0x803   : > { %v16833_v59 = vadd.f32 %v21534_v56, %v16793_v3  ;;  %v24339_v3 = vld [vmem:[%s31445_s3 + $0xf50] sm:$0xff]   ;;  %v6182_v56 = vmax.f32 %v6038_v42, 0.0  ;;  %v24354_v26 = vld [vmem:[%s31445_s3 + $0xf88] sm:$0xff]   ;;  %v24373_v42 = vld [vmem:[%s31445_s3 + $0x1058] sm:$0xff]  }
 0x805   : > { %21683 = vmatpush3.bf16.msra.mxu1 %v24332_v31  ;;  %v6611_v31 = vpack.c.bf16 %v6179_v41, %v6179_v41  ;;  %v6614_v27 = vpack.c.bf16 %v6182_v56, %v6182_v56  ;;  %v24376_v41 = vld [vmem:[%s31445_s3 + $0x1020] sm:$0xff]   ;;  %v24378_v56 = vld [vmem:[%s31445_s3 + $0x1028] sm:$0xff]  }
 0x806   : > { %21684 = vmatprep.subr.bf16.mxu1 %v24333_v16  ;;  %v24355_v16 = vld [vmem:[%s31445_s3 + $0xfd0] sm:$0xff]  }
 0x809   : > { %21685 = vmatpush3.bf16.msra.mxu1 %v24334_v30  ;;  %v24359_v30 = vld [vmem:[%s31445_s3 + $0xfe0] sm:$0xff]  }
 0x80a   : > { %21692 = vmatprep.subr.bf16.mxu1 %v24335_v36  ;;  %v24361_v36 = vld [vmem:[%s31445_s3 + $0xfe8] sm:$0xff]  }
 0x80c   : > { %17111 = vmatmul.mubr.bf16.vlgmr.msra.gmra.mrb[116].mxu1 %v6609_v14 }
 0x80d   : > { %21693 = vmatpush3.bf16.msra.mxu1 %v24336_v24  ;;  %17150 = vmatprep.mubr.bf16.mxu1 %v6612_v28  ;;  %v24363_v24 = vld [vmem:[%s31445_s3 + $0xff0] sm:$0xff]  }
 0x80e   : > { %21694 = vmatprep.subr.bf16.mxu1 %v24337_v23 }
 0x811   : > { %21695 = vmatpush3.bf16.msra.mxu1 %v24338_v55 }
 0x812   : > { %21696 = vmatprep.subr.bf16.mxu1 %v24339_v3  ;;  %v24364_v3 = vld [vmem:[%s31445_s3 + $0xfb0] sm:$0xff]  }
 0x815   : > { %21697 = vmatpush3.bf16.msra.mxu1 %v24340_v39  ;;  %v32827_v39 = vld [vmem:[#allocation151_spill] sm:$0xff] }
 0x816   : > { %21698 = vmatprep.subr.bf16.mxu1 %v24341_v51  ;;  %v6037_v51 = vadd.f32 %v30137_v29, %v32827_v39  ;;  %v24385_v39 = vld [vmem:[%s31445_s3 + $0x10c8] sm:$0xff]  }
 0x819   : > { %21699 = vmatpush3.bf16.msra.mxu1 %v24342_v32 }
 0x81a   : > { %21700 = vmatprep.subr.bf16.mxu1 %v24343_v44  ;;  %v24365_v44 = vld [vmem:[%s31445_s3 + $0xff8] sm:$0xff]  }
 0x81d   : > { %21701 = vmatpush3.bf16.msra.mxu1 %v24344_v21  ;;  %v32828_v21 = vld [vmem:[#allocation153_spill] sm:$0xff] }
 0x81e   : > { %21702 = vmatprep.subr.bf16.mxu1 %v24345_v63  ;;  %v6040_v63 = vadd.f32 %v30137_v29, %v32828_v21  ;;  %v24388_v21 = vld [vmem:[%s31445_s3 + $0x1090] sm:$0xff]  }
 0x81f   : > { %v21554_v52 = vpop.f32.mrb[92].mxu1 }
 0x820   : > { %v21555_v54 = vpop.f32.mrb[93].mxu1 }
 0x821   : > { %v21556_v9 = vadd.f32 %v21555_v54, %v21554_v52  ;;  %v21557_v5 = vpop.f32.mrb[94].mxu1  ;;  %21703 = vmatpush3.bf16.msra.mxu1 %v24346_v12  ;;  %v6181_v52 = vmax.f32 %v6037_v51, 0.0  ;;  %v24367_v54 = vld [vmem:[%s31445_s3 + $0x1040] sm:$0xff]  }
 0x822   : > { %v21558_v17 = vpop.f32.mrb[95].mxu1  ;;  %21704 = vmatprep.subr.bf16.mxu1 %v24347_v18  ;;  %v24366_v18 = vld [vmem:[%s31445_s3 + $0xfb8] sm:$0xff]   ;;  %v24368_v5 = vld [vmem:[%s31445_s3 + $0x1000] sm:$0xff]  }
 0x823   : > { %v16873_v53 = vadd.f32 %v21556_v9, %v16833_v59  ;;  %v24358_v59 = vld [vmem:[%s31445_s3 + $0xf98] sm:$0xff]   ;;  %v6184_v9 = vmax.f32 %v6040_v63, 0.0  ;;  %v24370_v17 = vld [vmem:[%s31445_s3 + $0x1008] sm:$0xff]  }
 0x824   : > { %v24389_v63 = vld [vmem:[%s31445_s3 + $0x10d8] sm:$0xff]  }
 0x825   : > { %21705 = vmatpush3.bf16.msra.mxu1 %v24348_v35  ;;  %v6613_v35 = vpack.c.bf16 %v6181_v52, %v6181_v52  ;;  %v6616_v50 = vpack.c.bf16 %v6184_v9, %v6184_v9  ;;  %v24392_v52 = vld [vmem:[%s31445_s3 + $0x10a0] sm:$0xff]   ;;  %v24394_v9 = vld [vmem:[%s31445_s3 + $0x10a8] sm:$0xff]  }
 0x826   : > { %21706 = vmatprep.subr.bf16.mxu1 %v24349_v34  ;;  %v24371_v34 = vld [vmem:[%s31445_s3 + $0x1050] sm:$0xff]  }
 0x829   : > { %21707 = vmatpush3.bf16.msra.mxu1 %v24350_v2  ;;  %v24375_v2 = vld [vmem:[%s31445_s3 + $0x1060] sm:$0xff]  }
 0x82a   : > { %21714 = vmatprep.subr.bf16.mxu1 %v24351_v57  ;;  %v24377_v57 = vld [vmem:[%s31445_s3 + $0x1068] sm:$0xff]  }
 0x82c   : > { %17151 = vmatmul.mubr.bf16.vlgmr.msra.gmra.mrb[120].mxu1 %v6611_v31 }
 0x82d   : > { %21715 = vmatpush3.bf16.msra.mxu1 %v24352_v49  ;;  %17190 = vmatprep.mubr.bf16.mxu1 %v6614_v27  ;;  %v24379_v49 = vld [vmem:[%s31445_s3 + $0x1070] sm:$0xff]  }
 0x82e   : > { %21716 = vmatprep.subr.bf16.mxu1 %v24353_v47 }
 0x831   : > { %21717 = vmatpush3.bf16.msra.mxu1 %v24354_v26 }
 0x832   : > { %21718 = vmatprep.subr.bf16.mxu1 %v24355_v16  ;;  %v24380_v16 = vld [vmem:[%s31445_s3 + $0x1030] sm:$0xff]  }
 0x835   : > { %21719 = vmatpush3.bf16.msra.mxu1 %v24356_v13  ;;  %v32829_v13 = vld [vmem:[#allocation274_spill] sm:$0xff] }
 0x836   : > { %21720 = vmatprep.subr.bf16.mxu1 %v24357_v19  ;;  %v6039_v19 = vadd.f32 %v30137_v29, %v32829_v13  ;;  %v24401_v13 = vld [vmem:[%s31445_s3 + $0x1148] sm:$0xff]  }
 0x839   : > { %21721 = vmatpush3.bf16.msra.mxu1 %v24358_v59 }
 0x83a   : > { %21722 = vmatprep.subr.bf16.mxu1 %v24359_v30  ;;  %v24381_v30 = vld [vmem:[%s31445_s3 + $0x1078] sm:$0xff]  }
 0x83d   : > { %21723 = vmatpush3.bf16.msra.mxu1 %v24360_v10  ;;  %v32830_v10 = vld [vmem:[#allocation15_spill] sm:$0xff] }
 0x83e   : > { %21724 = vmatprep.subr.bf16.mxu1 %v24361_v36  ;;  %v6042_v36 = vadd.f32 %v30137_v29, %v32830_v10  ;;  %v24404_v10 = vld [vmem:[%s31445_s3 + $0x1110] sm:$0xff]  }
 0x83f   : > { %v21576_v14 = vpop.f32.mrb[96].mxu1 }
 0x840   : > { %v21577_v23 = vpop.f32.mrb[97].mxu1 }
 0x841   : > { %v21578_v28 = vadd.f32 %v21577_v23, %v21576_v14  ;;  %v21579_v55 = vpop.f32.mrb[98].mxu1  ;;  %21725 = vmatpush3.bf16.msra.mxu1 %v24362_v15  ;;  %v6183_v14 = vmax.f32 %v6039_v19, 0.0  ;;  %v24383_v23 = vld [vmem:[%s31445_s3 + $0x10c0] sm:$0xff]  }
 0x842   : > { %v21580_v32 = vpop.f32.mrb[99].mxu1  ;;  %21726 = vmatprep.subr.bf16.mxu1 %v24363_v24  ;;  %v24382_v24 = vld [vmem:[%s31445_s3 + $0x1038] sm:$0xff]   ;;  %v24384_v55 = vld [vmem:[%s31445_s3 + $0x1080] sm:$0xff]  }
 0x843   : > { %v16913_v12 = vadd.f32 %v21578_v28, %v16873_v53  ;;  %v24374_v53 = vld [vmem:[%s31445_s3 + $0x1018] sm:$0xff]   ;;  %v6186_v28 = vmax.f32 %v6042_v36, 0.0  ;;  %v24386_v32 = vld [vmem:[%s31445_s3 + $0x1088] sm:$0xff]  }
 0x844   : > { %v24405_v36 = vld [vmem:[%s31445_s3 + $0x1158] sm:$0xff]  }
 0x845   : > { %21727 = vmatpush3.bf16.msra.mxu1 %v24364_v3  ;;  %v6615_v3 = vpack.c.bf16 %v6183_v14, %v6183_v14  ;;  %v6618_v51 = vpack.c.bf16 %v6186_v28, %v6186_v28  ;;  %v24408_v14 = vld [vmem:[%s31445_s3 + $0x1120] sm:$0xff]   ;;  %v24410_v28 = vld [vmem:[%s31445_s3 + $0x1128] sm:$0xff]  }
 0x846   : > { %21728 = vmatprep.subr.bf16.mxu1 %v24365_v44  ;;  %v24387_v44 = vld [vmem:[%s31445_s3 + $0x10d0] sm:$0xff]  }
 0x849   : > { %21729 = vmatpush3.bf16.msra.mxu1 %v24366_v18  ;;  %v24391_v18 = vld [vmem:[%s31445_s3 + $0x10e0] sm:$0xff]  }
 0x84a   : > { %21736 = vmatprep.subr.bf16.mxu1 %v24367_v54  ;;  %v24393_v54 = vld [vmem:[%s31445_s3 + $0x10e8] sm:$0xff]  }
 0x84c   : > { %17191 = vmatmul.mubr.bf16.vlgmr.msra.gmra.mrb[124].mxu1 %v6613_v35 }
 0x84d   : > { %21737 = vmatpush3.bf16.msra.mxu1 %v24368_v5  ;;  %17230 = vmatprep.mubr.bf16.mxu1 %v6616_v50  ;;  %v24395_v5 = vld [vmem:[%s31445_s3 + $0x10f0] sm:$0xff]  }
 0x84e   : > { %21738 = vmatprep.subr.bf16.mxu1 %v24369_v48 }
 0x851   : > { %21739 = vmatpush3.bf16.msra.mxu1 %v24370_v17 }
 0x852   : > { %21740 = vmatprep.subr.bf16.mxu1 %v24371_v34  ;;  %v24396_v34 = vld [vmem:[%s31445_s3 + $0x10b0] sm:$0xff]  }
 0x855   : > { %21741 = vmatpush3.bf16.msra.mxu1 %v24372_v20  ;;  %v32831_v20 = vld [vmem:[#allocation152_spill] sm:$0xff] }
 0x856   : > { %21742 = vmatprep.subr.bf16.mxu1 %v24373_v42  ;;  %v6041_v42 = vadd.f32 %v30137_v29, %v32831_v20  ;;  %v24417_v20 = vld [vmem:[%s31445_s3 + $0x11c8] sm:$0xff]  }
 0x859   : > { %21743 = vmatpush3.bf16.msra.mxu1 %v24374_v53 }
 0x85a   : > { %21744 = vmatprep.subr.bf16.mxu1 %v24375_v2  ;;  %v24397_v2 = vld [vmem:[%s31445_s3 + $0x10f8] sm:$0xff]  }
 0x85d   : > { %21745 = vmatpush3.bf16.msra.mxu1 %v24376_v41  ;;  %v32832_v41 = vld [vmem:[#allocation17_spill] sm:$0xff] }
 0x85e   : > { %21746 = vmatprep.subr.bf16.mxu1 %v24377_v57  ;;  %v6044_v57 = vadd.f32 %v30137_v29, %v32832_v41  ;;  %v24420_v41 = vld [vmem:[%s31445_s3 + $0x1190] sm:$0xff]  }
 0x85f   : > { %v21598_v31 = vpop.f32.mrb[100].mxu1 }
 0x860   : > { %v21599_v47 = vpop.f32.mrb[101].mxu1 }
 0x861   : > { %v21600_v27 = vadd.f32 %v21599_v47, %v21598_v31  ;;  %v21601_v26 = vpop.f32.mrb[102].mxu1  ;;  %21747 = vmatpush3.bf16.msra.mxu1 %v24378_v56  ;;  %v6185_v31 = vmax.f32 %v6041_v42, 0.0  ;;  %v24399_v47 = vld [vmem:[%s31445_s3 + $0x1140] sm:$0xff]  }
 0x862   : > { %v21602_v59 = vpop.f32.mrb[103].mxu1  ;;  %21748 = vmatprep.subr.bf16.mxu1 %v24379_v49  ;;  %v24398_v49 = vld [vmem:[%s31445_s3 + $0x10b8] sm:$0xff]   ;;  %v24400_v26 = vld [vmem:[%s31445_s3 + $0x1100] sm:$0xff]  }
 0x863   : > { %v16953_v15 = vadd.f32 %v21600_v27, %v16913_v12  ;;  %v24390_v12 = vld [vmem:[%s31445_s3 + $0x1098] sm:$0xff]   ;;  %v6188_v27 = vmax.f32 %v6044_v57, 0.0  ;;  %v24402_v59 = vld [vmem:[%s31445_s3 + $0x1108] sm:$0xff]  }
 0x864   : > { %v24421_v57 = vld [vmem:[%s31445_s3 + $0x11d8] sm:$0xff]  }
 0x865   : > { %21749 = vmatpush3.bf16.msra.mxu1 %v24380_v16  ;;  %v6617_v16 = vpack.c.bf16 %v6185_v31, %v6185_v31  ;;  %v6620_v19 = vpack.c.bf16 %v6188_v27, %v6188_v27  ;;  %v24424_v31 = vld [vmem:[%s31445_s3 + $0x11a0] sm:$0xff]   ;;  %v24426_v27 = vld [vmem:[%s31445_s3 + $0x11a8] sm:$0xff]  }
 0x866   : > { %21750 = vmatprep.subr.bf16.mxu1 %v24381_v30  ;;  %v24403_v30 = vld [vmem:[%s31445_s3 + $0x1150] sm:$0xff]  }
 0x869   : > { %21751 = vmatpush3.bf16.msra.mxu1 %v24382_v24  ;;  %v24407_v24 = vld [vmem:[%s31445_s3 + $0x1160] sm:$0xff]  }
 0x86a   : > { %21758 = vmatprep.subr.bf16.mxu1 %v24383_v23  ;;  %v24409_v23 = vld [vmem:[%s31445_s3 + $0x1168] sm:$0xff]  }
 0x86c   : > { %17231 = vmatmul.mubr.bf16.vlgmr.msra.gmra.mrb[128].mxu1 %v6615_v3 }
 0x86d   : > { %21759 = vmatpush3.bf16.msra.mxu1 %v24384_v55  ;;  %17270 = vmatprep.mubr.bf16.mxu1 %v6618_v51  ;;  %v24411_v55 = vld [vmem:[%s31445_s3 + $0x1170] sm:$0xff]  }
 0x86e   : > { %21760 = vmatprep.subr.bf16.mxu1 %v24385_v39 }
 0x871   : > { %21761 = vmatpush3.bf16.msra.mxu1 %v24386_v32 }
 0x872   : > { %21762 = vmatprep.subr.bf16.mxu1 %v24387_v44  ;;  %v24412_v44 = vld [vmem:[%s31445_s3 + $0x1130] sm:$0xff]  }
 0x875   : > { %21763 = vmatpush3.bf16.msra.mxu1 %v24388_v21  ;;  %v32833_v21 = vld [vmem:[#allocation16_spill] sm:$0xff] }
 0x876   : > { %21764 = vmatprep.subr.bf16.mxu1 %v24389_v63  ;;  %v6043_v63 = vadd.f32 %v30137_v29, %v32833_v21  ;;  %v24433_v21 = vld [vmem:[%s31445_s3 + $0x12c8] sm:$0xff]  }
 0x879   : > { %21765 = vmatpush3.bf16.msra.mxu1 %v24390_v12 }
 0x87a   : > { %21766 = vmatprep.subr.bf16.mxu1 %v24391_v18  ;;  %v24413_v18 = vld [vmem:[%s31445_s3 + $0x1178] sm:$0xff]  }
 0x87d   : > { %21767 = vmatpush3.bf16.msra.mxu1 %v24392_v52  ;;  %v32834_v52 = vld [vmem:[#allocation154_spill] sm:$0xff] }
 0x87e   : > { %21768 = vmatprep.subr.bf16.mxu1 %v24393_v54  ;;  %v6046_v54 = vadd.f32 %v30137_v29, %v32834_v52  ;;  %v24436_v52 = vld [vmem:[%s31445_s3 + $0x1290] sm:$0xff]  }
 0x87f   : > { %v21620_v35 = vpop.f32.mrb[104].mxu1 }
 0x880   : > { %v21621_v48 = vpop.f32.mrb[105].mxu1 }
 0x881   : > { %v21622_v50 = vadd.f32 %v21621_v48, %v21620_v35  ;;  %v21623_v17 = vpop.f32.mrb[106].mxu1  ;;  %21769 = vmatpush3.bf16.msra.mxu1 %v24394_v9  ;;  %v6187_v35 = vmax.f32 %v6043_v63, 0.0  ;;  %v24415_v48 = vld [vmem:[%s31445_s3 + $0x11c0] sm:$0xff]  }
 0x882   : > { %v21624_v53 = vpop.f32.mrb[107].mxu1  ;;  %21770 = vmatprep.subr.bf16.mxu1 %v24395_v5  ;;  %v24414_v5 = vld [vmem:[%s31445_s3 + $0x1138] sm:$0xff]   ;;  %v24416_v17 = vld [vmem:[%s31445_s3 + $0x1180] sm:$0xff]  }
 0x883   : > { %v16993_v56 = vadd.f32 %v21622_v50, %v16953_v15  ;;  %v24406_v15 = vld [vmem:[%s31445_s3 + $0x1118] sm:$0xff]   ;;  %v6190_v50 = vmax.f32 %v6046_v54, 0.0  ;;  %v24418_v53 = vld [vmem:[%s31445_s3 + $0x1188] sm:$0xff]  }
 0x884   : > { %v24437_v54 = vld [vmem:[%s31445_s3 + $0x12d8] sm:$0xff]  }
 0x885   : > { %21771 = vmatpush3.bf16.msra.mxu1 %v24396_v34  ;;  %v6619_v34 = vpack.c.bf16 %v6187_v35, %v6187_v35  ;;  %v6622_v42 = vpack.c.bf16 %v6190_v50, %v6190_v50  ;;  %v24440_v35 = vld [vmem:[%s31445_s3 + $0x12a0] sm:$0xff]   ;;  %v24442_v50 = vld [vmem:[%s31445_s3 + $0x12a8] sm:$0xff]  }
 0x886   : > { %21772 = vmatprep.subr.bf16.mxu1 %v24397_v2  ;;  %v24419_v2 = vld [vmem:[%s31445_s3 + $0x11d0] sm:$0xff]  }
 0x889   : > { %21773 = vmatpush3.bf16.msra.mxu1 %v24398_v49  ;;  %v24423_v49 = vld [vmem:[%s31445_s3 + $0x11e0] sm:$0xff]  }
 0x88a   : > { %21780 = vmatprep.subr.bf16.mxu1 %v24399_v47  ;;  %v24425_v47 = vld [vmem:[%s31445_s3 + $0x11e8] sm:$0xff]  }
 0x88c   : > { %17271 = vmatmul.mubr.bf16.vlgmr.msra.gmra.mrb[132].mxu1 %v6617_v16 }
 0x88d   : > { %21781 = vmatpush3.bf16.msra.mxu1 %v24400_v26  ;;  %17310 = vmatprep.mubr.bf16.mxu1 %v6620_v19  ;;  %v24427_v26 = vld [vmem:[%s31445_s3 + $0x11f0] sm:$0xff]  }
 0x88e   : > { %21782 = vmatprep.subr.bf16.mxu1 %v24401_v13 }
 0x891   : > { %21783 = vmatpush3.bf16.msra.mxu1 %v24402_v59 }
 0x892   : > { %21784 = vmatprep.subr.bf16.mxu1 %v24403_v30  ;;  %v24428_v30 = vld [vmem:[%s31445_s3 + $0x11b0] sm:$0xff]  }
 0x895   : > { %21785 = vmatpush3.bf16.msra.mxu1 %v24404_v10  ;;  %v32835_v10 = vld [vmem:[#allocation275_spill] sm:$0xff] }
 0x896   : > { %21786 = vmatprep.subr.bf16.mxu1 %v24405_v36  ;;  %v6045_v36 = vadd.f32 %v30137_v29, %v32835_v10  ;;  %v24449_v10 = vld [vmem:[%s31445_s3 + $0x13c8] sm:$0xff]  }
 0x899   : > { %21787 = vmatpush3.bf16.msra.mxu1 %v24406_v15 }
 0x89a   : > { %21788 = vmatprep.subr.bf16.mxu1 %v24407_v24  ;;  %v24429_v24 = vld [vmem:[%s31445_s3 + $0x11f8] sm:$0xff]  }
 0x89d   : > { %21789 = vmatpush3.bf16.msra.mxu1 %v24408_v14  ;;  %v32836_v14 = vld [vmem:[#allocation276_spill] sm:$0xff] }
 0x89e   : > { %21790 = vmatprep.subr.bf16.mxu1 %v24409_v23  ;;  %v6050_v23 = vadd.f32 %v30137_v29, %v32836_v14  ;;  %v24452_v14 = vld [vmem:[%s31445_s3 + $0x1390] sm:$0xff]  }
 0x89f   : > { %v21642_v3 = vpop.f32.mrb[108].mxu1 }
 0x8a0   : > { %v21643_v39 = vpop.f32.mrb[109].mxu1 }
 0x8a1   : > { %v21644_v51 = vadd.f32 %v21643_v39, %v21642_v3  ;;  %v21645_v32 = vpop.f32.mrb[110].mxu1  ;;  %21791 = vmatpush3.bf16.msra.mxu1 %v24410_v28  ;;  %v6189_v3 = vmax.f32 %v6045_v36, 0.0  ;;  %v24431_v39 = vld [vmem:[%s31445_s3 + $0x12c0] sm:$0xff]  }
 0x8a2   : > { %v21646_v12 = vpop.f32.mrb[111].mxu1  ;;  %21792 = vmatprep.subr.bf16.mxu1 %v24411_v55  ;;  %v24430_v55 = vld [vmem:[%s31445_s3 + $0x11b8] sm:$0xff]   ;;  %v24432_v32 = vld [vmem:[%s31445_s3 + $0x1280] sm:$0xff]  }
 0x8a3   : > { %v17033_v9 = vadd.f32 %v21644_v51, %v16993_v56  ;;  %v24422_v56 = vld [vmem:[%s31445_s3 + $0x1198] sm:$0xff]   ;;  %v6194_v51 = vmax.f32 %v6050_v23, 0.0  ;;  %v24434_v12 = vld [vmem:[%s31445_s3 + $0x1288] sm:$0xff]  }
 0x8a4   : > { %v24453_v23 = vld [vmem:[%s31445_s3 + $0x13d8] sm:$0xff]  }
 0x8a5   : > { %21793 = vmatpush3.bf16.msra.mxu1 %v24412_v44  ;;  %v6621_v44 = vpack.c.bf16 %v6189_v3, %v6189_v3  ;;  %v6626_v63 = vpack.c.bf16 %v6194_v51, %v6194_v51  ;;  %v24456_v3 = vld [vmem:[%s31445_s3 + $0x13a0] sm:$0xff]   ;;  %v24458_v51 = vld [vmem:[%s31445_s3 + $0x13a8] sm:$0xff]  }
 0x8a6   : > { %21794 = vmatprep.subr.bf16.mxu1 %v24413_v18  ;;  %v24435_v18 = vld [vmem:[%s31445_s3 + $0x12d0] sm:$0xff]  }
 0x8a9   : > { %21795 = vmatpush3.bf16.msra.mxu1 %v24414_v5  ;;  %v24439_v5 = vld [vmem:[%s31445_s3 + $0x12e0] sm:$0xff]  }
 0x8aa   : > { %21802 = vmatprep.subr.bf16.mxu1 %v24415_v48  ;;  %v24441_v48 = vld [vmem:[%s31445_s3 + $0x12e8] sm:$0xff]  }
 0x8ac   : > { %17311 = vmatmul.mubr.bf16.vlgmr.msra.gmra.mrb[136].mxu1 %v6619_v34 }
 0x8ad   : > { %21803 = vmatpush3.bf16.msra.mxu1 %v24416_v17  ;;  %17350 = vmatprep.mubr.bf16.mxu1 %v6622_v42  ;;  %v24443_v17 = vld [vmem:[%s31445_s3 + $0x12f0] sm:$0xff]  }
 0x8ae   : > { %21804 = vmatprep.subr.bf16.mxu1 %v24417_v20 }
 0x8b1   : > { %21805 = vmatpush3.bf16.msra.mxu1 %v24418_v53 }
 0x8b2   : > { %21806 = vmatprep.subr.bf16.mxu1 %v24419_v2  ;;  %v24444_v2 = vld [vmem:[%s31445_s3 + $0x12b0] sm:$0xff]  }
 0x8b5   : > { %21807 = vmatpush3.bf16.msra.mxu1 %v24420_v41  ;;  %v32837_v41 = vld [vmem:[#allocation155_spill] sm:$0xff] }
 0x8b6   : > { %21808 = vmatprep.subr.bf16.mxu1 %v24421_v57  ;;  %v6049_v57 = vadd.f32 %v30137_v29, %v32837_v41  ;;  %v24465_v41 = vld [vmem:[%s31445_s3 + $0x14c8] sm:$0xff]  }
 0x8b9   : > { %21809 = vmatpush3.bf16.msra.mxu1 %v24422_v56 }
 0x8ba   : > { %21810 = vmatprep.subr.bf16.mxu1 %v24423_v49  ;;  %v24445_v49 = vld [vmem:[%s31445_s3 + $0x12f8] sm:$0xff]  }
 0x8bd   : > { %21811 = vmatpush3.bf16.msra.mxu1 %v24424_v31  ;;  %v32838_v31 = vld [vmem:[#allocation18_spill] sm:$0xff] }
 0x8be   : > { %21812 = vmatprep.subr.bf16.mxu1 %v24425_v47  ;;  %v6054_v47 = vadd.f32 %v30137_v29, %v32838_v31  ;;  %v24468_v31 = vld [vmem:[%s31445_s3 + $0x1490] sm:$0xff]  }
 0x8bf   : > { %v21664_v16 = vpop.f32.mrb[112].mxu1 }
 0x8c0   : > { %v21665_v13 = vpop.f32.mrb[113].mxu1 }
 0x8c1   : > { %v21666_v19 = vadd.f32 %v21665_v13, %v21664_v16  ;;  %v21667_v59 = vpop.f32.mrb[114].mxu1  ;;  %21813 = vmatpush3.bf16.msra.mxu1 %v24426_v27  ;;  %v6193_v16 = vmax.f32 %v6049_v57, 0.0  ;;  %v24447_v13 = vld [vmem:[%s31445_s3 + $0x13c0] sm:$0xff]  }
 0x8c2   : > { %v21668_v15 = vpop.f32.mrb[115].mxu1  ;;  %21814 = vmatprep.subr.bf16.mxu1 %v24427_v26  ;;  %v24446_v26 = vld [vmem:[%s31445_s3 + $0x12b8] sm:$0xff]   ;;  %v24448_v59 = vld [vmem:[%s31445_s3 + $0x1380] sm:$0xff]  }
 0x8c3   : > { %v17073_v28 = vadd.f32 %v21666_v19, %v17033_v9  ;;  %v24438_v9 = vld [vmem:[%s31445_s3 + $0x1298] sm:$0xff]   ;;  %v6198_v19 = vmax.f32 %v6054_v47, 0.0  ;;  %v24450_v15 = vld [vmem:[%s31445_s3 + $0x1388] sm:$0xff]  }
 0x8c4   : > { %v24469_v47 = vld [vmem:[%s31445_s3 + $0x14d8] sm:$0xff]  }
 0x8c5   : > { %21815 = vmatpush3.bf16.msra.mxu1 %v24428_v30  ;;  %v6625_v30 = vpack.c.bf16 %v6193_v16, %v6193_v16  ;;  %v6630_v36 = vpack.c.bf16 %v6198_v19, %v6198_v19  ;;  %v24472_v16 = vld [vmem:[%s31445_s3 + $0x14a0] sm:$0xff]   ;;  %v24474_v19 = vld [vmem:[%s31445_s3 + $0x14a8] sm:$0xff]  }
 0x8c6   : > { %21816 = vmatprep.subr.bf16.mxu1 %v24429_v24  ;;  %v24451_v24 = vld [vmem:[%s31445_s3 + $0x13d0] sm:$0xff]  }
 0x8c9   : > { %21817 = vmatpush3.bf16.msra.mxu1 %v24430_v55  ;;  %v24455_v55 = vld [vmem:[%s31445_s3 + $0x13e0] sm:$0xff]  }
 0x8ca   : > { %21846 = vmatprep.subr.bf16.mxu1 %v24431_v39  ;;  %v24457_v39 = vld [vmem:[%s31445_s3 + $0x13e8] sm:$0xff]  }
 0x8cc   : > { %17351 = vmatmul.mubr.bf16.vlgmr.msra.gmra.mrb[140].mxu1 %v6621_v44 }
 0x8cd   : > { %21847 = vmatpush3.bf16.msra.mxu1 %v24432_v32  ;;  %17430 = vmatprep.mubr.bf16.mxu1 %v6626_v63  ;;  %v24459_v32 = vld [vmem:[%s31445_s3 + $0x13f0] sm:$0xff]  }
 0x8ce   : > { %21848 = vmatprep.subr.bf16.mxu1 %v24433_v21 }
 0x8d1   : > { %21849 = vmatpush3.bf16.msra.mxu1 %v24434_v12 }
 0x8d2   : > { %21850 = vmatprep.subr.bf16.mxu1 %v24435_v18  ;;  %v24460_v18 = vld [vmem:[%s31445_s3 + $0x13b0] sm:$0xff]  }
 0x8d5   : > { %21851 = vmatpush3.bf16.msra.mxu1 %v24436_v52  ;;  %v32839_v52 = vld [vmem:[#allocation277_spill] sm:$0xff] }
 0x8d6   : > { %21852 = vmatprep.subr.bf16.mxu1 %v24437_v54  ;;  %v6053_v54 = vadd.f32 %v30137_v29, %v32839_v52  ;;  %v24481_v52 = vld [vmem:[%s31445_s3 + $0x15c8] sm:$0xff]  }
 0x8d9   : > { %21853 = vmatpush3.bf16.msra.mxu1 %v24438_v9 }
 0x8da   : > { %21854 = vmatprep.subr.bf16.mxu1 %v24439_v5  ;;  %v24461_v5 = vld [vmem:[%s31445_s3 + $0x13f8] sm:$0xff]  }
 0x8dd   : > { %21855 = vmatpush3.bf16.msra.mxu1 %v24440_v35  ;;  %v32840_v35 = vld [vmem:[#allocation278_spill] sm:$0xff] }
 0x8de   : > { %21856 = vmatprep.subr.bf16.mxu1 %v24441_v48  ;;  %v6058_v48 = vadd.f32 %v30137_v29, %v32840_v35  ;;  %v24484_v35 = vld [vmem:[%s31445_s3 + $0x1590] sm:$0xff]  }
 0x8df   : > { %v21686_v34 = vpop.f32.mrb[116].mxu1 }
 0x8e0   : > { %v21687_v20 = vpop.f32.mrb[117].mxu1 }
 0x8e1   : > { %v21688_v42 = vadd.f32 %v21687_v20, %v21686_v34  ;;  %v21689_v53 = vpop.f32.mrb[118].mxu1  ;;  %21857 = vmatpush3.bf16.msra.mxu1 %v24442_v50  ;;  %v6197_v34 = vmax.f32 %v6053_v54, 0.0  ;;  %v24463_v20 = vld [vmem:[%s31445_s3 + $0x14c0] sm:$0xff]  }
 0x8e2   : > { %v21690_v56 = vpop.f32.mrb[119].mxu1  ;;  %21858 = vmatprep.subr.bf16.mxu1 %v24443_v17  ;;  %v24462_v17 = vld [vmem:[%s31445_s3 + $0x13b8] sm:$0xff]   ;;  %v24464_v53 = vld [vmem:[%s31445_s3 + $0x1480] sm:$0xff]  }
 0x8e3   : > { %v17113_v27 = vadd.f32 %v21688_v42, %v17073_v28  ;;  %v24454_v28 = vld [vmem:[%s31445_s3 + $0x1398] sm:$0xff]   ;;  %v6202_v42 = vmax.f32 %v6058_v48, 0.0  ;;  %v24466_v56 = vld [vmem:[%s31445_s3 + $0x1488] sm:$0xff]  }
 0x8e4   : > { %v24485_v48 = vld [vmem:[%s31445_s3 + $0x15d8] sm:$0xff]  }
 0x8e5   : > { %21859 = vmatpush3.bf16.msra.mxu1 %v24444_v2  ;;  %v6629_v2 = vpack.c.bf16 %v6197_v34, %v6197_v34  ;;  %v6634_v57 = vpack.c.bf16 %v6202_v42, %v6202_v42  ;;  %v24488_v34 = vld [vmem:[%s31445_s3 + $0x15a0] sm:$0xff]   ;;  %v24490_v42 = vld [vmem:[%s31445_s3 + $0x15a8] sm:$0xff]  }
 0x8e6   : > { %21860 = vmatprep.subr.bf16.mxu1 %v24445_v49  ;;  %v24467_v49 = vld [vmem:[%s31445_s3 + $0x14d0] sm:$0xff]  }
 0x8e9   : > { %21861 = vmatpush3.bf16.msra.mxu1 %v24446_v26  ;;  %v24471_v26 = vld [vmem:[%s31445_s3 + $0x14e0] sm:$0xff]  }
 0x8ea   : > { %21890 = vmatprep.subr.bf16.mxu1 %v24447_v13  ;;  %v24473_v13 = vld [vmem:[%s31445_s3 + $0x14e8] sm:$0xff]  }
 0x8ec   : > { %17431 = vmatmul.mubr.bf16.vlgmr.msra.gmra.mrb[144].mxu1 %v6625_v30 }
 0x8ed   : > { %21891 = vmatpush3.bf16.msra.mxu1 %v24448_v59  ;;  %17510 = vmatprep.mubr.bf16.mxu1 %v6630_v36  ;;  %v24475_v59 = vld [vmem:[%s31445_s3 + $0x14f0] sm:$0xff]  }
 0x8ee   : > { %21892 = vmatprep.subr.bf16.mxu1 %v24449_v10 }
 0x8f1   : > { %21893 = vmatpush3.bf16.msra.mxu1 %v24450_v15 }
 0x8f2   : > { %21894 = vmatprep.subr.bf16.mxu1 %v24451_v24  ;;  %v24476_v24 = vld [vmem:[%s31445_s3 + $0x14b0] sm:$0xff]  }
 0x8f5   : > { %21895 = vmatpush3.bf16.msra.mxu1 %v24452_v14  ;;  %v32841_v14 = vld [vmem:[#allocation156_spill] sm:$0xff] }
 0x8f6   : > { %21896 = vmatprep.subr.bf16.mxu1 %v24453_v23  ;;  %v6057_v23 = vadd.f32 %v30137_v29, %v32841_v14  ;;  %v24497_v14 = vld [vmem:[%s31445_s3 + $0x16c8] sm:$0xff]  }
 0x8f9   : > { %21897 = vmatpush3.bf16.msra.mxu1 %v24454_v28 }
 0x8fa   : > { %21898 = vmatprep.subr.bf16.mxu1 %v24455_v55  ;;  %v24477_v55 = vld [vmem:[%s31445_s3 + $0x14f8] sm:$0xff]  }
 0x8fd   : > { %21899 = vmatpush3.bf16.msra.mxu1 %v24456_v3  ;;  %v32842_v3 = vld [vmem:[#allocation157_spill] sm:$0xff] }
 0x8fe   : > { %21900 = vmatprep.subr.bf16.mxu1 %v24457_v39  ;;  %v6062_v39 = vadd.f32 %v30137_v29, %v32842_v3  ;;  %v24500_v3 = vld [vmem:[%s31445_s3 + $0x1690] sm:$0xff]  }
 0x8ff   : > { %v21708_v44 = vpop.f32.mrb[120].mxu1 }
 0x900   : > { %v21709_v21 = vpop.f32.mrb[121].mxu1 }
 0x901   : > { %v21710_v63 = vadd.f32 %v21709_v21, %v21708_v44  ;;  %v21711_v12 = vpop.f32.mrb[122].mxu1  ;;  %21901 = vmatpush3.bf16.msra.mxu1 %v24458_v51  ;;  %v6201_v44 = vmax.f32 %v6057_v23, 0.0  ;;  %v24479_v21 = vld [vmem:[%s31445_s3 + $0x15c0] sm:$0xff]  }
 0x902   : > { %v21712_v9 = vpop.f32.mrb[123].mxu1  ;;  %21902 = vmatprep.subr.bf16.mxu1 %v24459_v32  ;;  %v24478_v32 = vld [vmem:[%s31445_s3 + $0x14b8] sm:$0xff]   ;;  %v24480_v12 = vld [vmem:[%s31445_s3 + $0x1580] sm:$0xff]  }
 0x903   : > { %v17153_v50 = vadd.f32 %v21710_v63, %v17113_v27  ;;  %v24470_v27 = vld [vmem:[%s31445_s3 + $0x1498] sm:$0xff]   ;;  %v6206_v63 = vmax.f32 %v6062_v39, 0.0  ;;  %v24482_v9 = vld [vmem:[%s31445_s3 + $0x1588] sm:$0xff]  }
 0x904   : > { %v24501_v39 = vld [vmem:[%s31445_s3 + $0x16d8] sm:$0xff]  }
 0x905   : > { %21903 = vmatpush3.bf16.msra.mxu1 %v24460_v18  ;;  %v6633_v18 = vpack.c.bf16 %v6201_v44, %v6201_v44  ;;  %v6638_v54 = vpack.c.bf16 %v6206_v63, %v6206_v63  ;;  %v24504_v44 = vld [vmem:[%s31445_s3 + $0x16a0] sm:$0xff]   ;;  %v24506_v63 = vld [vmem:[%s31445_s3 + $0x16a8] sm:$0xff]  }
 0x906   : > { %21904 = vmatprep.subr.bf16.mxu1 %v24461_v5  ;;  %v24483_v5 = vld [vmem:[%s31445_s3 + $0x15d0] sm:$0xff]  }
 0x909   : > { %21905 = vmatpush3.bf16.msra.mxu1 %v24462_v17  ;;  %v24487_v17 = vld [vmem:[%s31445_s3 + $0x15e0] sm:$0xff]  }
 0x90a   : > { %21934 = vmatprep.subr.bf16.mxu1 %v24463_v20  ;;  %v24489_v20 = vld [vmem:[%s31445_s3 + $0x15e8] sm:$0xff]  }
 0x90c   : > { %17511 = vmatmul.mubr.bf16.vlgmr.msra.gmra.mrb[148].mxu1 %v6629_v2 }
 0x90d   : > { %21935 = vmatpush3.bf16.msra.mxu1 %v24464_v53  ;;  %17590 = vmatprep.mubr.bf16.mxu1 %v6634_v57  ;;  %v24491_v53 = vld [vmem:[%s31445_s3 + $0x15f0] sm:$0xff]  }
 0x90e   : > { %21936 = vmatprep.subr.bf16.mxu1 %v24465_v41 }
 0x911   : > { %21937 = vmatpush3.bf16.msra.mxu1 %v24466_v56 }
 0x912   : > { %21938 = vmatprep.subr.bf16.mxu1 %v24467_v49  ;;  %v24492_v49 = vld [vmem:[%s31445_s3 + $0x15b0] sm:$0xff]  }
 0x915   : > { %21939 = vmatpush3.bf16.msra.mxu1 %v24468_v31  ;;  %v32843_v31 = vld [vmem:[#allocation19_spill] sm:$0xff] }
 0x916   : > { %21940 = vmatprep.subr.bf16.mxu1 %v24469_v47  ;;  %v6061_v47 = vadd.f32 %v30137_v29, %v32843_v31  ;;  %v24513_v31 = vld [vmem:[%s31445_s3 + $0x17c8] sm:$0xff]  }
 0x919   : > { %21941 = vmatpush3.bf16.msra.mxu1 %v24470_v27 }
 0x91a   : > { %21942 = vmatprep.subr.bf16.mxu1 %v24471_v26  ;;  %v24493_v26 = vld [vmem:[%s31445_s3 + $0x15f8] sm:$0xff]  }
 0x91d   : > { %21943 = vmatpush3.bf16.msra.mxu1 %v24472_v16  ;;  %v32844_v16 = vld [vmem:[#allocation20_spill] sm:$0xff] }
 0x91e   : > { %21944 = vmatprep.subr.bf16.mxu1 %v24473_v13  ;;  %v6066_v13 = vadd.f32 %v30137_v29, %v32844_v16  ;;  %v24516_v16 = vld [vmem:[%s31445_s3 + $0x1790] sm:$0xff]  }
 0x91f   : > { %v21730_v30 = vpop.f32.mrb[124].mxu1 }
 0x920   : > { %v21731_v10 = vpop.f32.mrb[125].mxu1 }
 0x921   : > { %v21732_v36 = vadd.f32 %v21731_v10, %v21730_v30  ;;  %v21733_v15 = vpop.f32.mrb[126].mxu1  ;;  %21945 = vmatpush3.bf16.msra.mxu1 %v24474_v19  ;;  %v6205_v30 = vmax.f32 %v6061_v47, 0.0  ;;  %v24495_v10 = vld [vmem:[%s31445_s3 + $0x16c0] sm:$0xff]  }
 0x922   : > { %v21734_v28 = vpop.f32.mrb[127].mxu1  ;;  %21946 = vmatprep.subr.bf16.mxu1 %v24475_v59  ;;  %v24494_v59 = vld [vmem:[%s31445_s3 + $0x15b8] sm:$0xff]   ;;  %v24496_v15 = vld [vmem:[%s31445_s3 + $0x1680] sm:$0xff]  }
 0x923   : > { %v17193_v51 = vadd.f32 %v21732_v36, %v17153_v50  ;;  %v24486_v50 = vld [vmem:[%s31445_s3 + $0x1598] sm:$0xff]   ;;  %v6210_v36 = vmax.f32 %v6066_v13, 0.0  ;;  %v24498_v28 = vld [vmem:[%s31445_s3 + $0x1688] sm:$0xff]  }
 0x924   : > { %v24517_v13 = vld [vmem:[%s31445_s3 + $0x17d8] sm:$0xff]  }
 0x925   : > { %21947 = vmatpush3.bf16.msra.mxu1 %v24476_v24  ;;  %v6637_v24 = vpack.c.bf16 %v6205_v30, %v6205_v30  ;;  %v6642_v23 = vpack.c.bf16 %v6210_v36, %v6210_v36  ;;  %v24520_v30 = vld [vmem:[%s31445_s3 + $0x17a0] sm:$0xff]   ;;  %v24522_v36 = vld [vmem:[%s31445_s3 + $0x17a8] sm:$0xff]  }
 0x926   : > { %21948 = vmatprep.subr.bf16.mxu1 %v24477_v55  ;;  %v24499_v55 = vld [vmem:[%s31445_s3 + $0x16d0] sm:$0xff]  }
 0x929   : > { %21949 = vmatpush3.bf16.msra.mxu1 %v24478_v32  ;;  %v24503_v32 = vld [vmem:[%s31445_s3 + $0x16e0] sm:$0xff]  }
 0x92a   : > { %21978 = vmatprep.subr.bf16.mxu1 %v24479_v21  ;;  %v24505_v21 = vld [vmem:[%s31445_s3 + $0x16e8] sm:$0xff]  }
 0x92c   : > { %17591 = vmatmul.mubr.bf16.vlgmr.msra.gmra.mrb[152].mxu1 %v6633_v18 }
 0x92d   : > { %21979 = vmatpush3.bf16.msra.mxu1 %v24480_v12  ;;  %17670 = vmatprep.mubr.bf16.mxu1 %v6638_v54  ;;  %v24507_v12 = vld [vmem:[%s31445_s3 + $0x16f0] sm:$0xff]  }
 0x92e   : > { %21980 = vmatprep.subr.bf16.mxu1 %v24481_v52 }
 0x931   : > { %21981 = vmatpush3.bf16.msra.mxu1 %v24482_v9 }
 0x932   : > { %21982 = vmatprep.subr.bf16.mxu1 %v24483_v5  ;;  %v24508_v5 = vld [vmem:[%s31445_s3 + $0x16b0] sm:$0xff]  }
 0x935   : > { %21983 = vmatpush3.bf16.msra.mxu1 %v24484_v35  ;;  %v32845_v35 = vld [vmem:[#allocation279_spill] sm:$0xff] }
 0x936   : > { %21984 = vmatprep.subr.bf16.mxu1 %v24485_v48  ;;  %v6065_v48 = vadd.f32 %v30137_v29, %v32845_v35 }
 0x939   : > { %21985 = vmatpush3.bf16.msra.mxu1 %v24486_v50 }
 0x93a   : > { %21986 = vmatprep.subr.bf16.mxu1 %v24487_v17  ;;  %v24509_v17 = vld [vmem:[%s31445_s3 + $0x16f8] sm:$0xff]  }
 0x93d   : > { %21987 = vmatpush3.bf16.msra.mxu1 %v24488_v34  ;;  %v32846_v34 = vld [vmem:[#allocation21_spill] sm:$0xff] }
 0x93e   : > { %21988 = vmatprep.subr.bf16.mxu1 %v24489_v20  ;;  %v6070_v20 = vadd.f32 %v30137_v29, %v32846_v34  ;;  %v24533_v34 = vld [vmem:[%s31445_s3 + $0x18d8] sm:$0xff]  }
 0x93f   : > { %v21752_v2 = vpop.f32.mrb[128].mxu1 }
 0x940   : > { %v21753_v41 = vpop.f32.mrb[129].mxu1 }
 0x941   : > { %v21754_v57 = vadd.f32 %v21753_v41, %v21752_v2  ;;  %v21755_v56 = vpop.f32.mrb[130].mxu1  ;;  %21989 = vmatpush3.bf16.msra.mxu1 %v24490_v42  ;;  %v6209_v2 = vmax.f32 %v6065_v48, 0.0  ;;  %v24511_v41 = vld [vmem:[%s31445_s3 + $0x17c0] sm:$0xff]   ;;  %v24530_v48 = vld [vmem:[%s31445_s3 + $0x1888] sm:$0xff]  }
 0x942   : > { %v21756_v27 = vpop.f32.mrb[131].mxu1  ;;  %21990 = vmatprep.subr.bf16.mxu1 %v24491_v53  ;;  %v24510_v53 = vld [vmem:[%s31445_s3 + $0x16b8] sm:$0xff]   ;;  %v24512_v56 = vld [vmem:[%s31445_s3 + $0x1780] sm:$0xff]  }
 0x943   : > { %v17233_v19 = vadd.f32 %v21754_v57, %v17193_v51  ;;  %v24502_v51 = vld [vmem:[%s31445_s3 + $0x1698] sm:$0xff]   ;;  %v6214_v57 = vmax.f32 %v6070_v20, 0.0  ;;  %v24514_v27 = vld [vmem:[%s31445_s3 + $0x1788] sm:$0xff]  }
 0x944   : > { %v24534_v20 = vld [vmem:[%s31445_s3 + $0x1898] sm:$0xff]  }
 0x945   : > { %21991 = vmatpush3.bf16.msra.mxu1 %v24492_v49  ;;  %v6641_v49 = vpack.c.bf16 %v6209_v2, %v6209_v2  ;;  %v6646_v47 = vpack.c.bf16 %v6214_v57, %v6214_v57  ;;  %v24537_v2 = vld [vmem:[%s31445_s3 + $0x18e8] sm:$0xff]   ;;  %v24539_v57 = vld [vmem:[%s31445_s3 + $0x18f0] sm:$0xff]  }
 0x946   : > { %21992 = vmatprep.subr.bf16.mxu1 %v24493_v26  ;;  %v24515_v26 = vld [vmem:[%s31445_s3 + $0x17d0] sm:$0xff]  }
 0x949   : > { %21993 = vmatpush3.bf16.msra.mxu1 %v24494_v59  ;;  %v24519_v59 = vld [vmem:[%s31445_s3 + $0x17e0] sm:$0xff]  }
 0x94a   : > { %22022 = vmatprep.subr.bf16.mxu1 %v24495_v10  ;;  %v24521_v10 = vld [vmem:[%s31445_s3 + $0x17e8] sm:$0xff]  }
 0x94c   : > { %17671 = vmatmul.mubr.bf16.vlgmr.msra.gmra.mrb[156].mxu1 %v6637_v24 }
 0x94d   : > { %22023 = vmatpush3.bf16.msra.mxu1 %v24496_v15  ;;  %17750 = vmatprep.mubr.bf16.mxu1 %v6642_v23  ;;  %v24523_v15 = vld [vmem:[%s31445_s3 + $0x17f0] sm:$0xff]  }
 0x94e   : > { %22024 = vmatprep.subr.bf16.mxu1 %v24497_v14 }
 0x951   : > { %22025 = vmatpush3.bf16.msra.mxu1 %v24498_v28 }
 0x952   : > { %22026 = vmatprep.subr.bf16.mxu1 %v24499_v55  ;;  %v24524_v55 = vld [vmem:[%s31445_s3 + $0x17b0] sm:$0xff]  }
 0x955   : > { %22027 = vmatpush3.bf16.msra.mxu1 %v24500_v3  ;;  %v32847_v3 = vld [vmem:[#allocation158_spill] sm:$0xff] }
 0x956   : > { %22028 = vmatprep.subr.bf16.mxu1 %v24501_v39  ;;  %v6069_v39 = vadd.f32 %v30137_v29, %v32847_v3 }
 0x959   : > { %22029 = vmatpush3.bf16.msra.mxu1 %v24502_v51 }
 0x95a   : > { %22030 = vmatprep.subr.bf16.mxu1 %v24503_v32  ;;  %v24525_v32 = vld [vmem:[%s31445_s3 + $0x17f8] sm:$0xff]  }
 0x95d   : > { %22031 = vmatpush3.bf16.msra.mxu1 %v24504_v44  ;;  %v32848_v44 = vld [vmem:[#allocation280_spill] sm:$0xff] }
 0x95e   : > { %22032 = vmatprep.subr.bf16.mxu1 %v24505_v21  ;;  %v6074_v21 = vadd.f32 %v30137_v29, %v32848_v44  ;;  %v24529_v29 = vld [vmem:[%s31445_s3 + $0x18c8] sm:$0xff]   ;;  %v24548_v44 = vld [vmem:[%s31445_s3 + $0x1990] sm:$0xff]  }
 0x95f   : > { %v21774_v18 = vpop.f32.mrb[132].mxu1 }
 0x960   : > { %v21775_v52 = vpop.f32.mrb[133].mxu1 }
 0x961   : > { %v21776_v54 = vadd.f32 %v21775_v52, %v21774_v18  ;;  %v21777_v9 = vpop.f32.mrb[134].mxu1  ;;  %22033 = vmatpush3.bf16.msra.mxu1 %v24506_v63  ;;  %v6213_v18 = vmax.f32 %v6069_v39, 0.0  ;;  %v24527_v52 = vld [vmem:[%s31445_s3 + $0x18c0] sm:$0xff]   ;;  %v24545_v39 = vld [vmem:[%s31445_s3 + $0x19c8] sm:$0xff]  }
 0x962   : > { %v21778_v50 = vpop.f32.mrb[135].mxu1  ;;  %22034 = vmatprep.subr.bf16.mxu1 %v24507_v12  ;;  %v24526_v12 = vld [vmem:[%s31445_s3 + $0x17b8] sm:$0xff]   ;;  %v24528_v9 = vld [vmem:[%s31445_s3 + $0x1880] sm:$0xff]  }
 0x963   : > { %v17273_v42 = vadd.f32 %v21776_v54, %v17233_v19  ;;  %v24518_v19 = vld [vmem:[%s31445_s3 + $0x1798] sm:$0xff]   ;;  %v6218_v54 = vmax.f32 %v6074_v21, 0.0  ;;  %v24531_v50 = vld [vmem:[%s31445_s3 + $0x18d0] sm:$0xff]  }
 0x964   : > { %v24549_v21 = vld [vmem:[%s31445_s3 + $0x19d8] sm:$0xff]  }
 0x965   : > { %22035 = vmatpush3.bf16.msra.mxu1 %v24508_v5  ;;  %v6645_v5 = vpack.c.bf16 %v6213_v18, %v6213_v18  ;;  %v6650_v35 = vpack.c.bf16 %v6218_v54, %v6218_v54  ;;  %v24552_v18 = vld [vmem:[%s31445_s3 + $0x19a0] sm:$0xff]   ;;  %v24554_v54 = vld [vmem:[%s31445_s3 + $0x19a8] sm:$0xff]  }
 0x966   : > { %22036 = vmatprep.subr.bf16.mxu1 %v24509_v17  ;;  %v24532_v17 = vld [vmem:[%s31445_s3 + $0x1890] sm:$0xff]  }
 0x969   : > { %22037 = vmatpush3.bf16.msra.mxu1 %v24510_v53  ;;  %v24536_v53 = vld [vmem:[%s31445_s3 + $0x18a0] sm:$0xff]  }
 0x96a   : > { %22066 = vmatprep.subr.bf16.mxu1 %v24511_v41  ;;  %v24538_v41 = vld [vmem:[%s31445_s3 + $0x18a8] sm:$0xff]  }
 0x96c   : > { %17751 = vmatmul.mubr.bf16.vlgmr.msra.gmra.mrb[160].mxu1 %v6641_v49 }
 0x96d   : > { %22067 = vmatpush3.bf16.msra.mxu1 %v24512_v56  ;;  %17830 = vmatprep.mubr.bf16.mxu1 %v6646_v47 }
 0x96e   : > { %22068 = vmatprep.subr.bf16.mxu1 %v24513_v31 }
 0x971   : > { %22069 = vmatpush3.bf16.msra.mxu1 %v24514_v27  ;;  %v24540_v27 = vld [vmem:[%s31445_s3 + $0x18b0] sm:$0xff]  }
 0x972   : > { %22070 = vmatprep.subr.bf16.mxu1 %v24515_v26  ;;  %v30766_v26 = vld [vmem:[%s31444_s2] ss:$0 sm:$0xff] }
 0x975   : > { %22071 = vmatpush3.bf16.msra.mxu1 %v24516_v16  ;;  %v32849_v16 = vld [vmem:[#allocation159_spill] sm:$0xff] }
 0x976   : > { %22072 = vmatprep.subr.bf16.mxu1 %v24517_v13  ;;  %v6073_v13 = vadd.f32 %v30766_v26, %v32849_v16 }
 0x979   : > { %22073 = vmatpush3.bf16.msra.mxu1 %v24518_v19 }
 0x97a   : > { %22074 = vmatprep.subr.bf16.mxu1 %v24519_v59  ;;  %v24541_v59 = vld [vmem:[%s31445_s3 + $0x18f8] sm:$0xff]  }
 0x97d   : > { %22075 = vmatpush3.bf16.msra.mxu1 %v24520_v30  ;;  %v32850_v30 = vld [vmem:[#allocation22_spill] sm:$0xff] }
 0x97e   : > { %22076 = vmatprep.subr.bf16.mxu1 %v24521_v10  ;;  %v6078_v10 = vadd.f32 %v30766_v26, %v32850_v30  ;;  %v24564_v30 = vld [vmem:[%s31445_s3 + $0x1a90] sm:$0xff]  }
 0x97f   : > { %v21796_v24 = vpop.f32.mrb[136].mxu1 }
 0x980   : > { %v21797_v14 = vpop.f32.mrb[137].mxu1 }
 0x981   : > { %v21798_v23 = vadd.f32 %v21797_v14, %v21796_v24  ;;  %v21799_v28 = vpop.f32.mrb[138].mxu1  ;;  %22077 = vmatpush3.bf16.msra.mxu1 %v24522_v36  ;;  %v6217_v14 = vmax.f32 %v6073_v13, 0.0  ;;  %v24561_v13 = vld [vmem:[%s31445_s3 + $0x1ac8] sm:$0xff]  }
 0x982   : > { %v21800_v51 = vpop.f32.mrb[139].mxu1  ;;  %22078 = vmatprep.subr.bf16.mxu1 %v24523_v15  ;;  %v24542_v15 = vld [vmem:[%s31445_s3 + $0x18b8] sm:$0xff]   ;;  %v6222_v28 = vmax.f32 %v6078_v10, 0.0 }
 0x983   : > { %v17313_v63 = vadd.f32 %v21798_v23, %v17273_v42  ;;  %v24535_v42 = vld [vmem:[%s31445_s3 + $0x18e0] sm:$0xff]   ;;  %v6649_v3 = vpack.c.bf16 %v6217_v14, %v6217_v14  ;;  %v24565_v10 = vld [vmem:[%s31445_s3 + $0x1ad8] sm:$0xff]   ;;  %v24569_v14 = vld [vmem:[%s31445_s3 + $0x1ae8] sm:$0xff]  }
 0x984   : > { %v24543_v23 = vld [vmem:[%s31445_s3 + $0x19c0] sm:$0xff]   ;;  %v6654_v51 = vpack.c.bf16 %v6222_v28, %v6222_v28  ;;  %v24571_v28 = vld [vmem:[%s31445_s3 + $0x1af0] sm:$0xff]  }
 0x985   : > { %22079 = vmatpush3.bf16.msra.mxu1 %v24524_v55  ;;  %v24544_v55 = vld [vmem:[%s31445_s3 + $0x1980] sm:$0xff]  }
 0x986   : > { %22080 = vmatprep.subr.bf16.mxu1 %v24525_v32  ;;  %v24547_v32 = vld [vmem:[%s31445_s3 + $0x19d0] sm:$0xff]  }
 0x989   : > { %22081 = vmatpush3.bf16.msra.mxu1 %v24526_v12  ;;  %v24551_v12 = vld [vmem:[%s31445_s3 + $0x19e0] sm:$0xff]  }
 0x98a   : > { %22110 = vmatprep.subr.bf16.mxu1 %v24527_v52  ;;  %v24553_v52 = vld [vmem:[%s31445_s3 + $0x19e8] sm:$0xff]  }
 0x98c   : > { %17831 = vmatmul.mubr.bf16.vlgmr.msra.gmra.mrb[164].mxu1 %v6645_v5 }
 0x98d   : > { %22111 = vmatpush3.bf16.msra.mxu1 %v24528_v9  ;;  %17910 = vmatprep.mubr.bf16.mxu1 %v6650_v35  ;;  %v24555_v9 = vld [vmem:[%s31445_s3 + $0x19f0] sm:$0xff]  }
 0x98e   : > { %22112 = vmatprep.subr.bf16.mxu1 %v24529_v29 }
 0x991   : > { %22113 = vmatpush3.bf16.msra.mxu1 %v24530_v48 }
 0x992   : > { %22114 = vmatprep.subr.bf16.mxu1 %v24531_v50  ;;  %v24556_v50 = vld [vmem:[%s31445_s3 + $0x19b0] sm:$0xff]  }
 0x995   : > { %22115 = vmatpush3.bf16.msra.mxu1 %v24532_v17  ;;  %v32851_v17 = vld [vmem:[#allocation281_spill] sm:$0xff] }
 0x996   : > { %22116 = vmatprep.subr.bf16.mxu1 %v24533_v34  ;;  %v6077_v34 = vadd.f32 %v30766_v26, %v32851_v17  ;;  %v24577_v17 = vld [vmem:[%s31445_s3 + $0x1bc8] sm:$0xff]  }
 0x999   : > { %22117 = vmatpush3.bf16.msra.mxu1 %v24534_v20 }
 0x99a   : > { %22118 = vmatprep.subr.bf16.mxu1 %v24535_v42  ;;  %v24557_v42 = vld [vmem:[%s31445_s3 + $0x19f8] sm:$0xff]  }
 0x99d   : > { %22119 = vmatpush3.bf16.msra.mxu1 %v24536_v53  ;;  %v32852_v53 = vld [vmem:[#allocation282_spill] sm:$0xff] }
 0x99e   : > { %22120 = vmatprep.subr.bf16.mxu1 %v24537_v2  ;;  %v6082_v2 = vadd.f32 %v30766_v26, %v32852_v53  ;;  %v24581_v53 = vld [vmem:[%s31445_s3 + $0x1bd8] sm:$0xff]  }
 0x99f   : > { %v21818_v56 = vpop.f32.mrb[140].mxu1 }
 0x9a0   : > { %v21819_v49 = vpop.f32.mrb[141].mxu1 }
 0x9a1   : > { %v21820_v31 = vadd.f32 %v21819_v49, %v21818_v56  ;;  %v21821_v47 = vpop.f32.mrb[142].mxu1  ;;  %22121 = vmatpush3.bf16.msra.mxu1 %v24538_v41  ;;  %v6221_v49 = vmax.f32 %v6077_v34, 0.0 }
 0x9a2   : > { %v21822_v19 = vpop.f32.mrb[143].mxu1  ;;  %22122 = vmatprep.subr.bf16.mxu1 %v24539_v57  ;;  %v24558_v57 = vld [vmem:[%s31445_s3 + $0x19b8] sm:$0xff]   ;;  %v6226_v47 = vmax.f32 %v6082_v2, 0.0 }
 0x9a3   : > { %v17353_v36 = vadd.f32 %v21820_v31, %v17313_v63  ;;  %v24550_v63 = vld [vmem:[%s31445_s3 + $0x1998] sm:$0xff]   ;;  %v24559_v31 = vld [vmem:[%s31445_s3 + $0x1ac0] sm:$0xff]   ;;  %v6653_v16 = vpack.c.bf16 %v6221_v49, %v6221_v49  ;;  %v24586_v49 = vld [vmem:[%s31445_s3 + $0x1ba8] sm:$0xff]  }
 0x9a4   : > { %v6658_v19 = vpack.c.bf16 %v6226_v47, %v6226_v47  ;;  %v24582_v2 = vld [vmem:[%s31445_s3 + $0x1b98] sm:$0xff]  }
 0x9a5   : > { %22123 = vmatpush3.bf16.msra.mxu1 %v24540_v27  ;;  %v17393_v24 = vadd.f32 %v28563_v11, %v17353_v36  ;;  %v24546_v11 = vld [vmem:[%s31445_s3 + $0x1988] sm:$0xff]   ;;  %v24560_v27 = vld [vmem:[%s31445_s3 + $0x1a80] sm:$0xff]   ;;  %v24566_v36 = vld [vmem:[%s31445_s3 + $0x1a98] sm:$0xff]  }
 0x9a6   : > { %22124 = vmatprep.subr.bf16.mxu1 %v24541_v59  ;;  %v24563_v59 = vld [vmem:[%s31445_s3 + $0x1ad0] sm:$0xff]  }
 0x9a9   : > { %22125 = vmatpush3.bf16.msra.mxu1 %v24542_v15  ;;  %v24567_v15 = vld [vmem:[%s31445_s3 + $0x1ae0] sm:$0xff]  }
 0x9aa   : > { %22154 = vmatprep.subr.bf16.mxu1 %v24543_v23  ;;  %v24570_v23 = vld [vmem:[%s31445_s3 + $0x1aa8] sm:$0xff]  }
 0x9ac   : > { %17911 = vmatmul.mubr.bf16.vlgmr.msra.gmra.mrb[168].mxu1 %v6649_v3 }
 0x9ad   : > { %22155 = vmatpush3.bf16.msra.mxu1 %v24544_v55  ;;  %17990 = vmatprep.mubr.bf16.mxu1 %v6654_v51 }
 0x9ae   : > { %22156 = vmatprep.subr.bf16.mxu1 %v24545_v39 }
 0x9b1   : > { %22157 = vmatpush3.bf16.msra.mxu1 %v24546_v11  ;;  %v24572_v11 = vld [vmem:[%s31445_s3 + $0x1ab0] sm:$0xff]  }
 0x9b2   : > { %22158 = vmatprep.subr.bf16.mxu1 %v24547_v32  ;;  %v32853_v32 = vld [vmem:[#allocation160_spill] sm:$0xff] }
 0x9b5   : > { %22159 = vmatpush3.bf16.msra.mxu1 %v24548_v44  ;;  %v6081_v44 = vadd.f32 %v30766_v26, %v32853_v32 }
 0x9b6   : > { %22160 = vmatprep.subr.bf16.mxu1 %v24549_v21 }
 0x9b9   : > { %22161 = vmatpush3.bf16.msra.mxu1 %v24550_v63  ;;  %v24573_v63 = vld [vmem:[%s31445_s3 + $0x1af8] sm:$0xff]  }
 0x9ba   : > { %22162 = vmatprep.subr.bf16.mxu1 %v24551_v12  ;;  %v32854_v12 = vld [vmem:[#allocation161_spill] sm:$0xff] }
 0x9bd   : > { %22163 = vmatpush3.bf16.msra.mxu1 %v24552_v18  ;;  %v6086_v18 = vadd.f32 %v30766_v26, %v32854_v12  ;;  %v24598_v12 = vld [vmem:[%s31445_s3 + $0x1c98] sm:$0xff]  }
 0x9be   : > { %22164 = vmatprep.subr.bf16.mxu1 %v24553_v52 }
 0x9bf   : > { %v21862_v5 = vpop.f32.mrb[144].mxu1 }
 0x9c0   : > { %v21863_v29 = vpop.f32.mrb[145].mxu1 }
 0x9c1   : > { %v21864_v35 = vadd.f32 %v21863_v29, %v21862_v5  ;;  %v21865_v48 = vpop.f32.mrb[146].mxu1  ;;  %22165 = vmatpush3.bf16.msra.mxu1 %v24554_v54  ;;  %v24574_v54 = vld [vmem:[%s31445_s3 + $0x1ab8] sm:$0xff]   ;;  %v6225_v5 = vmax.f32 %v6081_v44, 0.0  ;;  %v24575_v29 = vld [vmem:[%s31445_s3 + $0x1bc0] sm:$0xff]   ;;  %v24595_v44 = vld [vmem:[%s31445_s3 + $0x1cd0] sm:$0xff]  }
 0x9c2   : > { %v21866_v20 = vpop.f32.mrb[147].mxu1  ;;  %22166 = vmatprep.subr.bf16.mxu1 %v24555_v9  ;;  %v24576_v48 = vld [vmem:[%s31445_s3 + $0x1b80] sm:$0xff]  }
 0x9c3   : > { %v17433_v41 = vadd.f32 %v21864_v35, %v17393_v24  ;;  %v24568_v24 = vld [vmem:[%s31445_s3 + $0x1aa0] sm:$0xff]   ;;  %v6230_v35 = vmax.f32 %v6086_v18, 0.0  ;;  %v24579_v20 = vld [vmem:[%s31445_s3 + $0x1bd0] sm:$0xff]  }
 0x9c4   : > { %v24599_v18 = vld [vmem:[%s31445_s3 + $0x1ce0] sm:$0xff]  }
 0x9c5   : > { %22167 = vmatpush3.bf16.msra.mxu1 %v24556_v50  ;;  %v17473_v56 = vadd.f32 %v28675_v61, %v17433_v41  ;;  %v24562_v61 = vld [vmem:[%s31445_s3 + $0x1a88] sm:$0xff]   ;;  %v6657_v50 = vpack.c.bf16 %v6225_v5, %v6225_v5  ;;  %v6662_v34 = vpack.c.bf16 %v6230_v35, %v6230_v35  ;;  %v24583_v41 = vld [vmem:[%s31445_s3 + $0x1be0] sm:$0xff]   ;;  %v24603_v5 = vld [vmem:[%s31445_s3 + $0x1cf0] sm:$0xff]  }
 0x9c6   : > { %22168 = vmatprep.subr.bf16.mxu1 %v24557_v42  ;;  %v24580_v42 = vld [vmem:[%s31445_s3 + $0x1b90] sm:$0xff]  }
 0x9c9   : > { %22169 = vmatpush3.bf16.msra.mxu1 %v24558_v57  ;;  %v24584_v57 = vld [vmem:[%s31445_s3 + $0x1ba0] sm:$0xff]  }
 0x9ca   : > { %22198 = vmatprep.subr.bf16.mxu1 %v24559_v31  ;;  %v24587_v31 = vld [vmem:[%s31445_s3 + $0x1bf0] sm:$0xff]  }
 0x9cc   : > { %17991 = vmatmul.mubr.bf16.vlgmr.msra.gmra.mrb[172].mxu1 %v6653_v16 }
 0x9cd   : > { %22199 = vmatpush3.bf16.msra.mxu1 %v24560_v27  ;;  %18070 = vmatprep.mubr.bf16.mxu1 %v6658_v19  ;;  %v24588_v19 = vld [vmem:[%s31445_s3 + $0x1bb0] sm:$0xff]  }
 0x9ce   : > { %22200 = vmatprep.subr.bf16.mxu1 %v24561_v13 }
 0x9d1   : > { %22201 = vmatpush3.bf16.msra.mxu1 %v24562_v61  ;;  %v32855_v61 = vld [vmem:[#allocation23_spill] sm:$0xff] }
 0x9d2   : > { %22202 = vmatprep.subr.bf16.mxu1 %v24563_v59  ;;  %v6085_v59 = vadd.f32 %v30766_v26, %v32855_v61  ;;  %v24611_v61 = vld [vmem:[%s31445_s3 + $0x1dd0] sm:$0xff]  }
 0x9d5   : > { %22203 = vmatpush3.bf16.msra.mxu1 %v24564_v30 }
 0x9d6   : > { %22204 = vmatprep.subr.bf16.mxu1 %v24565_v10  ;;  %v24589_v10 = vld [vmem:[%s31445_s3 + $0x1bf8] sm:$0xff]  }
 0x9d9   : > { %22205 = vmatpush3.bf16.msra.mxu1 %v24566_v36  ;;  %v32856_v36 = vld [vmem:[#allocation24_spill] sm:$0xff] }
 0x9da   : > { %22206 = vmatprep.subr.bf16.mxu1 %v24567_v15  ;;  %v6090_v15 = vadd.f32 %v30766_v26, %v32856_v36  ;;  %v24615_v36 = vld [vmem:[%s31445_s3 + $0x1de0] sm:$0xff]  }
 0x9dd   : > { %22207 = vmatpush3.bf16.msra.mxu1 %v24568_v24 }
 0x9de   : > { %22208 = vmatprep.subr.bf16.mxu1 %v24569_v14  ;;  %v24590_v14 = vld [vmem:[%s31445_s3 + $0x1bb8] sm:$0xff]  }
 0x9df   : > { %v21906_v55 = vpop.f32.mrb[148].mxu1 }
 0x9e0   : > { %v21907_v3 = vpop.f32.mrb[149].mxu1 }
 0x9e1   : > { %v21908_v39 = vadd.f32 %v21907_v3, %v21906_v55  ;;  %v21909_v51 = vpop.f32.mrb[150].mxu1  ;;  %22209 = vmatpush3.bf16.msra.mxu1 %v24570_v23  ;;  %v24591_v55 = vld [vmem:[%s31445_s3 + $0x1cc0] sm:$0xff]   ;;  %v6234_v3 = vmax.f32 %v6090_v15, 0.0 }
 0x9e2   : > { %v21910_v21 = vpop.f32.mrb[151].mxu1  ;;  %22210 = vmatprep.subr.bf16.mxu1 %v24571_v28  ;;  %v6229_v28 = vmax.f32 %v6085_v59, 0.0  ;;  %v24612_v59 = vld [vmem:[%s31445_s3 + $0x1d90] sm:$0xff]   ;;  %v24616_v15 = vld [vmem:[%s31445_s3 + $0x1da0] sm:$0xff]  }
 0x9e3   : > { %v17513_v52 = vadd.f32 %v21908_v39, %v17473_v56  ;;  %v24585_v56 = vld [vmem:[%s31445_s3 + $0x1be8] sm:$0xff]   ;;  %v24592_v39 = vld [vmem:[%s31445_s3 + $0x1c80] sm:$0xff]   ;;  %v6666_v32 = vpack.c.bf16 %v6234_v3, %v6234_v3  ;;  %v24596_v21 = vld [vmem:[%s31445_s3 + $0x1c90] sm:$0xff]  }
 0x9e4   : > { %v6661_v51 = vpack.c.bf16 %v6229_v28, %v6229_v28 }
 0x9e5   : > { %22211 = vmatpush3.bf16.msra.mxu1 %v24572_v11  ;;  %v17553_v9 = vadd.f32 %v28784_v25, %v17513_v52  ;;  %v24578_v25 = vld [vmem:[%s31445_s3 + $0x1b88] sm:$0xff]   ;;  %v24600_v52 = vld [vmem:[%s31445_s3 + $0x1ca0] sm:$0xff]  }
 0x9e6   : > { %22212 = vmatprep.subr.bf16.mxu1 %v24573_v63  ;;  %v24593_v11 = vld [vmem:[%s31445_s3 + $0x1cc8] sm:$0xff]   ;;  %v24597_v63 = vld [vmem:[%s31445_s3 + $0x1cd8] sm:$0xff]  }
 0x9e9   : > { %22213 = vmatpush3.bf16.msra.mxu1 %v24574_v54  ;;  %v24601_v54 = vld [vmem:[%s31445_s3 + $0x1ce8] sm:$0xff]  }
 0x9ea   : > { %22242 = vmatprep.subr.bf16.mxu1 %v24575_v29 }
 0x9ec   : > { %18071 = vmatmul.mubr.bf16.vlgmr.msra.gmra.mrb[176].mxu1 %v6657_v50 }
 0x9ed   : > { %22243 = vmatpush3.bf16.msra.mxu1 %v24576_v48  ;;  %18150 = vmatprep.mubr.bf16.mxu1 %v6662_v34  ;;  %v32857_v34 = vld [vmem:[#allocation283_spill] sm:$0xff] }
 0x9ee   : > { %22244 = vmatprep.subr.bf16.mxu1 %v24577_v17  ;;  %v24604_v17 = vld [vmem:[%s31445_s3 + $0x1cb0] sm:$0xff]  }
 0x9f1   : > { %22245 = vmatpush3.bf16.msra.mxu1 %v24578_v25  ;;  %v6089_v25 = vadd.f32 %v30766_v26, %v32857_v34  ;;  %v24628_v34 = vld [vmem:[%s31445_s3 + $0x1e90] sm:$0xff]  }
 0x9f2   : > { %22246 = vmatprep.subr.bf16.mxu1 %v24579_v20 }
 0x9f5   : > { %22247 = vmatpush3.bf16.msra.mxu1 %v24580_v42  ;;  %v24605_v42 = vld [vmem:[%s31445_s3 + $0x1cf8] sm:$0xff]  }
 0x9f6   : > { %22248 = vmatprep.subr.bf16.mxu1 %v24581_v53  ;;  %v32858_v53 = vld [vmem:[#allocation25_spill] sm:$0xff] }
 0x9f9   : > { %22249 = vmatpush3.bf16.msra.mxu1 %v24582_v2  ;;  %v6094_v2 = vadd.f32 %v30766_v26, %v32858_v53  ;;  %v24632_v53 = vld [vmem:[%s31445_s3 + $0x1ea0] sm:$0xff]  }
 0x9fa   : > { %22250 = vmatprep.subr.bf16.mxu1 %v24583_v41 }
 0x9fd   : > { %22251 = vmatpush3.bf16.msra.mxu1 %v24584_v57  ;;  %v24606_v57 = vld [vmem:[%s31445_s3 + $0x1cb8] sm:$0xff]  }
 0x9fe   : > { %22252 = vmatprep.subr.bf16.mxu1 %v24585_v56 }
 0x9ff   : > { %v21950_v47 = vpop.f32.mrb[152].mxu1 }
 0xa00   : > { %v21951_v27 = vpop.f32.mrb[153].mxu1 }
 0xa01   : > { %v21952_v16 = vadd.f32 %v21951_v27, %v21950_v47  ;;  %v21953_v13 = vpop.f32.mrb[154].mxu1  ;;  %22253 = vmatpush3.bf16.msra.mxu1 %v24586_v49  ;;  %v6233_v49 = vmax.f32 %v6089_v25, 0.0  ;;  %v6238_v47 = vmax.f32 %v6094_v2, 0.0  ;;  %v24608_v27 = vld [vmem:[%s31445_s3 + $0x1d80] sm:$0xff]   ;;  %v24629_v25 = vld [vmem:[%s31445_s3 + $0x1ed8] sm:$0xff]   ;;  %v24633_v2 = vld [vmem:[%s31445_s3 + $0x1ee8] sm:$0xff]  }
 0xa02   : > { %v21954_v30 = vpop.f32.mrb[155].mxu1  ;;  %22254 = vmatprep.subr.bf16.mxu1 %v24587_v31  ;;  %v24607_v31 = vld [vmem:[%s31445_s3 + $0x1dc0] sm:$0xff]   ;;  %v24609_v13 = vld [vmem:[%s31445_s3 + $0x1dc8] sm:$0xff]  }
 0xa03   : > { %v17593_v24 = vadd.f32 %v21952_v16, %v17553_v9  ;;  %v24602_v9 = vld [vmem:[%s31445_s3 + $0x1ca8] sm:$0xff]   ;;  %v6665_v16 = vpack.c.bf16 %v6233_v49, %v6233_v49  ;;  %v24613_v30 = vld [vmem:[%s31445_s3 + $0x1dd8] sm:$0xff]  }
 0xa05   : > { %22255 = vmatpush3.bf16.msra.mxu1 %v24588_v19  ;;  %v17633_v23 = vadd.f32 %v28893_v58, %v17593_v24  ;;  %v24594_v58 = vld [vmem:[%s31445_s3 + $0x1c88] sm:$0xff]   ;;  %v6670_v19 = vpack.c.bf16 %v6238_v47, %v6238_v47 }
 0xa06   : > { %22256 = vmatprep.subr.bf16.mxu1 %v24589_v10  ;;  %v24614_v10 = vld [vmem:[%s31445_s3 + $0x1d98] sm:$0xff]   ;;  %v24617_v24 = vld [vmem:[%s31445_s3 + $0x1de8] sm:$0xff]  }
 0xa09   : > { %22257 = vmatpush3.bf16.msra.mxu1 %v24590_v14  ;;  %v24618_v14 = vld [vmem:[%s31445_s3 + $0x1da8] sm:$0xff]  }
 0xa0a   : > { %22286 = vmatprep.subr.bf16.mxu1 %v24591_v55 }
 0xa0c   : > { %18151 = vmatmul.mubr.bf16.vlgmr.msra.gmra.mrb[180].mxu1 %v6661_v51  ;;  %v24620_v51 = vld [vmem:[%s31445_s3 + $0x1db0] sm:$0xff]  }
 0xa0d   : > { %22287 = vmatpush3.bf16.msra.mxu1 %v24592_v39  ;;  %18230 = vmatprep.mubr.bf16.mxu1 %v6666_v32 }
 0xa0e   : > { %22288 = vmatprep.subr.bf16.mxu1 %v24593_v11  ;;  %v32859_v11 = vld [vmem:[#allocation162_spill] sm:$0xff] }
 0xa0f   : > { %v6093_v32 = vadd.f32 %v30766_v26, %v32859_v11  ;;  %v24645_v11 = vld [vmem:[%s31445_s3 + $0x1fd8] sm:$0xff]  }
 0xa11   : > { %22289 = vmatpush3.bf16.msra.mxu1 %v24594_v58 }
 0xa12   : > { %22290 = vmatprep.subr.bf16.mxu1 %v24595_v44  ;;  %v24621_v44 = vld [vmem:[%s31445_s3 + $0x1df8] sm:$0xff]  }
 0xa15   : > { %22291 = vmatpush3.bf16.msra.mxu1 %v24596_v21  ;;  %v32860_v21 = vld [vmem:[#allocation284_spill] sm:$0xff] }
 0xa16   : > { %22292 = vmatprep.subr.bf16.mxu1 %v24597_v63  ;;  %v6098_v63 = vadd.f32 %v30766_v26, %v32860_v21  ;;  %v24649_v21 = vld [vmem:[%s31445_s3 + $0x1fe8] sm:$0xff]  }
 0xa19   : > { %22293 = vmatpush3.bf16.msra.mxu1 %v24598_v12 }
 0xa1a   : > { %22294 = vmatprep.subr.bf16.mxu1 %v24599_v18  ;;  %v24622_v18 = vld [vmem:[%s31445_s3 + $0x1db8] sm:$0xff]  }
 0xa1d   : > { %22295 = vmatpush3.bf16.msra.mxu1 %v24600_v52 }
 0xa1e   : > { %22296 = vmatprep.subr.bf16.mxu1 %v24601_v54  ;;  %v6237_v54 = vmax.f32 %v6093_v32, 0.0  ;;  %v24646_v32 = vld [vmem:[%s31445_s3 + $0x1f98] sm:$0xff]  }
 0xa1f   : > { %v21994_v29 = vpop.f32.mrb[156].mxu1 }
 0xa20   : > { %v21995_v35 = vpop.f32.mrb[157].mxu1 }
 0xa21   : > { %v21996_v48 = vadd.f32 %v21995_v35, %v21994_v29  ;;  %v21997_v50 = vpop.f32.mrb[158].mxu1  ;;  %22297 = vmatpush3.bf16.msra.mxu1 %v24602_v9  ;;  %v24623_v9 = vld [vmem:[%s31445_s3 + $0x1ec0] sm:$0xff]   ;;  %v6669_v35 = vpack.c.bf16 %v6237_v54, %v6237_v54 }
 0xa22   : > { %v21998_v20 = vpop.f32.mrb[159].mxu1  ;;  %22298 = vmatprep.subr.bf16.mxu1 %v24603_v5  ;;  %v6242_v5 = vmax.f32 %v6098_v63, 0.0  ;;  %v24624_v29 = vld [vmem:[%s31445_s3 + $0x1e80] sm:$0xff]   ;;  %v24650_v63 = vld [vmem:[%s31445_s3 + $0x1fa8] sm:$0xff]  }
 0xa23   : > { %v17673_v41 = vadd.f32 %v21996_v48, %v17633_v23  ;;  %v24619_v23 = vld [vmem:[%s31445_s3 + $0x1df0] sm:$0xff]   ;;  %v24625_v48 = vld [vmem:[%s31445_s3 + $0x1ec8] sm:$0xff]   ;;  %v24630_v20 = vld [vmem:[%s31445_s3 + $0x1e98] sm:$0xff]  }
 0xa24   : > { %v6674_v50 = vpack.c.bf16 %v6242_v5, %v6242_v5  ;;  %v24652_v5 = vld [vmem:[%s31445_s3 + $0x1fb0] sm:$0xff]  }
 0xa25   : > { %22299 = vmatpush3.bf16.msra.mxu1 %v24604_v17  ;;  %v17713_v56 = vadd.f32 %v29007_v33, %v17673_v41  ;;  %v24610_v33 = vld [vmem:[%s31445_s3 + $0x1d88] sm:$0xff]   ;;  %v24627_v17 = vld [vmem:[%s31445_s3 + $0x1ed0] sm:$0xff]  }
 0xa26   : > { %22300 = vmatprep.subr.bf16.mxu1 %v24605_v42  ;;  %v24631_v42 = vld [vmem:[%s31445_s3 + $0x1ee0] sm:$0xff]   ;;  %v24634_v41 = vld [vmem:[%s31445_s3 + $0x1ea8] sm:$0xff]  }
 0xa29   : > { %22301 = vmatpush3.bf16.msra.mxu1 %v24606_v57  ;;  %v24635_v57 = vld [vmem:[%s31445_s3 + $0x1ef0] sm:$0xff]  }
 0xa2a   : > { %22330 = vmatprep.subr.bf16.mxu1 %v24607_v31 }
 0xa2c   : > { %18231 = vmatmul.mubr.bf16.vlgmr.msra.gmra.mrb[184].mxu1 %v6665_v16  ;;  %v32861_v16 = vld [vmem:[#allocation163_spill] sm:$0xff] }
 0xa2d   : > { %22331 = vmatpush3.bf16.msra.mxu1 %v24608_v27  ;;  %18310 = vmatprep.mubr.bf16.mxu1 %v6670_v19  ;;  %v24636_v27 = vld [vmem:[%s31445_s3 + $0x1eb0] sm:$0xff]  }
 0xa2e   : > { %22332 = vmatprep.subr.bf16.mxu1 %v24609_v13  ;;  %v6097_v13 = vadd.f32 %v30766_v26, %v32861_v16  ;;  %v24662_v16 = vld [vmem:[%s31445_s3 + $0x2098] sm:$0xff]  }
 0xa31   : > { %22333 = vmatpush3.bf16.msra.mxu1 %v24610_v33  ;;  %v24637_v33 = vld [vmem:[%s31445_s3 + $0x1ef8] sm:$0xff]  }
 0xa32   : > { %22334 = vmatprep.subr.bf16.mxu1 %v24611_v61  ;;  %v32862_v61 = vld [vmem:[#allocation164_spill] sm:$0xff] }
 0xa35   : > { %22335 = vmatpush3.bf16.msra.mxu1 %v24612_v59  ;;  %v6102_v59 = vadd.f32 %v30766_v26, %v32862_v61  ;;  %v24666_v61 = vld [vmem:[%s31445_s3 + $0x20a8] sm:$0xff]  }
 0xa36   : > { %22336 = vmatprep.subr.bf16.mxu1 %v24613_v30 }
 0xa39   : > { %22337 = vmatpush3.bf16.msra.mxu1 %v24614_v10  ;;  %v24638_v10 = vld [vmem:[%s31445_s3 + $0x1eb8] sm:$0xff]  }
 0xa3a   : > { %22338 = vmatprep.subr.bf16.mxu1 %v24615_v36 }
 0xa3d   : > { %22339 = vmatpush3.bf16.msra.mxu1 %v24616_v15  ;;  %v6241_v15 = vmax.f32 %v6097_v13, 0.0  ;;  %v24663_v13 = vld [vmem:[%s31445_s3 + $0x20e0] sm:$0xff]  }
 0xa3e   : > { %22340 = vmatprep.subr.bf16.mxu1 %v24617_v24  ;;  %v24639_v24 = vld [vmem:[%s31445_s3 + $0x1fc0] sm:$0xff]  }
 0xa3f   : > { %v22038_v28 = vpop.f32.mrb[160].mxu1 }
 0xa40   : > { %v22039_v55 = vpop.f32.mrb[161].mxu1 }
 0xa41   : > { %v22040_v3 = vadd.f32 %v22039_v55, %v22038_v28  ;;  %v22041_v39 = vpop.f32.mrb[162].mxu1  ;;  %22341 = vmatpush3.bf16.msra.mxu1 %v24618_v14  ;;  %v6246_v14 = vmax.f32 %v6102_v59, 0.0  ;;  %v6673_v28 = vpack.c.bf16 %v6241_v15, %v6241_v15  ;;  %v24641_v55 = vld [vmem:[%s31445_s3 + $0x1fc8] sm:$0xff]   ;;  %v24667_v59 = vld [vmem:[%s31445_s3 + $0x20f0] sm:$0xff]  }
 0xa42   : > { %v22042_v58 = vpop.f32.mrb[163].mxu1  ;;  %22342 = vmatprep.subr.bf16.mxu1 %v24619_v23  ;;  %v24640_v23 = vld [vmem:[%s31445_s3 + $0x1f80] sm:$0xff]   ;;  %v24643_v39 = vld [vmem:[%s31445_s3 + $0x1fd0] sm:$0xff]  }
 0xa43   : > { %v17753_v12 = vadd.f32 %v22040_v3, %v17713_v56  ;;  %v6678_v3 = vpack.c.bf16 %v6246_v14, %v6246_v14  ;;  %v24647_v58 = vld [vmem:[%s31445_s3 + $0x1fe0] sm:$0xff]   ;;  %v32865_v14 = vld [vmem:[#allocation286_spill] sm:$0xff] }
 0xa45   : > { %22343 = vmatpush3.bf16.msra.mxu1 %v24620_v51  ;;  %v17793_v52 = vadd.f32 %v29116_v0, %v17753_v12  ;;  %v24626_v0 = vld [vmem:[%s31445_s3 + $0x1e88] sm:$0xff]   ;;  %v24644_v51 = vld [vmem:[%s31445_s3 + $0x1f90] sm:$0xff]  }
 0xa46   : > { %22344 = vmatprep.subr.bf16.mxu1 %v24621_v44  ;;  %v24648_v44 = vld [vmem:[%s31445_s3 + $0x1fa0] sm:$0xff]   ;;  %v24651_v12 = vld [vmem:[%s31445_s3 + $0x1ff0] sm:$0xff]  }
 0xa49   : > { %22345 = vmatpush3.bf16.msra.mxu1 %v24622_v18 }
 0xa4a   : > { %22374 = vmatprep.subr.bf16.mxu1 %v24623_v9 }
 0xa4c   : > { %18311 = vmatmul.mubr.bf16.vlgmr.msra.gmra.mrb[188].mxu1 %v6669_v35 }
 0xa4d   : > { %22375 = vmatpush3.bf16.msra.mxu1 %v24624_v29  ;;  %18390 = vmatprep.mubr.bf16.mxu1 %v6674_v50  ;;  %v32863_v29 = vld [vmem:[#allocation285_spill] sm:$0xff]  ;;  %v24653_v50 = vld [vmem:[%s31445_s3 + $0x1ff8] sm:$0xff]  }
 0xa4e   : > { %22376 = vmatprep.subr.bf16.mxu1 %v24625_v48  ;;  %v6101_v35 = vadd.f32 %v30766_v26, %v32863_v29  ;;  %v24679_v29 = vld [vmem:[%s31445_s3 + $0x21e0] sm:$0xff]  }
 0xa51   : > { %22377 = vmatpush3.bf16.msra.mxu1 %v24626_v0  ;;  %v32864_v0 = vld [vmem:[#allocation27_spill] sm:$0xff] }
 0xa52   : > { %22378 = vmatprep.subr.bf16.mxu1 %v24627_v17  ;;  %v6106_v17 = vadd.f32 %v30766_v26, %v32864_v0  ;;  %v24683_v0 = vld [vmem:[%s31445_s3 + $0x21f0] sm:$0xff]  }
 0xa55   : > { %22379 = vmatpush3.bf16.msra.mxu1 %v24628_v34 }
 0xa56   : > { %22380 = vmatprep.subr.bf16.mxu1 %v24629_v25  ;;  %v24654_v25 = vld [vmem:[%s31445_s3 + $0x1fb8] sm:$0xff]  }
 0xa59   : > { %22381 = vmatpush3.bf16.msra.mxu1 %v24630_v20 }
 0xa5a   : > { %22382 = vmatprep.subr.bf16.mxu1 %v24631_v42  ;;  %v6245_v42 = vmax.f32 %v6101_v35, 0.0  ;;  %v24680_v35 = vld [vmem:[%s31445_s3 + $0x21a0] sm:$0xff]  }
 0xa5d   : > { %22383 = vmatpush3.bf16.msra.mxu1 %v24632_v53  ;;  %v24655_v53 = vld [vmem:[%s31445_s3 + $0x20c0] sm:$0xff]  }
 0xa5e   : > { %22384 = vmatprep.subr.bf16.mxu1 %v24633_v2  ;;  %v6250_v2 = vmax.f32 %v6106_v17, 0.0 }
 0xa5f   : > { %v22082_v56 = vpop.f32.mrb[164].mxu1 }
 0xa60   : > { %v22083_v49 = vpop.f32.mrb[165].mxu1 }
 0xa61   : > { %v22084_v31 = vadd.f32 %v22083_v49, %v22082_v56  ;;  %v22085_v47 = vpop.f32.mrb[166].mxu1  ;;  %22385 = vmatpush3.bf16.msra.mxu1 %v24634_v41  ;;  %v24656_v41 = vld [vmem:[%s31445_s3 + $0x2080] sm:$0xff]   ;;  %v24657_v56 = vld [vmem:[%s31445_s3 + $0x20c8] sm:$0xff]   ;;  %v6682_v49 = vpack.c.bf16 %v6250_v2, %v6250_v2 }
 0xa62   : > { %v22086_v19 = vpop.f32.mrb[167].mxu1  ;;  %22386 = vmatprep.subr.bf16.mxu1 %v24635_v57  ;;  %v6677_v57 = vpack.c.bf16 %v6245_v42, %v6245_v42  ;;  %v24660_v47 = vld [vmem:[%s31445_s3 + $0x2090] sm:$0xff]  }
 0xa63   : > { %v17833_v30 = vadd.f32 %v22084_v31, %v17793_v52  ;;  %v24659_v31 = vld [vmem:[%s31445_s3 + $0x20d0] sm:$0xff]   ;;  %v24664_v19 = vld [vmem:[%s31445_s3 + $0x20a0] sm:$0xff]  }
 0xa64   : > { %v24684_v42 = vld [vmem:[%s31445_s3 + $0x21b0] sm:$0xff]  }
 0xa65   : > { %22387 = vmatpush3.bf16.msra.mxu1 %v24636_v27  ;;  %v17873_v36 = vadd.f32 %v29225_v60, %v17833_v30  ;;  %v24642_v60 = vld [vmem:[%s31445_s3 + $0x1f88] sm:$0xff]   ;;  %v24661_v27 = vld [vmem:[%s31445_s3 + $0x20d8] sm:$0xff]  }
 0xa66   : > { %22388 = vmatprep.subr.bf16.mxu1 %v24637_v33  ;;  %v24665_v33 = vld [vmem:[%s31445_s3 + $0x20e8] sm:$0xff]  }
 0xa69   : > { %22389 = vmatpush3.bf16.msra.mxu1 %v24638_v10 }
 0xa6a   : > { %22418 = vmatprep.subr.bf16.mxu1 %v24639_v24  ;;  %v24668_v24 = vld [vmem:[%s31445_s3 + $0x20b0] sm:$0xff]  }
 0xa6c   : > { %18391 = vmatmul.mubr.bf16.vlgmr.msra.gmra.mrb[192].mxu1 %v6673_v28 }
 0xa6d   : > { %22419 = vmatpush3.bf16.msra.mxu1 %v24640_v23  ;;  %18470 = vmatprep.mubr.bf16.mxu1 %v6678_v3  ;;  %v6105_v23 = vadd.f32 %v30766_v26, %v32865_v14  ;;  %v32866_v3 = vld [vmem:[#allocation287_spill] sm:$0xff]  ;;  %v24696_v14 = vld [vmem:[%s31445_s3 + $0x22a0] sm:$0xff]  }
 0xa6e   : > { %22420 = vmatprep.subr.bf16.mxu1 %v24641_v55  ;;  %v24669_v55 = vld [vmem:[%s31445_s3 + $0x20f8] sm:$0xff]  }
 0xa71   : > { %22421 = vmatpush3.bf16.msra.mxu1 %v24642_v60  ;;  %v6110_v60 = vadd.f32 %v30766_v26, %v32866_v3 }
 0xa72   : > { %22422 = vmatprep.subr.bf16.mxu1 %v24643_v39 }
 0xa75   : > { %22423 = vmatpush3.bf16.msra.mxu1 %v24644_v51  ;;  %v24670_v51 = vld [vmem:[%s31445_s3 + $0x20b8] sm:$0xff]  }
 0xa76   : > { %22424 = vmatprep.subr.bf16.mxu1 %v24645_v11 }
 0xa79   : > { %22425 = vmatpush3.bf16.msra.mxu1 %v24646_v32  ;;  %v6249_v32 = vmax.f32 %v6105_v23, 0.0  ;;  %v24697_v23 = vld [vmem:[%s31445_s3 + $0x22e8] sm:$0xff]  }
 0xa7a   : > { %22426 = vmatprep.subr.bf16.mxu1 %v24647_v58  ;;  %v24671_v58 = vld [vmem:[%s31445_s3 + $0x21c0] sm:$0xff]  }
 0xa7d   : > { %22427 = vmatpush3.bf16.msra.mxu1 %v24648_v44  ;;  %v6254_v44 = vmax.f32 %v6110_v60, 0.0 }
 0xa7e   : > { %22428 = vmatprep.subr.bf16.mxu1 %v24649_v21  ;;  %v24672_v21 = vld [vmem:[%s31445_s3 + $0x2180] sm:$0xff]  }
 0xa7f   : > { %v22126_v18 = vpop.f32.mrb[168].mxu1 }
 0xa80   : > { %v22127_v52 = vpop.f32.mrb[169].mxu1 }
 0xa81   : > { %v22128_v54 = vadd.f32 %v22127_v52, %v22126_v18  ;;  %v22129_v9 = vpop.f32.mrb[170].mxu1  ;;  %22429 = vmatpush3.bf16.msra.mxu1 %v24650_v63  ;;  %v6681_v63 = vpack.c.bf16 %v6249_v32, %v6249_v32  ;;  %v6686_v18 = vpack.c.bf16 %v6254_v44, %v6254_v44  ;;  %v24675_v52 = vld [vmem:[%s31445_s3 + $0x21d0] sm:$0xff]   ;;  %v32869_v32 = vld [vmem:[#allocation28_spill] sm:$0xff] }
 0xa82   : > { %v22130_v48 = vpop.f32.mrb[171].mxu1  ;;  %22430 = vmatprep.subr.bf16.mxu1 %v24651_v12  ;;  %v24673_v12 = vld [vmem:[%s31445_s3 + $0x21c8] sm:$0xff]   ;;  %v24677_v9 = vld [vmem:[%s31445_s3 + $0x21d8] sm:$0xff]  }
 0xa83   : > { %v17913_v34 = vadd.f32 %v22128_v54, %v17873_v36  ;;  %v24676_v54 = vld [vmem:[%s31445_s3 + $0x2190] sm:$0xff]   ;;  %v24681_v48 = vld [vmem:[%s31445_s3 + $0x21e8] sm:$0xff]  }
 0xa85   : > { %22431 = vmatpush3.bf16.msra.mxu1 %v24652_v5  ;;  %v17953_v20 = vadd.f32 %v29334_v1, %v17913_v34  ;;  %v24658_v1 = vld [vmem:[%s31445_s3 + $0x2088] sm:$0xff]   ;;  %v24678_v5 = vld [vmem:[%s31445_s3 + $0x2198] sm:$0xff]  }
 0xa86   : > { %22432 = vmatprep.subr.bf16.mxu1 %v24653_v50  ;;  %v24682_v50 = vld [vmem:[%s31445_s3 + $0x21a8] sm:$0xff]  }
 0xa89   : > { %22433 = vmatpush3.bf16.msra.mxu1 %v24654_v25 }
 0xa8a   : > { %22462 = vmatprep.subr.bf16.mxu1 %v24655_v53  ;;  %v32867_v53 = vld [vmem:[#allocation165_spill] sm:$0xff] }
 0xa8b   : > { %v6109_v2 = vadd.f32 %v30766_v26, %v32867_v53 }
 0xa8c   : > { %18471 = vmatmul.mubr.bf16.vlgmr.msra.gmra.mrb[196].mxu1 %v6677_v57  ;;  %v24685_v57 = vld [vmem:[%s31445_s3 + $0x21f8] sm:$0xff]  }
 0xa8d   : > { %22463 = vmatpush3.bf16.msra.mxu1 %v24656_v41  ;;  %18550 = vmatprep.mubr.bf16.mxu1 %v6682_v49 }
 0xa8e   : > { %22464 = vmatprep.subr.bf16.mxu1 %v24657_v56  ;;  %v32868_v56 = vld [vmem:[#allocation29_spill] sm:$0xff] }
 0xa8f   : > { %v6114_v49 = vadd.f32 %v30766_v26, %v32868_v56  ;;  %v24716_v56 = vld [vmem:[%s31445_s3 + $0x23b0] sm:$0xff]  }
 0xa91   : > { %22465 = vmatpush3.bf16.msra.mxu1 %v24658_v1 }
 0xa92   : > { %22466 = vmatprep.subr.bf16.mxu1 %v24659_v31  ;;  %v24686_v31 = vld [vmem:[%s31445_s3 + $0x21b8] sm:$0xff]  }
 0xa95   : > { %22467 = vmatpush3.bf16.msra.mxu1 %v24660_v47 }
 0xa96   : > { %22468 = vmatprep.subr.bf16.mxu1 %v24661_v27  ;;  %v6253_v27 = vmax.f32 %v6109_v2, 0.0 }
 0xa99   : > { %22469 = vmatpush3.bf16.msra.mxu1 %v24662_v16  ;;  %v24687_v16 = vld [vmem:[%s31445_s3 + $0x22c0] sm:$0xff]  }
 0xa9a   : > { %22470 = vmatprep.subr.bf16.mxu1 %v24663_v13  ;;  %v6258_v13 = vmax.f32 %v6114_v49, 0.0  ;;  %v24733_v49 = vld [vmem:[%s31444_s2] ss:$0 sm:$0xff] }
 0xa9d   : > { %22471 = vmatpush3.bf16.msra.mxu1 %v24664_v19  ;;  %v24688_v19 = vld [vmem:[%s31445_s3 + $0x2280] sm:$0xff]  }
 0xa9e   : > { %22472 = vmatprep.subr.bf16.mxu1 %v24665_v33  ;;  %v6685_v33 = vpack.c.bf16 %v6253_v27, %v6253_v27 }
 0xa9f   : > { %v22170_v30 = vpop.f32.mrb[172].mxu1 }
 0xaa0   : > { %v22171_v10 = vpop.f32.mrb[173].mxu1 }
 0xaa1   : > { %v22172_v36 = vadd.f32 %v22171_v10, %v22170_v30  ;;  %v22173_v15 = vpop.f32.mrb[174].mxu1  ;;  %22473 = vmatpush3.bf16.msra.mxu1 %v24666_v61  ;;  %v24689_v61 = vld [vmem:[%s31445_s3 + $0x22c8] sm:$0xff]   ;;  %v24691_v30 = vld [vmem:[%s31445_s3 + $0x22d0] sm:$0xff]  }
 0xaa2   : > { %v22174_v28 = vpop.f32.mrb[175].mxu1  ;;  %22474 = vmatprep.subr.bf16.mxu1 %v24667_v59  ;;  %v6690_v59 = vpack.c.bf16 %v6258_v13, %v6258_v13  ;;  %v24692_v10 = vld [vmem:[%s31445_s3 + $0x2290] sm:$0xff]   ;;  %v24694_v15 = vld [vmem:[%s31445_s3 + $0x2298] sm:$0xff]  }
 0xaa3   : > { %v17993_v39 = vadd.f32 %v22172_v36, %v17953_v20  ;;  %v24693_v36 = vld [vmem:[%s31445_s3 + $0x22d8] sm:$0xff]   ;;  %v24698_v28 = vld [vmem:[%s31445_s3 + $0x22a8] sm:$0xff]  }
 0xaa5   : > { %22475 = vmatpush3.bf16.msra.mxu1 %v24668_v24  ;;  %v18033_v11 = vadd.f32 %v29443_v38, %v17993_v39  ;;  %v24674_v38 = vld [vmem:[%s31445_s3 + $0x2188] sm:$0xff]   ;;  %v24695_v24 = vld [vmem:[%s31445_s3 + $0x22e0] sm:$0xff]  }
 0xaa6   : > { %22476 = vmatprep.subr.bf16.mxu1 %v24669_v55  ;;  %v24699_v55 = vld [vmem:[%s31445_s3 + $0x22f0] sm:$0xff]  }
 0xaa9   : > { %22477 = vmatpush3.bf16.msra.mxu1 %v24670_v51 }
 0xaaa   : > { %22506 = vmatprep.subr.bf16.mxu1 %v24671_v58  ;;  %v6113_v58 = vadd.f32 %v30766_v26, %v32869_v32 }
 0xaac   : > { %18551 = vmatmul.mubr.bf16.vlgmr.msra.gmra.mrb[200].mxu1 %v6681_v63  ;;  %v6118_v63 = vadd.f32 %v30766_v26, %v28266_v46  ;;  %v24704_v46 = vld [vmem:[%s31445_s3 + $0x2380] sm:$0xff]  }
 0xaad   : > { %22507 = vmatpush3.bf16.msra.mxu1 %v24672_v21  ;;  %18630 = vmatprep.mubr.bf16.mxu1 %v6686_v18  ;;  %v24701_v21 = vld [vmem:[%s31445_s3 + $0x22f8] sm:$0xff]  }
 0xaae   : > { %22508 = vmatprep.subr.bf16.mxu1 %v24673_v12  ;;  %v24702_v18 = vld [vmem:[%s31445_s3 + $0x22b8] sm:$0xff]  }
 0xab1   : > { %22509 = vmatpush3.bf16.msra.mxu1 %v24674_v38 }
 0xab2   : > { %22510 = vmatprep.subr.bf16.mxu1 %v24675_v52  ;;  %v6257_v52 = vmax.f32 %v6113_v58, 0.0 }
 0xab4   : > { %v6689_v26 = vpack.c.bf16 %v6257_v52, %v6257_v52  ;;  %v24726_v52 = vld [vmem:[%s31447_s5 + $0x38] sm:$0xff]  }
 0xab5   : > { %22511 = vmatpush3.bf16.msra.mxu1 %v24676_v54  ;;  %v24703_v54 = vld [vmem:[%s31445_s3 + $0x23c0] sm:$0xff]  }
 0xab6   : > { %22512 = vmatprep.subr.bf16.mxu1 %v24677_v9  ;;  %v6262_v9 = vmax.f32 %v6118_v63, 0.0  ;;  %v24725_v63 = vld [vmem:[%s31447_s5 + $0x30] sm:$0xff]  }
 0xab9   : > { %22513 = vmatpush3.bf16.msra.mxu1 %v24678_v5  ;;  %v24705_v5 = vld [vmem:[%s31445_s3 + $0x23c8] sm:$0xff]  }
 0xaba   : > { %22514 = vmatprep.subr.bf16.mxu1 %v24679_v29  ;;  %v6694_v29 = vpack.c.bf16 %v6262_v9, %v6262_v9 }
 0xabd   : > { %22515 = vmatpush3.bf16.msra.mxu1 %v24680_v35  ;;  %v24707_v35 = vld [vmem:[%s31445_s3 + $0x23d0] sm:$0xff]  }
 0xabe   : > { %22516 = vmatprep.subr.bf16.mxu1 %v24681_v48  ;;  %v24708_v48 = vld [vmem:[%s31445_s3 + $0x2390] sm:$0xff]  }
 0xabf   : > { %v22214_v17 = vpop.f32.mrb[176].mxu1 }
 0xac0   : > { %v22215_v34 = vpop.f32.mrb[177].mxu1 }
 0xac1   : > { %v22216_v25 = vadd.f32 %v22215_v34, %v22214_v17  ;;  %v22217_v20 = vpop.f32.mrb[178].mxu1  ;;  %22517 = vmatpush3.bf16.msra.mxu1 %v24682_v50  ;;  %v24709_v50 = vld [vmem:[%s31445_s3 + $0x23d8] sm:$0xff]   ;;  %v24711_v17 = vld [vmem:[%s31445_s3 + $0x23e0] sm:$0xff]  }
 0xac2   : > { %v22218_v41 = vpop.f32.mrb[179].mxu1  ;;  %22518 = vmatprep.subr.bf16.mxu1 %v24683_v0  ;;  %v24710_v0 = vld [vmem:[%s31445_s3 + $0x2398] sm:$0xff]   ;;  %v24712_v34 = vld [vmem:[%s31445_s3 + $0x23a0] sm:$0xff]   ;;  %v24714_v20 = vld [vmem:[%s31445_s3 + $0x23a8] sm:$0xff]  }
 0xac3   : > { %v18073_v1 = vadd.f32 %v22216_v25, %v18033_v11  ;;  %v24700_v11 = vld [vmem:[%s31445_s3 + $0x22b0] sm:$0xff]   ;;  %v24713_v25 = vld [vmem:[%s31445_s3 + $0x23e8] sm:$0xff]  }
 0xac5   : > { %22519 = vmatpush3.bf16.msra.mxu1 %v24684_v42  ;;  %v18113_v47 = vadd.f32 %v29552_v4, %v18073_v1  ;;  %v24690_v4 = vld [vmem:[%s31445_s3 + $0x2288] sm:$0xff]   ;;  %v24715_v42 = vld [vmem:[%s31445_s3 + $0x23f0] sm:$0xff]   ;;  %v6117_v1 = vadd.f32 %v24733_v49, %v28251_v62 }
 0xac6   : > { %22520 = vmatprep.subr.bf16.mxu1 %v24685_v57 }
 0xac9   : > { %22521 = vmatpush3.bf16.msra.mxu1 %v24686_v31 }
 0xaca   : > { %22550 = vmatprep.subr.bf16.mxu1 %v24687_v16  ;;  %v24718_v16 = vld [vmem:[%s31445_s3 + $0x23b8] sm:$0xff]  }
 0xacc   : > { %18631 = vmatmul.mubr.bf16.vlgmr.msra.gmra.mrb[204].mxu1 %v6685_v33 }
 0xacd   : > { %22551 = vmatpush3.bf16.msra.mxu1 %v24688_v19  ;;  %18710 = vmatprep.mubr.bf16.mxu1 %v6690_v59  ;;  %v6261_v19 = vmax.f32 %v6117_v1, 0.0 }
 0xace   : > { %22552 = vmatprep.subr.bf16.mxu1 %v24689_v61 }
 0xacf   : > { %v6693_v33 = vpack.c.bf16 %v6261_v19, %v6261_v19 }
 0xad1   : > { %22553 = vmatpush3.bf16.msra.mxu1 %v24690_v4 }
 0xad2   : > { %22554 = vmatprep.subr.bf16.mxu1 %v24691_v30 }
 0xad5   : > { %22555 = vmatpush3.bf16.msra.mxu1 %v24692_v10 }
 0xad6   : > { %22556 = vmatprep.subr.bf16.mxu1 %v24693_v36 }
 0xad9   : > { %22557 = vmatpush3.bf16.msra.mxu1 %v24694_v15 }
 0xada   : > { %22558 = vmatprep.subr.bf16.mxu1 %v24695_v24 }
 0xadd   : > { %22559 = vmatpush3.bf16.msra.mxu1 %v24696_v14 }
 0xade   : > { %22560 = vmatprep.subr.bf16.mxu1 %v24697_v23 }
 0xadf   : > { %v22258_v3 = vpop.f32.mrb[180].mxu1 }
 0xae0   : > { %v22259_v60 = vpop.f32.mrb[181].mxu1 }
 0xae1   : > { %v22260_v39 = vadd.f32 %v22259_v60, %v22258_v3  ;;  %v22261_v51 = vpop.f32.mrb[182].mxu1  ;;  %22561 = vmatpush3.bf16.msra.mxu1 %v24698_v28  ;;  %v24798_v3 = vmov 0.0  }
 0xae2   : > { %v22262_v44 = vpop.f32.mrb[183].mxu1  ;;  %22562 = vmatprep.subr.bf16.mxu1 %v24699_v55  ;;  %23211 = vmatprep.subr.bf16.mxu0 %v24798_v3  ;;  %v24722_v51 = vld [vmem:[%s31447_s5 + $0x18] sm:$0xff]  }
 0xae3   : > { %v18153_v12 = vadd.f32 %v22260_v39, %v18113_v47  ;;  %v24717_v47 = vld [vmem:[%s31445_s3 + $0x23f8] sm:$0xff]   ;;  %v24720_v39 = vld [vmem:[%s31447_s5 + $0x8] sm:$0xff]   ;;  %23227 = vmatprep.mubr.msk.bf16.mxu0 %vm24799_vm2, %v24798_v3 }
 0xae5   : > { %22563 = vmatpush3.bf16.msra.mxu1 %v24700_v11  ;;  %v18193_v38 = vadd.f32 %v29666_v22, %v18153_v12  ;;  %v24706_v22 = vld [vmem:[%s31445_s3 + $0x2388] sm:$0xff]  }
 0xae6   : > { %22564 = vmatprep.subr.bf16.mxu1 %v24701_v21  ;;  %v24724_v11 = vld [vmem:[%s31447_s5 + $0x28] sm:$0xff]  }
 0xae9   : > { %22565 = vmatpush3.bf16.msra.mxu1 %v24702_v18 }
 0xaea   : > { %22594 = vmatprep.subr.bf16.mxu1 %v24703_v54 }
 0xaec   : > { %18711 = vmatmul.mubr.bf16.vlgmr.msra.gmra.mrb[208].mxu1 %v6689_v26 }
 0xaed   : > { %22595 = vmatpush3.bf16.msra.mxu1 %v24704_v46  ;;  %18790 = vmatprep.mubr.bf16.mxu1 %v6694_v29 }
 0xaee   : > { %22596 = vmatprep.subr.bf16.mxu1 %v24705_v5 }
 0xaf1   : > { %22597 = vmatpush3.bf16.msra.mxu1 %v24706_v22 }
 0xaf2   : > { %22598 = vmatprep.subr.bf16.mxu1 %v24707_v35 }
 0xaf5   : > { %22599 = vmatpush3.bf16.msra.mxu1 %v24708_v48 }
 0xaf6   : > { %22600 = vmatprep.subr.bf16.mxu1 %v24709_v50 }
 0xaf9   : > { %22601 = vmatpush3.bf16.msra.mxu1 %v24710_v0 }
 0xafa   : > { %22602 = vmatprep.subr.bf16.mxu1 %v24711_v17 }
 0xafd   : > { %22603 = vmatpush3.bf16.msra.mxu1 %v24712_v34 }
 0xafe   : > { %22604 = vmatprep.subr.bf16.mxu1 %v24713_v25 }
 0xaff   : > { %v22302_v53 = vpop.f32.mrb[184].mxu1 }
 0xb00   : > { %v22303_v2 = vpop.f32.mrb[185].mxu1 }
 0xb01   : > { %v22304_v41 = vadd.f32 %v22303_v2, %v22302_v53  ;;  %v22305_v57 = vpop.f32.mrb[186].mxu1  ;;  %22605 = vmatpush3.bf16.msra.mxu1 %v24714_v20 }
 0xb02   : > { %v22306_v31 = vpop.f32.mrb[187].mxu1  ;;  %22606 = vmatprep.subr.bf16.mxu1 %v24715_v42 }
 0xb03   : > { %v18233_v27 = vadd.f32 %v22304_v41, %v18193_v38 }
 0xb05   : > { %22607 = vmatpush3.bf16.msra.mxu1 %v24716_v56  ;;  %v18273_v13 = vadd.f32 %v29732_v6, %v18233_v27  ;;  %v24719_v6 = vld [vmem:[%s31447_s5] sm:$0xff]  }
 0xb06   : > { %22608 = vmatprep.subr.bf16.mxu1 %v24717_v47  ;;  %23212 = vmatpush3.bf16.msra.mxu0 %v24719_v6 }
 0xb07   : > { %23213 = vmatprep.subr.bf16.mxu0 %v24798_v3 }
 0xb09   : > { %22609 = vmatpush3.bf16.msra.mxu1 %v24718_v16 }
 0xb0a   : > { %23214 = vmatpush3.bf16.msra.mxu0 %v24720_v39 }
 0xb0b   : > { %23215 = vmatprep.subr.bf16.mxu0 %v24798_v3 }
 0xb0c   : > { %18791 = vmatmul.mubr.bf16.vlgmr.msra.gmra.mrb[212].mxu1 %v6693_v33 }
 0xb1f   : > { %v22346_v62 = vpop.f32.mrb[188].mxu1 }
 0xb20   : > { %v22347_v61 = vpop.f32.mrb[189].mxu1 }
 0xb21   : > { %v22348_v59 = vadd.f32 %v22347_v61, %v22346_v62  ;;  %v22349_v4 = vpop.f32.mrb[190].mxu1 }
 0xb22   : > { %v22350_v30 = vpop.f32.mrb[191].mxu1 }
 0xb23   : > { %v18313_v10 = vadd.f32 %v22348_v59, %v18273_v13 }
 0xb25   : > { %v18353_v36 = vadd.f32 %v29786_v7, %v18313_v10  ;;  %v24721_v7 = vld [vmem:[%s31447_s5 + $0x10] sm:$0xff]  }
 0xb26   : > { %23216 = vmatpush3.bf16.msra.mxu0 %v24721_v7 }
 0xb27   : > { %23217 = vmatprep.subr.bf16.mxu0 %v24798_v3 }
 0xb2a   : > { %23218 = vmatpush3.bf16.msra.mxu0 %v24722_v51 }
 0xb2b   : > { %23219 = vmatprep.subr.bf16.mxu0 %v24798_v3 }
 0xb3f   : > { %v22390_v15 = vpop.f32.mrb[192].mxu1 }
 0xb40   : > { %v22391_v24 = vpop.f32.mrb[193].mxu1 }
 0xb41   : > { %v22392_v14 = vadd.f32 %v22391_v24, %v22390_v15  ;;  %v22393_v23 = vpop.f32.mrb[194].mxu1 }
 0xb42   : > { %v22394_v28 = vpop.f32.mrb[195].mxu1 }
 0xb43   : > { %v18393_v55 = vadd.f32 %v22392_v14, %v18353_v36 }
 0xb45   : > { %v18433_v60 = vadd.f32 %v29840_v45, %v18393_v55  ;;  %v24723_v45 = vld [vmem:[%s31447_s5 + $0x20] sm:$0xff]  }
 0xb46   : > { %23220 = vmatpush3.bf16.msra.mxu0 %v24723_v45 }
 0xb47   : > { %23221 = vmatprep.subr.bf16.mxu0 %v24798_v3 }
 0xb4a   : > { %23222 = vmatpush3.bf16.msra.mxu0 %v24724_v11 }
 0xb4b   : > { %23223 = vmatprep.subr.bf16.mxu0 %v24798_v3 }
 0xb4e   : > { %23224 = vmatpush3.bf16.msra.mxu0 %v24725_v63 }
 0xb4f   : > { %23225 = vmatprep.subr.bf16.mxu0 %v24798_v3 }
 0xb52   : > { %23226 = vmatpush3.bf16.msra.mxu0 %v24726_v52 }
 0xb5f   : > { %v22434_v32 = vpop.f32.mrb[196].mxu1 }
 0xb60   : > { %v22435_v58 = vpop.f32.mrb[197].mxu1 }
 0xb61   : > { %v22436_v44 = vadd.f32 %v22435_v58, %v22434_v32  ;;  %v22437_v21 = vpop.f32.mrb[198].mxu1 }
 0xb62   : > { %v22438_v12 = vpop.f32.mrb[199].mxu1 }
 0xb63   : > { %v18473_v18 = vadd.f32 %v22436_v44, %v18433_v60 }
 0xb65   : > { %v18513_v38 = vadd.f32 %v29894_v8, %v18473_v18 }
 0xb7f   : > { %v22478_v54 = vpop.f32.mrb[200].mxu1 }
 0xb80   : > { %v22479_v9 = vpop.f32.mrb[201].mxu1 }
 0xb81   : > { %v22480_v46 = vadd.f32 %v22479_v9, %v22478_v54  ;;  %v22481_v26 = vpop.f32.mrb[202].mxu1 }
 0xb82   : > { %v22482_v5 = vpop.f32.mrb[203].mxu1 }
 0xb83   : > { %v18553_v29 = vadd.f32 %v22480_v46, %v18513_v38 }
 0xb85   : > { %v18593_v22 = vadd.f32 %v29948_v43, %v18553_v29 }
 0xb9f   : > { %v22522_v35 = vpop.f32.mrb[204].mxu1 }
 0xba0   : > { %v22523_v48 = vpop.f32.mrb[205].mxu1 }
 0xba1   : > { %v22524_v50 = vadd.f32 %v22523_v48, %v22522_v35  ;;  %v22525_v0 = vpop.f32.mrb[206].mxu1 }
 0xba2   : > { %v22526_v8 = vpop.f32.mrb[207].mxu1 }
 0xba3   : > { %v18633_v17 = vadd.f32 %v22524_v50, %v18593_v22 }
 0xba5   : > { %v18673_v34 = vadd.f32 %v30002_v40, %v18633_v17  ;;  %v20726_v40 = vld [vmem:[%s31448_s6] ss:$0 sm:$0xff] }
 0xbbf   : > { %v22566_v25 = vpop.f32.mrb[208].mxu1 }
 0xbc0   : > { %v22567_v20 = vpop.f32.mrb[209].mxu1 }
 0xbc1   : > { %v22568_v42 = vadd.f32 %v22567_v20, %v22566_v25  ;;  %v22569_v53 = vpop.f32.mrb[210].mxu1 }
 0xbc2   : > { %v22570_v2 = vpop.f32.mrb[211].mxu1 }
 0xbc3   : > { %v18713_v41 = vadd.f32 %v22568_v42, %v18673_v34 }
 0xbc5   : > { %v18753_v57 = vadd.f32 %v30056_v37, %v18713_v41 }
 0xbdf   : > { %v22610_v56 = vpop.f32.mrb[212].mxu1 }
 0xbe0   : > { %v22611_v43 = vpop.f32.mrb[213].mxu1 }
 0xbe1   : > { %v22612_v49 = vadd.f32 %v22611_v43, %v22610_v56  ;;  %v22613_v1 = vpop.f32.mrb[214].mxu1 }
 0xbe2   : > { %v22614_v31 = vpop.f32.mrb[215].mxu1 }
 0xbe3   : > { %v18793_v47 = vadd.f32 %v22612_v49, %v18753_v57 }
 0xbe5   : > { %v18798_v27 = vmax.f32 %v18793_v47, 0.0 }
 0xbe7   : > { %v18799_v16 = vpack.c.bf16 %v18798_v27, %v18798_v27 }
 0xbe9   : > { %23228 = vmatmul.mubr.bf16.vlgmr.msra.gmra.mrb[136].mxu0 %v18799_v16 }
 0xcbc   : > { %v18905_v37 = vpop.f32.mrb[136].mxu0 }
 0xcbd   : > { %v18906_v13 = vadd.f32 %v20726_v40, %v18905_v37  ;;  %v23229_v19 = vpop.f32.mrb[137].mxu0 }
 0xcbe   : > { %v18908_v33 = vpop.f32.mrb[138].mxu0 }
 0xcbf   : > { %18911 = vst [vmem:[%s271_s14] sm:$0xff] %v18906_v13  ;;  %v23230_v62 = vpop.f32.mrb[139].mxu0 }
 0xcc0   : > { %24747 = shalt.err (!%p24744_p3)
}
 0xcc1   : > { %s24748_s8 = scalar_lea.hbm %s31400_s18, 128  ;;  %s24752_s9 = scalar_lea.hbm %s31449_s7, 256 }
 0xcc2   : > { %p24749_p4 = scmp.ne.s32.totalorder %s31400_s18, %s24748_s8  ;;  %p24753_p9 = scmp.lt.u32.totalorder %s31400_s18, %s31449_s7 }
 0xcc3   : > { %p24754_p10 = scmp.lt.u32.totalorder %s24752_s9, %s24748_s8  ;;  %p24756_p12 = scmp.lt.u32.totalorder %s24748_s8, %s31400_s18 }
 0xcc4   : > { %p24750_p7 = pnand %p24749_p4, %p24879_p5 }
 0xcc5   : > { %p24755_p11 = por %p24754_p10, %p24753_p9 }
 0xcc6   : > { %p24751_p8 = pneg %p24750_p7 }
 0xcc7   : > { %p24757_p13 = por %p24756_p12, %p24755_p11 }
 0xcc9   : > { %p24758_p0 = pnand %p24757_p13, %p24751_p8 }
 0xccb   : > { %24761 = shalt.err (!%p24758_p0)
}
 0xccc   : > { %23233 = dma.vmem_to_hbm [thread:$0]  (%p24879_p5), %s31402_s15, 128, %s31400_s18, %s18913_s19  }
 0xccd PF: > { %p23239_p1 = scmp.ge.s32.totalorder %s24796_s27, 2  ;;  %s18938_s16 = sand.u32 1, %s24784_s24  }
 0xcce   : > { %s18939_s17 = scalar_lea.sflag [#allocation4], %s18938_s16 }
 0xccf   : > { %p23236_p2 = pnand %p23239_p1, %p24883_p6 }
 0xcd1   : > { %24779 = dma.done.wait (!%p23236_p2), %s18939_s17, 128  }
 0xcd2   : > { %24781 = vsyncadd (!%p23236_p2), %s18939_s17, 4294967168  ;;  %p17_p3 = scmp.ge.s32.totalorder %s24866_s30, 4   ;;  %s32870_s24 = smov %s24788_s25 }
 0xcd3   : > { %s32871_s25 = smov %s24792_s26  ;;  %s32872_s26 = smov %s24877_s10 }
 0xcd4   : > { %s32873_s27 = smov %s24866_s30  ;;  %19 = sbr.rel (!%p17_p3) target bundleno = 3 (0x3), region = 83 }
 0xcdb   :  { %18944 = vsyncpa [#allocation4], 1 }
 0xcdc   :  { %18946 = vsyncpa [#allocation4 + $0x1], 1 }

</bundles_post_ra>
